<compile_context>
chip_gen: v6e
topology: v6e:2x2x1
jax: 0.10.0
libtpu: 0.0.40
codegen_flags: <defaults>
</compile_context>

<pallas_src>
import functools

import jax
import jax.numpy as jnp
from jax.experimental import pallas as pl
from jax.experimental.pallas import tpu as pltpu


# ----------------------------- tiled matmul --------------------------------

def _matmul_bias_kernel(x_ref, w_ref, b_ref, o_ref):
    y = jnp.dot(x_ref[...], w_ref[...], preferred_element_type=jnp.float32)
    o_ref[...] = (y + b_ref[...]).astype(o_ref.dtype)


def _pick_tile(dim, target, quantum):
    """Largest tile <= target that divides dim (quantum-aligned), else dim."""
    if dim <= target:
        return dim
    t = (target // quantum) * quantum
    while t >= quantum:
        if dim % t == 0:
            return t
        t -= quantum
    return dim


def matmul_bias(x, w, b):
    """y = x @ w + b, gridded over (M, N); bf16 MXU operands, f32 accumulate."""
    M, K = x.shape
    N = w.shape[1]
    tm = _pick_tile(M, 512, 8)
    tn = _pick_tile(N, 512, 128)
    return pl.pallas_call(
        _matmul_bias_kernel,
        grid=(M // tm, N // tn),
        in_specs=[
            pl.BlockSpec((tm, K), lambda i, j: (i, 0)),
            pl.BlockSpec((K, tn), lambda i, j: (0, j)),
            pl.BlockSpec((1, tn), lambda i, j: (0, j)),
        ],
        out_specs=pl.BlockSpec((tm, tn), lambda i, j: (i, j)),
        out_shape=jax.ShapeDtypeStruct((M, N), jnp.float32),
        compiler_params=pltpu.CompilerParams(
            dimension_semantics=("parallel", "parallel")),
    )(x.astype(jnp.bfloat16), w.astype(jnp.bfloat16), b)


# --------------------------- 3x3 conv helpers -------------------------------

def _im2col_3x3(xp_ref, H, W, C):
    """Gather the 9 taps from the (H+2, W+2, C) halo scratch -> (H*W, 9*C)."""
    taps = [xp_ref[dy:dy + H, dx:dx + W, :].reshape(H * W, C)
            for dy in range(3) for dx in range(3)]
    return jnp.concatenate(taps, axis=1)


def _fill_halo(xp_ref, interior, H, W):
    """Zero the halo scratch and write the interior (zero border = SAME pad)."""
    xp_ref[...] = jnp.zeros(xp_ref.shape, xp_ref.dtype)
    xp_ref[1:H + 1, 1:W + 1, :] = interior


# ----------------------- fused NAS-cell kernel ------------------------------

def _cell_kernel(arc_ref, x_ref, w3_ref, b3_ref, w1_ref, b1_ref, o_ref,
                 h_ref, xp_ref):
    """One whole NAS cell (all E edges), fully fused.

    Feature map stays in VMEM scratch h_ref across edges.  Per edge e:
      branch 0 (arc==0): 3x3 SAME conv (single K=9*C MXU dot) + ReLU
      branch 1 (arc!=0): 1x1 conv (matmul) + ReLU
      residual        : h <- h + relu(branch(h))
    """
    n = pl.program_id(0)
    H, W, C = o_ref.shape[1], o_ref.shape[2], o_ref.shape[3]
    E = w3_ref.shape[0]

    h_ref[...] = x_ref[0]                                   # (H, W, C) f32

    for e in range(E):
        arc = arc_ref[n, e]

        @pl.when(arc == 0)
        def _(e=e):
            x = h_ref[...]
            _fill_halo(xp_ref, x, H, W)
            patches = _im2col_3x3(xp_ref, H, W, C).astype(jnp.bfloat16)
            y = jnp.dot(patches, w3_ref[e],
                        preferred_element_type=jnp.float32) + b3_ref[e]
            h_ref[...] = x + jnp.maximum(y, 0.0).reshape(H, W, C)

        @pl.when(arc != 0)
        def _(e=e):
            # TODO(synk): a general cfg_ops with >2 branches needs one pl.when
            # per branch; the representative config here has num_branches == 2.
            x = h_ref[...]
            xb = x.reshape(H * W, C).astype(jnp.bfloat16)
            y = jnp.dot(xb, w1_ref[e],
                        preferred_element_type=jnp.float32) + b1_ref[e]
            h_ref[...] = x + jnp.maximum(y, 0.0).reshape(H, W, C)

    o_ref[0] = h_ref[...]


def nas_cell(h, arcs_cell, w3, b3, w1, b1):
    """Apply one NAS cell (E residual mixed-op edges) to NHWC feature map h."""
    N, H, W, C = h.shape
    E = w3.shape[0]
    return pl.pallas_call(
        _cell_kernel,
        grid_spec=pltpu.PrefetchScalarGridSpec(
            num_scalar_prefetch=1,
            grid=(N,),
            in_specs=[
                pl.BlockSpec((1, H, W, C), lambda n, arcs: (n, 0, 0, 0)),
                pl.BlockSpec((E, 9 * C, C), lambda n, arcs: (0, 0, 0)),
                pl.BlockSpec((E, 1, C), lambda n, arcs: (0, 0, 0)),
                pl.BlockSpec((E, C, C), lambda n, arcs: (0, 0, 0)),
                pl.BlockSpec((E, 1, C), lambda n, arcs: (0, 0, 0)),
            ],
            out_specs=pl.BlockSpec((1, H, W, C), lambda n, arcs: (n, 0, 0, 0)),
            scratch_shapes=[
                pltpu.VMEM((H, W, C), jnp.float32),          # resident h
                pltpu.VMEM((H + 2, W + 2, C), jnp.float32),  # 3x3 halo
            ],
        ),
        out_shape=jax.ShapeDtypeStruct((N, H, W, C), jnp.float32),
        compiler_params=pltpu.CompilerParams(
            dimension_semantics=("parallel",)),
    )(arcs_cell, h, w3, b3, w1, b1)


# -------------------- BatchNorm statistics (tiled reduce) -------------------

def _bn_stats_kernel(x_ref, stats_ref):
    n = pl.program_id(0)

    @pl.when(n == 0)
    def _():
        stats_ref[...] = jnp.zeros_like(stats_ref)

    H, W, C = x_ref.shape[1], x_ref.shape[2], x_ref.shape[3]
    x = x_ref[0].reshape(H * W, C)
    stats_ref[0:1, :] += jnp.sum(x, axis=0, keepdims=True)
    stats_ref[1:2, :] += jnp.sum(x * x, axis=0, keepdims=True)


def bn_batch_stats(h):
    N, H, W, C = h.shape
    stats = pl.pallas_call(
        _bn_stats_kernel,
        grid=(N,),
        in_specs=[pl.BlockSpec((1, H, W, C), lambda n: (n, 0, 0, 0))],
        out_specs=pl.BlockSpec((2, C), lambda n: (0, 0)),
        out_shape=jax.ShapeDtypeStruct((2, C), jnp.float32),
        compiler_params=pltpu.CompilerParams(
            dimension_semantics=("arbitrary",)),
    )(h)
    cnt = float(N * H * W)
    mean = stats[0] / cnt
    var = jnp.maximum(stats[1] / cnt - mean * mean, 0.0)   # biased (train-mode)
    return mean, var


# --------------- fused to_rgb: BN-norm + ReLU + conv3x3 + tanh --------------

def _to_rgb_kernel(x_ref, scale_ref, shift_ref, w_ref, b_ref, o_ref, xp_ref):
    H, W, C = x_ref.shape[1], x_ref.shape[2], x_ref.shape[3]
    x = x_ref[0].reshape(H * W, C)
    xn = jnp.maximum(x * scale_ref[...] + shift_ref[...], 0.0)   # BN + ReLU
    _fill_halo(xp_ref, xn.reshape(H, W, C), H, W)
    patches = _im2col_3x3(xp_ref, H, W, C).astype(jnp.bfloat16)
    y = jnp.dot(patches, w_ref[...],
                preferred_element_type=jnp.float32) + b_ref[...]
    o_ref[0] = jnp.tanh(y).reshape(H, W, o_ref.shape[3])


def to_rgb(h, scale, shift, w_rgb, b_rgb):
    N, H, W, C = h.shape
    Cp = w_rgb.shape[1]          # 128: lane-dense (unmasked) output stores
    out = pl.pallas_call(
        _to_rgb_kernel,
        grid=(N,),
        in_specs=[
            pl.BlockSpec((1, H, W, C), lambda n: (n, 0, 0, 0)),
            pl.BlockSpec((1, C), lambda n: (0, 0)),
            pl.BlockSpec((1, C), lambda n: (0, 0)),
            pl.BlockSpec((9 * C, Cp), lambda n: (0, 0)),
            pl.BlockSpec((1, Cp), lambda n: (0, 0)),
        ],
        out_specs=pl.BlockSpec((1, H, W, Cp), lambda n: (n, 0, 0, 0)),
        out_shape=jax.ShapeDtypeStruct((N, H, W, Cp), jnp.float32),
        scratch_shapes=[pltpu.VMEM((H + 2, W + 2, C), jnp.float32)],
        compiler_params=pltpu.CompilerParams(
            dimension_semantics=("parallel",)),
    )(h, scale, shift, w_rgb, b_rgb)
    return out[..., :3]          # drop the lane padding


# ------------------------- parameter initialization ------------------------

def _xavier_uniform(key, shape, fan_in, fan_out):
    bound = (6.0 / (fan_in + fan_out)) ** 0.5
    return jax.random.uniform(key, shape, jnp.float32, -bound, bound)


def init_params(key, cfg):
    dim_z, lch = cfg["dim_z"], cfg["linear_ch"]
    bw, ch = cfg["bottom_width"], cfg["ch"]
    E = cfg["num_edges_of_cell"]
    keys = iter(jax.random.split(key, 256))
    p = {}

    # l1: Linear(dim_z -> bw*bw*linear_ch); column order = c*bw*bw + y*bw + x
    out_l1 = bw * bw * lch
    p["l1_w"] = _xavier_uniform(next(keys), (dim_z, out_l1), dim_z, out_l1)
    p["l1_b"] = jnp.zeros((out_l1,), jnp.float32)

    # conv1: 1x1 Conv2d(linear_ch -> ch)
    p["conv1_w"] = _xavier_uniform(next(keys), (lch, ch), lch, ch)
    p["conv1_b"] = jnp.zeros((1, ch), jnp.float32)

    # cells: per edge, branch0 = 3x3 conv (tap-major (9*C, C)), branch1 = 1x1;
    # per-cell weights stacked along a leading edge axis for the fused kernel.
    for ci in range(cfg["num_cells"]):
        w3 = jnp.stack([_xavier_uniform(next(keys), (9 * ch, ch), 9 * ch, ch)
                        for _ in range(E)])
        w1 = jnp.stack([_xavier_uniform(next(keys), (ch, ch), ch, ch)
                        for _ in range(E)])
        p[f"c{ci}_w3"] = w3.astype(jnp.bfloat16)           # (E, 9*ch, ch)
        p[f"c{ci}_b3"] = jnp.zeros((E, 1, ch), jnp.float32)
        p[f"c{ci}_w1"] = w1.astype(jnp.bfloat16)           # (E, ch, ch)
        p[f"c{ci}_b1"] = jnp.zeros((E, 1, ch), jnp.float32)

    # out_bn affine params: weight ~ N(1, 0.02), bias = 0
    p["bn_g"] = 1.0 + 0.02 * jax.random.normal(next(keys), (ch,), jnp.float32)
    p["bn_b"] = jnp.zeros((ch,), jnp.float32)

    # to_rgb conv: 3x3 Conv2d(ch -> 3); output channels zero-padded to 128
    w_rgb = _xavier_uniform(next(keys), (9 * ch, 3), 9 * ch, 3)
    p["rgb_w"] = jnp.pad(w_rgb, ((0, 0), (0, 125))).astype(jnp.bfloat16)
    p["rgb_b"] = jnp.zeros((1, 128), jnp.float32)
    return p


# ------------------------------ forward pass --------------------------------

def dense_generator_forward(params, z, batched_arcs, cfg):
    dim_z, lch = cfg["dim_z"], cfg["linear_ch"]
    bw, ch = cfg["bottom_width"], cfg["ch"]
    E = cfg["num_edges_of_cell"]
    N = z.shape[0]

    # --- l1 + view(N, lch, bw, bw) + 1x1 conv1, folded into one matmul whose
    #     columns are already in NHWC order (position-major, channel-minor). ---
    l1_w = params["l1_w"].reshape(dim_z, lch, bw * bw)
    l1_b = params["l1_b"].reshape(lch, bw * bw)
    w_fused = jnp.einsum("zcp,ck->zpk", l1_w, params["conv1_w"]).reshape(
        dim_z, bw * bw * ch)
    b_fused = (jnp.einsum("cp,ck->pk", l1_b, params["conv1_w"]) +
               params["conv1_b"]).reshape(1, bw * bw * ch)
    h = matmul_bias(z, w_fused, b_fused).reshape(N, bw, bw, ch)    # NHWC

    for ci in range(cfg["num_cells"]):
        # TODO(synk): cfg_upsample is config-defined; nearest-neighbour 2x
        # assumed.  Kept as a tiny XLA repeat (fusing the interleave into the
        # cell kernel needs a sublane-strided store Mosaic doesn't expose).
        h = jnp.repeat(jnp.repeat(h, 2, axis=1), 2, axis=2)
        # TODO(synk): exact NAS cell topology comes from cfg_cell/cfg_ops; a
        # sequential residual chain of per-edge 2-branch mixed ops is used.
        arcs_cell = batched_arcs[:, ci * E:(ci + 1) * E].astype(jnp.int32)
        h = nas_cell(h, arcs_cell,
                     params[f"c{ci}_w3"], params[f"c{ci}_b3"],
                     params[f"c{ci}_w1"], params[f"c{ci}_b1"])

    # --- to_rgb: BN(batch stats) -> ReLU -> 3x3 conv -> tanh (fused) ---
    mean, var = bn_batch_stats(h)
    scale_vec = params["bn_g"] * jax.lax.rsqrt(var + 1e-5)
    shift_vec = params["bn_b"] - mean * scale_vec
    out = to_rgb(h, scale_vec.reshape(1, ch), shift_vec.reshape(1, ch),
                 params["rgb_w"], params["rgb_b"])
    return jnp.transpose(out, (0, 3, 1, 2))        # NCHW, like PyTorch


# ---------------------------------- main ------------------------------------

if __name__ == "__main__":
    cfg = dict(dim_z=16, linear_ch=8, bottom_width=4, ch=32,
               num_cells=2, num_edges_of_cell=2, num_branches=2)

    root = jax.random.PRNGKey(0)
    k_params, k_z, k_arc = jax.random.split(root, 3)
    params = init_params(k_params, cfg)

    N = 2
    z = jax.random.normal(k_z, (N, cfg["dim_z"]), jnp.float32)
    batched_arcs = jax.random.randint(
        k_arc, (N, cfg["num_cells"] * cfg["num_edges_of_cell"]),
        0, cfg["num_branches"], dtype=jnp.int32)

    fwd = jax.jit(functools.partial(dense_generator_forward, cfg=cfg))
    out = jax.block_until_ready(fwd(params, z, batched_arcs))

    final_hw = cfg["bottom_width"] * (2 ** cfg["num_cells"])
    assert out.shape == (N, 3, final_hw, final_hw), out.shape
    assert out.dtype == jnp.float32
    assert bool(jnp.all(jnp.isfinite(out)))
    print("KERNEL_OK")
</pallas_src>

<mosaic_0001>
module attributes {stable_mosaic.version = 11 : i64} {
  func.func @_matmul_bias_kernel(%arg0: i32, %arg1: i32, %arg2: memref<2x16xbf16, #tpu.memory_space<vmem>>, %arg3: memref<16x512xbf16, #tpu.memory_space<vmem>>, %arg4: memref<1x512xf32, #tpu.memory_space<vmem>>, %arg5: memref<2x512xf32, #tpu.memory_space<vmem>>) attributes {dimension_semantics = [#tpu.dimension_semantics<parallel>, #tpu.dimension_semantics<parallel>], iteration_bounds = array<i64: 1, 1>, scalar_prefetch = 0 : i64, scratch_operands = 0 : i64, tpu.core_type = #tpu.core_type<tc>, window_params = [{transform_indices = @transform_0, window_bounds = array<i64: 2, 16>}, {transform_indices = @transform_1, window_bounds = array<i64: 16, 512>}, {transform_indices = @transform_2, window_bounds = array<i64: 1, 512>}, {transform_indices = @transform_3, window_bounds = array<i64: 2, 512>}]} {
    %c0 = arith.constant 0 : index
    %c0_0 = arith.constant 0 : index
    %0 = vector.load %arg2[%c0, %c0_0] : memref<2x16xbf16, #tpu.memory_space<vmem>>, vector<2x16xbf16>
    %c0_1 = arith.constant 0 : index
    %c0_2 = arith.constant 0 : index
    %1 = vector.load %arg3[%c0_1, %c0_2] : memref<16x512xbf16, #tpu.memory_space<vmem>>, vector<16x512xbf16>
    %cst = arith.constant dense<0.000000e+00> : vector<2x512xf32>
    %2 = tpu.matmul %0, %1, %cst {dimension_numbers = #tpu.dot_dimension_numbers<[1], [0], [0], [1], [0, 0, 1, 1], [], []>} : vector<2x16xbf16>, vector<16x512xbf16>, vector<2x512xf32> -> vector<2x512xf32>
    %c0_3 = arith.constant 0 : index
    %c0_4 = arith.constant 0 : index
    %3 = vector.load %arg4[%c0_3, %c0_4] : memref<1x512xf32, #tpu.memory_space<vmem>>, vector<1x512xf32>
    %4 = vector.broadcast %3 : vector<1x512xf32> to vector<2x512xf32>
    %5 = arith.addf %2, %4 : vector<2x512xf32>
    %c0_5 = arith.constant 0 : index
    %c0_6 = arith.constant 0 : index
    %6 = vector.load %arg5[%c0_5, %c0_6] : memref<2x512xf32, #tpu.memory_space<vmem>>, vector<2x512xf32>
    tpu.vector_store %arg5[%c0_5, %c0_6], %5 {strides = array<i32>} : memref<2x512xf32, #tpu.memory_space<vmem>>, vector<2x512xf32>,
    return
  }
  func.func @transform_0(%arg0: i32, %arg1: i32) -> (i32, i32) {
    %c0_i32 = arith.constant 0 : i32
    %c0_i32_0 = arith.constant 0 : i32
    return %arg0, %c0_i32 : i32, i32
  }
  func.func @transform_1(%arg0: i32, %arg1: i32) -> (i32, i32) {
    %c0_i32 = arith.constant 0 : i32
    %c0_i32_0 = arith.constant 0 : i32
    return %c0_i32, %arg1 : i32, i32
  }
  func.func @transform_2(%arg0: i32, %arg1: i32) -> (i32, i32) {
    %c0_i32 = arith.constant 0 : i32
    %c0_i32_0 = arith.constant 0 : i32
    return %c0_i32, %arg1 : i32, i32
  }
  func.func @transform_3(%arg0: i32, %arg1: i32) -> (i32, i32) {
    %c0_i32 = arith.constant 0 : i32
    return %arg0, %arg1 : i32, i32
  }
}

module attributes {stable_mosaic.version = 11 : i64} {
  func.func @_cell_kernel(%arg0: i32, %arg1: memref<2x2xi32, #tpu.memory_space<smem>>, %arg2: memref<1x8x8x32xf32, #tpu.memory_space<vmem>>, %arg3: memref<2x288x32xbf16, #tpu.memory_space<vmem>>, %arg4: memref<2x1x32xf32, #tpu.memory_space<vmem>>, %arg5: memref<2x32x32xbf16, #tpu.memory_space<vmem>>, %arg6: memref<2x1x32xf32, #tpu.memory_space<vmem>>, %arg7: memref<1x8x8x32xf32, #tpu.memory_space<vmem>>, %arg8: memref<8x8x32xf32, #tpu.memory_space<vmem>>, %arg9: memref<10x10x32xf32, #tpu.memory_space<vmem>>) attributes {dimension_semantics = [#tpu.dimension_semantics<parallel>], iteration_bounds = array<i64: 2>, scalar_prefetch = 1 : i64, scratch_operands = 2 : i64, tpu.core_type = #tpu.core_type<tc>, window_params = [{transform_indices = @transform_0, window_bounds = array<i64: 1, 8, 8, 32>}, {pipeline_mode = #tpu.pipeline_mode<synchronous>, transform_indices = @transform_1, window_bounds = array<i64: 2, 288, 32>}, {pipeline_mode = #tpu.pipeline_mode<synchronous>, transform_indices = @transform_2, window_bounds = array<i64: 2, 1, 32>}, {pipeline_mode = #tpu.pipeline_mode<synchronous>, transform_indices = @transform_3, window_bounds = array<i64: 2, 32, 32>}, {pipeline_mode = #tpu.pipeline_mode<synchronous>, transform_indices = @transform_4, window_bounds = array<i64: 2, 1, 32>}, {transform_indices = @transform_5, window_bounds = array<i64: 1, 8, 8, 32>}]} {
    %c0 = arith.constant 0 : index
    %c0_0 = arith.constant 0 : index
    %c0_1 = arith.constant 0 : index
    %c0_2 = arith.constant 0 : index
    %0 = vector.load %arg2[%c0, %c0_0, %c0_1, %c0_2] : memref<1x8x8x32xf32, #tpu.memory_space<vmem>>, vector<1x8x8x32xf32>
    %1 = vector.shape_cast %0 : vector<1x8x8x32xf32> to vector<8x8x32xf32>
    %c0_3 = arith.constant 0 : index
    %c0_4 = arith.constant 0 : index
    %c0_5 = arith.constant 0 : index
    %2 = vector.load %arg8[%c0_3, %c0_4, %c0_5] : memref<8x8x32xf32, #tpu.memory_space<vmem>>, vector<8x8x32xf32>
    tpu.vector_store %arg8[%c0_3, %c0_4, %c0_5], %1 {strides = array<i32>} : memref<8x8x32xf32, #tpu.memory_space<vmem>>, vector<8x8x32xf32>,
    %3 = arith.index_cast %arg0 : i32 to index
    %c0_6 = arith.constant 0 : index
    %4 = memref.load %arg1[%3, %c0_6] : memref<2x2xi32, #tpu.memory_space<smem>>
    %c0_i32 = arith.constant 0 : i32
    %5 = arith.cmpi eq, %4, %c0_i32 : i32
    %6 = arith.extui %5 : i1 to i32
    %c0_i32_7 = arith.constant 0 : i32
    %7 = arith.cmpi ne, %6, %c0_i32_7 : i32
    scf.if %7 {
      %c0_21 = arith.constant 0 : index
      %c0_22 = arith.constant 0 : index
      %c0_23 = arith.constant 0 : index
      %23 = vector.load %arg8[%c0_21, %c0_22, %c0_23] : memref<8x8x32xf32, #tpu.memory_space<vmem>>, vector<8x8x32xf32>
      %cst = arith.constant 0.000000e+00 : f32
      %24 = vector.broadcast %cst : f32 to vector<10x10x32xf32>
      %c0_24 = arith.constant 0 : index
      %c0_25 = arith.constant 0 : index
      %c0_26 = arith.constant 0 : index
      %25 = vector.load %arg9[%c0_24, %c0_25, %c0_26] : memref<10x10x32xf32, #tpu.memory_space<vmem>>, vector<10x10x32xf32>
      tpu.vector_store %arg9[%c0_24, %c0_25, %c0_26], %24 {strides = array<i32>} : memref<10x10x32xf32, #tpu.memory_space<vmem>>, vector<10x10x32xf32>,
      %c1_27 = arith.constant 1 : index
      %c1_28 = arith.constant 1 : index
      %c0_29 = arith.constant 0 : index
      %26 = vector.load %arg9[%c1_27, %c1_28, %c0_29] : memref<10x10x32xf32, #tpu.memory_space<vmem>>, vector<8x8x32xf32>
      tpu.vector_store %arg9[%c1_27, %c1_28, %c0_29], %23 {strides = array<i32>} : memref<10x10x32xf32, #tpu.memory_space<vmem>>, vector<8x8x32xf32>,
      %c0_30 = arith.constant 0 : index
      %c0_31 = arith.constant 0 : index
      %c0_32 = arith.constant 0 : index
      %27 = vector.load %arg9[%c0_30, %c0_31, %c0_32] : memref<10x10x32xf32, #tpu.memory_space<vmem>>, vector<8x8x32xf32>
      %28 = vector.shape_cast %27 : vector<8x8x32xf32> to vector<64x32xf32>
      %c0_33 = arith.constant 0 : index
      %c1_34 = arith.constant 1 : index
      %c0_35 = arith.constant 0 : index
      %29 = vector.load %arg9[%c0_33, %c1_34, %c0_35] : memref<10x10x32xf32, #tpu.memory_space<vmem>>, vector<8x8x32xf32>
      %30 = vector.shape_cast %29 : vector<8x8x32xf32> to vector<64x32xf32>
      %c0_36 = arith.constant 0 : index
      %c2 = arith.constant 2 : index
      %c0_37 = arith.constant 0 : index
      %31 = vector.load %arg9[%c0_36, %c2, %c0_37] : memref<10x10x32xf32, #tpu.memory_space<vmem>>, vector<8x8x32xf32>
      %32 = vector.shape_cast %31 : vector<8x8x32xf32> to vector<64x32xf32>
      %c1_38 = arith.constant 1 : index
      %c0_39 = arith.constant 0 : index
      %c0_40 = arith.constant 0 : index
      %33 = vector.load %arg9[%c1_38, %c0_39, %c0_40] : memref<10x10x32xf32, #tpu.memory_space<vmem>>, vector<8x8x32xf32>
      %34 = vector.shape_cast %33 : vector<8x8x32xf32> to vector<64x32xf32>
      %c1_41 = arith.constant 1 : index
      %c1_42 = arith.constant 1 : index
      %c0_43 = arith.constant 0 : index
      %35 = vector.load %arg9[%c1_41, %c1_42, %c0_43] : memref<10x10x32xf32, #tpu.memory_space<vmem>>, vector<8x8x32xf32>
      %36 = vector.shape_cast %35 : vector<8x8x32xf32> to vector<64x32xf32>
      %c1_44 = arith.constant 1 : index
      %c2_45 = arith.constant 2 : index
      %c0_46 = arith.constant 0 : index
      %37 = vector.load %arg9[%c1_44, %c2_45, %c0_46] : memref<10x10x32xf32, #tpu.memory_space<vmem>>, vector<8x8x32xf32>
      %38 = vector.shape_cast %37 : vector<8x8x32xf32> to vector<64x32xf32>
      %c2_47 = arith.constant 2 : index
      %c0_48 = arith.constant 0 : index
      %c0_49 = arith.constant 0 : index
      %39 = vector.load %arg9[%c2_47, %c0_48, %c0_49] : memref<10x10x32xf32, #tpu.memory_space<vmem>>, vector<8x8x32xf32>
      %40 = vector.shape_cast %39 : vector<8x8x32xf32> to vector<64x32xf32>
      %c2_50 = arith.constant 2 : index
      %c1_51 = arith.constant 1 : index
      %c0_52 = arith.constant 0 : index
      %41 = vector.load %arg9[%c2_50, %c1_51, %c0_52] : memref<10x10x32xf32, #tpu.memory_space<vmem>>, vector<8x8x32xf32>
      %42 = vector.shape_cast %41 : vector<8x8x32xf32> to vector<64x32xf32>
      %c2_53 = arith.constant 2 : index
      %c2_54 = arith.constant 2 : index
      %c0_55 = arith.constant 0 : index
      %43 = vector.load %arg9[%c2_53, %c2_54, %c0_55] : memref<10x10x32xf32, #tpu.memory_space<vmem>>, vector<8x8x32xf32>
      %44 = vector.shape_cast %43 : vector<8x8x32xf32> to vector<64x32xf32>
      %45 = tpu.concatenate %28, %30, %32, %34, %36, %38, %40, %42, %44 in 1 : vector<64x32xf32>, vector<64x32xf32>, vector<64x32xf32>, vector<64x32xf32>, vector<64x32xf32>, vector<64x32xf32>, vector<64x32xf32>, vector<64x32xf32>, vector<64x32xf32> -> vector<64x288xf32>
      %46 = arith.truncf %45 : vector<64x288xf32> to vector<64x288xbf16>
      %c0_56 = arith.constant 0 : index
      %c0_57 = arith.constant 0 : index
      %c0_58 = arith.constant 0 : index
      %47 = vector.load %arg3[%c0_56, %c0_57, %c0_58] : memref<2x288x32xbf16, #tpu.memory_space<vmem>>, vector<1x288x32xbf16>
      %48 = vector.shape_cast %47 : vector<1x288x32xbf16> to vector<288x32xbf16>
      %cst_59 = arith.constant dense<0.000000e+00> : vector<64x32xf32>
      %49 = tpu.matmul %46, %48, %cst_59 {dimension_numbers = #tpu.dot_dimension_numbers<[1], [0], [0], [1], [0, 0, 1, 1], [], []>} : vector<64x288xbf16>, vector<288x32xbf16>, vector<64x32xf32> -> vector<64x32xf32>
      %c0_60 = arith.constant 0 : index
      %c0_61 = arith.constant 0 : index
      %c0_62 = arith.constant 0 : index
      %50 = vector.load %arg4[%c0_60, %c0_61, %c0_62] : memref<2x1x32xf32, #tpu.memory_space<vmem>>, vector<1x1x32xf32>
      %51 = vector.shape_cast %50 : vector<1x1x32xf32> to vector<1x32xf32>
      %52 = vector.broadcast %51 : vector<1x32xf32> to vector<64x32xf32>
      %53 = arith.addf %49, %52 : vector<64x32xf32>
      %cst_63 = arith.constant 0.000000e+00 : f32
      %54 = vector.broadcast %cst_63 : f32 to vector<64x32xf32>
      %55 = arith.maximumf %53, %54 : vector<64x32xf32>
      %56 = vector.shape_cast %55 : vector<64x32xf32> to vector<8x8x32xf32>
      %57 = arith.addf %23, %56 : vector<8x8x32xf32>
      %c0_64 = arith.constant 0 : index
      %c0_65 = arith.constant 0 : index
      %c0_66 = arith.constant 0 : index
      %58 = vector.load %arg8[%c0_64, %c0_65, %c0_66] : memref<8x8x32xf32, #tpu.memory_space<vmem>>, vector<8x8x32xf32>
      tpu.vector_store %arg8[%c0_64, %c0_65, %c0_66], %57 {strides = array<i32>} : memref<8x8x32xf32, #tpu.memory_space<vmem>>, vector<8x8x32xf32>,
    } else {
    }
    %c0_i32_8 = arith.constant 0 : i32
    %8 = arith.cmpi ne, %4, %c0_i32_8 : i32
    %9 = arith.extui %8 : i1 to i32
    %c0_i32_9 = arith.constant 0 : i32
    %10 = arith.cmpi ne, %9, %c0_i32_9 : i32
    scf.if %10 {
      %c0_21 = arith.constant 0 : index
      %c0_22 = arith.constant 0 : index
      %c0_23 = arith.constant 0 : index
      %23 = vector.load %arg8[%c0_21, %c0_22, %c0_23] : memref<8x8x32xf32, #tpu.memory_space<vmem>>, vector<8x8x32xf32>
      %24 = vector.shape_cast %23 : vector<8x8x32xf32> to vector<64x32xf32>
      %25 = arith.truncf %24 : vector<64x32xf32> to vector<64x32xbf16>
      %c0_24 = arith.constant 0 : index
      %c0_25 = arith.constant 0 : index
      %c0_26 = arith.constant 0 : index
      %26 = vector.load %arg5[%c0_24, %c0_25, %c0_26] : memref<2x32x32xbf16, #tpu.memory_space<vmem>>, vector<1x32x32xbf16>
      %27 = vector.shape_cast %26 : vector<1x32x32xbf16> to vector<32x32xbf16>
      %cst = arith.constant dense<0.000000e+00> : vector<64x32xf32>
      %28 = tpu.matmul %25, %27, %cst {dimension_numbers = #tpu.dot_dimension_numbers<[1], [0], [0], [1], [0, 0, 1, 1], [], []>} : vector<64x32xbf16>, vector<32x32xbf16>, vector<64x32xf32> -> vector<64x32xf32>
      %c0_27 = arith.constant 0 : index
      %c0_28 = arith.constant 0 : index
      %c0_29 = arith.constant 0 : index
      %29 = vector.load %arg6[%c0_27, %c0_28, %c0_29] : memref<2x1x32xf32, #tpu.memory_space<vmem>>, vector<1x1x32xf32>
      %30 = vector.shape_cast %29 : vector<1x1x32xf32> to vector<1x32xf32>
      %31 = vector.broadcast %30 : vector<1x32xf32> to vector<64x32xf32>
      %32 = arith.addf %28, %31 : vector<64x32xf32>
      %cst_30 = arith.constant 0.000000e+00 : f32
      %33 = vector.broadcast %cst_30 : f32 to vector<64x32xf32>
      %34 = arith.maximumf %32, %33 : vector<64x32xf32>
      %35 = vector.shape_cast %34 : vector<64x32xf32> to vector<8x8x32xf32>
      %36 = arith.addf %23, %35 : vector<8x8x32xf32>
      %c0_31 = arith.constant 0 : index
      %c0_32 = arith.constant 0 : index
      %c0_33 = arith.constant 0 : index
      %37 = vector.load %arg8[%c0_31, %c0_32, %c0_33] : memref<8x8x32xf32, #tpu.memory_space<vmem>>, vector<8x8x32xf32>
      tpu.vector_store %arg8[%c0_31, %c0_32, %c0_33], %36 {strides = array<i32>} : memref<8x8x32xf32, #tpu.memory_space<vmem>>, vector<8x8x32xf32>,
    } else {
    }
    %11 = arith.index_cast %arg0 : i32 to index
    %c1 = arith.constant 1 : index
    %12 = memref.load %arg1[%11, %c1] : memref<2x2xi32, #tpu.memory_space<smem>>
    %c0_i32_10 = arith.constant 0 : i32
    %13 = arith.cmpi eq, %12, %c0_i32_10 : i32
    %14 = arith.extui %13 : i1 to i32
    %c0_i32_11 = arith.constant 0 : i32
    %15 = arith.cmpi ne, %14, %c0_i32_11 : i32
    scf.if %15 {
      %c0_21 = arith.constant 0 : index
      %c0_22 = arith.constant 0 : index
      %c0_23 = arith.constant 0 : index
      %23 = vector.load %arg8[%c0_21, %c0_22, %c0_23] : memref<8x8x32xf32, #tpu.memory_space<vmem>>, vector<8x8x32xf32>
      %cst = arith.constant 0.000000e+00 : f32
      %24 = vector.broadcast %cst : f32 to vector<10x10x32xf32>
      %c0_24 = arith.constant 0 : index
      %c0_25 = arith.constant 0 : index
      %c0_26 = arith.constant 0 : index
      %25 = vector.load %arg9[%c0_24, %c0_25, %c0_26] : memref<10x10x32xf32, #tpu.memory_space<vmem>>, vector<10x10x32xf32>
      tpu.vector_store %arg9[%c0_24, %c0_25, %c0_26], %24 {strides = array<i32>} : memref<10x10x32xf32, #tpu.memory_space<vmem>>, vector<10x10x32xf32>,
      %c1_27 = arith.constant 1 : index
      %c1_28 = arith.constant 1 : index
      %c0_29 = arith.constant 0 : index
      %26 = vector.load %arg9[%c1_27, %c1_28, %c0_29] : memref<10x10x32xf32, #tpu.memory_space<vmem>>, vector<8x8x32xf32>
      tpu.vector_store %arg9[%c1_27, %c1_28, %c0_29], %23 {strides = array<i32>} : memref<10x10x32xf32, #tpu.memory_space<vmem>>, vector<8x8x32xf32>,
      %c0_30 = arith.constant 0 : index
      %c0_31 = arith.constant 0 : index
      %c0_32 = arith.constant 0 : index
      %27 = vector.load %arg9[%c0_30, %c0_31, %c0_32] : memref<10x10x32xf32, #tpu.memory_space<vmem>>, vector<8x8x32xf32>
      %28 = vector.shape_cast %27 : vector<8x8x32xf32> to vector<64x32xf32>
      %c0_33 = arith.constant 0 : index
      %c1_34 = arith.constant 1 : index
      %c0_35 = arith.constant 0 : index
      %29 = vector.load %arg9[%c0_33, %c1_34, %c0_35] : memref<10x10x32xf32, #tpu.memory_space<vmem>>, vector<8x8x32xf32>
      %30 = vector.shape_cast %29 : vector<8x8x32xf32> to vector<64x32xf32>
      %c0_36 = arith.constant 0 : index
      %c2 = arith.constant 2 : index
      %c0_37 = arith.constant 0 : index
      %31 = vector.load %arg9[%c0_36, %c2, %c0_37] : memref<10x10x32xf32, #tpu.memory_space<vmem>>, vector<8x8x32xf32>
      %32 = vector.shape_cast %31 : vector<8x8x32xf32> to vector<64x32xf32>
      %c1_38 = arith.constant 1 : index
      %c0_39 = arith.constant 0 : index
      %c0_40 = arith.constant 0 : index
      %33 = vector.load %arg9[%c1_38, %c0_39, %c0_40] : memref<10x10x32xf32, #tpu.memory_space<vmem>>, vector<8x8x32xf32>
      %34 = vector.shape_cast %33 : vector<8x8x32xf32> to vector<64x32xf32>
      %c1_41 = arith.constant 1 : index
      %c1_42 = arith.constant 1 : index
      %c0_43 = arith.constant 0 : index
      %35 = vector.load %arg9[%c1_41, %c1_42, %c0_43] : memref<10x10x32xf32, #tpu.memory_space<vmem>>, vector<8x8x32xf32>
      %36 = vector.shape_cast %35 : vector<8x8x32xf32> to vector<64x32xf32>
      %c1_44 = arith.constant 1 : index
      %c2_45 = arith.constant 2 : index
      %c0_46 = arith.constant 0 : index
      %37 = vector.load %arg9[%c1_44, %c2_45, %c0_46] : memref<10x10x32xf32, #tpu.memory_space<vmem>>, vector<8x8x32xf32>
      %38 = vector.shape_cast %37 : vector<8x8x32xf32> to vector<64x32xf32>
      %c2_47 = arith.constant 2 : index
      %c0_48 = arith.constant 0 : index
      %c0_49 = arith.constant 0 : index
      %39 = vector.load %arg9[%c2_47, %c0_48, %c0_49] : memref<10x10x32xf32, #tpu.memory_space<vmem>>, vector<8x8x32xf32>
      %40 = vector.shape_cast %39 : vector<8x8x32xf32> to vector<64x32xf32>
      %c2_50 = arith.constant 2 : index
      %c1_51 = arith.constant 1 : index
      %c0_52 = arith.constant 0 : index
      %41 = vector.load %arg9[%c2_50, %c1_51, %c0_52] : memref<10x10x32xf32, #tpu.memory_space<vmem>>, vector<8x8x32xf32>
      %42 = vector.shape_cast %41 : vector<8x8x32xf32> to vector<64x32xf32>
      %c2_53 = arith.constant 2 : index
      %c2_54 = arith.constant 2 : index
      %c0_55 = arith.constant 0 : index
      %43 = vector.load %arg9[%c2_53, %c2_54, %c0_55] : memref<10x10x32xf32, #tpu.memory_space<vmem>>, vector<8x8x32xf32>
      %44 = vector.shape_cast %43 : vector<8x8x32xf32> to vector<64x32xf32>
      %45 = tpu.concatenate %28, %30, %32, %34, %36, %38, %40, %42, %44 in 1 : vector<64x32xf32>, vector<64x32xf32>, vector<64x32xf32>, vector<64x32xf32>, vector<64x32xf32>, vector<64x32xf32>, vector<64x32xf32>, vector<64x32xf32>, vector<64x32xf32> -> vector<64x288xf32>
      %46 = arith.truncf %45 : vector<64x288xf32> to vector<64x288xbf16>
      %c1_56 = arith.constant 1 : index
      %c0_57 = arith.constant 0 : index
      %c0_58 = arith.constant 0 : index
      %47 = vector.load %arg3[%c1_56, %c0_57, %c0_58] : memref<2x288x32xbf16, #tpu.memory_space<vmem>>, vector<1x288x32xbf16>
      %48 = vector.shape_cast %47 : vector<1x288x32xbf16> to vector<288x32xbf16>
      %cst_59 = arith.constant dense<0.000000e+00> : vector<64x32xf32>
      %49 = tpu.matmul %46, %48, %cst_59 {dimension_numbers = #tpu.dot_dimension_numbers<[1], [0], [0], [1], [0, 0, 1, 1], [], []>} : vector<64x288xbf16>, vector<288x32xbf16>, vector<64x32xf32> -> vector<64x32xf32>
      %c1_60 = arith.constant 1 : index
      %c0_61 = arith.constant 0 : index
      %c0_62 = arith.constant 0 : index
      %50 = vector.load %arg4[%c1_60, %c0_61, %c0_62] : memref<2x1x32xf32, #tpu.memory_space<vmem>>, vector<1x1x32xf32>
      %51 = vector.shape_cast %50 : vector<1x1x32xf32> to vector<1x32xf32>
      %52 = vector.broadcast %51 : vector<1x32xf32> to vector<64x32xf32>
      %53 = arith.addf %49, %52 : vector<64x32xf32>
      %cst_63 = arith.constant 0.000000e+00 : f32
      %54 = vector.broadcast %cst_63 : f32 to vector<64x32xf32>
      %55 = arith.maximumf %53, %54 : vector<64x32xf32>
      %56 = vector.shape_cast %55 : vector<64x32xf32> to vector<8x8x32xf32>
      %57 = arith.addf %23, %56 : vector<8x8x32xf32>
      %c0_64 = arith.constant 0 : index
      %c0_65 = arith.constant 0 : index
      %c0_66 = arith.constant 0 : index
      %58 = vector.load %arg8[%c0_64, %c0_65, %c0_66] : memref<8x8x32xf32, #tpu.memory_space<vmem>>, vector<8x8x32xf32>
      tpu.vector_store %arg8[%c0_64, %c0_65, %c0_66], %57 {strides = array<i32>} : memref<8x8x32xf32, #tpu.memory_space<vmem>>, vector<8x8x32xf32>,
    } else {
    }
    %c0_i32_12 = arith.constant 0 : i32
    %16 = arith.cmpi ne, %12, %c0_i32_12 : i32
    %17 = arith.extui %16 : i1 to i32
    %c0_i32_13 = arith.constant 0 : i32
    %18 = arith.cmpi ne, %17, %c0_i32_13 : i32
    scf.if %18 {
      %c0_21 = arith.constant 0 : index
      %c0_22 = arith.constant 0 : index
      %c0_23 = arith.constant 0 : index
      %23 = vector.load %arg8[%c0_21, %c0_22, %c0_23] : memref<8x8x32xf32, #tpu.memory_space<vmem>>, vector<8x8x32xf32>
      %24 = vector.shape_cast %23 : vector<8x8x32xf32> to vector<64x32xf32>
      %25 = arith.truncf %24 : vector<64x32xf32> to vector<64x32xbf16>
      %c1_24 = arith.constant 1 : index
      %c0_25 = arith.constant 0 : index
      %c0_26 = arith.constant 0 : index
      %26 = vector.load %arg5[%c1_24, %c0_25, %c0_26] : memref<2x32x32xbf16, #tpu.memory_space<vmem>>, vector<1x32x32xbf16>
      %27 = vector.shape_cast %26 : vector<1x32x32xbf16> to vector<32x32xbf16>
      %cst = arith.constant dense<0.000000e+00> : vector<64x32xf32>
      %28 = tpu.matmul %25, %27, %cst {dimension_numbers = #tpu.dot_dimension_numbers<[1], [0], [0], [1], [0, 0, 1, 1], [], []>} : vector<64x32xbf16>, vector<32x32xbf16>, vector<64x32xf32> -> vector<64x32xf32>
      %c1_27 = arith.constant 1 : index
      %c0_28 = arith.constant 0 : index
      %c0_29 = arith.constant 0 : index
      %29 = vector.load %arg6[%c1_27, %c0_28, %c0_29] : memref<2x1x32xf32, #tpu.memory_space<vmem>>, vector<1x1x32xf32>
      %30 = vector.shape_cast %29 : vector<1x1x32xf32> to vector<1x32xf32>
      %31 = vector.broadcast %30 : vector<1x32xf32> to vector<64x32xf32>
      %32 = arith.addf %28, %31 : vector<64x32xf32>
      %cst_30 = arith.constant 0.000000e+00 : f32
      %33 = vector.broadcast %cst_30 : f32 to vector<64x32xf32>
      %34 = arith.maximumf %32, %33 : vector<64x32xf32>
      %35 = vector.shape_cast %34 : vector<64x32xf32> to vector<8x8x32xf32>
      %36 = arith.addf %23, %35 : vector<8x8x32xf32>
      %c0_31 = arith.constant 0 : index
      %c0_32 = arith.constant 0 : index
      %c0_33 = arith.constant 0 : index
      %37 = vector.load %arg8[%c0_31, %c0_32, %c0_33] : memref<8x8x32xf32, #tpu.memory_space<vmem>>, vector<8x8x32xf32>
      tpu.vector_store %arg8[%c0_31, %c0_32, %c0_33], %36 {strides = array<i32>} : memref<8x8x32xf32, #tpu.memory_space<vmem>>, vector<8x8x32xf32>,
    } else {
    }
    %c0_14 = arith.constant 0 : index
    %c0_15 = arith.constant 0 : index
    %c0_16 = arith.constant 0 : index
    %19 = vector.load %arg8[%c0_14, %c0_15, %c0_16] : memref<8x8x32xf32, #tpu.memory_space<vmem>>, vector<8x8x32xf32>
    %c0_17 = arith.constant 0 : index
    %c0_18 = arith.constant 0 : index
    %c0_19 = arith.constant 0 : index
    %c0_20 = arith.constant 0 : index
    %20 = vector.load %arg7[%c0_17, %c0_18, %c0_19, %c0_20] : memref<1x8x8x32xf32, #tpu.memory_space<vmem>>, vector<1x8x8x32xf32>
    %21 = vector.shape_cast %20 : vector<1x8x8x32xf32> to vector<8x8x32xf32>
    %22 = vector.shape_cast %19 : vector<8x8x32xf32> to vector<1x8x8x32xf32>
    tpu.vector_store %arg7[%c0_17, %c0_18, %c0_19, %c0_20], %22 {strides = array<i32>} : memref<1x8x8x32xf32, #tpu.memory_space<vmem>>, vector<1x8x8x32xf32>,
    return
  }
  func.func @transform_0(%arg0: i32, %arg1: memref<2x2xi32, #tpu.memory_space<smem>>) -> (i32, i32, i32, i32) {
    %c0_i32 = arith.constant 0 : i32
    %c0_i32_0 = arith.constant 0 : i32
    %c0_i32_1 = arith.constant 0 : i32
    %c0_i32_2 = arith.constant 0 : i32
    return %arg0, %c0_i32, %c0_i32_0, %c0_i32_1 : i32, i32, i32, i32
  }
  func.func @transform_1(%arg0: i32, %arg1: memref<2x2xi32, #tpu.memory_space<smem>>) -> (i32, i32, i32) {
    %c0_i32 = arith.constant 0 : i32
    %c0_i32_0 = arith.constant 0 : i32
    %c0_i32_1 = arith.constant 0 : i32
    %c0_i32_2 = arith.constant 0 : i32
    return %c0_i32, %c0_i32_0, %c0_i32_1 : i32, i32, i32
  }
  func.func @transform_2(%arg0: i32, %arg1: memref<2x2xi32, #tpu.memory_space<smem>>) -> (i32, i32, i32) {
    %c0_i32 = arith.constant 0 : i32
    %c0_i32_0 = arith.constant 0 : i32
    %c0_i32_1 = arith.constant 0 : i32
    %c0_i32_2 = arith.constant 0 : i32
    return %c0_i32, %c0_i32_0, %c0_i32_1 : i32, i32, i32
  }
  func.func @transform_3(%arg0: i32, %arg1: memref<2x2xi32, #tpu.memory_space<smem>>) -> (i32, i32, i32) {
    %c0_i32 = arith.constant 0 : i32
    %c0_i32_0 = arith.constant 0 : i32
    %c0_i32_1 = arith.constant 0 : i32
    %c0_i32_2 = arith.constant 0 : i32
    return %c0_i32, %c0_i32_0, %c0_i32_1 : i32, i32, i32
  }
  func.func @transform_4(%arg0: i32, %arg1: memref<2x2xi32, #tpu.memory_space<smem>>) -> (i32, i32, i32) {
    %c0_i32 = arith.constant 0 : i32
    %c0_i32_0 = arith.constant 0 : i32
    %c0_i32_1 = arith.constant 0 : i32
    %c0_i32_2 = arith.constant 0 : i32
    return %c0_i32, %c0_i32_0, %c0_i32_1 : i32, i32, i32
  }
  func.func @transform_5(%arg0: i32, %arg1: memref<2x2xi32, #tpu.memory_space<smem>>) -> (i32, i32, i32, i32) {
    %c0_i32 = arith.constant 0 : i32
    %c0_i32_0 = arith.constant 0 : i32
    %c0_i32_1 = arith.constant 0 : i32
    %c0_i32_2 = arith.constant 0 : i32
    return %arg0, %c0_i32, %c0_i32_0, %c0_i32_1 : i32, i32, i32, i32
  }
}

module attributes {stable_mosaic.version = 11 : i64} {
  func.func @_cell_kernel(%arg0: i32, %arg1: memref<2x2xi32, #tpu.memory_space<smem>>, %arg2: memref<1x16x16x32xf32, #tpu.memory_space<vmem>>, %arg3: memref<2x288x32xbf16, #tpu.memory_space<vmem>>, %arg4: memref<2x1x32xf32, #tpu.memory_space<vmem>>, %arg5: memref<2x32x32xbf16, #tpu.memory_space<vmem>>, %arg6: memref<2x1x32xf32, #tpu.memory_space<vmem>>, %arg7: memref<1x16x16x32xf32, #tpu.memory_space<vmem>>, %arg8: memref<16x16x32xf32, #tpu.memory_space<vmem>>, %arg9: memref<18x18x32xf32, #tpu.memory_space<vmem>>) attributes {dimension_semantics = [#tpu.dimension_semantics<parallel>], iteration_bounds = array<i64: 2>, scalar_prefetch = 1 : i64, scratch_operands = 2 : i64, tpu.core_type = #tpu.core_type<tc>, window_params = [{transform_indices = @transform_0, window_bounds = array<i64: 1, 16, 16, 32>}, {pipeline_mode = #tpu.pipeline_mode<synchronous>, transform_indices = @transform_1, window_bounds = array<i64: 2, 288, 32>}, {pipeline_mode = #tpu.pipeline_mode<synchronous>, transform_indices = @transform_2, window_bounds = array<i64: 2, 1, 32>}, {pipeline_mode = #tpu.pipeline_mode<synchronous>, transform_indices = @transform_3, window_bounds = array<i64: 2, 32, 32>}, {pipeline_mode = #tpu.pipeline_mode<synchronous>, transform_indices = @transform_4, window_bounds = array<i64: 2, 1, 32>}, {transform_indices = @transform_5, window_bounds = array<i64: 1, 16, 16, 32>}]} {
    %c0 = arith.constant 0 : index
    %c0_0 = arith.constant 0 : index
    %c0_1 = arith.constant 0 : index
    %c0_2 = arith.constant 0 : index
    %0 = vector.load %arg2[%c0, %c0_0, %c0_1, %c0_2] : memref<1x16x16x32xf32, #tpu.memory_space<vmem>>, vector<1x16x16x32xf32>
    %1 = vector.shape_cast %0 : vector<1x16x16x32xf32> to vector<16x16x32xf32>
    %c0_3 = arith.constant 0 : index
    %c0_4 = arith.constant 0 : index
    %c0_5 = arith.constant 0 : index
    %2 = vector.load %arg8[%c0_3, %c0_4, %c0_5] : memref<16x16x32xf32, #tpu.memory_space<vmem>>, vector<16x16x32xf32>
    tpu.vector_store %arg8[%c0_3, %c0_4, %c0_5], %1 {strides = array<i32>} : memref<16x16x32xf32, #tpu.memory_space<vmem>>, vector<16x16x32xf32>,
    %3 = arith.index_cast %arg0 : i32 to index
    %c0_6 = arith.constant 0 : index
    %4 = memref.load %arg1[%3, %c0_6] : memref<2x2xi32, #tpu.memory_space<smem>>
    %c0_i32 = arith.constant 0 : i32
    %5 = arith.cmpi eq, %4, %c0_i32 : i32
    %6 = arith.extui %5 : i1 to i32
    %c0_i32_7 = arith.constant 0 : i32
    %7 = arith.cmpi ne, %6, %c0_i32_7 : i32
    scf.if %7 {
      %c0_21 = arith.constant 0 : index
      %c0_22 = arith.constant 0 : index
      %c0_23 = arith.constant 0 : index
      %23 = vector.load %arg8[%c0_21, %c0_22, %c0_23] : memref<16x16x32xf32, #tpu.memory_space<vmem>>, vector<16x16x32xf32>
      %cst = arith.constant 0.000000e+00 : f32
      %24 = vector.broadcast %cst : f32 to vector<18x18x32xf32>
      %c0_24 = arith.constant 0 : index
      %c0_25 = arith.constant 0 : index
      %c0_26 = arith.constant 0 : index
      %25 = vector.load %arg9[%c0_24, %c0_25, %c0_26] : memref<18x18x32xf32, #tpu.memory_space<vmem>>, vector<18x18x32xf32>
      tpu.vector_store %arg9[%c0_24, %c0_25, %c0_26], %24 {strides = array<i32>} : memref<18x18x32xf32, #tpu.memory_space<vmem>>, vector<18x18x32xf32>,
      %c1_27 = arith.constant 1 : index
      %c1_28 = arith.constant 1 : index
      %c0_29 = arith.constant 0 : index
      %26 = vector.load %arg9[%c1_27, %c1_28, %c0_29] : memref<18x18x32xf32, #tpu.memory_space<vmem>>, vector<16x16x32xf32>
      tpu.vector_store %arg9[%c1_27, %c1_28, %c0_29], %23 {strides = array<i32>} : memref<18x18x32xf32, #tpu.memory_space<vmem>>, vector<16x16x32xf32>,
      %c0_30 = arith.constant 0 : index
      %c0_31 = arith.constant 0 : index
      %c0_32 = arith.constant 0 : index
      %27 = vector.load %arg9[%c0_30, %c0_31, %c0_32] : memref<18x18x32xf32, #tpu.memory_space<vmem>>, vector<16x16x32xf32>
      %28 = vector.shape_cast %27 : vector<16x16x32xf32> to vector<256x32xf32>
      %c0_33 = arith.constant 0 : index
      %c1_34 = arith.constant 1 : index
      %c0_35 = arith.constant 0 : index
      %29 = vector.load %arg9[%c0_33, %c1_34, %c0_35] : memref<18x18x32xf32, #tpu.memory_space<vmem>>, vector<16x16x32xf32>
      %30 = vector.shape_cast %29 : vector<16x16x32xf32> to vector<256x32xf32>
      %c0_36 = arith.constant 0 : index
      %c2 = arith.constant 2 : index
      %c0_37 = arith.constant 0 : index
      %31 = vector.load %arg9[%c0_36, %c2, %c0_37] : memref<18x18x32xf32, #tpu.memory_space<vmem>>, vector<16x16x32xf32>
      %32 = vector.shape_cast %31 : vector<16x16x32xf32> to vector<256x32xf32>
      %c1_38 = arith.constant 1 : index
      %c0_39 = arith.constant 0 : index
      %c0_40 = arith.constant 0 : index
      %33 = vector.load %arg9[%c1_38, %c0_39, %c0_40] : memref<18x18x32xf32, #tpu.memory_space<vmem>>, vector<16x16x32xf32>
      %34 = vector.shape_cast %33 : vector<16x16x32xf32> to vector<256x32xf32>
      %c1_41 = arith.constant 1 : index
      %c1_42 = arith.constant 1 : index
      %c0_43 = arith.constant 0 : index
      %35 = vector.load %arg9[%c1_41, %c1_42, %c0_43] : memref<18x18x32xf32, #tpu.memory_space<vmem>>, vector<16x16x32xf32>
      %36 = vector.shape_cast %35 : vector<16x16x32xf32> to vector<256x32xf32>
      %c1_44 = arith.constant 1 : index
      %c2_45 = arith.constant 2 : index
      %c0_46 = arith.constant 0 : index
      %37 = vector.load %arg9[%c1_44, %c2_45, %c0_46] : memref<18x18x32xf32, #tpu.memory_space<vmem>>, vector<16x16x32xf32>
      %38 = vector.shape_cast %37 : vector<16x16x32xf32> to vector<256x32xf32>
      %c2_47 = arith.constant 2 : index
      %c0_48 = arith.constant 0 : index
      %c0_49 = arith.constant 0 : index
      %39 = vector.load %arg9[%c2_47, %c0_48, %c0_49] : memref<18x18x32xf32, #tpu.memory_space<vmem>>, vector<16x16x32xf32>
      %40 = vector.shape_cast %39 : vector<16x16x32xf32> to vector<256x32xf32>
      %c2_50 = arith.constant 2 : index
      %c1_51 = arith.constant 1 : index
      %c0_52 = arith.constant 0 : index
      %41 = vector.load %arg9[%c2_50, %c1_51, %c0_52] : memref<18x18x32xf32, #tpu.memory_space<vmem>>, vector<16x16x32xf32>
      %42 = vector.shape_cast %41 : vector<16x16x32xf32> to vector<256x32xf32>
      %c2_53 = arith.constant 2 : index
      %c2_54 = arith.constant 2 : index
      %c0_55 = arith.constant 0 : index
      %43 = vector.load %arg9[%c2_53, %c2_54, %c0_55] : memref<18x18x32xf32, #tpu.memory_space<vmem>>, vector<16x16x32xf32>
      %44 = vector.shape_cast %43 : vector<16x16x32xf32> to vector<256x32xf32>
      %45 = tpu.concatenate %28, %30, %32, %34, %36, %38, %40, %42, %44 in 1 : vector<256x32xf32>, vector<256x32xf32>, vector<256x32xf32>, vector<256x32xf32>, vector<256x32xf32>, vector<256x32xf32>, vector<256x32xf32>, vector<256x32xf32>, vector<256x32xf32> -> vector<256x288xf32>
      %46 = arith.truncf %45 : vector<256x288xf32> to vector<256x288xbf16>
      %c0_56 = arith.constant 0 : index
      %c0_57 = arith.constant 0 : index
      %c0_58 = arith.constant 0 : index
      %47 = vector.load %arg3[%c0_56, %c0_57, %c0_58] : memref<2x288x32xbf16, #tpu.memory_space<vmem>>, vector<1x288x32xbf16>
      %48 = vector.shape_cast %47 : vector<1x288x32xbf16> to vector<288x32xbf16>
      %cst_59 = arith.constant dense<0.000000e+00> : vector<256x32xf32>
      %49 = tpu.matmul %46, %48, %cst_59 {dimension_numbers = #tpu.dot_dimension_numbers<[1], [0], [0], [1], [0, 0, 1, 1], [], []>} : vector<256x288xbf16>, vector<288x32xbf16>, vector<256x32xf32> -> vector<256x32xf32>
      %c0_60 = arith.constant 0 : index
      %c0_61 = arith.constant 0 : index
      %c0_62 = arith.constant 0 : index
      %50 = vector.load %arg4[%c0_60, %c0_61, %c0_62] : memref<2x1x32xf32, #tpu.memory_space<vmem>>, vector<1x1x32xf32>
      %51 = vector.shape_cast %50 : vector<1x1x32xf32> to vector<1x32xf32>
      %52 = vector.broadcast %51 : vector<1x32xf32> to vector<256x32xf32>
      %53 = arith.addf %49, %52 : vector<256x32xf32>
      %cst_63 = arith.constant 0.000000e+00 : f32
      %54 = vector.broadcast %cst_63 : f32 to vector<256x32xf32>
      %55 = arith.maximumf %53, %54 : vector<256x32xf32>
      %56 = vector.shape_cast %55 : vector<256x32xf32> to vector<16x16x32xf32>
      %57 = arith.addf %23, %56 : vector<16x16x32xf32>
      %c0_64 = arith.constant 0 : index
      %c0_65 = arith.constant 0 : index
      %c0_66 = arith.constant 0 : index
      %58 = vector.load %arg8[%c0_64, %c0_65, %c0_66] : memref<16x16x32xf32, #tpu.memory_space<vmem>>, vector<16x16x32xf32>
      tpu.vector_store %arg8[%c0_64, %c0_65, %c0_66], %57 {strides = array<i32>} : memref<16x16x32xf32, #tpu.memory_space<vmem>>, vector<16x16x32xf32>,
    } else {
    }
    %c0_i32_8 = arith.constant 0 : i32
    %8 = arith.cmpi ne, %4, %c0_i32_8 : i32
    %9 = arith.extui %8 : i1 to i32
    %c0_i32_9 = arith.constant 0 : i32
    %10 = arith.cmpi ne, %9, %c0_i32_9 : i32
    scf.if %10 {
      %c0_21 = arith.constant 0 : index
      %c0_22 = arith.constant 0 : index
      %c0_23 = arith.constant 0 : index
      %23 = vector.load %arg8[%c0_21, %c0_22, %c0_23] : memref<16x16x32xf32, #tpu.memory_space<vmem>>, vector<16x16x32xf32>
      %24 = vector.shape_cast %23 : vector<16x16x32xf32> to vector<256x32xf32>
      %25 = arith.truncf %24 : vector<256x32xf32> to vector<256x32xbf16>
      %c0_24 = arith.constant 0 : index
      %c0_25 = arith.constant 0 : index
      %c0_26 = arith.constant 0 : index
      %26 = vector.load %arg5[%c0_24, %c0_25, %c0_26] : memref<2x32x32xbf16, #tpu.memory_space<vmem>>, vector<1x32x32xbf16>
      %27 = vector.shape_cast %26 : vector<1x32x32xbf16> to vector<32x32xbf16>
      %cst = arith.constant dense<0.000000e+00> : vector<256x32xf32>
      %28 = tpu.matmul %25, %27, %cst {dimension_numbers = #tpu.dot_dimension_numbers<[1], [0], [0], [1], [0, 0, 1, 1], [], []>} : vector<256x32xbf16>, vector<32x32xbf16>, vector<256x32xf32> -> vector<256x32xf32>
      %c0_27 = arith.constant 0 : index
      %c0_28 = arith.constant 0 : index
      %c0_29 = arith.constant 0 : index
      %29 = vector.load %arg6[%c0_27, %c0_28, %c0_29] : memref<2x1x32xf32, #tpu.memory_space<vmem>>, vector<1x1x32xf32>
      %30 = vector.shape_cast %29 : vector<1x1x32xf32> to vector<1x32xf32>
      %31 = vector.broadcast %30 : vector<1x32xf32> to vector<256x32xf32>
      %32 = arith.addf %28, %31 : vector<256x32xf32>
      %cst_30 = arith.constant 0.000000e+00 : f32
      %33 = vector.broadcast %cst_30 : f32 to vector<256x32xf32>
      %34 = arith.maximumf %32, %33 : vector<256x32xf32>
      %35 = vector.shape_cast %34 : vector<256x32xf32> to vector<16x16x32xf32>
      %36 = arith.addf %23, %35 : vector<16x16x32xf32>
      %c0_31 = arith.constant 0 : index
      %c0_32 = arith.constant 0 : index
      %c0_33 = arith.constant 0 : index
      %37 = vector.load %arg8[%c0_31, %c0_32, %c0_33] : memref<16x16x32xf32, #tpu.memory_space<vmem>>, vector<16x16x32xf32>
      tpu.vector_store %arg8[%c0_31, %c0_32, %c0_33], %36 {strides = array<i32>} : memref<16x16x32xf32, #tpu.memory_space<vmem>>, vector<16x16x32xf32>,
    } else {
    }
    %11 = arith.index_cast %arg0 : i32 to index
    %c1 = arith.constant 1 : index
    %12 = memref.load %arg1[%11, %c1] : memref<2x2xi32, #tpu.memory_space<smem>>
    %c0_i32_10 = arith.constant 0 : i32
    %13 = arith.cmpi eq, %12, %c0_i32_10 : i32
    %14 = arith.extui %13 : i1 to i32
    %c0_i32_11 = arith.constant 0 : i32
    %15 = arith.cmpi ne, %14, %c0_i32_11 : i32
    scf.if %15 {
      %c0_21 = arith.constant 0 : index
      %c0_22 = arith.constant 0 : index
      %c0_23 = arith.constant 0 : index
      %23 = vector.load %arg8[%c0_21, %c0_22, %c0_23] : memref<16x16x32xf32, #tpu.memory_space<vmem>>, vector<16x16x32xf32>
      %cst = arith.constant 0.000000e+00 : f32
      %24 = vector.broadcast %cst : f32 to vector<18x18x32xf32>
      %c0_24 = arith.constant 0 : index
      %c0_25 = arith.constant 0 : index
      %c0_26 = arith.constant 0 : index
      %25 = vector.load %arg9[%c0_24, %c0_25, %c0_26] : memref<18x18x32xf32, #tpu.memory_space<vmem>>, vector<18x18x32xf32>
      tpu.vector_store %arg9[%c0_24, %c0_25, %c0_26], %24 {strides = array<i32>} : memref<18x18x32xf32, #tpu.memory_space<vmem>>, vector<18x18x32xf32>,
      %c1_27 = arith.constant 1 : index
      %c1_28 = arith.constant 1 : index
      %c0_29 = arith.constant 0 : index
      %26 = vector.load %arg9[%c1_27, %c1_28, %c0_29] : memref<18x18x32xf32, #tpu.memory_space<vmem>>, vector<16x16x32xf32>
      tpu.vector_store %arg9[%c1_27, %c1_28, %c0_29], %23 {strides = array<i32>} : memref<18x18x32xf32, #tpu.memory_space<vmem>>, vector<16x16x32xf32>,
      %c0_30 = arith.constant 0 : index
      %c0_31 = arith.constant 0 : index
      %c0_32 = arith.constant 0 : index
      %27 = vector.load %arg9[%c0_30, %c0_31, %c0_32] : memref<18x18x32xf32, #tpu.memory_space<vmem>>, vector<16x16x32xf32>
      %28 = vector.shape_cast %27 : vector<16x16x32xf32> to vector<256x32xf32>
      %c0_33 = arith.constant 0 : index
      %c1_34 = arith.constant 1 : index
      %c0_35 = arith.constant 0 : index
      %29 = vector.load %arg9[%c0_33, %c1_34, %c0_35] : memref<18x18x32xf32, #tpu.memory_space<vmem>>, vector<16x16x32xf32>
      %30 = vector.shape_cast %29 : vector<16x16x32xf32> to vector<256x32xf32>
      %c0_36 = arith.constant 0 : index
      %c2 = arith.constant 2 : index
      %c0_37 = arith.constant 0 : index
      %31 = vector.load %arg9[%c0_36, %c2, %c0_37] : memref<18x18x32xf32, #tpu.memory_space<vmem>>, vector<16x16x32xf32>
      %32 = vector.shape_cast %31 : vector<16x16x32xf32> to vector<256x32xf32>
      %c1_38 = arith.constant 1 : index
      %c0_39 = arith.constant 0 : index
      %c0_40 = arith.constant 0 : index
      %33 = vector.load %arg9[%c1_38, %c0_39, %c0_40] : memref<18x18x32xf32, #tpu.memory_space<vmem>>, vector<16x16x32xf32>
      %34 = vector.shape_cast %33 : vector<16x16x32xf32> to vector<256x32xf32>
      %c1_41 = arith.constant 1 : index
      %c1_42 = arith.constant 1 : index
      %c0_43 = arith.constant 0 : index
      %35 = vector.load %arg9[%c1_41, %c1_42, %c0_43] : memref<18x18x32xf32, #tpu.memory_space<vmem>>, vector<16x16x32xf32>
      %36 = vector.shape_cast %35 : vector<16x16x32xf32> to vector<256x32xf32>
      %c1_44 = arith.constant 1 : index
      %c2_45 = arith.constant 2 : index
      %c0_46 = arith.constant 0 : index
      %37 = vector.load %arg9[%c1_44, %c2_45, %c0_46] : memref<18x18x32xf32, #tpu.memory_space<vmem>>, vector<16x16x32xf32>
      %38 = vector.shape_cast %37 : vector<16x16x32xf32> to vector<256x32xf32>
      %c2_47 = arith.constant 2 : index
      %c0_48 = arith.constant 0 : index
      %c0_49 = arith.constant 0 : index
      %39 = vector.load %arg9[%c2_47, %c0_48, %c0_49] : memref<18x18x32xf32, #tpu.memory_space<vmem>>, vector<16x16x32xf32>
      %40 = vector.shape_cast %39 : vector<16x16x32xf32> to vector<256x32xf32>
      %c2_50 = arith.constant 2 : index
      %c1_51 = arith.constant 1 : index
      %c0_52 = arith.constant 0 : index
      %41 = vector.load %arg9[%c2_50, %c1_51, %c0_52] : memref<18x18x32xf32, #tpu.memory_space<vmem>>, vector<16x16x32xf32>
      %42 = vector.shape_cast %41 : vector<16x16x32xf32> to vector<256x32xf32>
      %c2_53 = arith.constant 2 : index
      %c2_54 = arith.constant 2 : index
      %c0_55 = arith.constant 0 : index
      %43 = vector.load %arg9[%c2_53, %c2_54, %c0_55] : memref<18x18x32xf32, #tpu.memory_space<vmem>>, vector<16x16x32xf32>
      %44 = vector.shape_cast %43 : vector<16x16x32xf32> to vector<256x32xf32>
      %45 = tpu.concatenate %28, %30, %32, %34, %36, %38, %40, %42, %44 in 1 : vector<256x32xf32>, vector<256x32xf32>, vector<256x32xf32>, vector<256x32xf32>, vector<256x32xf32>, vector<256x32xf32>, vector<256x32xf32>, vector<256x32xf32>, vector<256x32xf32> -> vector<256x288xf32>
      %46 = arith.truncf %45 : vector<256x288xf32> to vector<256x288xbf16>
      %c1_56 = arith.constant 1 : index
      %c0_57 = arith.constant 0 : index
      %c0_58 = arith.constant 0 : index
      %47 = vector.load %arg3[%c1_56, %c0_57, %c0_58] : memref<2x288x32xbf16, #tpu.memory_space<vmem>>, vector<1x288x32xbf16>
      %48 = vector.shape_cast %47 : vector<1x288x32xbf16> to vector<288x32xbf16>
      %cst_59 = arith.constant dense<0.000000e+00> : vector<256x32xf32>
      %49 = tpu.matmul %46, %48, %cst_59 {dimension_numbers = #tpu.dot_dimension_numbers<[1], [0], [0], [1], [0, 0, 1, 1], [], []>} : vector<256x288xbf16>, vector<288x32xbf16>, vector<256x32xf32> -> vector<256x32xf32>
      %c1_60 = arith.constant 1 : index
      %c0_61 = arith.constant 0 : index
      %c0_62 = arith.constant 0 : index
      %50 = vector.load %arg4[%c1_60, %c0_61, %c0_62] : memref<2x1x32xf32, #tpu.memory_space<vmem>>, vector<1x1x32xf32>
      %51 = vector.shape_cast %50 : vector<1x1x32xf32> to vector<1x32xf32>
      %52 = vector.broadcast %51 : vector<1x32xf32> to vector<256x32xf32>
      %53 = arith.addf %49, %52 : vector<256x32xf32>
      %cst_63 = arith.constant 0.000000e+00 : f32
      %54 = vector.broadcast %cst_63 : f32 to vector<256x32xf32>
      %55 = arith.maximumf %53, %54 : vector<256x32xf32>
      %56 = vector.shape_cast %55 : vector<256x32xf32> to vector<16x16x32xf32>
      %57 = arith.addf %23, %56 : vector<16x16x32xf32>
      %c0_64 = arith.constant 0 : index
      %c0_65 = arith.constant 0 : index
      %c0_66 = arith.constant 0 : index
      %58 = vector.load %arg8[%c0_64, %c0_65, %c0_66] : memref<16x16x32xf32, #tpu.memory_space<vmem>>, vector<16x16x32xf32>
      tpu.vector_store %arg8[%c0_64, %c0_65, %c0_66], %57 {strides = array<i32>} : memref<16x16x32xf32, #tpu.memory_space<vmem>>, vector<16x16x32xf32>,
    } else {
    }
    %c0_i32_12 = arith.constant 0 : i32
    %16 = arith.cmpi ne, %12, %c0_i32_12 : i32
    %17 = arith.extui %16 : i1 to i32
    %c0_i32_13 = arith.constant 0 : i32
    %18 = arith.cmpi ne, %17, %c0_i32_13 : i32
    scf.if %18 {
      %c0_21 = arith.constant 0 : index
      %c0_22 = arith.constant 0 : index
      %c0_23 = arith.constant 0 : index
      %23 = vector.load %arg8[%c0_21, %c0_22, %c0_23] : memref<16x16x32xf32, #tpu.memory_space<vmem>>, vector<16x16x32xf32>
      %24 = vector.shape_cast %23 : vector<16x16x32xf32> to vector<256x32xf32>
      %25 = arith.truncf %24 : vector<256x32xf32> to vector<256x32xbf16>
      %c1_24 = arith.constant 1 : index
      %c0_25 = arith.constant 0 : index
      %c0_26 = arith.constant 0 : index
      %26 = vector.load %arg5[%c1_24, %c0_25, %c0_26] : memref<2x32x32xbf16, #tpu.memory_space<vmem>>, vector<1x32x32xbf16>
      %27 = vector.shape_cast %26 : vector<1x32x32xbf16> to vector<32x32xbf16>
      %cst = arith.constant dense<0.000000e+00> : vector<256x32xf32>
      %28 = tpu.matmul %25, %27, %cst {dimension_numbers = #tpu.dot_dimension_numbers<[1], [0], [0], [1], [0, 0, 1, 1], [], []>} : vector<256x32xbf16>, vector<32x32xbf16>, vector<256x32xf32> -> vector<256x32xf32>
      %c1_27 = arith.constant 1 : index
      %c0_28 = arith.constant 0 : index
      %c0_29 = arith.constant 0 : index
      %29 = vector.load %arg6[%c1_27, %c0_28, %c0_29] : memref<2x1x32xf32, #tpu.memory_space<vmem>>, vector<1x1x32xf32>
      %30 = vector.shape_cast %29 : vector<1x1x32xf32> to vector<1x32xf32>
      %31 = vector.broadcast %30 : vector<1x32xf32> to vector<256x32xf32>
      %32 = arith.addf %28, %31 : vector<256x32xf32>
      %cst_30 = arith.constant 0.000000e+00 : f32
      %33 = vector.broadcast %cst_30 : f32 to vector<256x32xf32>
      %34 = arith.maximumf %32, %33 : vector<256x32xf32>
      %35 = vector.shape_cast %34 : vector<256x32xf32> to vector<16x16x32xf32>
      %36 = arith.addf %23, %35 : vector<16x16x32xf32>
      %c0_31 = arith.constant 0 : index
      %c0_32 = arith.constant 0 : index
      %c0_33 = arith.constant 0 : index
      %37 = vector.load %arg8[%c0_31, %c0_32, %c0_33] : memref<16x16x32xf32, #tpu.memory_space<vmem>>, vector<16x16x32xf32>
      tpu.vector_store %arg8[%c0_31, %c0_32, %c0_33], %36 {strides = array<i32>} : memref<16x16x32xf32, #tpu.memory_space<vmem>>, vector<16x16x32xf32>,
    } else {
    }
    %c0_14 = arith.constant 0 : index
    %c0_15 = arith.constant 0 : index
    %c0_16 = arith.constant 0 : index
    %19 = vector.load %arg8[%c0_14, %c0_15, %c0_16] : memref<16x16x32xf32, #tpu.memory_space<vmem>>, vector<16x16x32xf32>
    %c0_17 = arith.constant 0 : index
    %c0_18 = arith.constant 0 : index
    %c0_19 = arith.constant 0 : index
    %c0_20 = arith.constant 0 : index
    %20 = vector.load %arg7[%c0_17, %c0_18, %c0_19, %c0_20] : memref<1x16x16x32xf32, #tpu.memory_space<vmem>>, vector<1x16x16x32xf32>
    %21 = vector.shape_cast %20 : vector<1x16x16x32xf32> to vector<16x16x32xf32>
    %22 = vector.shape_cast %19 : vector<16x16x32xf32> to vector<1x16x16x32xf32>
    tpu.vector_store %arg7[%c0_17, %c0_18, %c0_19, %c0_20], %22 {strides = array<i32>} : memref<1x16x16x32xf32, #tpu.memory_space<vmem>>, vector<1x16x16x32xf32>,
    return
  }
  func.func @transform_0(%arg0: i32, %arg1: memref<2x2xi32, #tpu.memory_space<smem>>) -> (i32, i32, i32, i32) {
    %c0_i32 = arith.constant 0 : i32
    %c0_i32_0 = arith.constant 0 : i32
    %c0_i32_1 = arith.constant 0 : i32
    %c0_i32_2 = arith.constant 0 : i32
    return %arg0, %c0_i32, %c0_i32_0, %c0_i32_1 : i32, i32, i32, i32
  }
  func.func @transform_1(%arg0: i32, %arg1: memref<2x2xi32, #tpu.memory_space<smem>>) -> (i32, i32, i32) {
    %c0_i32 = arith.constant 0 : i32
    %c0_i32_0 = arith.constant 0 : i32
    %c0_i32_1 = arith.constant 0 : i32
    %c0_i32_2 = arith.constant 0 : i32
    return %c0_i32, %c0_i32_0, %c0_i32_1 : i32, i32, i32
  }
  func.func @transform_2(%arg0: i32, %arg1: memref<2x2xi32, #tpu.memory_space<smem>>) -> (i32, i32, i32) {
    %c0_i32 = arith.constant 0 : i32
    %c0_i32_0 = arith.constant 0 : i32
    %c0_i32_1 = arith.constant 0 : i32
    %c0_i32_2 = arith.constant 0 : i32
    return %c0_i32, %c0_i32_0, %c0_i32_1 : i32, i32, i32
  }
  func.func @transform_3(%arg0: i32, %arg1: memref<2x2xi32, #tpu.memory_space<smem>>) -> (i32, i32, i32) {
    %c0_i32 = arith.constant 0 : i32
    %c0_i32_0 = arith.constant 0 : i32
    %c0_i32_1 = arith.constant 0 : i32
    %c0_i32_2 = arith.constant 0 : i32
    return %c0_i32, %c0_i32_0, %c0_i32_1 : i32, i32, i32
  }
  func.func @transform_4(%arg0: i32, %arg1: memref<2x2xi32, #tpu.memory_space<smem>>) -> (i32, i32, i32) {
    %c0_i32 = arith.constant 0 : i32
    %c0_i32_0 = arith.constant 0 : i32
    %c0_i32_1 = arith.constant 0 : i32
    %c0_i32_2 = arith.constant 0 : i32
    return %c0_i32, %c0_i32_0, %c0_i32_1 : i32, i32, i32
  }
  func.func @transform_5(%arg0: i32, %arg1: memref<2x2xi32, #tpu.memory_space<smem>>) -> (i32, i32, i32, i32) {
    %c0_i32 = arith.constant 0 : i32
    %c0_i32_0 = arith.constant 0 : i32
    %c0_i32_1 = arith.constant 0 : i32
    %c0_i32_2 = arith.constant 0 : i32
    return %arg0, %c0_i32, %c0_i32_0, %c0_i32_1 : i32, i32, i32, i32
  }
}

module attributes {stable_mosaic.version = 11 : i64} {
  func.func @_bn_stats_kernel(%arg0: i32, %arg1: memref<1x16x16x32xf32, #tpu.memory_space<vmem>>, %arg2: memref<2x32xf32, #tpu.memory_space<vmem>>) attributes {dimension_semantics = [#tpu.dimension_semantics<arbitrary>], iteration_bounds = array<i64: 2>, scalar_prefetch = 0 : i64, scratch_operands = 0 : i64, tpu.core_type = #tpu.core_type<tc>, window_params = [{transform_indices = @transform_0, window_bounds = array<i64: 1, 16, 16, 32>}, {pipeline_mode = #tpu.pipeline_mode<synchronous>, transform_indices = @transform_1, window_bounds = array<i64: 2, 32>}]} {
    %c0_i32 = arith.constant 0 : i32
    %0 = arith.cmpi eq, %arg0, %c0_i32 : i32
    %1 = arith.extui %0 : i1 to i32
    %c0_i32_0 = arith.constant 0 : i32
    %2 = arith.cmpi ne, %1, %c0_i32_0 : i32
    scf.if %2 {
      %cst_12 = arith.constant 0.000000e+00 : f32
      %17 = vector.broadcast %cst_12 : f32 to vector<2x32xf32>
      %c0_13 = arith.constant 0 : index
      %c0_14 = arith.constant 0 : index
      %18 = vector.load %arg2[%c0_13, %c0_14] : memref<2x32xf32, #tpu.memory_space<vmem>>, vector<2x32xf32>
      tpu.vector_store %arg2[%c0_13, %c0_14], %17 {strides = array<i32>} : memref<2x32xf32, #tpu.memory_space<vmem>>, vector<2x32xf32>,
    } else {
    }
    %c0 = arith.constant 0 : index
    %c0_1 = arith.constant 0 : index
    %c0_2 = arith.constant 0 : index
    %c0_3 = arith.constant 0 : index
    %3 = vector.load %arg1[%c0, %c0_1, %c0_2, %c0_3] : memref<1x16x16x32xf32, #tpu.memory_space<vmem>>, vector<1x16x16x32xf32>
    %4 = vector.shape_cast %3 : vector<1x16x16x32xf32> to vector<16x16x32xf32>
    %5 = vector.shape_cast %4 : vector<16x16x32xf32> to vector<256x32xf32>
    %c0_4 = arith.constant 0 : index
    %c0_5 = arith.constant 0 : index
    %6 = vector.load %arg2[%c0_4, %c0_5] : memref<2x32xf32, #tpu.memory_space<vmem>>, vector<1x32xf32>
    %cst = arith.constant dense<0.000000e+00> : vector<32xf32>
    %7 = vector.multi_reduction <add>, %5, %cst [0] : vector<256x32xf32> to vector<32xf32>
    %8 = vector.shape_cast %7 : vector<32xf32> to vector<1x32xf32>
    %9 = arith.addf %6, %8 : vector<1x32xf32>
    %c0_6 = arith.constant 0 : index
    %c0_7 = arith.constant 0 : index
    %10 = vector.load %arg2[%c0_6, %c0_7] : memref<2x32xf32, #tpu.memory_space<vmem>>, vector<1x32xf32>
    tpu.vector_store %arg2[%c0_6, %c0_7], %9 {strides = array<i32>} : memref<2x32xf32, #tpu.memory_space<vmem>>, vector<1x32xf32>,
    %c1 = arith.constant 1 : index
    %c0_8 = arith.constant 0 : index
    %11 = vector.load %arg2[%c1, %c0_8] : memref<2x32xf32, #tpu.memory_space<vmem>>, vector<1x32xf32>
    %12 = arith.mulf %5, %5 : vector<256x32xf32>
    %cst_9 = arith.constant dense<0.000000e+00> : vector<32xf32>
    %13 = vector.multi_reduction <add>, %12, %cst_9 [0] : vector<256x32xf32> to vector<32xf32>
    %14 = vector.shape_cast %13 : vector<32xf32> to vector<1x32xf32>
    %15 = arith.addf %11, %14 : vector<1x32xf32>
    %c1_10 = arith.constant 1 : index
    %c0_11 = arith.constant 0 : index
    %16 = vector.load %arg2[%c1_10, %c0_11] : memref<2x32xf32, #tpu.memory_space<vmem>>, vector<1x32xf32>
    tpu.vector_store %arg2[%c1_10, %c0_11], %15 {strides = array<i32>} : memref<2x32xf32, #tpu.memory_space<vmem>>, vector<1x32xf32>,
    return
  }
  func.func @transform_0(%arg0: i32) -> (i32, i32, i32, i32) {
    %c0_i32 = arith.constant 0 : i32
    %c0_i32_0 = arith.constant 0 : i32
    %c0_i32_1 = arith.constant 0 : i32
    %c0_i32_2 = arith.constant 0 : i32
    return %arg0, %c0_i32, %c0_i32_0, %c0_i32_1 : i32, i32, i32, i32
  }
  func.func @transform_1(%arg0: i32) -> (i32, i32) {
    %c0_i32 = arith.constant 0 : i32
    %c0_i32_0 = arith.constant 0 : i32
    %c0_i32_1 = arith.constant 0 : i32
    return %c0_i32, %c0_i32_0 : i32, i32
  }
}

module attributes {stable_mosaic.version = 11 : i64} {
  func.func @_to_rgb_kernel(%arg0: i32, %arg1: memref<1x16x16x32xf32, #tpu.memory_space<vmem>>, %arg2: memref<1x32xf32, #tpu.memory_space<vmem>>, %arg3: memref<1x32xf32, #tpu.memory_space<vmem>>, %arg4: memref<288x128xbf16, #tpu.memory_space<vmem>>, %arg5: memref<1x128xf32, #tpu.memory_space<vmem>>, %arg6: memref<1x16x16x128xf32, #tpu.memory_space<vmem>>, %arg7: memref<18x18x32xf32, #tpu.memory_space<vmem>>) attributes {dimension_semantics = [#tpu.dimension_semantics<parallel>], iteration_bounds = array<i64: 2>, scalar_prefetch = 0 : i64, scratch_operands = 1 : i64, tpu.core_type = #tpu.core_type<tc>, window_params = [{transform_indices = @transform_0, window_bounds = array<i64: 1, 16, 16, 32>}, {pipeline_mode = #tpu.pipeline_mode<synchronous>, transform_indices = @transform_1, window_bounds = array<i64: 1, 32>}, {pipeline_mode = #tpu.pipeline_mode<synchronous>, transform_indices = @transform_2, window_bounds = array<i64: 1, 32>}, {pipeline_mode = #tpu.pipeline_mode<synchronous>, transform_indices = @transform_3, window_bounds = array<i64: 288, 128>}, {pipeline_mode = #tpu.pipeline_mode<synchronous>, transform_indices = @transform_4, window_bounds = array<i64: 1, 128>}, {transform_indices = @transform_5, window_bounds = array<i64: 1, 16, 16, 128>}]} {
    %c0 = arith.constant 0 : index
    %c0_0 = arith.constant 0 : index
    %c0_1 = arith.constant 0 : index
    %c0_2 = arith.constant 0 : index
    %0 = vector.load %arg1[%c0, %c0_0, %c0_1, %c0_2] : memref<1x16x16x32xf32, #tpu.memory_space<vmem>>, vector<1x16x16x32xf32>
    %1 = vector.shape_cast %0 : vector<1x16x16x32xf32> to vector<16x16x32xf32>
    %2 = vector.shape_cast %1 : vector<16x16x32xf32> to vector<256x32xf32>
    %c0_3 = arith.constant 0 : index
    %c0_4 = arith.constant 0 : index
    %3 = vector.load %arg2[%c0_3, %c0_4] : memref<1x32xf32, #tpu.memory_space<vmem>>, vector<1x32xf32>
    %4 = vector.broadcast %3 : vector<1x32xf32> to vector<256x32xf32>
    %5 = arith.mulf %2, %4 : vector<256x32xf32>
    %c0_5 = arith.constant 0 : index
    %c0_6 = arith.constant 0 : index
    %6 = vector.load %arg3[%c0_5, %c0_6] : memref<1x32xf32, #tpu.memory_space<vmem>>, vector<1x32xf32>
    %7 = vector.broadcast %6 : vector<1x32xf32> to vector<256x32xf32>
    %8 = arith.addf %5, %7 : vector<256x32xf32>
    %cst = arith.constant 0.000000e+00 : f32
    %9 = vector.broadcast %cst : f32 to vector<256x32xf32>
    %10 = arith.maximumf %8, %9 : vector<256x32xf32>
    %11 = vector.shape_cast %10 : vector<256x32xf32> to vector<16x16x32xf32>
    %cst_7 = arith.constant 0.000000e+00 : f32
    %12 = vector.broadcast %cst_7 : f32 to vector<18x18x32xf32>
    %c0_8 = arith.constant 0 : index
    %c0_9 = arith.constant 0 : index
    %c0_10 = arith.constant 0 : index
    %13 = vector.load %arg7[%c0_8, %c0_9, %c0_10] : memref<18x18x32xf32, #tpu.memory_space<vmem>>, vector<18x18x32xf32>
    tpu.vector_store %arg7[%c0_8, %c0_9, %c0_10], %12 {strides = array<i32>} : memref<18x18x32xf32, #tpu.memory_space<vmem>>, vector<18x18x32xf32>,
    %c1 = arith.constant 1 : index
    %c1_11 = arith.constant 1 : index
    %c0_12 = arith.constant 0 : index
    %14 = vector.load %arg7[%c1, %c1_11, %c0_12] : memref<18x18x32xf32, #tpu.memory_space<vmem>>, vector<16x16x32xf32>
    tpu.vector_store %arg7[%c1, %c1_11, %c0_12], %11 {strides = array<i32>} : memref<18x18x32xf32, #tpu.memory_space<vmem>>, vector<16x16x32xf32>,
    %c0_13 = arith.constant 0 : index
    %c0_14 = arith.constant 0 : index
    %c0_15 = arith.constant 0 : index
    %15 = vector.load %arg7[%c0_13, %c0_14, %c0_15] : memref<18x18x32xf32, #tpu.memory_space<vmem>>, vector<16x16x32xf32>
    %16 = vector.shape_cast %15 : vector<16x16x32xf32> to vector<256x32xf32>
    %c0_16 = arith.constant 0 : index
    %c1_17 = arith.constant 1 : index
    %c0_18 = arith.constant 0 : index
    %17 = vector.load %arg7[%c0_16, %c1_17, %c0_18] : memref<18x18x32xf32, #tpu.memory_space<vmem>>, vector<16x16x32xf32>
    %18 = vector.shape_cast %17 : vector<16x16x32xf32> to vector<256x32xf32>
    %c0_19 = arith.constant 0 : index
    %c2 = arith.constant 2 : index
    %c0_20 = arith.constant 0 : index
    %19 = vector.load %arg7[%c0_19, %c2, %c0_20] : memref<18x18x32xf32, #tpu.memory_space<vmem>>, vector<16x16x32xf32>
    %20 = vector.shape_cast %19 : vector<16x16x32xf32> to vector<256x32xf32>
    %c1_21 = arith.constant 1 : index
    %c0_22 = arith.constant 0 : index
    %c0_23 = arith.constant 0 : index
    %21 = vector.load %arg7[%c1_21, %c0_22, %c0_23] : memref<18x18x32xf32, #tpu.memory_space<vmem>>, vector<16x16x32xf32>
    %22 = vector.shape_cast %21 : vector<16x16x32xf32> to vector<256x32xf32>
    %c1_24 = arith.constant 1 : index
    %c1_25 = arith.constant 1 : index
    %c0_26 = arith.constant 0 : index
    %23 = vector.load %arg7[%c1_24, %c1_25, %c0_26] : memref<18x18x32xf32, #tpu.memory_space<vmem>>, vector<16x16x32xf32>
    %24 = vector.shape_cast %23 : vector<16x16x32xf32> to vector<256x32xf32>
    %c1_27 = arith.constant 1 : index
    %c2_28 = arith.constant 2 : index
    %c0_29 = arith.constant 0 : index
    %25 = vector.load %arg7[%c1_27, %c2_28, %c0_29] : memref<18x18x32xf32, #tpu.memory_space<vmem>>, vector<16x16x32xf32>
    %26 = vector.shape_cast %25 : vector<16x16x32xf32> to vector<256x32xf32>
    %c2_30 = arith.constant 2 : index
    %c0_31 = arith.constant 0 : index
    %c0_32 = arith.constant 0 : index
    %27 = vector.load %arg7[%c2_30, %c0_31, %c0_32] : memref<18x18x32xf32, #tpu.memory_space<vmem>>, vector<16x16x32xf32>
    %28 = vector.shape_cast %27 : vector<16x16x32xf32> to vector<256x32xf32>
    %c2_33 = arith.constant 2 : index
    %c1_34 = arith.constant 1 : index
    %c0_35 = arith.constant 0 : index
    %29 = vector.load %arg7[%c2_33, %c1_34, %c0_35] : memref<18x18x32xf32, #tpu.memory_space<vmem>>, vector<16x16x32xf32>
    %30 = vector.shape_cast %29 : vector<16x16x32xf32> to vector<256x32xf32>
    %c2_36 = arith.constant 2 : index
    %c2_37 = arith.constant 2 : index
    %c0_38 = arith.constant 0 : index
    %31 = vector.load %arg7[%c2_36, %c2_37, %c0_38] : memref<18x18x32xf32, #tpu.memory_space<vmem>>, vector<16x16x32xf32>
    %32 = vector.shape_cast %31 : vector<16x16x32xf32> to vector<256x32xf32>
    %33 = tpu.concatenate %16, %18, %20, %22, %24, %26, %28, %30, %32 in 1 : vector<256x32xf32>, vector<256x32xf32>, vector<256x32xf32>, vector<256x32xf32>, vector<256x32xf32>, vector<256x32xf32>, vector<256x32xf32>, vector<256x32xf32>, vector<256x32xf32> -> vector<256x288xf32>
    %34 = arith.truncf %33 : vector<256x288xf32> to vector<256x288xbf16>
    %c0_39 = arith.constant 0 : index
    %c0_40 = arith.constant 0 : index
    %35 = vector.load %arg4[%c0_39, %c0_40] : memref<288x128xbf16, #tpu.memory_space<vmem>>, vector<288x128xbf16>
    %cst_41 = arith.constant dense<0.000000e+00> : vector<256x128xf32>
    %36 = tpu.matmul %34, %35, %cst_41 {dimension_numbers = #tpu.dot_dimension_numbers<[1], [0], [0], [1], [0, 0, 1, 1], [], []>} : vector<256x288xbf16>, vector<288x128xbf16>, vector<256x128xf32> -> vector<256x128xf32>
    %c0_42 = arith.constant 0 : index
    %c0_43 = arith.constant 0 : index
    %37 = vector.load %arg5[%c0_42, %c0_43] : memref<1x128xf32, #tpu.memory_space<vmem>>, vector<1x128xf32>
    %38 = vector.broadcast %37 : vector<1x128xf32> to vector<256x128xf32>
    %39 = arith.addf %36, %38 : vector<256x128xf32>
    %40 = math.tanh %39 : vector<256x128xf32>
    %41 = vector.shape_cast %40 : vector<256x128xf32> to vector<16x16x128xf32>
    %c0_44 = arith.constant 0 : index
    %c0_45 = arith.constant 0 : index
    %c0_46 = arith.constant 0 : index
    %c0_47 = arith.constant 0 : index
    %42 = vector.load %arg6[%c0_44, %c0_45, %c0_46, %c0_47] : memref<1x16x16x128xf32, #tpu.memory_space<vmem>>, vector<1x16x16x128xf32>
    %43 = vector.shape_cast %42 : vector<1x16x16x128xf32> to vector<16x16x128xf32>
    %44 = vector.shape_cast %41 : vector<16x16x128xf32> to vector<1x16x16x128xf32>
    tpu.vector_store %arg6[%c0_44, %c0_45, %c0_46, %c0_47], %44 {strides = array<i32>} : memref<1x16x16x128xf32, #tpu.memory_space<vmem>>, vector<1x16x16x128xf32>,
    return
  }
  func.func @transform_0(%arg0: i32) -> (i32, i32, i32, i32) {
    %c0_i32 = arith.constant 0 : i32
    %c0_i32_0 = arith.constant 0 : i32
    %c0_i32_1 = arith.constant 0 : i32
    %c0_i32_2 = arith.constant 0 : i32
    return %arg0, %c0_i32, %c0_i32_0, %c0_i32_1 : i32, i32, i32, i32
  }
  func.func @transform_1(%arg0: i32) -> (i32, i32) {
    %c0_i32 = arith.constant 0 : i32
    %c0_i32_0 = arith.constant 0 : i32
    %c0_i32_1 = arith.constant 0 : i32
    return %c0_i32, %c0_i32_0 : i32, i32
  }
  func.func @transform_2(%arg0: i32) -> (i32, i32) {
    %c0_i32 = arith.constant 0 : i32
    %c0_i32_0 = arith.constant 0 : i32
    %c0_i32_1 = arith.constant 0 : i32
    return %c0_i32, %c0_i32_0 : i32, i32
  }
  func.func @transform_3(%arg0: i32) -> (i32, i32) {
    %c0_i32 = arith.constant 0 : i32
    %c0_i32_0 = arith.constant 0 : i32
    %c0_i32_1 = arith.constant 0 : i32
    return %c0_i32, %c0_i32_0 : i32, i32
  }
  func.func @transform_4(%arg0: i32) -> (i32, i32) {
    %c0_i32 = arith.constant 0 : i32
    %c0_i32_0 = arith.constant 0 : i32
    %c0_i32_1 = arith.constant 0 : i32
    return %c0_i32, %c0_i32_0 : i32, i32
  }
  func.func @transform_5(%arg0: i32) -> (i32, i32, i32, i32) {
    %c0_i32 = arith.constant 0 : i32
    %c0_i32_0 = arith.constant 0 : i32
    %c0_i32_1 = arith.constant 0 : i32
    %c0_i32_2 = arith.constant 0 : i32
    return %arg0, %c0_i32, %c0_i32_0, %c0_i32_1 : i32, i32, i32, i32
  }
}

</mosaic_0001>

<bundles_post_ra>
// kernel: dense_generator_forward.5
= control target key start
LH: loop header
LB: loop body
LE: loop exit
PB: predicated region body
PF: predicated region fallthrough
CT: control target
= control target key end

     0   :  { %v189_v1 = vmov 0   ;;  %vm62_vm0 = vcmask 130048   ;;  %v22_v6 = vlaneseq  ;;  %v190_v8 = vmov 1983009808   ;;  %s232_s1 = inlined_call_operand.vmem [shape: bf16[16,512], index: 1, kind: input, shape index: {}]   ;;  %s233_s0 = inlined_call_operand.vmem [shape: bf16[2,16], index: 0, kind: input, shape index: {}]   ;;  %s234_s2 = inlined_call_operand.vmem [shape: f32[1,512], index: 2, kind: input, shape index: {}]   ;;  %s235_s3 = inlined_call_operand.vmem [shape: f32[2,512], index: 3, kind: output, shape index: {}]  }
   0x1   :  { %v183_v0 = vld [vmem:[%s232_s1 + $0x4] ss:$16 sps:$4 sm:$0xff]   ;;  %98 = vmatprep.mubr.bf16.mxu0 %v189_v1  ;;  %139 = vmatprep.mubr.bf16.mxu1 %v189_v1  ;;  %v185_v2 = vld [vmem:[%s232_s1 + $0xc] ss:$16 sps:$4 sm:$0xff]   ;;  %v187_v3 = vld [vmem:[%s232_s1] ss:$16 sps:$4 sm:$0xff]   ;;  %v155_v9 = vunpack.c.l.s4 %v190_v8 }
   0x2   :  { %80 = vmatprep.subr.bf16.mxu0 %v183_v0  ;;  %v188_v4 = vld [vmem:[%s232_s1 + $0x8] ss:$16 sps:$4 sm:$0xff]   ;;  %121 = vmatprep.subr.bf16.mxu1 %v185_v2  ;;  %v15_v5 = vld [vmem:[%s233_s0] sm:$0x1]  ;;  %v23_v7 = vshrl.u32 %v22_v6, 7 }
   0x3   :  { %81 = vmatpush1.bf16.msra.mxu0 %v187_v3  ;;  %122 = vmatpush1.bf16.msra.mxu1 %v188_v4  ;;  %v20_v14 = vld [vmem:[%s234_s2] sm:$0xf]  ;;  %v156_v15 = vunpack.c.0.s8 %v155_v9 }
   0x4   :  { %v24_v10 = vsub.s32 0, %v23_v7  ;;  %v32_v11 = vsub.s32 2, %v23_v7  ;;  %v28_v12 = vsub.s32 1, %v23_v7  ;;  %v36_v13 = vsub.s32 3, %v23_v7 }
   0x5   :  { %v159_v23 = vsub.s32 %v156_v15, %v23_v7 }
   0x6   :  { %179 = vmatmul.mubr.msk.bf16.vlgmr.msra.gmra.mxu0 %vm62_vm0, %v15_v5  ;;  %180 = vmatmul.mubr.msk.bf16.vlgmr.msra.gmra.mxu1 %vm62_vm0, %v15_v5  ;;  %v25_v16 = vrot.slane %v20_v14, %v24_v10  ;;  %v33_v17 = vrot.slane %v20_v14, %v32_v11  ;;  %v29_v18 = vrot.slane %v20_v14, %v28_v12 }
   0x7   :  { %v37_v19 = vrot.slane %v20_v14, %v36_v13 }
  0xc6   :  { %v100_v20 = vpop.f32.mrf.mxu0  ;;  %v141_v21 = vpop.f32.mrf.mxu1 }
  0xc7   :  { %v101_v25 = vadd.f32 %v100_v20, %v25_v16  ;;  %v142_v26 = vadd.f32 %v141_v21, %v33_v17 }
  0xc8   :  { %v102_v22 = vpop.f32.mrf.mxu0  ;;  %v143_v24 = vpop.f32.mrf.mxu1 }
  0xc9   :  { %v103_v27 = vadd.f32 %v102_v22, %v29_v18  ;;  %v144_v28 = vadd.f32 %v143_v24, %v37_v19 }
  0xca   :  { %v104_v29 = vpop.f32.mrf.mxu0  ;;  %v145_v30 = vpop.f32.mrf.mxu1 }
  0xcb   :  { %v152_v31 = vcombine.low %v101_v25, %v103_v27  ;;  %v153_v32 = vcombine.low %v142_v26, %v144_v28 }
  0xcc   :  { %v105_v33 = vpop.f32.mrf.mxu0  ;;  %v146_v34 = vpop.f32.mrf.mxu1 }
  0xcd   :  { %v160_v35 = vrot.slane %v152_v31, %v159_v23  ;;  %v167_v36 = vrot.slane %v153_v32, %v159_v23 }
  0xcf   :  { %v168_v37 = vcombine.low %v160_v35, %v167_v36 }
  0xd1   :  { %170 = vst [vmem:[%s235_s3] sm:$0xff] %v168_v37 }

// kernel: dense_generator_forward.8
= control target key start
LH: loop header
LB: loop body
LE: loop exit
PB: predicated region body
PF: predicated region fallthrough
CT: control target
= control target key end

     0   :  { %s384_s6 = smov 0   ;;  %s513_s0 = inlined_call_operand.vmem [shape: f32[2,16,16,32], index: 0, kind: input, shape index: {}]   ;;  %s514_s1 = inlined_call_operand.vmem [shape: f32[2,32], index: 1, kind: output, shape index: {}]  }
   0x1 LB: > { %s346_s7 = sadd.s32 4294967295, %s371_s6   ;;  %p349_p0 = scmp.ge.s32.totalorder %s371_s6, 1  ;;  %s371_s6 = sphi %s384_s6, %s11_s6  }
   0x2   : > { %p82_p1 = scmp.lt.s32.totalorder %s371_s6, 3 }
   0x4   : > { %p83_p2 = pnand %p349_p0, %p82_p1 }
   0x5   : > { %p97_p3 = scmp.lt.s32.totalorder (!%p83_p2), %s346_s7, 1  ;;  %p352_p4 = scmp.ne.s32.totalorder (!%p83_p2), %s346_s7, 0 }
   0x6   : > { %86 = sbr.rel (%p83_p2) target bundleno = 103 (0x67), region = 24 }
   0xb   : > { %s98_s8 = scalar_select %p97_p3, %s346_s7, 1 }
   0xc   : > { %105 = sbr.rel (%p352_p4) target bundleno = 19 (0x13), region = 28 }
   0xd   : > { %s355_s9 = sshll.u32 %s98_s8, 8 }
   0xe   : > { %s395_s12 = scalar_lea.vmem %s513_s0, %s355_s9 }
  0x11   : > { %vm106_vm0 = vcmask 254976   ;;  %v373_v0 = vmov 0.0  }
  0x12   : > { %107 = vst.msk [vmem:[%s514_s1] sm:$0x3] %vm106_vm0, %v373_v0 }
  0x13 PF: > { %v108_v1 = vld [vmem:[%s395_s12] sm:$0xff]  ;;  %v109_v2 = vld [vmem:[%s395_s12 + $0x8] sm:$0xff]  ;;  %v110_v3 = vld [vmem:[%s395_s12 + $0x10] sm:$0xff]  ;;  %vm141_vm1 = vcmask 261120   ;;  %vm212_vm2 = vcmask 253952  }
  0x14   : > { %v142_v4 = vsel %vm141_vm1, %v108_v1, 0.0  ;;  %v143_v5 = vsel %vm141_vm1, %v109_v2, 0.0  ;;  %v145_v6 = vsel %vm141_vm1, %v110_v3, 0.0  ;;  %v111_v7 = vld [vmem:[%s395_s12 + $0x18] sm:$0xff]  ;;  %v112_v10 = vld [vmem:[%s395_s12 + $0x20] sm:$0xff]  ;;  %v113_v13 = vld [vmem:[%s395_s12 + $0x28] sm:$0xff]  ;;  %v215_v28 = vmul.f32 %v108_v1, %v108_v1 }
  0x15   : > { %v144_v8 = vadd.f32 %v143_v5, %v142_v4  ;;  %v147_v9 = vsel %vm141_vm1, %v111_v7, 0.0  ;;  %v149_v12 = vsel %vm141_vm1, %v112_v10, 0.0  ;;  %v151_v15 = vsel %vm141_vm1, %v113_v13, 0.0  ;;  %v114_v16 = vld [vmem:[%s395_s12 + $0x30] sm:$0xff]  ;;  %v115_v19 = vld [vmem:[%s395_s12 + $0x38] sm:$0xff]  ;;  %v116_v22 = vld [vmem:[%s395_s12 + $0x40] sm:$0xff] }
  0x16   : > { %v153_v18 = vsel %vm141_vm1, %v114_v16, 0.0  ;;  %v155_v21 = vsel %vm141_vm1, %v115_v19, 0.0  ;;  %v157_v24 = vsel %vm141_vm1, %v116_v22, 0.0  ;;  %v117_v25 = vld [vmem:[%s395_s12 + $0x48] sm:$0xff]  ;;  %v216_v29 = vmul.f32 %v109_v2, %v109_v2  ;;  %v118_v31 = vld [vmem:[%s395_s12 + $0x50] sm:$0xff]  ;;  %v119_v33 = vld [vmem:[%s395_s12 + $0x58] sm:$0xff] }
  0x17   : > { %v146_v11 = vadd.f32 %v145_v6, %v144_v8  ;;  %v159_v27 = vsel %vm141_vm1, %v117_v25, 0.0  ;;  %v217_v30 = vmul.f32 %v110_v3, %v110_v3  ;;  %v161_v34 = vsel %vm141_vm1, %v118_v31, 0.0  ;;  %v120_v42 = vld [vmem:[%s395_s12 + $0x60] sm:$0xff]  ;;  %v121_v48 = vld [vmem:[%s395_s12 + $0x68] sm:$0xff]  ;;  %v122_v54 = vld [vmem:[%s395_s12 + $0x70] sm:$0xff] }
  0x18   : > { %v218_v35 = vmul.f32 %v111_v7, %v111_v7  ;;  %v163_v37 = vsel %vm141_vm1, %v119_v33, 0.0  ;;  %v219_v38 = vmul.f32 %v112_v10, %v112_v10  ;;  %v247_v39 = vsel %vm141_vm1, %v215_v28, 0.0  ;;  %v123_v60 = vld [vmem:[%s395_s12 + $0x78] sm:$0xff]  ;;  %v124_v2 = vld [vmem:[%s395_s12 + $0x80] sm:$0xff]  ;;  %v125_v8 = vld [vmem:[%s395_s12 + $0x88] sm:$0xff] }
  0x19   : > { %v148_v14 = vadd.f32 %v147_v9, %v146_v11  ;;  %v248_v40 = vsel %vm141_vm1, %v216_v29, 0.0  ;;  %v250_v41 = vsel %vm141_vm1, %v217_v30, 0.0  ;;  %v165_v45 = vsel %vm141_vm1, %v120_v42, 0.0 }
  0x1a   : > { %v249_v44 = vadd.f32 %v248_v40, %v247_v39  ;;  %v220_v46 = vmul.f32 %v113_v13, %v113_v13  ;;  %v252_v47 = vsel %vm141_vm1, %v218_v35, 0.0  ;;  %v167_v51 = vsel %vm141_vm1, %v121_v48, 0.0 }
  0x1b   : > { %v150_v17 = vadd.f32 %v149_v12, %v148_v14  ;;  %v221_v52 = vmul.f32 %v114_v16, %v114_v16  ;;  %v254_v53 = vsel %vm141_vm1, %v219_v38, 0.0  ;;  %v169_v57 = vsel %vm141_vm1, %v122_v54, 0.0  ;;  %v126_v14 = vld [vmem:[%s395_s12 + $0x90] sm:$0xff] }
  0x1c   : > { %v251_v50 = vadd.f32 %v250_v41, %v249_v44  ;;  %v222_v58 = vmul.f32 %v115_v19, %v115_v19  ;;  %v256_v59 = vsel %vm141_vm1, %v220_v46, 0.0  ;;  %v171_v63 = vsel %vm141_vm1, %v123_v60, 0.0  ;;  %v130_v38 = vld [vmem:[%s395_s12 + $0xb0] sm:$0xff]  ;;  %v131_v44 = vld [vmem:[%s395_s12 + $0xb8] sm:$0xff] }
  0x1d   : > { %v152_v20 = vadd.f32 %v151_v15, %v150_v17  ;;  %v223_v0 = vmul.f32 %v116_v22, %v116_v22  ;;  %v258_v1 = vsel %vm141_vm1, %v221_v52, 0.0  ;;  %v173_v5 = vsel %vm141_vm1, %v124_v2, 0.0 }
  0x1e   : > { %v253_v56 = vadd.f32 %v252_v47, %v251_v50  ;;  %v224_v6 = vmul.f32 %v117_v25, %v117_v25  ;;  %v260_v7 = vsel %vm141_vm1, %v222_v58, 0.0  ;;  %v175_v11 = vsel %vm141_vm1, %v125_v8, 0.0  ;;  %v132_v50 = vld [vmem:[%s395_s12 + $0xc0] sm:$0xff] }
  0x1f   : > { %v154_v23 = vadd.f32 %v153_v18, %v152_v20  ;;  %v225_v12 = vmul.f32 %v118_v31, %v118_v31  ;;  %v262_v13 = vsel %vm141_vm1, %v223_v0, 0.0  ;;  %v177_v17 = vsel %vm141_vm1, %v126_v14, 0.0  ;;  %v127_v20 = vld [vmem:[%s395_s12 + $0x98] sm:$0xff] }
  0x20   : > { %v255_v62 = vadd.f32 %v254_v53, %v253_v56  ;;  %v226_v18 = vmul.f32 %v119_v33, %v119_v33  ;;  %v264_v19 = vsel %vm141_vm1, %v224_v6, 0.0  ;;  %v228_v30 = vmul.f32 %v121_v48, %v121_v48  ;;  %v133_v56 = vld [vmem:[%s395_s12 + $0xc8] sm:$0xff] }
  0x21   : > { %v156_v26 = vadd.f32 %v155_v21, %v154_v23  ;;  %v179_v23 = vsel %vm141_vm1, %v127_v20, 0.0  ;;  %v266_v25 = vsel %vm141_vm1, %v225_v12, 0.0  ;;  %v185_v41 = vsel %vm141_vm1, %v130_v38, 0.0 }
  0x22   : > { %v257_v4 = vadd.f32 %v256_v59, %v255_v62  ;;  %v268_v31 = vsel %vm141_vm1, %v226_v18, 0.0  ;;  %v187_v47 = vsel %vm141_vm1, %v131_v44, 0.0  ;;  %v231_v48 = vmul.f32 %v124_v2, %v124_v2  ;;  %v134_v62 = vld [vmem:[%s395_s12 + $0xd0] sm:$0xff] }
  0x23   : > { %v158_v32 = vadd.f32 %v157_v24, %v156_v26  ;;  %v227_v24 = vmul.f32 %v120_v42, %v120_v42  ;;  %v128_v26 = vld [vmem:[%s395_s12 + $0xa0] sm:$0xff]  ;;  %v230_v42 = vmul.f32 %v123_v60, %v123_v60  ;;  %v189_v53 = vsel %vm141_vm1, %v132_v50, 0.0 }
  0x24   : > { %v259_v10 = vadd.f32 %v258_v1, %v257_v4  ;;  %v181_v29 = vsel %vm141_vm1, %v128_v26, 0.0  ;;  %v191_v59 = vsel %vm141_vm1, %v133_v56, 0.0  ;;  %v233_v60 = vmul.f32 %v126_v14, %v126_v14  ;;  %v135_v4 = vld [vmem:[%s395_s12 + $0xd8] sm:$0xff] }
  0x25   : > { %v160_v36 = vadd.f32 %v159_v27, %v158_v32  ;;  %v129_v32 = vld [vmem:[%s395_s12 + $0xa8] sm:$0xff]  ;;  %v193_v1 = vsel %vm141_vm1, %v134_v62, 0.0  ;;  %v234_v2 = vmul.f32 %v127_v20, %v127_v20  ;;  %v237_v20 = vmul.f32 %v130_v38, %v130_v38 }
  0x26   : > { %v261_v16 = vadd.f32 %v260_v7, %v259_v10  ;;  %v183_v35 = vsel %vm141_vm1, %v129_v32, 0.0  ;;  %v195_v7 = vsel %vm141_vm1, %v135_v4, 0.0  ;;  %v136_v10 = vld [vmem:[%s395_s12 + $0xe0] sm:$0xff]  ;;  %v236_v14 = vmul.f32 %v129_v32, %v129_v32 }
  0x27   : > { %v162_v43 = vadd.f32 %v161_v34, %v160_v36  ;;  %v229_v36 = vmul.f32 %v122_v54, %v122_v54  ;;  %v232_v54 = vmul.f32 %v125_v8, %v125_v8  ;;  %v235_v8 = vmul.f32 %v128_v26, %v128_v26 }
  0x28   : > { %v263_v22 = vadd.f32 %v262_v13, %v261_v16  ;;  %v197_v13 = vsel %vm141_vm1, %v136_v10, 0.0  ;;  %v137_v16 = vld [vmem:[%s395_s12 + $0xe8] sm:$0xff]  ;;  %v238_v26 = vmul.f32 %v131_v44, %v131_v44  ;;  %v239_v32 = vmul.f32 %v132_v50, %v132_v50 }
  0x29   : > { %v164_v49 = vadd.f32 %v163_v37, %v162_v43  ;;  %v270_v37 = vsel %vm141_vm1, %v227_v24, 0.0  ;;  %v272_v43 = vsel %vm141_vm1, %v228_v30, 0.0  ;;  %v242_v44 = vmul.f32 %v135_v4, %v135_v4 }
  0x2a   : > { %v265_v28 = vadd.f32 %v264_v19, %v263_v22  ;;  %v199_v19 = vsel %vm141_vm1, %v137_v16, 0.0  ;;  %v138_v22 = vld [vmem:[%s395_s12 + $0xf0] sm:$0xff] }
  0x2b   : > { %v166_v55 = vadd.f32 %v165_v45, %v164_v49  ;;  %v274_v49 = vsel %vm141_vm1, %v229_v36, 0.0  ;;  %v240_v36 = vmul.f32 %v133_v56, %v133_v56  ;;  %v245_v56 = vmul.f32 %v138_v22, %v138_v22 }
  0x2c   : > { %v267_v34 = vadd.f32 %v266_v25, %v265_v28  ;;  %v201_v25 = vsel %vm141_vm1, %v138_v22, 0.0  ;;  %v139_v28 = vld [vmem:[%s395_s12 + $0xf8] sm:$0xff] }
  0x2d   : > { %v168_v61 = vadd.f32 %v167_v51, %v166_v55  ;;  %v276_v55 = vsel %vm141_vm1, %v230_v42, 0.0 }
  0x2e   : > { %v269_v40 = vadd.f32 %v268_v31, %v267_v34  ;;  %v203_v31 = vsel %vm141_vm1, %v139_v28, 0.0 }
  0x2f   : > { %v170_v3 = vadd.f32 %v169_v57, %v168_v61  ;;  %v278_v61 = vsel %vm141_vm1, %v231_v48, 0.0  ;;  %v243_v48 = vmul.f32 %v136_v10, %v136_v10 }
  0x30   : > { %v271_v46 = vadd.f32 %v270_v37, %v269_v40  ;;  %v292_v37 = vsel %vm141_vm1, %v238_v26, 0.0  ;;  %v241_v40 = vmul.f32 %v134_v62, %v134_v62 }
  0x31   : > { %v172_v9 = vadd.f32 %v171_v63, %v170_v3  ;;  %v280_v3 = vsel %vm141_vm1, %v232_v54, 0.0 }
  0x32   : > { %v273_v52 = vadd.f32 %v272_v43, %v271_v46 }
  0x33   : > { %v174_v15 = vadd.f32 %v173_v5, %v172_v9  ;;  %v282_v9 = vsel %vm141_vm1, %v233_v60, 0.0  ;;  %v140_v60 = vld [vmem:[%s514_s1] sm:$0x1] }
  0x34   : > { %v275_v58 = vadd.f32 %v274_v49, %v273_v52  ;;  %v298_v49 = vsel %vm141_vm1, %v241_v40, 0.0  ;;  %v244_v52 = vmul.f32 %v137_v16, %v137_v16 }
  0x35   : > { %v176_v21 = vadd.f32 %v175_v11, %v174_v15  ;;  %v284_v15 = vsel %vm141_vm1, %v234_v2, 0.0 }
  0x36   : > { %v277_v0 = vadd.f32 %v276_v55, %v275_v58  ;;  %v304_v62 = vsel %vm141_vm1, %v244_v52, 0.0 }
  0x37   : > { %v178_v27 = vadd.f32 %v177_v17, %v176_v21  ;;  %v286_v21 = vsel %vm141_vm1, %v235_v8, 0.0 }
  0x38   : > { %v279_v6 = vadd.f32 %v278_v61, %v277_v0  ;;  %v246_v61 = vmul.f32 %v139_v28, %v139_v28 }
  0x39   : > { %v180_v33 = vadd.f32 %v179_v23, %v178_v27  ;;  %v288_v27 = vsel %vm141_vm1, %v236_v14, 0.0 }
  0x3a   : > { %v281_v12 = vadd.f32 %v280_v3, %v279_v6  ;;  %v308_v4 = vsel %vm141_vm1, %v246_v61, 0.0 }
  0x3b   : > { %v182_v39 = vadd.f32 %v181_v29, %v180_v33  ;;  %v290_v33 = vsel %vm141_vm1, %v237_v20, 0.0 }
  0x3c   : > { %v283_v18 = vadd.f32 %v282_v9, %v281_v12  ;;  %v214_v12 = vld [vmem:[%s514_s1 + $0x1] sm:$0x1] }
  0x3d   : > { %v184_v45 = vadd.f32 %v183_v35, %v182_v39 }
  0x3e   : > { %v285_v24 = vadd.f32 %v284_v15, %v283_v18 }
  0x3f   : > { %v186_v51 = vadd.f32 %v185_v41, %v184_v45  ;;  %v294_v41 = vsel %vm141_vm1, %v239_v32, 0.0  ;;  %v296_v45 = vsel %vm141_vm1, %v240_v36, 0.0 }
  0x40   : > { %v287_v30 = vadd.f32 %v286_v21, %v285_v24 }
  0x41   : > { %v188_v57 = vadd.f32 %v187_v47, %v186_v51 }
  0x42   : > { %v289_v35 = vadd.f32 %v288_v27, %v287_v30 }
  0x43   : > { %v190_v63 = vadd.f32 %v189_v53, %v188_v57  ;;  %v300_v53 = vsel %vm141_vm1, %v242_v44, 0.0  ;;  %v302_v57 = vsel %vm141_vm1, %v243_v48, 0.0 }
  0x44   : > { %v291_v39 = vadd.f32 %v290_v33, %v289_v35 }
  0x45   : > { %v192_v5 = vadd.f32 %v191_v59, %v190_v63 }
  0x46   : > { %v293_v43 = vadd.f32 %v292_v37, %v291_v39 }
  0x47   : > { %v194_v11 = vadd.f32 %v193_v1, %v192_v5  ;;  %v306_v1 = vsel %vm141_vm1, %v245_v56, 0.0 }
  0x48   : > { %v295_v47 = vadd.f32 %v294_v41, %v293_v43 }
  0x49   : > { %v196_v17 = vadd.f32 %v195_v7, %v194_v11 }
  0x4a   : > { %v297_v51 = vadd.f32 %v296_v45, %v295_v47 }
  0x4b   : > { %v198_v23 = vadd.f32 %v197_v13, %v196_v17 }
  0x4c   : > { %v299_v55 = vadd.f32 %v298_v49, %v297_v51 }
  0x4d   : > { %v200_v29 = vadd.f32 %v199_v19, %v198_v23 }
  0x4e   : > { %v301_v59 = vadd.f32 %v300_v53, %v299_v55 }
  0x4f   : > { %v202_v34 = vadd.f32 %v201_v25, %v200_v29 }
  0x50   : > { %v303_v0 = vadd.f32 %v302_v57, %v301_v59 }
  0x51   : > { %v204_v38 = vadd.f32 %v203_v31, %v202_v34 }
  0x52   : > { %v305_v3 = vadd.f32 %v304_v62, %v303_v0 }
  0x53   : > { %v205_v42 = vrot.slane %v204_v38, 4 }
  0x54   : > { %v307_v5 = vadd.f32 %v306_v1, %v305_v3 }
  0x55   : > { %v206_v46 = vadd.f32 %v205_v42, %v204_v38 }
  0x56   : > { %v309_v6 = vadd.f32 %v308_v4, %v307_v5 }
  0x57   : > { %v207_v50 = vrot.slane %v206_v46, 2 }
  0x58   : > { %v310_v7 = vrot.slane %v309_v6, 4 }
  0x59   : > { %v208_v54 = vadd.f32 %v207_v50, %v206_v46 }
  0x5a   : > { %v311_v8 = vadd.f32 %v310_v7, %v309_v6 }
  0x5b   : > { %v209_v58 = vrot.slane %v208_v54, 1 }
  0x5c   : > { %v312_v9 = vrot.slane %v311_v8, 2 }
  0x5d   : > { %v210_v63 = vadd.f32 %v209_v58, %v208_v54 }
  0x5e   : > { %v313_v10 = vadd.f32 %v312_v9, %v311_v8 }
  0x5f   : > { %v211_v2 = vadd.f32 %v210_v63, %v140_v60 }
  0x60   : > { %v314_v11 = vrot.slane %v313_v10, 1 }
  0x61   : > { %213 = vst.msk [vmem:[%s514_s1] sm:$0x1] %vm212_vm2, %v211_v2 }
  0x62   : > { %v315_v13 = vadd.f32 %v314_v11, %v313_v10 }
  0x64   : > { %v316_v14 = vadd.f32 %v315_v13, %v214_v12 }
  0x66   : > { %317 = vst.msk [vmem:[%s514_s1 + $0x1] sm:$0x1] %vm212_vm2, %v316_v14 }
  0x67 PF: > { %s11_s6 = sadd.s32 1, %s371_s6  }
  0x68   : > { %p8_p5 = scmp.ge.s32.totalorder %s11_s6, 4  }
  0x6a   :  { %10 = sbr.rel (!%p8_p5) target bundleno = 1 (0x1), region = 54 }

// kernel: dense_generator_forward.6
= control target key start
LH: loop header
LB: loop body
LE: loop exit
PB: predicated region body
PF: predicated region fallthrough
CT: control target
= control target key end

     0   :  { %s3387_s0 = inlined_call_operand.vmem [shape: s32[2,2], index: 0, kind: input, shape index: {}]   ;;  %s3388_s1 = inlined_call_operand.vmem [shape: f32[2,8,8,32], index: 1, kind: input, shape index: {}]   ;;  %s3389_s2 = inlined_call_operand.vmem [shape: bf16[2,288,32], index: 2, kind: input, shape index: {}]   ;;  %s3390_s3 = inlined_call_operand.vmem [shape: f32[2,1,32], index: 3, kind: input, shape index: {}]   ;;  %s3391_s4 = inlined_call_operand.vmem [shape: bf16[2,32,32], index: 4, kind: input, shape index: {}]   ;;  %s3392_s5 = inlined_call_operand.vmem [shape: f32[2,1,32], index: 5, kind: input, shape index: {}]   ;;  %s3393_s6 = inlined_call_operand.vmem [shape: f32[2,8,8,32], index: 6, kind: output, shape index: {}]  }
   0x1   :  { %s11_s23 = sshll.u32 %s3387_s0, 4  ;;  %s12_s23 = int_to_ptr.vmem [resolvable:$true] %s11_s23 }
   0x2   :  { %s2590_s24 = scalar_lea.vmem %s12_s23, 32  ;;  %p2595_p1 = scmp.lt.s32.totalorder %s12_s23, %s12_s23 }
   0x3   :  { %p2591_p0 = scmp.ne.s32.totalorder %s12_s23, %s2590_s24  ;;  %p2596_p2 = scmp.lt.s32.totalorder %s2590_s24, %s2590_s24 }
   0x5   :  { %p2597_p3 = por %p2596_p2, %p2595_p1 }
   0x7   :  { %p2598_p4 = pnand %p2597_p3, %p2591_p0 }
   0x9   :  { %2601 = shalt.err (!%p2598_p4)  }
   0xa   :  { %s2612_s25 = smov [#allocation5]  }
   0xb   :  { %14 = dma.vmem_to_smem %s12_s23, 32, %s2612_s25, [#allocation4] }
   0xc   :  { %2606 = dma.done.wait [#allocation4], 32 }
   0xd   :  { %2607 = vsyncadd [#allocation4], 4294967264 }
   0xe   :  { %16 = sfence }
   0xf   :  { %s2659_s26 = smov 0  }
  0x10 LB: > { %s2665_s0 = sadd.s32 4294967295, %s2610_s26   ;;  %p1985_p5 = scmp.ge.s32.totalorder %s2610_s26, 1  ;;  %s2610_s26 = sphi %s2659_s26, %s22_s26  }
  0x11   : > { %p194_p6 = scmp.lt.s32.totalorder %s2610_s26, 3 }
  0x13   : > { %p195_p7 = pnand %p1985_p5, %p194_p6 }
  0x14   : > { %p222_p8 = scmp.lt.s32.totalorder (!%p195_p7), %s2665_s0, 1  ;;  %s1990_s27 = sshll.u32 (!%p195_p7), %s2665_s0, 7 }
  0x15   : > { %198 = sbr.rel (%p195_p7) target bundleno = 1297 (0x511), region = 40  ;;  %s2673_s28 = sld [smem:[#allocation5 + %s1990_s27]] (!%p195_p7) }
  0x1a   : > { %s223_s29 = scalar_select %p222_p8, %s2665_s0, 1  ;;  %vm241_vm0 = vcmask 261120  }
  0x1b   : > { %p1991_p9 = scmp.ne.s32.totalorder %s2673_s28, 0 }
  0x1c   : > { %s2099_s30 = sshll.u32 %s223_s29, 6  ;;  %s2614_s23 = smov (!%p1991_p9), 64  }
  0x1d   : > { %s226_s9 = scalar_lea.vmem %s3388_s1, %s2099_s30  ;;  %s2682_s12 = scalar_lea.vmem %s3393_s6, %s2099_s30 }
  0x1e   : > { %v233_v0 = vld [vmem:[%s226_s9] sm:$0xff]  ;;  %v234_v1 = vld [vmem:[%s226_s9 + $0x8] sm:$0xff]  ;;  %v235_v2 = vld [vmem:[%s226_s9 + $0x10] sm:$0xff]  ;;  %255 = sbr.rel (%p1991_p9) target bundleno = 432 (0x1b0), region = 44  ;;  %s2615_s24 = smov (!%p1991_p9), 32  }
  0x1f   : > { %242 = vst.msk [vmem:[#allocation2] sm:$0xff] %vm241_vm0, %v233_v0  ;;  %243 = vst.msk [vmem:[#allocation2 + $0x8] sm:$0xff] %vm241_vm0, %v234_v1  ;;  %v236_v3 = vld [vmem:[%s226_s9 + $0x18] sm:$0xff]  ;;  %v237_v4 = vld [vmem:[%s226_s9 + $0x20] sm:$0xff]  ;;  %s2616_s10 = smov (!%p1991_p9), 96  }
  0x20   : > { %244 = vst.msk [vmem:[#allocation2 + $0x10] sm:$0xff] %vm241_vm0, %v235_v2  ;;  %v238_v5 = vld [vmem:[%s226_s9 + $0x28] sm:$0xff]  ;;  %245 = vst.msk [vmem:[#allocation2 + $0x18] sm:$0xff] %vm241_vm0, %v236_v3  ;;  %v239_v6 = vld [vmem:[%s226_s9 + $0x30] sm:$0xff] }
  0x21   : > { %246 = vst.msk [vmem:[#allocation2 + $0x20] sm:$0xff] %vm241_vm0, %v237_v4  ;;  %247 = vst.msk [vmem:[#allocation2 + $0x28] sm:$0xff] %vm241_vm0, %v238_v5  ;;  %v240_v7 = vld [vmem:[%s226_s9 + $0x38] sm:$0xff] }
  0x22   : > { %248 = vst.msk [vmem:[#allocation2 + $0x30] sm:$0xff] %vm241_vm0, %v239_v6  ;;  %249 = vst.msk [vmem:[#allocation2 + $0x38] sm:$0xff] %vm241_vm0, %v240_v7 }
  0x23   : > { %vm265_vm1 = vcmask 254976   ;;  %v2613_v11 = vmov 0.0   ;;  %v2430_v17 = vld [vmem:[%s3389_s2 + $0x78] sm:$0xff]   ;;  %v2432_v19 = vld [vmem:[%s3389_s2 + $0x70] sm:$0xff]   ;;  %v2434_v21 = vld [vmem:[%s3389_s2 + $0x68] sm:$0xff]   ;;  %vm567_vm2 = vcmask 523264  }
  0x24   : > { %269 = vst.msk [vmem:[#allocation3 + $0x20] sm:$0xff] %vm241_vm0, %v2613_v11  ;;  %271 = vst.msk [vmem:[#allocation3 + $0x30] sm:$0xff] %vm241_vm0, %v2613_v11  ;;  %v2431_v18 = vld [vmem:[%s3389_s2 + $0x38] sm:$0xff]   ;;  %2101 = vmatprep.subr.bf16.mxu0 %v2430_v17  ;;  %2253 = vmatprep.subr.bf16.mxu1 %v2430_v17  ;;  %v2433_v20 = vld [vmem:[%s3389_s2 + $0x30] sm:$0xff]   ;;  %vm576_vm3 = vcmask 785408  }
  0x25   : > { %270 = vst.msk [vmem:[#allocation3 + $0x28] sm:$0x3] %vm265_vm1, %v2613_v11  ;;  %272 = vst.msk [vmem:[#allocation3 + $0x38] sm:$0x3] %vm265_vm1, %v2613_v11  ;;  %2102 = vmatpush3.bf16.msra.mxu0 %v2431_v18  ;;  %2261 = vmatpush3.bf16.msra.mxu1 %v2431_v18  ;;  %v2435_v42 = vld [vmem:[%s3389_s2 + $0x28] sm:$0xff]   ;;  %v2436_v43 = vld [vmem:[%s3389_s2 + $0x60] sm:$0xff]  }
  0x26   : > { %v2693_v8 = vld [vmem:[#allocation2 + $0x8] sm:$0xff]  ;;  %v2697_v10 = vld [vmem:[#allocation2] sm:$0xff]  ;;  %264 = vst.msk [vmem:[#allocation3] sm:$0xff] %vm241_vm0, %v2613_v11  ;;  %267 = vst.msk [vmem:[#allocation3 + $0x10] sm:$0xff] %vm241_vm0, %v2613_v11  ;;  %2103 = vmatprep.subr.bf16.mxu0 %v2432_v19  ;;  %2254 = vmatprep.subr.bf16.mxu1 %v2432_v19 }
  0x27   : > { %v2695_v9 = vld [vmem:[#allocation2 + $0x10] sm:$0xff]  ;;  %266 = vst.msk [vmem:[#allocation3 + $0x8] sm:$0x3] %vm265_vm1, %v2613_v11  ;;  %268 = vst.msk [vmem:[#allocation3 + $0x18] sm:$0x3] %vm265_vm1, %v2613_v11  ;;  %v2737_v15 = vld [vmem:[#allocation2 + $0x18] sm:$0xff] }
  0x28   : > { %273 = vst.msk [vmem:[#allocation3 + $0x40] sm:$0xff] %vm241_vm0, %v2613_v11  ;;  %275 = vst.msk [vmem:[#allocation3 + $0x50] sm:$0xff] %vm241_vm0, %v2613_v11  ;;  %v2719_v12 = vld [vmem:[#allocation2 + $0x28] sm:$0xff]  ;;  %v2739_v16 = vld [vmem:[#allocation2 + $0x20] sm:$0xff] }
  0x29   : > { %274 = vst.msk [vmem:[#allocation3 + $0x48] sm:$0x3] %vm265_vm1, %v2613_v11  ;;  %276 = vst.msk [vmem:[#allocation3 + $0x58] sm:$0x3] %vm265_vm1, %v2613_v11  ;;  %v2721_v13 = vld [vmem:[#allocation2 + $0x30] sm:$0xff]  ;;  %v2723_v14 = vld [vmem:[#allocation2 + $0x38] sm:$0xff]  ;;  %2104 = vmatpush3.bf16.msra.mxu0 %v2433_v20  ;;  %2262 = vmatpush3.bf16.msra.mxu1 %v2433_v20 }
  0x2a   : > { %277 = vst.msk [vmem:[#allocation3 + $0x60] sm:$0xff] %vm241_vm0, %v2613_v11  ;;  %279 = vst.msk [vmem:[#allocation3 + $0x70] sm:$0xff] %vm241_vm0, %v2613_v11  ;;  %2105 = vmatprep.subr.bf16.mxu0 %v2434_v21  ;;  %2255 = vmatprep.subr.bf16.mxu1 %v2434_v21  ;;  %v2437_v44 = vld [vmem:[%s3389_s2 + $0x20] sm:$0xff]   ;;  %v2438_v47 = vld [vmem:[%s3389_s2 + $0x58] sm:$0xff]  }
  0x2b   : > { %278 = vst.msk [vmem:[#allocation3 + $0x68] sm:$0x3] %vm265_vm1, %v2613_v11  ;;  %280 = vst.msk [vmem:[#allocation3 + $0x78] sm:$0x3] %vm265_vm1, %v2613_v11  ;;  %v2439_v52 = vld [vmem:[%s3389_s2 + $0x18] sm:$0xff]   ;;  %v2440_v54 = vld [vmem:[%s3389_s2 + $0x50] sm:$0xff]  }
  0x2c   : > { %281 = vst.msk [vmem:[#allocation3 + $0x80] sm:$0xff] %vm241_vm0, %v2613_v11  ;;  %283 = vst.msk [vmem:[#allocation3 + $0x90] sm:$0xff] %vm241_vm0, %v2613_v11  ;;  %v2441_v58 = vld [vmem:[%s3389_s2 + $0x10] sm:$0xff]   ;;  %v2442_v60 = vld [vmem:[%s3389_s2 + $0x48] sm:$0xff]  }
  0x2d   : > { %282 = vst.msk [vmem:[#allocation3 + $0x88] sm:$0x3] %vm265_vm1, %v2613_v11  ;;  %284 = vst.msk [vmem:[#allocation3 + $0x98] sm:$0x3] %vm265_vm1, %v2613_v11  ;;  %2106 = vmatpush3.bf16.msra.mxu0 %v2435_v42  ;;  %2263 = vmatpush3.bf16.msra.mxu1 %v2435_v42  ;;  %v2443_v1 = vld [vmem:[%s3389_s2 + $0x8] sm:$0xff]   ;;  %v2444_v3 = vld [vmem:[%s3389_s2 + $0x40] sm:$0xff]  }
  0x2e   : > { %287 = vst.msk [vmem:[#allocation3 + $0x21] sm:$0xff] %vm241_vm0, %v2693_v8  ;;  %288 = vst.msk [vmem:[#allocation3 + $0x31] sm:$0xff] %vm241_vm0, %v2695_v9  ;;  %v310_v22 = vld [vmem:[#allocation3 + $0x2] sm:$0xff]  ;;  %2107 = vmatprep.subr.bf16.mxu0 %v2436_v43  ;;  %2256 = vmatprep.subr.bf16.mxu1 %v2436_v43 }
  0x2f   : > { %286 = vst.msk [vmem:[#allocation3 + $0x11] sm:$0xff] %vm241_vm0, %v2697_v10  ;;  %291 = vst.msk [vmem:[#allocation3 + $0x61] sm:$0xff] %vm241_vm0, %v2719_v12  ;;  %v302_v28 = vld [vmem:[#allocation3 + $0x1] sm:$0xff] }
  0x30   : > { %292 = vst.msk [vmem:[#allocation3 + $0x71] sm:$0xff] %vm241_vm0, %v2721_v13  ;;  %293 = vst.msk [vmem:[#allocation3 + $0x81] sm:$0xff] %vm241_vm0, %v2723_v14  ;;  %v2445_v11 = vld [vmem:[%s3389_s2] sm:$0xff]   ;;  %v2874_v18 = vld [vmem:[%s3389_s2 + $0x88] sm:$0xff]  }
  0x31   : > { %289 = vst.msk [vmem:[#allocation3 + $0x41] sm:$0xff] %vm241_vm0, %v2737_v15  ;;  %290 = vst.msk [vmem:[#allocation3 + $0x51] sm:$0xff] %vm241_vm0, %v2739_v16  ;;  %2108 = vmatpush3.bf16.msra.mxu0 %v2437_v44  ;;  %2264 = vmatpush3.bf16.msra.mxu1 %v2437_v44 }
  0x32   : > { %2109 = vmatprep.subr.bf16.mxu0 %v2438_v47  ;;  %2257 = vmatprep.subr.bf16.mxu1 %v2438_v47  ;;  %v294_v47 = vld [vmem:[#allocation3] sm:$0xff] }
  0x33   : > { %v350_v46 = vld [vmem:[#allocation3 + $0x90] sm:$0xff] }
  0x34   : > { %v358_v57 = vld [vmem:[#allocation3 + $0x91] sm:$0xff] }
  0x35   : > { %v2760_v23 = vld [vmem:[#allocation3 + $0x20] sm:$0xff]  ;;  %v2762_v24 = vld [vmem:[#allocation3 + $0x30] sm:$0xff]  ;;  %2110 = vmatpush3.bf16.msra.mxu0 %v2439_v52  ;;  %2265 = vmatpush3.bf16.msra.mxu1 %v2439_v52 }
  0x36   : > { %v334_v25 = vld [vmem:[#allocation3 + $0x12] sm:$0xff]  ;;  %v2320_v26 = vpack.i.bf16 %v2762_v24, %v2760_v23  ;;  %v2766_v27 = vld [vmem:[#allocation3 + $0x22] sm:$0xff]  ;;  %2111 = vmatprep.subr.bf16.mxu0 %v2440_v54  ;;  %2258 = vmatprep.subr.bf16.mxu1 %v2440_v54 }
  0x37   : > { %v2768_v29 = vld [vmem:[#allocation3 + $0x11] sm:$0xff]  ;;  %v2310_v30 = vpack.i.bf16 %v2766_v27, %v334_v25  ;;  %v2325_v31 = vpack.i.bf16 %v334_v25, %v310_v22  ;;  %v2776_v34 = vld [vmem:[#allocation3 + $0x21] sm:$0xff] }
  0x38   : > { %2321 = vrot.lane.b32.xlu1 %v2320_v26, %s2614_s23  ;;  %v2315_v32 = vpack.i.bf16 %v2768_v29, %v302_v28  ;;  %v2774_v33 = vld [vmem:[#allocation3 + $0x10] sm:$0xff]  ;;  %v2783_v37 = vld [vmem:[#allocation3 + $0x61] sm:$0xff] }
  0x39   : > { %2311 = vrot.lane.b32.xlu0 %v2310_v30, %s2615_s24  ;;  %v2778_v35 = vld [vmem:[#allocation3 + $0x31] sm:$0xff]  ;;  %v2335_v36 = vpack.i.bf16 %v2760_v23, %v2774_v33  ;;  %v2792_v41 = vld [vmem:[#allocation3 + $0x82] sm:$0xff]  ;;  %2112 = vmatpush3.bf16.msra.mxu0 %v2441_v58 }
  0x3a   : > { %v2785_v38 = vld [vmem:[#allocation3 + $0x71] sm:$0xff]  ;;  %v2330_v40 = vpack.i.bf16 %v2778_v35, %v2776_v34  ;;  %v2814_v49 = vld [vmem:[#allocation3 + $0x62] sm:$0xff]  ;;  %2266 = vmatpush3.bf16.msra.mxu1 %v2441_v58  ;;  %2113 = vmatprep.subr.bf16.mxu0 %v2442_v60 }
  0x3b   : > { %v2787_v39 = vld [vmem:[#allocation3 + $0x72] sm:$0xff]  ;;  %v2806_v45 = vpack.i.bf16 %v2785_v38, %v2783_v37  ;;  %v349_v50 = vld [vmem:[#allocation3 + $0x80] sm:$0xff]  ;;  %2259 = vmatprep.subr.bf16.mxu1 %v2442_v60 }
  0x3c   : > { %2326 = vrot.lane.b32.xlu1 %v2325_v31, %s2614_s23  ;;  %v2340_v48 = vpack.i.bf16 %v2792_v41, %v2787_v39  ;;  %v2816_v51 = vld [vmem:[#allocation3 + $0x70] sm:$0xff]  ;;  %v2355_v53 = vpack.i.bf16 %v2787_v39, %v2814_v49  ;;  %v2350_v55 = vpack.i.bf16 %v350_v46, %v349_v50  ;;  %v2829_v56 = vld [vmem:[#allocation3 + $0x81] sm:$0xff]  ;;  %v617_v22 = vpack.c.bf16 %v2787_v39, %v2814_v49 }
  0x3d   : > { %2316 = vrot.lane.b32.xlu0 %v2315_v32, %s2615_s24  ;;  %v2365_v59 = vpack.i.bf16 %v349_v50, %v2816_v51  ;;  %v2360_v61 = vpack.i.bf16 %v358_v57, %v2829_v56  ;;  %v2841_v62 = vld [vmem:[#allocation3 + $0x32] sm:$0xff]  ;;  %v2843_v63 = vld [vmem:[#allocation3 + $0x42] sm:$0xff]  ;;  %2114 = vmatpush3.bf16.msra.mxu0 %v2443_v1 }
  0x3e   : > { %v2845_v0 = vld [vmem:[#allocation3 + $0x52] sm:$0xff]  ;;  %v611_v2 = vpack.c.bf16 %v2841_v62, %v2766_v27  ;;  %v2370_v5 = vpack.i.bf16 %v2843_v63, %v2841_v62  ;;  %v2861_v6 = vld [vmem:[#allocation3 + $0x40] sm:$0xff]  ;;  %2267 = vmatpush3.bf16.msra.mxu1 %v2443_v1  ;;  %v2385_v17 = vpack.i.bf16 %v2841_v62, %v2766_v27  ;;  %2115 = vmatprep.subr.bf16.mxu0 %v2444_v3 }
  0x3f   : > { %v614_v4 = vpack.c.bf16 %v2845_v0, %v2843_v63  ;;  %v2863_v7 = vld [vmem:[#allocation3 + $0x50] sm:$0xff]  ;;  %2260 = vmatprep.subr.bf16.mxu1 %v2444_v3  ;;  %v2879_v20 = vld [vmem:[#allocation3 + $0x41] sm:$0xff]  ;;  %v2395_v25 = vpack.i.bf16 %v2861_v6, %v2762_v24  ;;  %v2400_v28 = vpack.i.bf16 %v2814_v49, %v2845_v0  ;;  %v2415_v31 = vpack.i.bf16 %v2845_v0, %v2843_v63 }
  0x40   : > { %2336 = vrot.lane.b32.xlu1 %v2335_v36, %s2616_s10  ;;  %v2380_v19 = vpack.i.bf16 %v2863_v7, %v2861_v6  ;;  %v2881_v21 = vld [vmem:[#allocation3 + $0x51] sm:$0xff]  ;;  %v347_v30 = vld [vmem:[#allocation3 + $0x60] sm:$0xff] }
  0x41   : > { %2331 = vrot.lane.b32.xlu0 %v2330_v40, %s2616_s10  ;;  %2116 = vmatpush3.bf16.msra.mxu0 %v2445_v11  ;;  %v2390_v26 = vpack.i.bf16 %v2881_v21, %v2879_v20  ;;  %v2410_v32 = vpack.i.bf16 %v2816_v51, %v347_v30  ;;  %v2425_v36 = vpack.i.bf16 %v347_v30, %v2863_v7 }
  0x42   : > { %2268 = vmatpush3.bf16.msra.mxu1 %v2445_v11 }
  0x43   : > { %2205 = vmatprep.subr.bf16.mxu1 %v2874_v18 }
  0x44   : > { %2346 = vrot.lane.b32.xlu1 %v2806_v45, %s2615_s24 }
  0x45   : > { %2341 = vrot.lane.b32.xlu0 %v2340_v48, %s2615_s24 }
  0x48   : > { %2356 = vrot.lane.b32.xlu1 %v2355_v53, %s2614_s23 }
  0x49   : > { %2351 = vrot.lane.b32.xlu0 %v2350_v55, %s2614_s23 }
  0x4c   : > { %2366 = vrot.lane.b32.xlu1 %v2365_v59, %s2616_s10 }
  0x4d   : > { %2361 = vrot.lane.b32.xlu0 %v2360_v61, %s2616_s10 }
  0x50   : > { %2376 = vrot.lane.b32.xlu1 %v2330_v40, %s2615_s24 }
  0x51   : > { %2371 = vrot.lane.b32.xlu0 %v2370_v5, %s2615_s24 }
  0x54   : > { %2386 = vrot.lane.b32.xlu1 %v2385_v17, %s2614_s23 }
  0x55   : > { %2381 = vrot.lane.b32.xlu0 %v2380_v19, %s2614_s23 }
  0x58   : > { %2396 = vrot.lane.b32.xlu1 %v2395_v25, %s2616_s10 }
  0x59   : > { %2391 = vrot.lane.b32.xlu0 %v2390_v26, %s2616_s10 }
  0x5c   : > { %2406 = vrot.lane.b32.xlu1 %v2390_v26, %s2615_s24 }
  0x5d   : > { %2401 = vrot.lane.b32.xlu0 %v2400_v28, %s2615_s24 }
  0x60   : > { %2416 = vrot.lane.b32.xlu1 %v2415_v31, %s2614_s23 }
  0x61   : > { %2411 = vrot.lane.b32.xlu0 %v2410_v32, %s2614_s23 }
  0x64   : > { %2426 = vrot.lane.b32.xlu1 %v2425_v36, %s2616_s10 }
  0x65   : > { %2421 = vrot.lane.b32.xlu0 %v2806_v45, %s2616_s10 }
  0xaa   : > { %v2322_v40 = vpop.permute.xlu1 %2321 }
  0xab   : > { %v2312_v42 = vpop.permute.xlu0 %2311  ;;  %v2324_v55 = vunpack.i.h.bf16 %v2322_v40  ;;  %v2323_v57 = vunpack.i.l.bf16 %v2322_v40 }
  0xac   : > { %v2314_v43 = vunpack.i.h.bf16 %v2312_v42  ;;  %v2313_v44 = vunpack.i.l.bf16 %v2312_v42 }
  0xae   : > { %v2327_v46 = vpop.permute.xlu1 %2326  ;;  %v586_v58 = vsel %vm241_vm0, %v2776_v34, %v2314_v43  ;;  %v585_v45 = vsel %vm241_vm0, %v2768_v29, %v2313_v44 }
  0xaf   : > { %v2317_v48 = vpop.permute.xlu0 %2316  ;;  %v2329_v50 = vunpack.i.h.bf16 %v2327_v46  ;;  %v2328_v52 = vunpack.i.l.bf16 %v2327_v46  ;;  %v593_v34 = vsel %vm567_vm2, %v585_v45, %v2323_v57  ;;  %v594_v26 = vsel %vm567_vm2, %v586_v58, %v2324_v55 }
  0xb0   : > { %v2319_v53 = vunpack.i.h.bf16 %v2317_v48  ;;  %v2318_v54 = vunpack.i.l.bf16 %v2317_v48 }
  0xb2   : > { %v559_v59 = vsel %vm241_vm0, %v294_v47, %v2318_v54  ;;  %v560_v60 = vsel %vm241_vm0, %v2774_v33, %v2319_v53  ;;  %v2337_v61 = vpop.permute.xlu1 %2336 }
  0xb3   : > { %v2339_v1 = vunpack.i.h.bf16 %v2337_v61  ;;  %v2338_v3 = vunpack.i.l.bf16 %v2337_v61  ;;  %v2332_v5 = vpop.permute.xlu0 %2331  ;;  %v568_v11 = vsel %vm567_vm2, %v559_v59, %v2328_v52  ;;  %v569_v17 = vsel %vm567_vm2, %v560_v60, %v2329_v50 }
  0xb4   : > { %v2334_v19 = vunpack.i.h.bf16 %v2332_v5  ;;  %v2333_v25 = vunpack.i.l.bf16 %v2332_v5 }
  0xb5   : > { %v577_v29 = vsel %vm576_vm3, %v568_v11, %v2338_v3  ;;  %v578_v28 = vsel %vm576_vm3, %v569_v17, %v2339_v1 }
  0xb6   : > { %v2347_v31 = vpop.permute.xlu1 %2346  ;;  %v601_v33 = vsel %vm576_vm3, %v593_v34, %v2333_v25  ;;  %v602_v32 = vsel %vm576_vm3, %v594_v26, %v2334_v19  ;;  %v609_v36 = vpack.c.bf16 %v578_v28, %v577_v29 }
  0xb7   : > { %v2342_v40 = vpop.permute.xlu0 %2341  ;;  %v610_v42 = vpack.c.bf16 %v602_v32, %v601_v33  ;;  %v2349_v43 = vunpack.i.h.bf16 %v2347_v31  ;;  %v2348_v44 = vunpack.i.l.bf16 %v2347_v31  ;;  %v2447_v33 = vld [vmem:[%s3389_s2 + $0x80] sm:$0xff]  }
  0xb8   : > { %v2344_v47 = vunpack.i.h.bf16 %v2342_v40  ;;  %v2343_v48 = vunpack.i.l.bf16 %v2342_v40 }
  0xb9   : > { %816 = vmatprep.mubr.bf16.mxu0 %v610_v42  ;;  %v566_v57 = vsel %vm241_vm0, %v2816_v51, %v2349_v43  ;;  %v565_v58 = vsel %vm241_vm0, %v347_v30, %v2348_v44 }
  0xba   : > { %817 = vmatmul.mubr.bf16.vlgmr.msra.gmra.mxu0 %v609_v36  ;;  %v2357_v46 = vpop.permute.xlu1 %2356  ;;  %v592_v59 = vsel %vm241_vm0, %v2829_v56, %v2344_v47  ;;  %v591_v60 = vsel %vm241_vm0, %v2785_v38, %v2343_v48 }
  0xbb   : > { %v2352_v50 = vpop.permute.xlu0 %2351  ;;  %v2359_v52 = vunpack.i.h.bf16 %v2357_v46  ;;  %v2358_v53 = vunpack.i.l.bf16 %v2357_v46 }
  0xbc   : > { %v2354_v54 = vunpack.i.h.bf16 %v2352_v50  ;;  %v2353_v55 = vunpack.i.l.bf16 %v2352_v50 }
  0xbd   : > { %v574_v5 = vsel %vm567_vm2, %v565_v58, %v2358_v53  ;;  %v575_v11 = vsel %vm567_vm2, %v566_v57, %v2359_v52 }
  0xbe   : > { %v2367_v45 = vpop.permute.xlu1 %2366  ;;  %v599_v51 = vsel %vm567_vm2, %v591_v60, %v2353_v55  ;;  %v600_v30 = vsel %vm567_vm2, %v592_v59, %v2354_v54 }
  0xbf   : > { %v2369_v61 = vunpack.i.h.bf16 %v2367_v45  ;;  %v2368_v1 = vunpack.i.l.bf16 %v2367_v45  ;;  %v2362_v3 = vpop.permute.xlu0 %2361 }
  0xc0   : > { %v2364_v17 = vunpack.i.h.bf16 %v2362_v3  ;;  %v2363_v19 = vunpack.i.l.bf16 %v2362_v3 }
  0xc1   : > { %v583_v25 = vsel %vm576_vm3, %v574_v5, %v2368_v1  ;;  %v584_v56 = vsel %vm576_vm3, %v575_v11, %v2369_v61 }
  0xc2   : > { %v2377_v34 = vpop.permute.xlu1 %2376  ;;  %v607_v38 = vsel %vm576_vm3, %v599_v51, %v2363_v19  ;;  %v608_v26 = vsel %vm576_vm3, %v600_v30, %v2364_v17  ;;  %v618_v29 = vpack.c.bf16 %v584_v56, %v583_v25  ;;  %v366_v17 = vld [vmem:[#allocation3 + $0x92] sm:$0xff] }
  0xc3   : > { %v2372_v28 = vpop.permute.xlu0 %2371  ;;  %v619_v31 = vpack.c.bf16 %v608_v26, %v607_v38  ;;  %v2379_v32 = vunpack.i.h.bf16 %v2377_v34  ;;  %v2378_v36 = vunpack.i.l.bf16 %v2377_v34  ;;  %v620_v0 = vpack.c.bf16 %v366_v17, %v2792_v41 }
  0xc4   : > { %v2374_v42 = vunpack.i.h.bf16 %v2372_v28  ;;  %v2373_v43 = vunpack.i.l.bf16 %v2372_v28 }
  0xc5   : > { %840 = vmatprep.mubr.bf16.mxu1 %v619_v31  ;;  %v562_v52 = vsel %vm241_vm0, %v2762_v24, %v2379_v32  ;;  %v561_v53 = vsel %vm241_vm0, %v2760_v23, %v2378_v36 }
  0xc6   : > { %841 = vmatmul.mubr.bf16.vlgmr.msra.gmra.mxu1 %v618_v29  ;;  %v2387_v40 = vpop.permute.xlu1 %2386  ;;  %v587_v27 = vsel %vm241_vm0, %v2778_v35, %v2373_v43 }
  0xc7   : > { %v2382_v44 = vpop.permute.xlu0 %2381  ;;  %2206 = vmatpush3.bf16.msra.mxu1 %v2874_v18  ;;  %2209 = vmatprep.mubr.msk.bf16.mxu1 %vm241_vm0, %v611_v2  ;;  %v2389_v46 = vunpack.i.h.bf16 %v2387_v40  ;;  %v2388_v47 = vunpack.i.l.bf16 %v2387_v40  ;;  %v588_v18 = vsel %vm241_vm0, %v2879_v20, %v2374_v42 }
  0xc8   : > { %2207 = vmatprep.subr.bf16.mxu1 %v2447_v33  ;;  %v2384_v48 = vunpack.i.h.bf16 %v2382_v44  ;;  %v2383_v50 = vunpack.i.l.bf16 %v2382_v44 }
  0xc9   : > { %v570_v57 = vsel %vm567_vm2, %v561_v53, %v2388_v47  ;;  %v571_v58 = vsel %vm567_vm2, %v562_v52, %v2389_v46 }
  0xca   : > { %v2397_v54 = vpop.permute.xlu1 %2396  ;;  %v595_v59 = vsel %vm567_vm2, %v587_v27, %v2383_v50  ;;  %v596_v23 = vsel %vm567_vm2, %v588_v18, %v2384_v48 }
  0xcb   : > { %v2399_v62 = vunpack.i.h.bf16 %v2397_v54  ;;  %v2398_v2 = vunpack.i.l.bf16 %v2397_v54  ;;  %v2392_v55 = vpop.permute.xlu0 %2391  ;;  %2208 = vmatpush3.bf16.msra.mxu1 %v2447_v33 }
  0xcc   : > { %v2394_v45 = vunpack.i.h.bf16 %v2392_v55  ;;  %v2393_v24 = vunpack.i.l.bf16 %v2392_v55  ;;  %v1992_v55 = vld [vmem:[%s3390_s3] ss:$0 sm:$0xff] }
  0xcd   : > { %v579_v60 = vsel %vm576_vm3, %v570_v57, %v2398_v2  ;;  %v580_v20 = vsel %vm576_vm3, %v571_v58, %v2399_v62 }
  0xce   : > { %2210 = vmatmul.mubr.msk.bf16.vlgmr.msra.gmra.mxu1 %vm241_vm0, %v614_v4  ;;  %v2407_v35 = vpop.permute.xlu1 %2406  ;;  %v603_v61 = vsel %vm576_vm3, %v595_v59, %v2393_v24  ;;  %v604_v1 = vsel %vm576_vm3, %v596_v23, %v2394_v45  ;;  %v612_v3 = vpack.c.bf16 %v580_v20, %v579_v60 }
  0xcf   : > { %v2402_v5 = vpop.permute.xlu0 %2401  ;;  %v613_v11 = vpack.c.bf16 %v604_v1, %v603_v61  ;;  %2213 = vmatprep.mubr.msk.bf16.mxu1 %vm241_vm0, %v617_v22  ;;  %v2409_v19 = vunpack.i.h.bf16 %v2407_v35  ;;  %v2408_v51 = vunpack.i.l.bf16 %v2407_v35 }
  0xd0   : > { %v2404_v4 = vunpack.i.h.bf16 %v2402_v5  ;;  %v2403_v30 = vunpack.i.l.bf16 %v2402_v5 }
  0xd1   : > { %824 = vmatprep.mubr.bf16.mxu0 %v613_v11  ;;  %v564_v39 = vsel %vm241_vm0, %v2863_v7, %v2409_v19  ;;  %v563_v49 = vsel %vm241_vm0, %v2861_v6, %v2408_v51 }
  0xd2   : > { %825 = vmatmul.mubr.bf16.gmra.mxu0 %v612_v3  ;;  %v2417_v63 = vpop.permute.xlu1 %2416  ;;  %v590_v29 = vsel %vm241_vm0, %v2783_v37, %v2404_v4  ;;  %v589_v41 = vsel %vm241_vm0, %v2881_v21, %v2403_v30 }
  0xd3   : > { %v2412_v25 = vpop.permute.xlu0 %2411  ;;  %v2419_v56 = vunpack.i.h.bf16 %v2417_v63  ;;  %v2418_v34 = vunpack.i.l.bf16 %v2417_v63 }
  0xd4   : > { %v2414_v38 = vunpack.i.h.bf16 %v2412_v25  ;;  %v2413_v26 = vunpack.i.l.bf16 %v2412_v25 }
  0xd5   : > { %v572_v32 = vsel %vm567_vm2, %v563_v49, %v2418_v34  ;;  %v573_v36 = vsel %vm567_vm2, %v564_v39, %v2419_v56 }
  0xd6   : > { %2214 = vmatmul.mubr.msk.bf16.gmra.mxu1 %vm241_vm0, %v620_v0  ;;  %v2427_v22 = vpop.permute.xlu1 %2426  ;;  %v597_v6 = vsel %vm567_vm2, %v589_v41, %v2413_v26  ;;  %v598_v42 = vsel %vm567_vm2, %v590_v29, %v2414_v38 }
  0xd7   : > { %v2429_v28 = vunpack.i.h.bf16 %v2427_v22  ;;  %v2428_v31 = vunpack.i.l.bf16 %v2427_v22  ;;  %v2422_v33 = vpop.permute.xlu0 %2421 }
  0xd8   : > { %v2424_v7 = vunpack.i.h.bf16 %v2422_v33  ;;  %v2423_v40 = vunpack.i.l.bf16 %v2422_v33 }
  0xd9   : > { %v581_v43 = vsel %vm576_vm3, %v572_v32, %v2428_v31  ;;  %v582_v37 = vsel %vm576_vm3, %v573_v36, %v2429_v28 }
  0xda   : > { %v605_v44 = vsel %vm576_vm3, %v597_v6, %v2423_v40  ;;  %v606_v21 = vsel %vm576_vm3, %v598_v42, %v2424_v7  ;;  %v615_v46 = vpack.c.bf16 %v582_v37, %v581_v43 }
  0xdb   : > { %v616_v47 = vpack.c.bf16 %v606_v21, %v605_v44 }
  0xdd   : > { %832 = vmatprep.mubr.bf16.mxu0 %v616_v47 }
  0xde   : > { %833 = vmatmul.mubr.bf16.gmra.mxu0 %v615_v46 }
 0x17a   : > { %v2117_v48 = vpop.f32.mrf.mxu0 }
 0x17c   : > { %v2118_v50 = vpop.f32.mrf.mxu0 }
 0x17d   : > { %v2119_v27 = vadd.f32 %v2118_v50, %v2117_v48 }
 0x17e   : > { %v2120_v53 = vpop.f32.mrf.mxu0 }
 0x17f   : > { %v819_v45 = vadd.f32 %v2119_v27, %v1992_v55 }
 0x180   : > { %v2121_v62 = vpop.f32.mrf.mxu0 }
 0x181   : > { %v2122_v58 = vadd.f32 %v2121_v62, %v2120_v53 }
 0x183   : > { %v822_v61 = vadd.f32 %v2122_v58, %v1992_v55 }
 0x186   : > { %v2135_v52 = vpop.f32.mrf.mxu1 }
 0x188   : > { %v2136_v54 = vpop.f32.mrf.mxu1 }
 0x189   : > { %v2137_v59 = vadd.f32 %v2136_v54, %v2135_v52 }
 0x18a   : > { %v2138_v18 = vpop.f32.mrf.mxu1 }
 0x18b   : > { %v843_v51 = vadd.f32 %v2137_v59, %v1992_v55 }
 0x18c   : > { %v2139_v2 = vpop.f32.mrf.mxu1 }
 0x18d   : > { %v2140_v1 = vadd.f32 %v2139_v2, %v2138_v18 }
 0x18e   : > { %v2211_v57 = vpop.f32.mrf.mxu1 }
 0x18f   : > { %v846_v38 = vadd.f32 %v2140_v1, %v1992_v55 }
 0x190   : > { %v883_v24 = vpop.f32.mrf.mxu1 }
 0x191   : > { %v884_v23 = vadd.f32 %v883_v24, %v819_v45 }
 0x192   : > { %v2123_v60 = vpop.f32.mrf.mxu0  ;;  %v2212_v20 = vpop.f32.mrf.mxu1 }
 0x193   : > { %v914_v35 = vmax.f32 %v884_v23, 0.0 }
 0x194   : > { %v2124_v3 = vpop.f32.mrf.mxu0  ;;  %v886_v5 = vpop.f32.mrf.mxu1 }
 0x195   : > { %v922_v11 = vadd.f32 %v914_v35, %v2697_v10  ;;  %v2125_v17 = vadd.f32 %v2124_v3, %v2123_v60  ;;  %v887_v19 = vadd.f32 %v886_v5, %v822_v61 }
 0x196   : > { %v2126_v63 = vpop.f32.mrf.mxu0  ;;  %v2215_v0 = vpop.f32.mrf.mxu1 }
 0x197   : > { %930 = vst.msk [vmem:[#allocation2] sm:$0xff] %vm241_vm0, %v922_v11  ;;  %v827_v4 = vadd.f32 %v2125_v17, %v1992_v55  ;;  %v915_v30 = vmax.f32 %v887_v19, 0.0  ;;  %v908_v25 = vadd.f32 %v2215_v0, %v843_v51 }
 0x198   : > { %v2127_v56 = vpop.f32.mrf.mxu0  ;;  %v899_v34 = vpop.f32.mrf.mxu1 }
 0x199   : > { %v892_v26 = vadd.f32 %v2211_v57, %v827_v4  ;;  %v923_v39 = vadd.f32 %v915_v30, %v2693_v8  ;;  %v920_v49 = vmax.f32 %v908_v25, 0.0  ;;  %v2128_v22 = vadd.f32 %v2127_v56, %v2126_v63 }
 0x19a   : > { %v2216_v29 = vpop.f32.mrf.mxu1 }
 0x19b   : > { %v916_v10 = vmax.f32 %v892_v26, 0.0  ;;  %931 = vst.msk [vmem:[#allocation2 + $0x8] sm:$0xff] %vm241_vm0, %v923_v39  ;;  %v928_v41 = vadd.f32 %v920_v49, %v2721_v13  ;;  %v830_v28 = vadd.f32 %v2128_v22, %v1992_v55  ;;  %v911_v31 = vadd.f32 %v2216_v29, %v846_v38 }
 0x19c   : > { %v902_v48 = vpop.f32.mrf.mxu1 }
 0x19d   : > { %v924_v33 = vadd.f32 %v916_v10, %v2695_v9  ;;  %936 = vst.msk [vmem:[#allocation2 + $0x30] sm:$0xff] %vm241_vm0, %v928_v41  ;;  %v895_v32 = vadd.f32 %v2212_v20, %v830_v28  ;;  %v921_v36 = vmax.f32 %v911_v31, 0.0 }
 0x19e   : > { %v2129_v7 = vpop.f32.mrf.mxu0 }
 0x19f   : > { %932 = vst.msk [vmem:[#allocation2 + $0x10] sm:$0xff] %vm241_vm0, %v924_v33  ;;  %v917_v8 = vmax.f32 %v895_v32, 0.0  ;;  %v929_v40 = vadd.f32 %v921_v36, %v2723_v14 }
 0x1a0   : > { %v2130_v6 = vpop.f32.mrf.mxu0 }
 0x1a1   : > { %v925_v42 = vadd.f32 %v917_v8, %v2737_v15  ;;  %937 = vst.msk [vmem:[#allocation2 + $0x38] sm:$0xff] %vm241_vm0, %v929_v40  ;;  %v2131_v13 = vadd.f32 %v2130_v6, %v2129_v7 }
 0x1a2   : > { %v2132_v43 = vpop.f32.mrf.mxu0 }
 0x1a3   : > { %933 = vst.msk [vmem:[#allocation2 + $0x18] sm:$0xff] %vm241_vm0, %v925_v42  ;;  %v835_v9 = vadd.f32 %v2131_v13, %v1992_v55 }
 0x1a4   : > { %v2133_v37 = vpop.f32.mrf.mxu0 }
 0x1a5   : > { %v900_v44 = vadd.f32 %v899_v34, %v835_v9  ;;  %v2134_v21 = vadd.f32 %v2133_v37, %v2132_v43 }
 0x1a7   : > { %v918_v46 = vmax.f32 %v900_v44, 0.0  ;;  %v838_v47 = vadd.f32 %v2134_v21, %v1992_v55 }
 0x1a9   : > { %v926_v50 = vadd.f32 %v918_v46, %v2739_v16  ;;  %v903_v52 = vadd.f32 %v902_v48, %v838_v47 }
 0x1ab   : > { %934 = vst.msk [vmem:[#allocation2 + $0x20] sm:$0xff] %vm241_vm0, %v926_v50  ;;  %v919_v14 = vmax.f32 %v903_v52, 0.0 }
 0x1ad   : > { %v927_v15 = vadd.f32 %v919_v14, %v2719_v12 }
 0x1af   : > { %935 = vst.msk [vmem:[#allocation2 + $0x28] sm:$0xff] %vm241_vm0, %v927_v15 }
 0x1b0 PF: > { %p2015_p10 = scmp.eq.s32.totalorder %s2673_s28, 0 }
 0x1b2   : > { %941 = sbr.rel (%p2015_p10) target bundleno = 655 (0x28f), region = 48 }
 0x1b7   : > { %v2448_v53 = vld [vmem:[%s3391_s4 + $0x8] sm:$0xff]   ;;  %v2449_v16 = vld [vmem:[%s3391_s4] sm:$0xff]   ;;  %v944_v2 = vld [vmem:[#allocation2 + $0x10] sm:$0xff] }
 0x1b8   : > { %2217 = vmatprep.subr.bf16.mxu0 %v2448_v53  ;;  %2269 = vmatprep.subr.bf16.mxu1 %v2448_v53  ;;  %v942_v54 = vld [vmem:[#allocation2] sm:$0xff]  ;;  %v943_v18 = vld [vmem:[#allocation2 + $0x8] sm:$0xff]  ;;  %v945_v55 = vld [vmem:[#allocation2 + $0x18] sm:$0xff] }
 0x1b9   : > { %v946_v27 = vld [vmem:[#allocation2 + $0x20] sm:$0xff]  ;;  %2218 = vmatpush3.bf16.msra.mxu0 %v2448_v53  ;;  %2271 = vmatpush3.bf16.msra.mxu1 %v2448_v53  ;;  %v950_v12 = vpack.c.bf16 %v943_v18, %v942_v54  ;;  %v947_v62 = vld [vmem:[#allocation2 + $0x28] sm:$0xff]  ;;  %v948_v58 = vld [vmem:[#allocation2 + $0x30] sm:$0xff]  ;;  %v951_v24 = vpack.c.bf16 %v945_v55, %v944_v2 }
 0x1ba   : > { %2219 = vmatprep.subr.bf16.mxu0 %v2449_v16  ;;  %2270 = vmatprep.subr.bf16.mxu1 %v2449_v16  ;;  %v952_v57 = vpack.c.bf16 %v947_v62, %v946_v27  ;;  %v949_v45 = vld [vmem:[#allocation2 + $0x38] sm:$0xff]  ;;  %v2016_v23 = vld [vmem:[%s3392_s5] ss:$0 sm:$0xff] }
 0x1bb   : > { %2221 = vmatprep.mubr.msk.bf16.mxu0 %vm241_vm0, %v950_v12  ;;  %v953_v59 = vpack.c.bf16 %v949_v45, %v948_v58 }
 0x1bc   : > { %2225 = vmatprep.mubr.msk.bf16.mxu1 %vm241_vm0, %v952_v57 }
 0x1bd   : > { %2220 = vmatpush3.bf16.msra.mxu0 %v2449_v16  ;;  %2272 = vmatpush3.bf16.msra.mxu1 %v2449_v16 }
 0x1c0   : > { %2222 = vmatmul.mubr.msk.bf16.vlgmr.msra.gmra.mxu0 %vm241_vm0, %v951_v24  ;;  %2226 = vmatmul.mubr.msk.bf16.vlgmr.msra.gmra.mxu1 %vm241_vm0, %v953_v59 }
 0x280   : > { %v2223_v60 = vpop.f32.mrf.mxu0  ;;  %v2227_v20 = vpop.f32.mrf.mxu1 }
 0x281   : > { %v1032_v35 = vadd.f32 %v2223_v60, %v2016_v23  ;;  %v1048_v61 = vadd.f32 %v2227_v20, %v2016_v23 }
 0x282   : > { %v1023_v1 = vpop.f32.mrf.mxu0  ;;  %v1039_v3 = vpop.f32.mrf.mxu1 }
 0x283   : > { %v1056_v5 = vmax.f32 %v1032_v35, 0.0  ;;  %v1060_v11 = vmax.f32 %v1048_v61, 0.0  ;;  %v1024_v17 = vadd.f32 %v2016_v23, %v1023_v1  ;;  %v1040_v19 = vadd.f32 %v2016_v23, %v1039_v3 }
 0x284   : > { %v2224_v51 = vpop.f32.mrf.mxu0  ;;  %v2228_v63 = vpop.f32.mrf.mxu1 }
 0x285   : > { %v1064_v0 = vadd.f32 %v1056_v5, %v944_v2  ;;  %v1068_v4 = vadd.f32 %v1060_v11, %v948_v58  ;;  %v1054_v30 = vmax.f32 %v1024_v17, 0.0  ;;  %v1058_v25 = vmax.f32 %v1040_v19, 0.0 }
 0x286   : > { %v1035_v56 = vadd.f32 %v2224_v51, %v2016_v23  ;;  %v1051_v34 = vadd.f32 %v2228_v63, %v2016_v23  ;;  %v1026_v38 = vpop.f32.mrf.mxu0  ;;  %v1042_v26 = vpop.f32.mrf.mxu1 }
 0x287   : > { %1072 = vst.msk [vmem:[#allocation2 + $0x10] sm:$0xff] %vm241_vm0, %v1064_v0  ;;  %1076 = vst.msk [vmem:[#allocation2 + $0x30] sm:$0xff] %vm241_vm0, %v1068_v4  ;;  %v1062_v39 = vadd.f32 %v1054_v30, %v942_v54  ;;  %v1066_v49 = vadd.f32 %v1058_v25, %v946_v27  ;;  %v1027_v22 = vadd.f32 %v2016_v23, %v1026_v38 }
 0x288   : > { %v1043_v29 = vadd.f32 %v2016_v23, %v1042_v26  ;;  %v1057_v10 = vmax.f32 %v1035_v56, 0.0  ;;  %v1061_v41 = vmax.f32 %v1051_v34, 0.0 }
 0x289   : > { %1070 = vst.msk [vmem:[#allocation2] sm:$0xff] %vm241_vm0, %v1062_v39  ;;  %1074 = vst.msk [vmem:[#allocation2 + $0x20] sm:$0xff] %vm241_vm0, %v1066_v49  ;;  %v1055_v28 = vmax.f32 %v1027_v22, 0.0 }
 0x28a   : > { %v1059_v31 = vmax.f32 %v1043_v29, 0.0  ;;  %v1065_v33 = vadd.f32 %v1057_v10, %v945_v55  ;;  %v1069_v32 = vadd.f32 %v1061_v41, %v949_v45 }
 0x28b   : > { %v1063_v36 = vadd.f32 %v1055_v28, %v943_v18 }
 0x28c   : > { %v1067_v7 = vadd.f32 %v1059_v31, %v947_v62  ;;  %1073 = vst.msk [vmem:[#allocation2 + $0x18] sm:$0xff] %vm241_vm0, %v1065_v33  ;;  %1077 = vst.msk [vmem:[#allocation2 + $0x38] sm:$0xff] %vm241_vm0, %v1069_v32 }
 0x28d   : > { %1071 = vst.msk [vmem:[#allocation2 + $0x8] sm:$0xff] %vm241_vm0, %v1063_v36 }
 0x28e   : > { %1075 = vst.msk [vmem:[#allocation2 + $0x28] sm:$0xff] %vm241_vm0, %v1067_v7 }
 0x28f PF: > { %s1078_s19 = sadd.s32 1, %s1990_s27 }
 0x290   : > { %s3030_s20 = sld [smem:[#allocation5 + %s1078_s19]] }
 0x296   : > { %p2023_p11 = scmp.ne.s32.totalorder %s3030_s20, 0 }
 0x297   : > { %s2618_s11 = smov (!%p2023_p11), 64   ;;  %s2619_s23 = smov (!%p2023_p11), 32  }
 0x298   : > { %1083 = sbr.rel (%p2023_p11) target bundleno = 1066 (0x42a), region = 52  ;;  %s2620_s17 = smov (!%p2023_p11), 96  }
 0x29d   : > { %v3033_v8 = vld [vmem:[#allocation2 + $0x8] sm:$0xff]  ;;  %v3035_v40 = vld [vmem:[#allocation2 + $0x10] sm:$0xff]  ;;  %vm1093_vm4 = vcmask 254976   ;;  %v3037_v6 = vld [vmem:[#allocation2] sm:$0xff]  ;;  %v2617_v42 = vmov 0.0   ;;  %vm1395_vm5 = vcmask 523264  }
 0x29e   : > { %1097 = vst.msk [vmem:[#allocation3 + $0x20] sm:$0xff] %vm241_vm0, %v2617_v42  ;;  %1099 = vst.msk [vmem:[#allocation3 + $0x30] sm:$0xff] %vm241_vm0, %v2617_v42  ;;  %v3059_v13 = vld [vmem:[#allocation2 + $0x28] sm:$0xff]  ;;  %v3061_v43 = vld [vmem:[#allocation2 + $0x30] sm:$0xff]  ;;  %vm1404_vm6 = vcmask 785408  }
 0x29f   : > { %1098 = vst.msk [vmem:[#allocation3 + $0x28] sm:$0x3] %vm1093_vm4, %v2617_v42  ;;  %1100 = vst.msk [vmem:[#allocation3 + $0x38] sm:$0x3] %vm1093_vm4, %v2617_v42  ;;  %v3063_v9 = vld [vmem:[#allocation2 + $0x38] sm:$0xff]  ;;  %v3079_v44 = vld [vmem:[#allocation2 + $0x20] sm:$0xff] }
 0x2a0   : > { %1092 = vst.msk [vmem:[#allocation3] sm:$0xff] %vm241_vm0, %v2617_v42  ;;  %1095 = vst.msk [vmem:[#allocation3 + $0x10] sm:$0xff] %vm241_vm0, %v2617_v42  ;;  %v3077_v37 = vld [vmem:[#allocation2 + $0x18] sm:$0xff]  ;;  %v2570_v21 = vld [vmem:[%s3389_s2 + $0x108] sm:$0xff]  }
 0x2a1   : > { %1094 = vst.msk [vmem:[#allocation3 + $0x8] sm:$0x3] %vm1093_vm4, %v2617_v42  ;;  %1096 = vst.msk [vmem:[#allocation3 + $0x18] sm:$0x3] %vm1093_vm4, %v2617_v42  ;;  %v2571_v46 = vld [vmem:[%s3389_s2 + $0xc8] sm:$0xff]   ;;  %2153 = vmatprep.subr.bf16.mxu0 %v2570_v21  ;;  %v2572_v47 = vld [vmem:[%s3389_s2 + $0x100] sm:$0xff]   ;;  %2273 = vmatprep.subr.bf16.mxu1 %v2570_v21 }
 0x2a2   : > { %1101 = vst.msk [vmem:[#allocation3 + $0x40] sm:$0xff] %vm241_vm0, %v2617_v42  ;;  %1103 = vst.msk [vmem:[#allocation3 + $0x50] sm:$0xff] %vm241_vm0, %v2617_v42  ;;  %2154 = vmatpush3.bf16.msra.mxu0 %v2571_v46  ;;  %v2573_v48 = vld [vmem:[%s3389_s2 + $0xc0] sm:$0xff]   ;;  %2281 = vmatpush3.bf16.msra.mxu1 %v2571_v46  ;;  %v2574_v50 = vld [vmem:[%s3389_s2 + $0xf8] sm:$0xff]  }
 0x2a3   : > { %1102 = vst.msk [vmem:[#allocation3 + $0x48] sm:$0x3] %vm1093_vm4, %v2617_v42  ;;  %1104 = vst.msk [vmem:[#allocation3 + $0x58] sm:$0x3] %vm1093_vm4, %v2617_v42  ;;  %2155 = vmatprep.subr.bf16.mxu0 %v2572_v47  ;;  %2274 = vmatprep.subr.bf16.mxu1 %v2572_v47  ;;  %v2575_v35 = vld [vmem:[%s3389_s2 + $0xb8] sm:$0xff]   ;;  %v2576_v61 = vld [vmem:[%s3389_s2 + $0xf0] sm:$0xff]  }
 0x2a4   : > { %1105 = vst.msk [vmem:[#allocation3 + $0x60] sm:$0xff] %vm241_vm0, %v2617_v42  ;;  %1107 = vst.msk [vmem:[#allocation3 + $0x70] sm:$0xff] %vm241_vm0, %v2617_v42  ;;  %v2577_v1 = vld [vmem:[%s3389_s2 + $0xb0] sm:$0xff]   ;;  %v2578_v11 = vld [vmem:[%s3389_s2 + $0xe8] sm:$0xff]  }
 0x2a5   : > { %1106 = vst.msk [vmem:[#allocation3 + $0x68] sm:$0x3] %vm1093_vm4, %v2617_v42  ;;  %1108 = vst.msk [vmem:[#allocation3 + $0x78] sm:$0x3] %vm1093_vm4, %v2617_v42  ;;  %v2579_v0 = vld [vmem:[%s3389_s2 + $0xa8] sm:$0xff]   ;;  %v2580_v30 = vld [vmem:[%s3389_s2 + $0xe0] sm:$0xff]  }
 0x2a6   : > { %1109 = vst.msk [vmem:[#allocation3 + $0x80] sm:$0xff] %vm241_vm0, %v2617_v42  ;;  %1111 = vst.msk [vmem:[#allocation3 + $0x90] sm:$0xff] %vm241_vm0, %v2617_v42  ;;  %2156 = vmatpush3.bf16.msra.mxu0 %v2573_v48  ;;  %2282 = vmatpush3.bf16.msra.mxu1 %v2573_v48  ;;  %v2581_v38 = vld [vmem:[%s3389_s2 + $0xa0] sm:$0xff]   ;;  %v2582_v39 = vld [vmem:[%s3389_s2 + $0xd8] sm:$0xff]  }
 0x2a7   : > { %1110 = vst.msk [vmem:[#allocation3 + $0x88] sm:$0x3] %vm1093_vm4, %v2617_v42  ;;  %1112 = vst.msk [vmem:[#allocation3 + $0x98] sm:$0x3] %vm1093_vm4, %v2617_v42  ;;  %2157 = vmatprep.subr.bf16.mxu0 %v2574_v50  ;;  %2275 = vmatprep.subr.bf16.mxu1 %v2574_v50  ;;  %v2583_v41 = vld [vmem:[%s3389_s2 + $0x98] sm:$0xff]   ;;  %v2584_v31 = vld [vmem:[%s3389_s2 + $0xd0] sm:$0xff]  }
 0x2a8   : > { %1115 = vst.msk [vmem:[#allocation3 + $0x21] sm:$0xff] %vm241_vm0, %v3033_v8  ;;  %1116 = vst.msk [vmem:[#allocation3 + $0x31] sm:$0xff] %vm241_vm0, %v3035_v40  ;;  %v1138_v52 = vld [vmem:[#allocation3 + $0x2] sm:$0xff]  ;;  %v2585_v42 = vld [vmem:[%s3389_s2 + $0x90] sm:$0xff]  }
 0x2a9   : > { %1114 = vst.msk [vmem:[#allocation3 + $0x11] sm:$0xff] %vm241_vm0, %v3037_v6  ;;  %1119 = vst.msk [vmem:[#allocation3 + $0x61] sm:$0xff] %vm241_vm0, %v3059_v13  ;;  %v1130_v18 = vld [vmem:[#allocation3 + $0x1] sm:$0xff]  ;;  %v3214_v46 = vld [vmem:[%s3389_s2 + $0x118] sm:$0xff]  }
 0x2aa   : > { %1120 = vst.msk [vmem:[#allocation3 + $0x71] sm:$0xff] %vm241_vm0, %v3061_v43  ;;  %1121 = vst.msk [vmem:[#allocation3 + $0x81] sm:$0xff] %vm241_vm0, %v3063_v9  ;;  %2158 = vmatpush3.bf16.msra.mxu0 %v2575_v35  ;;  %2283 = vmatpush3.bf16.msra.mxu1 %v2575_v35 }
 0x2ab   : > { %1117 = vst.msk [vmem:[#allocation3 + $0x41] sm:$0xff] %vm241_vm0, %v3077_v37  ;;  %1118 = vst.msk [vmem:[#allocation3 + $0x51] sm:$0xff] %vm241_vm0, %v3079_v44  ;;  %2159 = vmatprep.subr.bf16.mxu0 %v2576_v61  ;;  %2276 = vmatprep.subr.bf16.mxu1 %v2576_v61 }
 0x2ad   : > { %v1178_v5 = vld [vmem:[#allocation3 + $0x90] sm:$0xff] }
 0x2ae   : > { %2160 = vmatpush3.bf16.msra.mxu0 %v2577_v1  ;;  %2284 = vmatpush3.bf16.msra.mxu1 %v2577_v1  ;;  %v1186_v34 = vld [vmem:[#allocation3 + $0x91] sm:$0xff] }
 0x2af   : > { %v3100_v14 = vld [vmem:[#allocation3 + $0x20] sm:$0xff]  ;;  %v3102_v15 = vld [vmem:[#allocation3 + $0x30] sm:$0xff]  ;;  %2161 = vmatprep.subr.bf16.mxu0 %v2578_v11  ;;  %2277 = vmatprep.subr.bf16.mxu1 %v2578_v11 }
 0x2b0   : > { %v1162_v53 = vld [vmem:[#allocation3 + $0x12] sm:$0xff]  ;;  %v2460_v16 = vpack.i.bf16 %v3102_v15, %v3100_v14  ;;  %v3106_v54 = vld [vmem:[#allocation3 + $0x22] sm:$0xff] }
 0x2b1   : > { %v3108_v27 = vld [vmem:[#allocation3 + $0x11] sm:$0xff]  ;;  %v2450_v12 = vpack.i.bf16 %v3106_v54, %v1162_v53  ;;  %v2465_v62 = vpack.i.bf16 %v1162_v53, %v1138_v52  ;;  %v3116_v57 = vld [vmem:[#allocation3 + $0x21] sm:$0xff] }
 0x2b2   : > { %2461 = vrot.lane.b32.xlu1 %v2460_v16, %s2618_s11  ;;  %v2455_v2 = vpack.i.bf16 %v3108_v27, %v1130_v18  ;;  %v3114_v55 = vld [vmem:[#allocation3 + $0x10] sm:$0xff]  ;;  %v3123_v24 = vld [vmem:[#allocation3 + $0x61] sm:$0xff]  ;;  %2162 = vmatpush3.bf16.msra.mxu0 %v2579_v0 }
 0x2b3   : > { %2451 = vrot.lane.b32.xlu0 %v2450_v12, %s2619_s23  ;;  %v3118_v58 = vld [vmem:[#allocation3 + $0x31] sm:$0xff]  ;;  %v2475_v45 = vpack.i.bf16 %v3100_v14, %v3114_v55  ;;  %v3132_v20 = vld [vmem:[#allocation3 + $0x82] sm:$0xff]  ;;  %2285 = vmatpush3.bf16.msra.mxu1 %v2579_v0 }
 0x2b4   : > { %v3125_v59 = vld [vmem:[#allocation3 + $0x71] sm:$0xff]  ;;  %v2470_v60 = vpack.i.bf16 %v3118_v58, %v3116_v57  ;;  %v3154_v19 = vld [vmem:[#allocation3 + $0x62] sm:$0xff]  ;;  %2163 = vmatprep.subr.bf16.mxu0 %v2580_v30  ;;  %2278 = vmatprep.subr.bf16.mxu1 %v2580_v30 }
 0x2b5   : > { %v3127_v23 = vld [vmem:[#allocation3 + $0x72] sm:$0xff]  ;;  %v3146_v3 = vpack.i.bf16 %v3125_v59, %v3123_v24  ;;  %v1177_v51 = vld [vmem:[#allocation3 + $0x80] sm:$0xff] }
 0x2b6   : > { %2466 = vrot.lane.b32.xlu1 %v2465_v62, %s2618_s11  ;;  %v2480_v17 = vpack.i.bf16 %v3132_v20, %v3127_v23  ;;  %v3156_v63 = vld [vmem:[#allocation3 + $0x70] sm:$0xff]  ;;  %v2495_v4 = vpack.i.bf16 %v3127_v23, %v3154_v19  ;;  %v2490_v25 = vpack.i.bf16 %v1178_v5, %v1177_v51  ;;  %v3169_v56 = vld [vmem:[#allocation3 + $0x81] sm:$0xff]  ;;  %2164 = vmatpush3.bf16.msra.mxu0 %v2581_v38 }
 0x2b7   : > { %2456 = vrot.lane.b32.xlu0 %v2455_v2, %s2619_s23  ;;  %v2505_v26 = vpack.i.bf16 %v1177_v51, %v3156_v63  ;;  %v2500_v49 = vpack.i.bf16 %v1186_v34, %v3169_v56  ;;  %v3181_v22 = vld [vmem:[#allocation3 + $0x32] sm:$0xff]  ;;  %v3183_v29 = vld [vmem:[#allocation3 + $0x42] sm:$0xff]  ;;  %2286 = vmatpush3.bf16.msra.mxu1 %v2581_v38  ;;  %v1445_v52 = vpack.c.bf16 %v3127_v23, %v3154_v19 }
 0x2b8   : > { %v3185_v10 = vld [vmem:[#allocation3 + $0x52] sm:$0xff]  ;;  %v1439_v28 = vpack.c.bf16 %v3181_v22, %v3106_v54  ;;  %2165 = vmatprep.subr.bf16.mxu0 %v2582_v39  ;;  %v2510_v32 = vpack.i.bf16 %v3183_v29, %v3181_v22  ;;  %2279 = vmatprep.subr.bf16.mxu1 %v2582_v39  ;;  %v3201_v36 = vld [vmem:[#allocation3 + $0x40] sm:$0xff]  ;;  %v2525_v21 = vpack.i.bf16 %v3181_v22, %v3106_v54 }
 0x2b9   : > { %v1442_v33 = vpack.c.bf16 %v3185_v10, %v3183_v29  ;;  %v3203_v7 = vld [vmem:[#allocation3 + $0x50] sm:$0xff]  ;;  %v3219_v48 = vld [vmem:[#allocation3 + $0x41] sm:$0xff]  ;;  %v2535_v53 = vpack.i.bf16 %v3201_v36, %v3102_v15  ;;  %v2540_v18 = vpack.i.bf16 %v3154_v19, %v3185_v10  ;;  %v2555_v62 = vpack.i.bf16 %v3185_v10, %v3183_v29 }
 0x2ba   : > { %2476 = vrot.lane.b32.xlu1 %v2475_v45, %s2620_s17  ;;  %2166 = vmatpush3.bf16.msra.mxu0 %v2583_v41  ;;  %v2520_v47 = vpack.i.bf16 %v3203_v7, %v3201_v36  ;;  %v3221_v50 = vld [vmem:[#allocation3 + $0x51] sm:$0xff]  ;;  %v1175_v12 = vld [vmem:[#allocation3 + $0x60] sm:$0xff] }
 0x2bb   : > { %2471 = vrot.lane.b32.xlu0 %v2470_v60, %s2620_s17  ;;  %2287 = vmatpush3.bf16.msra.mxu1 %v2583_v41  ;;  %v2530_v16 = vpack.i.bf16 %v3221_v50, %v3219_v48  ;;  %v2550_v2 = vpack.i.bf16 %v3156_v63, %v1175_v12  ;;  %v2565_v45 = vpack.i.bf16 %v1175_v12, %v3203_v7  ;;  %v1122_v11 = vld [vmem:[#allocation3] sm:$0xff] }
 0x2bc   : > { %2167 = vmatprep.subr.bf16.mxu0 %v2584_v31  ;;  %2280 = vmatprep.subr.bf16.mxu1 %v2584_v31 }
 0x2be   : > { %2486 = vrot.lane.b32.xlu1 %v3146_v3, %s2619_s23  ;;  %2168 = vmatpush3.bf16.msra.mxu0 %v2585_v42 }
 0x2bf   : > { %2481 = vrot.lane.b32.xlu0 %v2480_v17, %s2619_s23  ;;  %2288 = vmatpush3.bf16.msra.mxu1 %v2585_v42 }
 0x2c0   : > { %2229 = vmatprep.subr.bf16.mxu1 %v3214_v46 }
 0x2c2   : > { %2496 = vrot.lane.b32.xlu1 %v2495_v4, %s2618_s11 }
 0x2c3   : > { %2491 = vrot.lane.b32.xlu0 %v2490_v25, %s2618_s11 }
 0x2c6   : > { %2506 = vrot.lane.b32.xlu1 %v2505_v26, %s2620_s17 }
 0x2c7   : > { %2501 = vrot.lane.b32.xlu0 %v2500_v49, %s2620_s17 }
 0x2ca   : > { %2516 = vrot.lane.b32.xlu1 %v2470_v60, %s2619_s23 }
 0x2cb   : > { %2511 = vrot.lane.b32.xlu0 %v2510_v32, %s2619_s23 }
 0x2ce   : > { %2526 = vrot.lane.b32.xlu1 %v2525_v21, %s2618_s11 }
 0x2cf   : > { %2521 = vrot.lane.b32.xlu0 %v2520_v47, %s2618_s11 }
 0x2d2   : > { %2536 = vrot.lane.b32.xlu1 %v2535_v53, %s2620_s17 }
 0x2d3   : > { %2531 = vrot.lane.b32.xlu0 %v2530_v16, %s2620_s17 }
 0x2d6   : > { %2546 = vrot.lane.b32.xlu1 %v2530_v16, %s2619_s23 }
 0x2d7   : > { %2541 = vrot.lane.b32.xlu0 %v2540_v18, %s2619_s23 }
 0x2da   : > { %2556 = vrot.lane.b32.xlu1 %v2555_v62, %s2618_s11 }
 0x2db   : > { %2551 = vrot.lane.b32.xlu0 %v2550_v2, %s2618_s11 }
 0x2de   : > { %2566 = vrot.lane.b32.xlu1 %v2565_v45, %s2620_s17 }
 0x2df   : > { %2561 = vrot.lane.b32.xlu0 %v3146_v3, %s2620_s17 }
 0x324   : > { %v2462_v60 = vpop.permute.xlu1 %2461 }
 0x325   : > { %v2452_v35 = vpop.permute.xlu0 %2451  ;;  %v2464_v25 = vunpack.i.h.bf16 %v2462_v60  ;;  %v2463_v34 = vunpack.i.l.bf16 %v2462_v60 }
 0x326   : > { %v2454_v61 = vunpack.i.h.bf16 %v2452_v35  ;;  %v2453_v1 = vunpack.i.l.bf16 %v2452_v35 }
 0x328   : > { %v2467_v5 = vpop.permute.xlu1 %2466  ;;  %v1414_v38 = vsel %vm241_vm0, %v3116_v57, %v2454_v61  ;;  %v1413_v3 = vsel %vm241_vm0, %v3108_v27, %v2453_v1 }
 0x329   : > { %v2457_v17 = vpop.permute.xlu0 %2456  ;;  %v2469_v51 = vunpack.i.h.bf16 %v2467_v5  ;;  %v2468_v0 = vunpack.i.l.bf16 %v2467_v5  ;;  %v1421_v57 = vsel %vm1395_vm5, %v1413_v3, %v2463_v34  ;;  %v1422_v16 = vsel %vm1395_vm5, %v1414_v38, %v2464_v25 }
 0x32a   : > { %v2459_v4 = vunpack.i.h.bf16 %v2457_v17  ;;  %v2458_v30 = vunpack.i.l.bf16 %v2457_v17 }
 0x32c   : > { %v1387_v26 = vsel %vm241_vm0, %v1122_v11, %v2458_v30  ;;  %v1388_v39 = vsel %vm241_vm0, %v3114_v55, %v2459_v4  ;;  %v2477_v49 = vpop.permute.xlu1 %2476 }
 0x32d   : > { %v2479_v41 = vunpack.i.h.bf16 %v2477_v49  ;;  %v2478_v31 = vunpack.i.l.bf16 %v2477_v49  ;;  %v2472_v32 = vpop.permute.xlu0 %2471  ;;  %v1396_v42 = vsel %vm1395_vm5, %v1387_v26, %v2468_v0  ;;  %v1397_v21 = vsel %vm1395_vm5, %v1388_v39, %v2469_v51 }
 0x32e   : > { %v2474_v47 = vunpack.i.h.bf16 %v2472_v32  ;;  %v2473_v53 = vunpack.i.l.bf16 %v2472_v32 }
 0x32f   : > { %v1405_v27 = vsel %vm1404_vm6, %v1396_v42, %v2478_v31  ;;  %v1406_v18 = vsel %vm1404_vm6, %v1397_v21, %v2479_v41 }
 0x330   : > { %v2487_v62 = vpop.permute.xlu1 %2486  ;;  %v1429_v55 = vsel %vm1404_vm6, %v1421_v57, %v2473_v53  ;;  %v1430_v2 = vsel %vm1404_vm6, %v1422_v16, %v2474_v47  ;;  %v1437_v45 = vpack.c.bf16 %v1406_v18, %v1405_v27 }
 0x331   : > { %v2482_v60 = vpop.permute.xlu0 %2481  ;;  %v1438_v35 = vpack.c.bf16 %v1430_v2, %v1429_v55  ;;  %v2489_v61 = vunpack.i.h.bf16 %v2487_v62  ;;  %v2488_v1 = vunpack.i.l.bf16 %v2487_v62  ;;  %v2587_v55 = vld [vmem:[%s3389_s2 + $0x110] sm:$0xff]  }
 0x332   : > { %v2484_v11 = vunpack.i.h.bf16 %v2482_v60  ;;  %v2483_v17 = vunpack.i.l.bf16 %v2482_v60 }
 0x333   : > { %1646 = vmatprep.mubr.bf16.mxu0 %v1438_v35  ;;  %v1394_v34 = vsel %vm241_vm0, %v3156_v63, %v2489_v61  ;;  %v1393_v38 = vsel %vm241_vm0, %v1175_v12, %v2488_v1 }
 0x334   : > { %1647 = vmatmul.mubr.bf16.vlgmr.msra.gmra.mxu0 %v1437_v45  ;;  %v2497_v5 = vpop.permute.xlu1 %2496  ;;  %v1420_v26 = vsel %vm241_vm0, %v3169_v56, %v2484_v11  ;;  %v1419_v39 = vsel %vm241_vm0, %v3125_v59, %v2483_v17 }
 0x335   : > { %v2492_v51 = vpop.permute.xlu0 %2491  ;;  %v2499_v0 = vunpack.i.h.bf16 %v2497_v5  ;;  %v2498_v4 = vunpack.i.l.bf16 %v2497_v5 }
 0x336   : > { %v2494_v30 = vunpack.i.h.bf16 %v2492_v51  ;;  %v2493_v25 = vunpack.i.l.bf16 %v2492_v51 }
 0x337   : > { %v1402_v32 = vsel %vm1395_vm5, %v1393_v38, %v2498_v4  ;;  %v1403_v42 = vsel %vm1395_vm5, %v1394_v34, %v2499_v0 }
 0x338   : > { %v2507_v3 = vpop.permute.xlu1 %2506  ;;  %v1427_v63 = vsel %vm1395_vm5, %v1419_v39, %v2493_v25  ;;  %v1428_v12 = vsel %vm1395_vm5, %v1420_v26, %v2494_v30 }
 0x339   : > { %v2509_v49 = vunpack.i.h.bf16 %v2507_v3  ;;  %v2508_v41 = vunpack.i.l.bf16 %v2507_v3  ;;  %v2502_v31 = vpop.permute.xlu0 %2501 }
 0x33a   : > { %v2504_v21 = vunpack.i.h.bf16 %v2502_v31  ;;  %v2503_v47 = vunpack.i.l.bf16 %v2502_v31 }
 0x33b   : > { %v1411_v53 = vsel %vm1404_vm6, %v1402_v32, %v2508_v41  ;;  %v1412_v56 = vsel %vm1404_vm6, %v1403_v42, %v2509_v49 }
 0x33c   : > { %v2517_v57 = vpop.permute.xlu1 %2516  ;;  %v1435_v59 = vsel %vm1404_vm6, %v1427_v63, %v2503_v47  ;;  %v1436_v16 = vsel %vm1404_vm6, %v1428_v12, %v2504_v21  ;;  %v1446_v27 = vpack.c.bf16 %v1412_v56, %v1411_v53  ;;  %v1194_v21 = vld [vmem:[#allocation3 + $0x92] sm:$0xff] }
 0x33d   : > { %v2512_v18 = vpop.permute.xlu0 %2511  ;;  %v1447_v62 = vpack.c.bf16 %v1436_v16, %v1435_v59  ;;  %v2519_v2 = vunpack.i.h.bf16 %v2517_v57  ;;  %v2518_v45 = vunpack.i.l.bf16 %v2517_v57  ;;  %v1448_v10 = vpack.c.bf16 %v1194_v21, %v3132_v20 }
 0x33e   : > { %v2514_v35 = vunpack.i.h.bf16 %v2512_v18  ;;  %v2513_v61 = vunpack.i.l.bf16 %v2512_v18 }
 0x33f   : > { %1670 = vmatprep.mubr.bf16.mxu1 %v1447_v62  ;;  %v1390_v0 = vsel %vm241_vm0, %v3102_v15, %v2519_v2  ;;  %v1389_v4 = vsel %vm241_vm0, %v3100_v14, %v2518_v45 }
 0x340   : > { %1671 = vmatmul.mubr.bf16.vlgmr.msra.gmra.mxu1 %v1446_v27  ;;  %v2527_v60 = vpop.permute.xlu1 %2526  ;;  %v1415_v54 = vsel %vm241_vm0, %v3118_v58, %v2513_v61 }
 0x341   : > { %v2522_v1 = vpop.permute.xlu0 %2521  ;;  %2230 = vmatpush3.bf16.msra.mxu1 %v3214_v46  ;;  %2233 = vmatprep.mubr.msk.bf16.mxu1 %vm241_vm0, %v1439_v28  ;;  %v2529_v5 = vunpack.i.h.bf16 %v2527_v60  ;;  %v2528_v11 = vunpack.i.l.bf16 %v2527_v60  ;;  %v1416_v46 = vsel %vm241_vm0, %v3219_v48, %v2514_v35 }
 0x342   : > { %2231 = vmatprep.subr.bf16.mxu1 %v2587_v55  ;;  %v2524_v17 = vunpack.i.h.bf16 %v2522_v1  ;;  %v2523_v51 = vunpack.i.l.bf16 %v2522_v1 }
 0x343   : > { %v1398_v34 = vsel %vm1395_vm5, %v1389_v4, %v2528_v11  ;;  %v1399_v38 = vsel %vm1395_vm5, %v1390_v0, %v2529_v5 }
 0x344   : > { %v2537_v30 = vpop.permute.xlu1 %2536  ;;  %v1423_v26 = vsel %vm1395_vm5, %v1415_v54, %v2523_v51  ;;  %v1424_v14 = vsel %vm1395_vm5, %v1416_v46, %v2524_v17 }
 0x345   : > { %v2539_v22 = vunpack.i.h.bf16 %v2537_v30  ;;  %v2538_v28 = vunpack.i.l.bf16 %v2537_v30  ;;  %v2532_v25 = vpop.permute.xlu0 %2531  ;;  %2232 = vmatpush3.bf16.msra.mxu1 %v2587_v55 }
 0x346   : > { %v2534_v3 = vunpack.i.h.bf16 %v2532_v25  ;;  %v2533_v15 = vunpack.i.l.bf16 %v2532_v25  ;;  %v2061_v25 = vld [vmem:[%s3390_s3 + $0x1] ss:$0 sm:$0xff] }
 0x347   : > { %v1407_v39 = vsel %vm1404_vm6, %v1398_v34, %v2538_v28  ;;  %v1408_v48 = vsel %vm1404_vm6, %v1399_v38, %v2539_v22 }
 0x348   : > { %2234 = vmatmul.mubr.msk.bf16.vlgmr.msra.gmra.mxu1 %vm241_vm0, %v1442_v33  ;;  %v2547_v58 = vpop.permute.xlu1 %2546  ;;  %v1431_v49 = vsel %vm1404_vm6, %v1423_v26, %v2533_v15  ;;  %v1432_v41 = vsel %vm1404_vm6, %v1424_v14, %v2534_v3  ;;  %v1440_v31 = vpack.c.bf16 %v1408_v48, %v1407_v39 }
 0x349   : > { %v2542_v32 = vpop.permute.xlu0 %2541  ;;  %v1441_v42 = vpack.c.bf16 %v1432_v41, %v1431_v49  ;;  %2237 = vmatprep.mubr.msk.bf16.mxu1 %vm241_vm0, %v1445_v52  ;;  %v2549_v47 = vunpack.i.h.bf16 %v2547_v58  ;;  %v2548_v63 = vunpack.i.l.bf16 %v2547_v58 }
 0x34a   : > { %v2544_v33 = vunpack.i.h.bf16 %v2542_v32  ;;  %v2543_v12 = vunpack.i.l.bf16 %v2542_v32 }
 0x34b   : > { %1654 = vmatprep.mubr.bf16.mxu0 %v1441_v42  ;;  %v1392_v23 = vsel %vm241_vm0, %v3203_v7, %v2549_v47  ;;  %v1391_v19 = vsel %vm241_vm0, %v3201_v36, %v2548_v63 }
 0x34c   : > { %1655 = vmatmul.mubr.bf16.gmra.mxu0 %v1440_v31  ;;  %v2557_v29 = vpop.permute.xlu1 %2556  ;;  %v1418_v27 = vsel %vm241_vm0, %v3123_v24, %v2544_v33  ;;  %v1417_v20 = vsel %vm241_vm0, %v3221_v50, %v2543_v12 }
 0x34d   : > { %v2552_v53 = vpop.permute.xlu0 %2551  ;;  %v2559_v56 = vunpack.i.h.bf16 %v2557_v29  ;;  %v2558_v57 = vunpack.i.l.bf16 %v2557_v29 }
 0x34e   : > { %v2554_v59 = vunpack.i.h.bf16 %v2552_v53  ;;  %v2553_v16 = vunpack.i.l.bf16 %v2552_v53 }
 0x34f   : > { %v1400_v2 = vsel %vm1395_vm5, %v1391_v19, %v2558_v57  ;;  %v1401_v45 = vsel %vm1395_vm5, %v1392_v23, %v2559_v56 }
 0x350   : > { %2238 = vmatmul.mubr.msk.bf16.gmra.mxu1 %vm241_vm0, %v1448_v10  ;;  %v2567_v52 = vpop.permute.xlu1 %2566  ;;  %v1425_v36 = vsel %vm1395_vm5, %v1417_v20, %v2553_v16  ;;  %v1426_v35 = vsel %vm1395_vm5, %v1418_v27, %v2554_v59 }
 0x351   : > { %v2569_v18 = vunpack.i.h.bf16 %v2567_v52  ;;  %v2568_v62 = vunpack.i.l.bf16 %v2567_v52  ;;  %v2562_v55 = vpop.permute.xlu0 %2561 }
 0x352   : > { %v2564_v7 = vunpack.i.h.bf16 %v2562_v55  ;;  %v2563_v60 = vunpack.i.l.bf16 %v2562_v55 }
 0x353   : > { %v1409_v61 = vsel %vm1404_vm6, %v1400_v2, %v2568_v62  ;;  %v1410_v24 = vsel %vm1404_vm6, %v1401_v45, %v2569_v18 }
 0x354   : > { %v1433_v1 = vsel %vm1404_vm6, %v1425_v36, %v2563_v60  ;;  %v1434_v50 = vsel %vm1404_vm6, %v1426_v35, %v2564_v7  ;;  %v1443_v5 = vpack.c.bf16 %v1410_v24, %v1409_v61 }
 0x355   : > { %v1444_v11 = vpack.c.bf16 %v1434_v50, %v1433_v1 }
 0x357   : > { %1662 = vmatprep.mubr.bf16.mxu0 %v1444_v11 }
 0x358   : > { %1663 = vmatmul.mubr.bf16.gmra.mxu0 %v1443_v5 }
 0x3f4   : > { %v2169_v17 = vpop.f32.mrf.mxu0 }
 0x3f6   : > { %v2170_v51 = vpop.f32.mrf.mxu0 }
 0x3f7   : > { %v2171_v54 = vadd.f32 %v2170_v51, %v2169_v17 }
 0x3f8   : > { %v2172_v4 = vpop.f32.mrf.mxu0 }
 0x3f9   : > { %v1649_v3 = vadd.f32 %v2171_v54, %v2061_v25 }
 0x3fa   : > { %v2173_v22 = vpop.f32.mrf.mxu0 }
 0x3fb   : > { %v2174_v38 = vadd.f32 %v2173_v22, %v2172_v4 }
 0x3fd   : > { %v1652_v49 = vadd.f32 %v2174_v38, %v2061_v25 }
 0x400   : > { %v2187_v0 = vpop.f32.mrf.mxu1 }
 0x402   : > { %v2188_v30 = vpop.f32.mrf.mxu1 }
 0x403   : > { %v2189_v26 = vadd.f32 %v2188_v30, %v2187_v0 }
 0x404   : > { %v2190_v46 = vpop.f32.mrf.mxu1 }
 0x405   : > { %v1673_v63 = vadd.f32 %v2189_v26, %v2061_v25 }
 0x406   : > { %v2191_v28 = vpop.f32.mrf.mxu1 }
 0x407   : > { %v2192_v41 = vadd.f32 %v2191_v28, %v2190_v46 }
 0x408   : > { %v2235_v34 = vpop.f32.mrf.mxu1 }
 0x409   : > { %v1676_v59 = vadd.f32 %v2192_v41, %v2061_v25 }
 0x40a   : > { %v1713_v15 = vpop.f32.mrf.mxu1 }
 0x40b   : > { %v1714_v14 = vadd.f32 %v1713_v15, %v1649_v3 }
 0x40c   : > { %v2175_v39 = vpop.f32.mrf.mxu0  ;;  %v2236_v48 = vpop.f32.mrf.mxu1 }
 0x40d   : > { %v1744_v58 = vmax.f32 %v1714_v14, 0.0 }
 0x40e   : > { %v2176_v31 = vpop.f32.mrf.mxu0  ;;  %v1716_v32 = vpop.f32.mrf.mxu1 }
 0x40f   : > { %v1752_v42 = vadd.f32 %v1744_v58, %v3037_v6  ;;  %v2177_v21 = vadd.f32 %v2176_v31, %v2175_v39  ;;  %v1717_v47 = vadd.f32 %v1716_v32, %v1652_v49 }
 0x410   : > { %v2178_v29 = vpop.f32.mrf.mxu0  ;;  %v2239_v10 = vpop.f32.mrf.mxu1 }
 0x411   : > { %1760 = vst.msk [vmem:[#allocation2] sm:$0xff] %vm241_vm0, %v1752_v42  ;;  %v1657_v33 = vadd.f32 %v2177_v21, %v2061_v25  ;;  %v1745_v12 = vmax.f32 %v1717_v47, 0.0  ;;  %v1738_v53 = vadd.f32 %v2239_v10, %v1673_v63 }
 0x412   : > { %v2179_v56 = vpop.f32.mrf.mxu0  ;;  %v1729_v57 = vpop.f32.mrf.mxu1 }
 0x413   : > { %v1722_v16 = vadd.f32 %v2235_v34, %v1657_v33  ;;  %v1753_v23 = vadd.f32 %v1745_v12, %v3033_v8  ;;  %v1750_v19 = vmax.f32 %v1738_v53, 0.0  ;;  %v2180_v52 = vadd.f32 %v2179_v56, %v2178_v29 }
 0x414   : > { %v2240_v27 = vpop.f32.mrf.mxu1 }
 0x415   : > { %v1746_v6 = vmax.f32 %v1722_v16, 0.0  ;;  %1761 = vst.msk [vmem:[#allocation2 + $0x8] sm:$0xff] %vm241_vm0, %v1753_v23  ;;  %v1758_v20 = vadd.f32 %v1750_v19, %v3061_v43  ;;  %v1660_v18 = vadd.f32 %v2180_v52, %v2061_v25  ;;  %v1741_v62 = vadd.f32 %v2240_v27, %v1676_v59 }
 0x416   : > { %v1732_v17 = vpop.f32.mrf.mxu1 }
 0x417   : > { %v1754_v55 = vadd.f32 %v1746_v6, %v3035_v40  ;;  %1766 = vst.msk [vmem:[#allocation2 + $0x30] sm:$0xff] %vm241_vm0, %v1758_v20  ;;  %v1725_v2 = vadd.f32 %v2236_v48, %v1660_v18  ;;  %v1751_v45 = vmax.f32 %v1741_v62, 0.0 }
 0x418   : > { %v2181_v7 = vpop.f32.mrf.mxu0 }
 0x419   : > { %1762 = vst.msk [vmem:[#allocation2 + $0x10] sm:$0xff] %vm241_vm0, %v1754_v55  ;;  %v1747_v8 = vmax.f32 %v1725_v2, 0.0  ;;  %v1759_v60 = vadd.f32 %v1751_v45, %v3063_v9 }
 0x41a   : > { %v2182_v36 = vpop.f32.mrf.mxu0 }
 0x41b   : > { %v1755_v35 = vadd.f32 %v1747_v8, %v3077_v37  ;;  %1767 = vst.msk [vmem:[#allocation2 + $0x38] sm:$0xff] %vm241_vm0, %v1759_v60  ;;  %v2183_v43 = vadd.f32 %v2182_v36, %v2181_v7 }
 0x41c   : > { %v2184_v61 = vpop.f32.mrf.mxu0 }
 0x41d   : > { %1763 = vst.msk [vmem:[#allocation2 + $0x18] sm:$0xff] %vm241_vm0, %v1755_v35  ;;  %v1665_v40 = vadd.f32 %v2183_v43, %v2061_v25 }
 0x41e   : > { %v2185_v24 = vpop.f32.mrf.mxu0 }
 0x41f   : > { %v1730_v1 = vadd.f32 %v1729_v57, %v1665_v40  ;;  %v2186_v50 = vadd.f32 %v2185_v24, %v2184_v61 }
 0x421   : > { %v1748_v5 = vmax.f32 %v1730_v1, 0.0  ;;  %v1668_v11 = vadd.f32 %v2186_v50, %v2061_v25 }
 0x423   : > { %v1756_v51 = vadd.f32 %v1748_v5, %v3079_v44  ;;  %v1733_v0 = vadd.f32 %v1732_v17, %v1668_v11 }
 0x425   : > { %1764 = vst.msk [vmem:[#allocation2 + $0x20] sm:$0xff] %vm241_vm0, %v1756_v51  ;;  %v1749_v9 = vmax.f32 %v1733_v0, 0.0 }
 0x427   : > { %v1757_v37 = vadd.f32 %v1749_v9, %v3059_v13 }
 0x429   : > { %1765 = vst.msk [vmem:[#allocation2 + $0x28] sm:$0xff] %vm241_vm0, %v1757_v37 }
 0x42a PF: > { %p2084_p12 = scmp.eq.s32.totalorder %s3030_s20, 0 }
 0x42c   : > { %1771 = sbr.rel (%p2084_p12) target bundleno = 1289 (0x509), region = 56 }
 0x431   : > { %v2588_v4 = vld [vmem:[%s3391_s4 + $0x18] sm:$0xff]   ;;  %v2589_v44 = vld [vmem:[%s3391_s4 + $0x10] sm:$0xff]   ;;  %v1772_v30 = vld [vmem:[#allocation2] sm:$0xff] }
 0x432   : > { %2241 = vmatprep.subr.bf16.mxu0 %v2588_v4  ;;  %2289 = vmatprep.subr.bf16.mxu1 %v2588_v4  ;;  %v1773_v46 = vld [vmem:[#allocation2 + $0x8] sm:$0xff]  ;;  %v1776_v54 = vld [vmem:[#allocation2 + $0x20] sm:$0xff]  ;;  %v1774_v28 = vld [vmem:[#allocation2 + $0x10] sm:$0xff] }
 0x433   : > { %2242 = vmatpush3.bf16.msra.mxu0 %v2588_v4  ;;  %2291 = vmatpush3.bf16.msra.mxu1 %v2588_v4  ;;  %v1780_v13 = vpack.c.bf16 %v1773_v46, %v1772_v30  ;;  %v1777_v22 = vld [vmem:[#allocation2 + $0x28] sm:$0xff]  ;;  %v1775_v25 = vld [vmem:[#allocation2 + $0x18] sm:$0xff]  ;;  %v1778_v38 = vld [vmem:[#allocation2 + $0x30] sm:$0xff] }
 0x434   : > { %2243 = vmatprep.subr.bf16.mxu0 %v2589_v44  ;;  %2290 = vmatprep.subr.bf16.mxu1 %v2589_v44  ;;  %v1782_v34 = vpack.c.bf16 %v1777_v22, %v1776_v54  ;;  %v1779_v3 = vld [vmem:[#allocation2 + $0x38] sm:$0xff]  ;;  %v1781_v15 = vpack.c.bf16 %v1775_v25, %v1774_v28  ;;  %v2090_v14 = vld [vmem:[%s3392_s5 + $0x1] ss:$0 sm:$0xff] }
 0x435   : > { %2245 = vmatprep.mubr.msk.bf16.mxu0 %vm241_vm0, %v1780_v13  ;;  %v1783_v26 = vpack.c.bf16 %v1779_v3, %v1778_v38 }
 0x436   : > { %2249 = vmatprep.mubr.msk.bf16.mxu1 %vm241_vm0, %v1782_v34 }
 0x437   : > { %2244 = vmatpush3.bf16.msra.mxu0 %v2589_v44  ;;  %2292 = vmatpush3.bf16.msra.mxu1 %v2589_v44 }
 0x43a   : > { %2246 = vmatmul.mubr.msk.bf16.vlgmr.msra.gmra.mxu0 %vm241_vm0, %v1781_v15  ;;  %2250 = vmatmul.mubr.msk.bf16.vlgmr.msra.gmra.mxu1 %vm241_vm0, %v1783_v26 }
 0x4fa   : > { %v2247_v39 = vpop.f32.mrf.mxu0  ;;  %v2251_v48 = vpop.f32.mrf.mxu1 }
 0x4fb   : > { %v1864_v58 = vadd.f32 %v2247_v39, %v2090_v14  ;;  %v1880_v49 = vadd.f32 %v2251_v48, %v2090_v14 }
 0x4fc   : > { %v1855_v41 = vpop.f32.mrf.mxu0  ;;  %v1871_v31 = vpop.f32.mrf.mxu1 }
 0x4fd   : > { %v1888_v32 = vmax.f32 %v1864_v58, 0.0  ;;  %v1892_v42 = vmax.f32 %v1880_v49, 0.0  ;;  %v1856_v21 = vadd.f32 %v2090_v14, %v1855_v41  ;;  %v1872_v47 = vadd.f32 %v2090_v14, %v1871_v31 }
 0x4fe   : > { %v2248_v63 = vpop.f32.mrf.mxu0  ;;  %v2252_v29 = vpop.f32.mrf.mxu1 }
 0x4ff   : > { %v1896_v10 = vadd.f32 %v1888_v32, %v1774_v28  ;;  %v1900_v33 = vadd.f32 %v1892_v42, %v1778_v38  ;;  %v1886_v12 = vmax.f32 %v1856_v21, 0.0  ;;  %v1890_v53 = vmax.f32 %v1872_v47, 0.0 }
 0x500   : > { %v1867_v56 = vadd.f32 %v2248_v63, %v2090_v14  ;;  %v1883_v57 = vadd.f32 %v2252_v29, %v2090_v14  ;;  %v1858_v59 = vpop.f32.mrf.mxu0  ;;  %v1874_v16 = vpop.f32.mrf.mxu1 }
 0x501   : > { %1904 = vst.msk [vmem:[#allocation2 + $0x10] sm:$0xff] %vm241_vm0, %v1896_v10  ;;  %1908 = vst.msk [vmem:[#allocation2 + $0x30] sm:$0xff] %vm241_vm0, %v1900_v33  ;;  %v1894_v23 = vadd.f32 %v1886_v12, %v1772_v30  ;;  %v1898_v19 = vadd.f32 %v1890_v53, %v1776_v54  ;;  %v1859_v52 = vadd.f32 %v2090_v14, %v1858_v59 }
 0x502   : > { %v1875_v27 = vadd.f32 %v2090_v14, %v1874_v16  ;;  %v1889_v6 = vmax.f32 %v1867_v56, 0.0  ;;  %v1893_v20 = vmax.f32 %v1883_v57, 0.0 }
 0x503   : > { %1902 = vst.msk [vmem:[#allocation2] sm:$0xff] %vm241_vm0, %v1894_v23  ;;  %1906 = vst.msk [vmem:[#allocation2 + $0x20] sm:$0xff] %vm241_vm0, %v1898_v19  ;;  %v1887_v18 = vmax.f32 %v1859_v52, 0.0 }
 0x504   : > { %v1891_v62 = vmax.f32 %v1875_v27, 0.0  ;;  %v1897_v55 = vadd.f32 %v1889_v6, %v1775_v25  ;;  %v1901_v2 = vadd.f32 %v1893_v20, %v1779_v3 }
 0x505   : > { %v1895_v45 = vadd.f32 %v1887_v18, %v1773_v46 }
 0x506   : > { %v1899_v7 = vadd.f32 %v1891_v62, %v1777_v22  ;;  %1905 = vst.msk [vmem:[#allocation2 + $0x18] sm:$0xff] %vm241_vm0, %v1897_v55  ;;  %1909 = vst.msk [vmem:[#allocation2 + $0x38] sm:$0xff] %vm241_vm0, %v1901_v2 }
 0x507   : > { %1903 = vst.msk [vmem:[#allocation2 + $0x8] sm:$0xff] %vm241_vm0, %v1895_v45 }
 0x508   : > { %1907 = vst.msk [vmem:[#allocation2 + $0x28] sm:$0xff] %vm241_vm0, %v1899_v7 }
 0x509 PF: > { %v1912_v36 = vld [vmem:[#allocation2 + $0x10] sm:$0xff] }
 0x50a   : > { %v1910_v8 = vld [vmem:[#allocation2] sm:$0xff]  ;;  %1920 = vst.msk [vmem:[%s2682_s12 + $0x10] sm:$0xff] %vm241_vm0, %v1912_v36  ;;  %v1916_v40 = vld [vmem:[#allocation2 + $0x30] sm:$0xff] }
 0x50b   : > { %1918 = vst.msk [vmem:[%s2682_s12] sm:$0xff] %vm241_vm0, %v1910_v8  ;;  %v1914_v43 = vld [vmem:[#allocation2 + $0x20] sm:$0xff]  ;;  %1924 = vst.msk [vmem:[%s2682_s12 + $0x30] sm:$0xff] %vm241_vm0, %v1916_v40 }
 0x50c   : > { %1922 = vst.msk [vmem:[%s2682_s12 + $0x20] sm:$0xff] %vm241_vm0, %v1914_v43 }
 0x50d   : > { %v1913_v35 = vld [vmem:[#allocation2 + $0x18] sm:$0xff] }
 0x50e   : > { %v1911_v60 = vld [vmem:[#allocation2 + $0x8] sm:$0xff]  ;;  %1921 = vst.msk [vmem:[%s2682_s12 + $0x18] sm:$0xff] %vm241_vm0, %v1913_v35  ;;  %v1917_v24 = vld [vmem:[#allocation2 + $0x38] sm:$0xff] }
 0x50f   : > { %1919 = vst.msk [vmem:[%s2682_s12 + $0x8] sm:$0xff] %vm241_vm0, %v1911_v60  ;;  %v1915_v61 = vld [vmem:[#allocation2 + $0x28] sm:$0xff]  ;;  %1925 = vst.msk [vmem:[%s2682_s12 + $0x38] sm:$0xff] %vm241_vm0, %v1917_v24 }
 0x510   : > { %1923 = vst.msk [vmem:[%s2682_s12 + $0x28] sm:$0xff] %vm241_vm0, %v1915_v61 }
 0x511 PF: > { %s22_s26 = sadd.s32 1, %s2610_s26  }
 0x512   : > { %p19_p13 = scmp.ge.s32.totalorder %s22_s26, 4  }
 0x514   :  { %21 = sbr.rel (!%p19_p13) target bundleno = 16 (0x10), region = 94 }

// kernel: dense_generator_forward.9
= control target key start
LH: loop header
LB: loop body
LE: loop exit
PB: predicated region body
PF: predicated region fallthrough
CT: control target
= control target key end

     0   :  { %s3247_s18 = smov 0   ;;  %s4229_s0 = inlined_call_operand.vmem [shape: f32[2,16,16,32], index: 0, kind: input, shape index: {}]   ;;  %s4230_s1 = inlined_call_operand.vmem [shape: f32[1,32], index: 1, kind: input, shape index: {}]   ;;  %s4231_s2 = inlined_call_operand.vmem [shape: f32[1,32], index: 2, kind: input, shape index: {}]   ;;  %s4232_s3 = inlined_call_operand.vmem [shape: bf16[288,128], index: 3, kind: input, shape index: {}]   ;;  %s4233_s4 = inlined_call_operand.vmem [shape: f32[1,128], index: 4, kind: input, shape index: {}]   ;;  %s4234_s5 = inlined_call_operand.vmem [shape: f32[2,16,16,128], index: 5, kind: output, shape index: {}]  }
   0x1 LB: > { %s2396_s19 = sadd.s32 4294967295, %s3211_s18   ;;  %p2400_p0 = scmp.ge.s32.totalorder %s3211_s18, 1  ;;  %s3211_s18 = sphi %s3247_s18, %s15_s18  }
   0x2   : > { %p187_p1 = scmp.lt.s32.totalorder %s3211_s18, 3 }
   0x4   : > { %p188_p2 = pnand %p2400_p0, %p187_p1 }
   0x5   : > { %p215_p3 = scmp.lt.s32.totalorder (!%p188_p2), %s2396_s19, 1  ;;  %s3214_s13 = smov (!%p188_p2), 32  }
   0x6   : > { %191 = sbr.rel (%p188_p2) target bundleno = 577 (0x241), region = 40  ;;  %s3215_s14 = smov (!%p188_p2), 64  }
   0x7   : > { %s3216_s23 = smov (!%p188_p2), 96  }
   0xb   : > { %vm368_vm0 = vcmask 261120   ;;  %vm371_vm1 = vcmask 254976   ;;  %v3120_v0 = vld [vmem:[%s4232_s3 + $0x78] sm:$0xff]   ;;  %v3213_v1 = vmov 0.0   ;;  %s4236_s19 = smov (!%p215_p3, %s2396_s19), 1  ;;  %v3122_v4 = vld [vmem:[%s4232_s3 + $0x70] sm:$0xff]  }
   0xc   : > { %369 = vst.msk [vmem:[#allocation2] sm:$0xff] %vm368_vm0, %v3213_v1  ;;  %370 = vst.msk [vmem:[#allocation2 + $0x8] sm:$0xff] %vm368_vm0, %v3213_v1  ;;  %2446 = vmatprep.subr.bf16.mxu0 %v3120_v0  ;;  %2612 = vmatprep.subr.bf16.mxu1 %v3120_v0  ;;  %v3321_v2 = vld [vmem:[%s4230_s1] ss:$0 sm:$0xff]  ;;  %v3121_v3 = vld [vmem:[%s4232_s3 + $0x38] sm:$0xff]   ;;  %s2444_s28 = sshll.u32 %s4236_s19, 8 }
   0xd   : > { %372 = vst.msk [vmem:[#allocation2 + $0x10] sm:$0x3] %vm371_vm1, %v3213_v1  ;;  %375 = vst.msk [vmem:[#allocation2 + $0x28] sm:$0x3] %vm371_vm1, %v3213_v1  ;;  %v3333_v5 = vld [vmem:[%s4231_s2] ss:$0 sm:$0xff]  ;;  %2447 = vmatpush3.bf16.msra.mxu0 %v3121_v3  ;;  %2620 = vmatpush3.bf16.msra.mxu1 %v3121_v3  ;;  %s3343_s10 = scalar_lea.vmem %s4229_s0, %s2444_s28  ;;  %s4134_s26 = scalar_lea.vmem %s4234_s5, %s2444_s28 }
   0xe   : > { %373 = vst.msk [vmem:[#allocation2 + $0x18] sm:$0xff] %vm368_vm0, %v3213_v1  ;;  %374 = vst.msk [vmem:[#allocation2 + $0x20] sm:$0xff] %vm368_vm0, %v3213_v1  ;;  %v3123_v6 = vld [vmem:[%s4232_s3 + $0x30] sm:$0xff]   ;;  %2448 = vmatprep.subr.bf16.mxu0 %v3122_v4  ;;  %v3124_v7 = vld [vmem:[%s4232_s3 + $0x68] sm:$0xff]   ;;  %2613 = vmatprep.subr.bf16.mxu1 %v3122_v4  ;;  %vm1546_vm2 = vcmask 523264   ;;  %vm1579_vm3 = vcmask 785408  }
   0xf   : > { %376 = vst.msk [vmem:[#allocation2 + $0x30] sm:$0xff] %vm368_vm0, %v3213_v1  ;;  %377 = vst.msk [vmem:[#allocation2 + $0x38] sm:$0xff] %vm368_vm0, %v3213_v1  ;;  %v228_v8 = vld [vmem:[%s3343_s10 + $0x10] sm:$0xff]  ;;  %v229_v9 = vld [vmem:[%s3343_s10 + $0x18] sm:$0xff] }
  0x10   : > { %378 = vst.msk [vmem:[#allocation2 + $0x40] sm:$0x3] %vm371_vm1, %v3213_v1  ;;  %381 = vst.msk [vmem:[#allocation2 + $0x58] sm:$0x3] %vm371_vm1, %v3213_v1  ;;  %v226_v10 = vld [vmem:[%s3343_s10] sm:$0xff]  ;;  %v267_v14 = vmul.f32 %v3321_v2, %v228_v8  ;;  %v268_v15 = vmul.f32 %v3321_v2, %v229_v9  ;;  %v227_v19 = vld [vmem:[%s3343_s10 + $0x8] sm:$0xff] }
  0x11   : > { %379 = vst.msk [vmem:[#allocation2 + $0x48] sm:$0xff] %vm368_vm0, %v3213_v1  ;;  %380 = vst.msk [vmem:[#allocation2 + $0x50] sm:$0xff] %vm368_vm0, %v3213_v1  ;;  %v265_v16 = vmul.f32 %v3321_v2, %v226_v10  ;;  %v230_v20 = vld [vmem:[%s3343_s10 + $0x20] sm:$0xff]  ;;  %2449 = vmatpush3.bf16.msra.mxu0 %v3123_v6  ;;  %2621 = vmatpush3.bf16.msra.mxu1 %v3123_v6  ;;  %v266_v24 = vmul.f32 %v3321_v2, %v227_v19  ;;  %v251_v26 = vld [vmem:[%s3343_s10 + $0xc8] sm:$0xff] }
  0x12   : > { %382 = vst.msk [vmem:[#allocation2 + $0x60] sm:$0xff] %vm368_vm0, %v3213_v1  ;;  %383 = vst.msk [vmem:[#allocation2 + $0x68] sm:$0xff] %vm368_vm0, %v3213_v1  ;;  %v306_v22 = vadd.f32 %v3333_v5, %v267_v14  ;;  %v307_v23 = vadd.f32 %v3333_v5, %v268_v15  ;;  %v250_v25 = vld [vmem:[%s3343_s10 + $0xc0] sm:$0xff]  ;;  %v249_v27 = vld [vmem:[%s3343_s10 + $0xb8] sm:$0xff]  ;;  %2450 = vmatprep.subr.bf16.mxu0 %v3124_v7  ;;  %v269_v29 = vmul.f32 %v3321_v2, %v230_v20 }
  0x13   : > { %384 = vst.msk [vmem:[#allocation2 + $0x70] sm:$0x3] %vm371_vm1, %v3213_v1  ;;  %387 = vst.msk [vmem:[#allocation2 + $0x88] sm:$0x3] %vm371_vm1, %v3213_v1  ;;  %v489_v11 = vld [vmem:[#allocation2 + $0x1] sm:$0xff]  ;;  %v304_v28 = vadd.f32 %v3333_v5, %v265_v16  ;;  %v289_v30 = vmul.f32 %v3321_v2, %v250_v25  ;;  %v290_v31 = vmul.f32 %v3321_v2, %v251_v26  ;;  %v248_v32 = vld [vmem:[%s3343_s10 + $0xb0] sm:$0xff]  ;;  %2614 = vmatprep.subr.bf16.mxu1 %v3124_v7 }
  0x14   : > { %385 = vst.msk [vmem:[#allocation2 + $0x78] sm:$0xff] %vm368_vm0, %v3213_v1  ;;  %386 = vst.msk [vmem:[#allocation2 + $0x80] sm:$0xff] %vm368_vm0, %v3213_v1  ;;  %v490_v12 = vld [vmem:[#allocation2 + $0x9] sm:$0xff]  ;;  %v338_v34 = vmax.f32 %v306_v22, 0.0  ;;  %v339_v35 = vmax.f32 %v307_v23, 0.0  ;;  %v305_v36 = vadd.f32 %v3333_v5, %v266_v24  ;;  %v288_v37 = vmul.f32 %v3321_v2, %v249_v27  ;;  %v253_v38 = vld [vmem:[%s3343_s10 + $0xd8] sm:$0xff] }
  0x15   : > { %388 = vst.msk [vmem:[#allocation2 + $0x90] sm:$0xff] %vm368_vm0, %v3213_v1  ;;  %389 = vst.msk [vmem:[#allocation2 + $0x98] sm:$0xff] %vm368_vm0, %v3213_v1  ;;  %v521_v13 = vld [vmem:[#allocation2 + $0x2] sm:$0xff]  ;;  %v2640_v17 = vpack.i.bf16 %v490_v12, %v489_v11  ;;  %v522_v18 = vld [vmem:[#allocation2 + $0xa] sm:$0xff]  ;;  %v336_v39 = vmax.f32 %v304_v28, 0.0  ;;  %v308_v40 = vadd.f32 %v3333_v5, %v269_v29  ;;  %v328_v41 = vadd.f32 %v3333_v5, %v289_v30 }
  0x16   : > { %390 = vst.msk [vmem:[#allocation2 + $0xa0] sm:$0x3] %vm371_vm1, %v3213_v1  ;;  %393 = vst.msk [vmem:[#allocation2 + $0xb8] sm:$0x3] %vm371_vm1, %v3213_v1  ;;  %v2645_v21 = vpack.i.bf16 %v522_v18, %v521_v13  ;;  %v252_v33 = vld [vmem:[%s3343_s10 + $0xd0] sm:$0xff]  ;;  %v329_v42 = vadd.f32 %v3333_v5, %v290_v31  ;;  %v231_v43 = vld [vmem:[%s3343_s10 + $0x28] sm:$0xff]  ;;  %v327_v45 = vadd.f32 %v3333_v5, %v288_v37 }
  0x17   : > { %391 = vst.msk [vmem:[#allocation2 + $0xa8] sm:$0xff] %vm368_vm0, %v3213_v1  ;;  %392 = vst.msk [vmem:[#allocation2 + $0xb0] sm:$0xff] %vm368_vm0, %v3213_v1  ;;  %2641 = vrot.lane.b32.xlu0 %v2640_v17, %s3214_s13  ;;  %v337_v44 = vmax.f32 %v305_v36, 0.0  ;;  %v287_v46 = vmul.f32 %v3321_v2, %v248_v32  ;;  %v291_v47 = vmul.f32 %v3321_v2, %v252_v33  ;;  %v254_v48 = vld [vmem:[%s3343_s10 + $0xe0] sm:$0xff]  ;;  %v255_v49 = vld [vmem:[%s3343_s10 + $0xe8] sm:$0xff]  ;;  %v340_v51 = vmax.f32 %v308_v40, 0.0 }
  0x18   : > { %394 = vst.msk [vmem:[#allocation2 + $0xc0] sm:$0xff] %vm368_vm0, %v3213_v1  ;;  %395 = vst.msk [vmem:[#allocation2 + $0xc8] sm:$0xff] %vm368_vm0, %v3213_v1  ;;  %v232_v50 = vld [vmem:[%s3343_s10 + $0x30] sm:$0xff]  ;;  %v360_v52 = vmax.f32 %v328_v41, 0.0  ;;  %v361_v53 = vmax.f32 %v329_v42, 0.0  ;;  %v292_v54 = vmul.f32 %v3321_v2, %v253_v38  ;;  %v233_v55 = vld [vmem:[%s3343_s10 + $0x38] sm:$0xff]  ;;  %v270_v59 = vmul.f32 %v3321_v2, %v231_v43 }
  0x19   : > { %396 = vst.msk [vmem:[#allocation2 + $0xd0] sm:$0x3] %vm371_vm1, %v3213_v1  ;;  %399 = vst.msk [vmem:[#allocation2 + $0xe8] sm:$0x3] %vm371_vm1, %v3213_v1  ;;  %v359_v56 = vmax.f32 %v327_v45, 0.0  ;;  %v326_v57 = vadd.f32 %v3333_v5, %v287_v46  ;;  %v330_v58 = vadd.f32 %v3333_v5, %v291_v47  ;;  %v293_v61 = vmul.f32 %v3321_v2, %v254_v48  ;;  %v256_v0 = vld [vmem:[%s3343_s10 + $0xf0] sm:$0xff] }
  0x1a   : > { %397 = vst.msk [vmem:[#allocation2 + $0xd8] sm:$0xff] %vm368_vm0, %v3213_v1  ;;  %398 = vst.msk [vmem:[#allocation2 + $0xe0] sm:$0xff] %vm368_vm0, %v3213_v1  ;;  %v331_v60 = vadd.f32 %v3333_v5, %v292_v54  ;;  %v294_v62 = vmul.f32 %v3321_v2, %v255_v49  ;;  %v271_v63 = vmul.f32 %v3321_v2, %v232_v50  ;;  %v234_v3 = vld [vmem:[%s3343_s10 + $0x40] sm:$0xff]  ;;  %v235_v9 = vld [vmem:[%s3343_s10 + $0x48] sm:$0xff] }
  0x1b   : > { %400 = vst.msk [vmem:[#allocation2 + $0xf0] sm:$0xff] %vm368_vm0, %v3213_v1  ;;  %401 = vst.msk [vmem:[#allocation2 + $0xf8] sm:$0xff] %vm368_vm0, %v3213_v1  ;;  %2646 = vrot.lane.b32.xlu0 %v2645_v21, %s3215_s14  ;;  %v358_v4 = vmax.f32 %v326_v57, 0.0  ;;  %v362_v6 = vmax.f32 %v330_v58, 0.0  ;;  %v309_v7 = vadd.f32 %v3333_v5, %v270_v59  ;;  %v272_v8 = vmul.f32 %v3321_v2, %v233_v55  ;;  %v3125_v10 = vld [vmem:[%s4232_s3 + $0x28] sm:$0xff]   ;;  %v3126_v15 = vld [vmem:[%s4232_s3 + $0x60] sm:$0xff]  }
  0x1c   : > { %402 = vst.msk [vmem:[#allocation2 + $0x100] sm:$0x3] %vm371_vm1, %v3213_v1  ;;  %405 = vst.msk [vmem:[#allocation2 + $0x118] sm:$0x3] %vm371_vm1, %v3213_v1  ;;  %v363_v11 = vmax.f32 %v331_v60, 0.0  ;;  %v332_v12 = vadd.f32 %v3333_v5, %v293_v61  ;;  %v333_v13 = vadd.f32 %v3333_v5, %v294_v62  ;;  %v310_v14 = vadd.f32 %v3333_v5, %v271_v63  ;;  %v3127_v20 = vld [vmem:[%s4232_s3 + $0x20] sm:$0xff]  }
  0x1d   : > { %403 = vst.msk [vmem:[#allocation2 + $0x108] sm:$0xff] %vm368_vm0, %v3213_v1  ;;  %404 = vst.msk [vmem:[#allocation2 + $0x110] sm:$0xff] %vm368_vm0, %v3213_v1  ;;  %v341_v16 = vmax.f32 %v309_v7, 0.0  ;;  %v311_v17 = vadd.f32 %v3333_v5, %v272_v8  ;;  %v295_v18 = vmul.f32 %v3321_v2, %v256_v0  ;;  %2451 = vmatpush3.bf16.msra.mxu0 %v3125_v10  ;;  %2622 = vmatpush3.bf16.msra.mxu1 %v3125_v10  ;;  %v236_v32 = vld [vmem:[%s3343_s10 + $0x50] sm:$0xff]  ;;  %v237_v33 = vld [vmem:[%s3343_s10 + $0x58] sm:$0xff] }
  0x1e   : > { %406 = vst.msk [vmem:[#allocation2 + $0x120] sm:$0xff] %vm368_vm0, %v3213_v1  ;;  %407 = vst.msk [vmem:[#allocation2 + $0x128] sm:$0xff] %vm368_vm0, %v3213_v1  ;;  %v364_v23 = vmax.f32 %v332_v12, 0.0  ;;  %v365_v24 = vmax.f32 %v333_v13, 0.0  ;;  %v342_v25 = vmax.f32 %v310_v14, 0.0  ;;  %v273_v26 = vmul.f32 %v3321_v2, %v234_v3  ;;  %2452 = vmatprep.subr.bf16.mxu0 %v3126_v15  ;;  %2615 = vmatprep.subr.bf16.mxu1 %v3126_v15  ;;  %v239_v49 = vld [vmem:[%s3343_s10 + $0x68] sm:$0xff] }
  0x1f   : > { %408 = vst.msk [vmem:[#allocation2 + $0x130] sm:$0x3] %vm371_vm1, %v3213_v1  ;;  %411 = vst.msk [vmem:[#allocation2 + $0x148] sm:$0x3] %vm371_vm1, %v3213_v1  ;;  %v343_v29 = vmax.f32 %v311_v17, 0.0  ;;  %v334_v30 = vadd.f32 %v3333_v5, %v295_v18  ;;  %v274_v37 = vmul.f32 %v3321_v2, %v235_v9  ;;  %v275_v55 = vmul.f32 %v3321_v2, %v236_v32  ;;  %v240_v32 = vld [vmem:[%s3343_s10 + $0x70] sm:$0xff] }
  0x20   : > { %409 = vst.msk [vmem:[#allocation2 + $0x138] sm:$0xff] %vm368_vm0, %v3213_v1  ;;  %410 = vst.msk [vmem:[#allocation2 + $0x140] sm:$0xff] %vm368_vm0, %v3213_v1  ;;  %v312_v38 = vadd.f32 %v3333_v5, %v273_v26  ;;  %v278_v59 = vmul.f32 %v3321_v2, %v239_v49 }
  0x21   : > { %412 = vst.msk [vmem:[#allocation2 + $0x150] sm:$0xff] %vm368_vm0, %v3213_v1  ;;  %413 = vst.msk [vmem:[#allocation2 + $0x158] sm:$0xff] %vm368_vm0, %v3213_v1  ;;  %v366_v42 = vmax.f32 %v334_v30, 0.0  ;;  %2453 = vmatpush3.bf16.msra.mxu0 %v3127_v20  ;;  %v313_v48 = vadd.f32 %v3333_v5, %v274_v37  ;;  %2623 = vmatpush3.bf16.msra.mxu1 %v3127_v20  ;;  %v314_v60 = vadd.f32 %v3333_v5, %v275_v55  ;;  %v3133_v55 = vld [vmem:[%s4232_s3 + $0x8] sm:$0xff]  }
  0x22   : > { %414 = vst.msk [vmem:[#allocation2 + $0x160] sm:$0x3] %vm371_vm1, %v3213_v1  ;;  %417 = vst.msk [vmem:[#allocation2 + $0x178] sm:$0x3] %vm371_vm1, %v3213_v1  ;;  %v317_v0 = vadd.f32 %v3333_v5, %v278_v59  ;;  %v279_v37 = vmul.f32 %v3321_v2, %v240_v32  ;;  %v243_v59 = vld [vmem:[%s3343_s10 + $0x88] sm:$0xff] }
  0x23   : > { %415 = vst.msk [vmem:[#allocation2 + $0x168] sm:$0xff] %vm368_vm0, %v3213_v1  ;;  %416 = vst.msk [vmem:[#allocation2 + $0x170] sm:$0xff] %vm368_vm0, %v3213_v1  ;;  %v345_v54 = vmax.f32 %v313_v48, 0.0  ;;  %v3132_v48 = vld [vmem:[%s4232_s3 + $0x48] sm:$0xff]  }
  0x24   : > { %418 = vst.msk [vmem:[#allocation2 + $0x180] sm:$0xff] %vm368_vm0, %v3213_v1  ;;  %419 = vst.msk [vmem:[#allocation2 + $0x188] sm:$0xff] %vm368_vm0, %v3213_v1  ;;  %v349_v10 = vmax.f32 %v317_v0, 0.0  ;;  %v244_v0 = vld [vmem:[%s3343_s10 + $0x90] sm:$0xff] }
  0x25   : > { %420 = vst.msk [vmem:[#allocation2 + $0x190] sm:$0x3] %vm371_vm1, %v3213_v1  ;;  %423 = vst.msk [vmem:[#allocation2 + $0x1a8] sm:$0x3] %vm371_vm1, %v3213_v1 }
  0x26   : > { %421 = vst.msk [vmem:[#allocation2 + $0x198] sm:$0xff] %vm368_vm0, %v3213_v1  ;;  %422 = vst.msk [vmem:[#allocation2 + $0x1a0] sm:$0xff] %vm368_vm0, %v3213_v1  ;;  %v257_v1 = vld [vmem:[%s3343_s10 + $0xf8] sm:$0xff] }
  0x27   : > { %427 = vst.msk [vmem:[#allocation2 + $0x31] sm:$0xff] %vm368_vm0, %v338_v34  ;;  %428 = vst.msk [vmem:[#allocation2 + $0x39] sm:$0xff] %vm368_vm0, %v339_v35  ;;  %v296_v19 = vmul.f32 %v3321_v2, %v257_v1 }
  0x28   : > { %425 = vst.msk [vmem:[#allocation2 + $0x19] sm:$0xff] %vm368_vm0, %v336_v39  ;;  %426 = vst.msk [vmem:[#allocation2 + $0x21] sm:$0xff] %vm368_vm0, %v337_v44  ;;  %v238_v44 = vld [vmem:[%s3343_s10 + $0x60] sm:$0xff] }
  0x29   : > { %429 = vst.msk [vmem:[#allocation2 + $0x49] sm:$0xff] %vm368_vm0, %v340_v51  ;;  %449 = vst.msk [vmem:[#allocation2 + $0x139] sm:$0xff] %vm368_vm0, %v360_v52  ;;  %v335_v31 = vadd.f32 %v3333_v5, %v296_v19  ;;  %v344_v51 = vmax.f32 %v312_v38, 0.0  ;;  %v277_v58 = vmul.f32 %v3321_v2, %v238_v44  ;;  %v318_v44 = vadd.f32 %v3333_v5, %v279_v37 }
  0x2a   : > { %450 = vst.msk [vmem:[#allocation2 + $0x141] sm:$0xff] %vm368_vm0, %v361_v53  ;;  %448 = vst.msk [vmem:[#allocation2 + $0x129] sm:$0xff] %vm368_vm0, %v359_v56  ;;  %v276_v56 = vmul.f32 %v3321_v2, %v237_v33  ;;  %v241_v33 = vld [vmem:[%s3343_s10 + $0x78] sm:$0xff] }
  0x2b   : > { %447 = vst.msk [vmem:[#allocation2 + $0x121] sm:$0xff] %vm368_vm0, %v358_v4  ;;  %451 = vst.msk [vmem:[#allocation2 + $0x151] sm:$0xff] %vm368_vm0, %v362_v6  ;;  %v367_v43 = vmax.f32 %v335_v31, 0.0  ;;  %v316_v63 = vadd.f32 %v3333_v5, %v277_v58  ;;  %v346_v4 = vmax.f32 %v314_v60, 0.0  ;;  %v3128_v31 = vld [vmem:[%s4232_s3 + $0x58] sm:$0xff]   ;;  %v280_v38 = vmul.f32 %v3321_v2, %v241_v33  ;;  %v242_v58 = vld [vmem:[%s3343_s10 + $0x80] sm:$0xff] }
  0x2c   : > { %452 = vst.msk [vmem:[#allocation2 + $0x159] sm:$0xff] %vm368_vm0, %v363_v11  ;;  %430 = vst.msk [vmem:[#allocation2 + $0x51] sm:$0xff] %vm368_vm0, %v341_v16  ;;  %v315_v61 = vadd.f32 %v3333_v5, %v276_v56  ;;  %2454 = vmatprep.subr.bf16.mxu0 %v3128_v31  ;;  %2616 = vmatprep.subr.bf16.mxu1 %v3128_v31  ;;  %v281_v60 = vmul.f32 %v3321_v2, %v242_v58 }
  0x2d   : > { %453 = vst.msk [vmem:[#allocation2 + $0x169] sm:$0xff] %vm368_vm0, %v364_v23  ;;  %454 = vst.msk [vmem:[#allocation2 + $0x171] sm:$0xff] %vm368_vm0, %v365_v24  ;;  %v348_v7 = vmax.f32 %v316_v63, 0.0 }
  0x2e   : > { %v3423_v21 = vld [vmem:[#allocation2 + $0x31] sm:$0xff]  ;;  %v494_v22 = vld [vmem:[#allocation2 + $0x39] sm:$0xff]  ;;  %431 = vst.msk [vmem:[#allocation2 + $0x61] sm:$0xff] %vm368_vm0, %v342_v25  ;;  %432 = vst.msk [vmem:[#allocation2 + $0x69] sm:$0xff] %vm368_vm0, %v343_v29  ;;  %v347_v6 = vmax.f32 %v315_v61, 0.0  ;;  %v320_v63 = vadd.f32 %v3333_v5, %v281_v60 }
  0x2f   : > { %v3428_v27 = vpack.i.bf16 %v494_v22, %v3423_v21  ;;  %v491_v28 = vld [vmem:[#allocation2 + $0x19] sm:$0xff]  ;;  %v492_v34 = vld [vmem:[#allocation2 + $0x21] sm:$0xff]  ;;  %v650_v46 = vld [vmem:[#allocation2 + $0x30] sm:$0xff]  ;;  %455 = vst.msk [vmem:[#allocation2 + $0x181] sm:$0xff] %vm368_vm0, %v366_v42 }
  0x30   : > { %v3435_v35 = vld [vmem:[#allocation2 + $0x1a] sm:$0xff]  ;;  %v3437_v36 = vld [vmem:[#allocation2 + $0x22] sm:$0xff]  ;;  %v2650_v39 = vpack.i.bf16 %v492_v34, %v491_v28  ;;  %456 = vst.msk [vmem:[#allocation2 + $0x189] sm:$0xff] %vm368_vm0, %v367_v43  ;;  %433 = vst.msk [vmem:[#allocation2 + $0x79] sm:$0xff] %vm368_vm0, %v344_v51 }
  0x31   : > { %2656 = vrot.lane.b32.xlu1 %v3428_v27, %s3214_s13  ;;  %v3446_v40 = vld [vmem:[#allocation2 + $0x49] sm:$0xff]  ;;  %v3448_v41 = vld [vmem:[#allocation2 + $0x13a] sm:$0xff]  ;;  %434 = vst.msk [vmem:[#allocation2 + $0x81] sm:$0xff] %vm368_vm0, %v345_v54  ;;  %v3481_v3 = vld [vmem:[#allocation2 + $0x32] sm:$0xff]  ;;  %v2725_v56 = vpack.i.bf16 %v3437_v36, %v3435_v35 }
  0x32   : > { %v2660_v45 = vpack.i.bf16 %v3435_v35, %v3446_v40  ;;  %v651_v47 = vld [vmem:[#allocation2 + $0x38] sm:$0xff]  ;;  %2651 = vrot.lane.b32.xlu0 %v2650_v39, %s3214_s13  ;;  %v2665_v50 = vpack.i.bf16 %v3448_v41, %v3437_v36  ;;  %v3463_v53 = vld [vmem:[#allocation2 + $0x20] sm:$0xff]  ;;  %v514_v1 = vld [vmem:[#allocation2 + $0x129] sm:$0xff]  ;;  %435 = vst.msk [vmem:[#allocation2 + $0x91] sm:$0xff] %vm368_vm0, %v346_v4 }
  0x33   : > { %v3461_v52 = vld [vmem:[#allocation2 + $0x18] sm:$0xff]  ;;  %v3468_v57 = vpack.i.bf16 %v651_v47, %v650_v46  ;;  %v513_v8 = vld [vmem:[#allocation2 + $0x121] sm:$0xff]  ;;  %436 = vst.msk [vmem:[#allocation2 + $0x99] sm:$0xff] %vm368_vm0, %v347_v6  ;;  %v2690_v11 = vpack.i.bf16 %v3481_v3, %v514_v1  ;;  %437 = vst.msk [vmem:[#allocation2 + $0xa9] sm:$0xff] %vm368_vm0, %v348_v7 }
  0x34   : > { %v2680_v62 = vpack.i.bf16 %v3463_v53, %v3461_v52  ;;  %v3485_v9 = vld [vmem:[#allocation2 + $0x142] sm:$0xff]  ;;  %v546_v13 = vld [vmem:[#allocation2 + $0x12a] sm:$0xff]  ;;  %438 = vst.msk [vmem:[#allocation2 + $0xb1] sm:$0xff] %vm368_vm0, %v349_v10  ;;  %v675_v16 = vld [vmem:[#allocation2 + $0x158] sm:$0xff] }
  0x35   : > { %2661 = vrot.lane.b32.xlu1 %v2660_v45, %s3214_s13  ;;  %v545_v12 = vld [vmem:[#allocation2 + $0x122] sm:$0xff]  ;;  %v2685_v14 = vpack.i.bf16 %v513_v8, %v3485_v9  ;;  %v674_v15 = vld [vmem:[#allocation2 + $0x150] sm:$0xff]  ;;  %v577_v18 = vld [vmem:[#allocation2 + $0x138] sm:$0xff]  ;;  %v319_v45 = vadd.f32 %v3333_v5, %v280_v38  ;;  %v283_v8 = vmul.f32 %v3321_v2, %v244_v0 }
  0x36   : > { %2666 = vrot.lane.b32.xlu0 %v2665_v50, %s3214_s13  ;;  %v2700_v17 = vpack.i.bf16 %v546_v13, %v545_v12  ;;  %v578_v19 = vld [vmem:[#allocation2 + $0x140] sm:$0xff]  ;;  %v3498_v20 = vpack.i.bf16 %v675_v16, %v674_v15  ;;  %v3500_v22 = vld [vmem:[#allocation2 + $0x151] sm:$0xff]  ;;  %v652_v25 = vld [vmem:[#allocation2 + $0x48] sm:$0xff]  ;;  %v350_v50 = vmax.f32 %v318_v44, 0.0  ;;  %v352_v13 = vmax.f32 %v320_v63, 0.0 }
  0x37   : > { %v3502_v23 = vld [vmem:[#allocation2 + $0x159] sm:$0xff]  ;;  %v2710_v24 = vpack.i.bf16 %v578_v19, %v577_v18  ;;  %v653_v26 = vld [vmem:[#allocation2 + $0x50] sm:$0xff]  ;;  %v351_v51 = vmax.f32 %v319_v45, 0.0  ;;  %v676_v36 = vld [vmem:[#allocation2 + $0x168] sm:$0xff] }
  0x38   : > { %v2705_v28 = vpack.i.bf16 %v3502_v23, %v3500_v22  ;;  %v3511_v29 = vld [vmem:[#allocation2 + $0x152] sm:$0xff]  ;;  %v3521_v34 = vpack.i.bf16 %v653_v26, %v652_v25  ;;  %v3548_v54 = vld [vmem:[#allocation2 + $0x15a] sm:$0xff]  ;;  %439 = vst.msk [vmem:[#allocation2 + $0xc1] sm:$0xff] %vm368_vm0, %v350_v50  ;;  %v3582_v12 = vld [vmem:[#allocation2 + $0x4a] sm:$0xff] }
  0x39   : > { %2671 = vrot.lane.b32.xlu1 %v3468_v57, %s3215_s14  ;;  %v3513_v30 = vld [vmem:[#allocation2 + $0x51] sm:$0xff]  ;;  %v3539_v47 = vld [vmem:[#allocation2 + $0x139] sm:$0xff]  ;;  %440 = vst.msk [vmem:[#allocation2 + $0xc9] sm:$0xff] %vm368_vm0, %v351_v51  ;;  %v3572_v4 = vld [vmem:[#allocation2 + $0x141] sm:$0xff] }
  0x3a   : > { %2681 = vrot.lane.b32.xlu0 %v2680_v62, %s3216_s23  ;;  %v3129_v39 = vld [vmem:[%s4232_s3 + $0x18] sm:$0xff]   ;;  %v3130_v42 = vld [vmem:[%s4232_s3 + $0x50] sm:$0xff]   ;;  %v2730_v49 = vpack.i.bf16 %v3513_v30, %v3446_v40  ;;  %v3134_v40 = vld [vmem:[%s4232_s3 + $0x40] sm:$0xff]   ;;  %v2740_v35 = vpack.i.bf16 %v3539_v47, %v3548_v54  ;;  %v282_v62 = vmul.f32 %v3321_v2, %v243_v59  ;;  %441 = vst.msk [vmem:[#allocation2 + $0xd9] sm:$0xff] %vm368_vm0, %v352_v13 }
  0x3b   : > { %2455 = vmatpush3.bf16.msra.mxu0 %v3129_v39  ;;  %v3131_v46 = vld [vmem:[%s4232_s3 + $0x10] sm:$0xff]   ;;  %2624 = vmatpush3.bf16.msra.mxu1 %v3129_v39  ;;  %v245_v1 = vld [vmem:[%s3343_s10 + $0x98] sm:$0xff]  ;;  %v3135_v7 = vld [vmem:[%s4232_s3] sm:$0xff]  }
  0x3c   : > { %2456 = vmatprep.subr.bf16.mxu0 %v3130_v42  ;;  %2617 = vmatprep.subr.bf16.mxu1 %v3130_v42  ;;  %v677_v61 = vld [vmem:[#allocation2 + $0x170] sm:$0xff]  ;;  %v321_v6 = vadd.f32 %v3333_v5, %v282_v62  ;;  %v284_v10 = vmul.f32 %v3321_v2, %v245_v1  ;;  %v247_v15 = vld [vmem:[%s3343_s10 + $0xa8] sm:$0xff]  ;;  %v654_v44 = vld [vmem:[#allocation2 + $0x60] sm:$0xff] }
  0x3d   : > { %2676 = vrot.lane.b32.xlu1 %v3428_v27, %s3216_s23  ;;  %v3505_v27 = vld [vmem:[#allocation2 + $0x3a] sm:$0xff]  ;;  %v709_v25 = vld [vmem:[#allocation2 + $0x171] sm:$0xff]  ;;  %v286_v26 = vmul.f32 %v3321_v2, %v247_v15  ;;  %v655_v45 = vld [vmem:[#allocation2 + $0x68] sm:$0xff] }
  0x3e   : > { %2691 = vrot.lane.b32.xlu0 %v2690_v11, %s3214_s13  ;;  %v2715_v43 = vpack.i.bf16 %v3511_v29, %v3505_v27  ;;  %v3580_v11 = vpack.i.bf16 %v677_v61, %v676_v36  ;;  %v353_v16 = vmax.f32 %v321_v6, 0.0  ;;  %v323_v18 = vadd.f32 %v3333_v5, %v284_v10  ;;  %v622_v38 = vld [vmem:[#allocation2 + $0x52] sm:$0xff]  ;;  %v3605_v39 = vld [vmem:[#allocation2 + $0x16a] sm:$0xff]  ;;  %v710_v58 = vld [vmem:[#allocation2 + $0x181] sm:$0xff] }
  0x3f   : > { %2457 = vmatpush3.bf16.msra.mxu0 %v3131_v46  ;;  %2625 = vmatpush3.bf16.msra.mxu1 %v3131_v46  ;;  %v325_v37 = vadd.f32 %v3333_v5, %v286_v26  ;;  %v2780_v46 = vpack.i.bf16 %v3505_v27, %v3481_v3  ;;  %v646_v51 = vld [vmem:[#allocation2 + $0x172] sm:$0xff]  ;;  %v678_v27 = vld [vmem:[#allocation2 + $0x180] sm:$0xff]  ;;  %v648_v0 = vld [vmem:[#allocation2 + $0x18a] sm:$0xff]  ;;  %v2835_v1 = vpack.i.bf16 %v622_v38, %v3582_v12 }
  0x40   : > { %2458 = vmatprep.subr.bf16.mxu0 %v3132_v48  ;;  %2618 = vmatprep.subr.bf16.mxu1 %v3132_v48  ;;  %442 = vst.msk [vmem:[#allocation2 + $0xe1] sm:$0xff] %vm368_vm0, %v353_v16  ;;  %v355_v32 = vmax.f32 %v323_v18, 0.0  ;;  %v687_v48 = vld [vmem:[#allocation2 + $0x69] sm:$0xff]  ;;  %v657_v59 = vld [vmem:[#allocation2 + $0x80] sm:$0xff] }
  0x41   : > { %2686 = vrot.lane.b32.xlu1 %v2685_v14, %s3214_s13  ;;  %v246_v14 = vld [vmem:[%s3343_s10 + $0xa0] sm:$0xff]  ;;  %v357_v42 = vmax.f32 %v325_v37, 0.0  ;;  %v3658_v16 = vld [vmem:[%s4232_s3 + $0x88] sm:$0xff]   ;;  %v658_v18 = vld [vmem:[#allocation2 + $0x90] sm:$0xff] }
  0x42   : > { %2701 = vrot.lane.b32.xlu0 %v2700_v17, %s3215_s14  ;;  %v322_v17 = vadd.f32 %v3333_v5, %v283_v8  ;;  %v285_v19 = vmul.f32 %v3321_v2, %v246_v14  ;;  %444 = vst.msk [vmem:[#allocation2 + $0xf9] sm:$0xff] %vm368_vm0, %v355_v32  ;;  %v688_v61 = vld [vmem:[#allocation2 + $0x79] sm:$0xff]  ;;  %v689_v62 = vld [vmem:[#allocation2 + $0x81] sm:$0xff] }
  0x43   : > { %2459 = vmatpush3.bf16.msra.mxu0 %v3133_v55  ;;  %2626 = vmatpush3.bf16.msra.mxu1 %v3133_v55  ;;  %446 = vst.msk [vmem:[#allocation2 + $0x111] sm:$0xff] %vm368_vm0, %v357_v42  ;;  %v679_v55 = vld [vmem:[#allocation2 + $0x188] sm:$0xff]  ;;  %v681_v8 = vld [vmem:[#allocation2 + $0x1a0] sm:$0xff]  ;;  %v693_v42 = vld [vmem:[#allocation2 + $0xb1] sm:$0xff] }
  0x44   : > { %2460 = vmatprep.subr.bf16.mxu0 %v3134_v40  ;;  %2619 = vmatprep.subr.bf16.mxu1 %v3134_v40  ;;  %v354_v31 = vmax.f32 %v322_v17, 0.0  ;;  %v324_v33 = vadd.f32 %v3333_v5, %v285_v19  ;;  %v2770_v5 = vpack.i.bf16 %v3605_v39, %v622_v38  ;;  %v2805_v40 = vpack.i.bf16 %v679_v55, %v678_v27  ;;  %v647_v63 = vld [vmem:[#allocation2 + $0x182] sm:$0xff]  ;;  %v625_v14 = vld [vmem:[#allocation2 + $0x7a] sm:$0xff] }
  0x45   : > { %2696 = vrot.lane.b32.xlu1 %v3498_v20, %s3215_s14  ;;  %v2850_v6 = vpack.i.bf16 %v648_v0, %v647_v63  ;;  %v626_v15 = vld [vmem:[#allocation2 + $0x82] sm:$0xff]  ;;  %v659_v19 = vld [vmem:[#allocation2 + $0x98] sm:$0xff] }
  0x46   : > { %2711 = vrot.lane.b32.xlu0 %v2710_v24, %s3216_s23  ;;  %v708_v24 = vld [vmem:[#allocation2 + $0x169] sm:$0xff]  ;;  %443 = vst.msk [vmem:[#allocation2 + $0xf1] sm:$0xff] %vm368_vm0, %v354_v31  ;;  %v2880_v17 = vpack.i.bf16 %v626_v15, %v625_v14  ;;  %v691_v26 = vld [vmem:[#allocation2 + $0x99] sm:$0xff] }
  0x47   : > { %2461 = vmatpush3.bf16.msra.mxu0 %v3135_v7  ;;  %2627 = vmatpush3.bf16.msra.mxu1 %v3135_v7  ;;  %v3601_v2 = vpack.i.bf16 %v709_v25, %v708_v24  ;;  %v680_v7 = vld [vmem:[#allocation2 + $0x198] sm:$0xff]  ;;  %v2890_v24 = vpack.i.bf16 %v659_v19, %v658_v18 }
  0x48   : > { %v2860_v10 = vpack.i.bf16 %v681_v8, %v680_v7  ;;  %2576 = vmatprep.subr.bf16.mxu1 %v3658_v16  ;;  %v690_v25 = vld [vmem:[#allocation2 + $0x91] sm:$0xff]  ;;  %v628_v32 = vld [vmem:[#allocation2 + $0x9a] sm:$0xff] }
  0x49   : > { %2706 = vrot.lane.b32.xlu1 %v2705_v28, %s3216_s23  ;;  %v2745_v28 = vpack.i.bf16 %v3582_v12, %v3572_v4  ;;  %v2865_v12 = vpack.i.bf16 %v646_v51, %v3605_v39  ;;  %v627_v31 = vld [vmem:[#allocation2 + $0x92] sm:$0xff]  ;;  %v692_v39 = vld [vmem:[#allocation2 + $0xa9] sm:$0xff] }
  0x4a   : > { %2721 = vrot.lane.b32.xlu0 %v3521_v34, %s3215_s14  ;;  %v2910_v37 = vpack.i.bf16 %v628_v32, %v627_v31  ;;  %v697_v31 = vld [vmem:[#allocation2 + $0xe1] sm:$0xff] }
  0x4d   : > { %2716 = vrot.lane.b32.xlu1 %v2715_v43, %s3214_s13  ;;  %v2755_v43 = vpack.i.bf16 %v3485_v9, %v3448_v41  ;;  %v2775_v41 = vpack.i.bf16 %v655_v45, %v654_v44  ;;  %v686_v9 = vld [vmem:[#allocation2 + $0x61] sm:$0xff]  ;;  %v629_v44 = vld [vmem:[#allocation2 + $0xaa] sm:$0xff]  ;;  %v630_v45 = vld [vmem:[#allocation2 + $0xb2] sm:$0xff] }
  0x4e   : > { %2731 = vrot.lane.b32.xlu0 %v2730_v49, %s3216_s23  ;;  %v3622_v49 = vld [vmem:[#allocation2 + $0x62] sm:$0xff]  ;;  %v3625_v50 = vpack.i.bf16 %v687_v48, %v686_v9 }
  0x4f   : > { %v2800_v3 = vpack.i.bf16 %v3622_v49, %v3502_v23  ;;  %v656_v23 = vld [vmem:[#allocation2 + $0x78] sm:$0xff]  ;;  %v662_v9 = vld [vmem:[#allocation2 + $0xc0] sm:$0xff]  ;;  %v663_v48 = vld [vmem:[#allocation2 + $0xc8] sm:$0xff] }
  0x50   : > { %v2830_v36 = vpack.i.bf16 %v657_v59, %v656_v23  ;;  %v457_v23 = vld [vmem:[#allocation2] sm:$0xff] }
  0x51   : > { %2726 = vrot.lane.b32.xlu1 %v2725_v56, %s3215_s14  ;;  %v2810_v56 = vpack.i.bf16 %v3548_v54, %v3511_v29  ;;  %v2840_v54 = vpack.i.bf16 %v689_v62, %v688_v61 }
  0x52   : > { %2741 = vrot.lane.b32.xlu0 %v2740_v35, %s3214_s13  ;;  %v624_v35 = vld [vmem:[#allocation2 + $0x6a] sm:$0xff] }
  0x53   : > { %v2825_v29 = vpack.i.bf16 %v3513_v30, %v624_v35  ;;  %v712_v30 = vld [vmem:[#allocation2 + $0x199] sm:$0xff] }
  0x55   : > { %2736 = vrot.lane.b32.xlu1 %v3468_v57, %s3216_s23  ;;  %v356_v57 = vmax.f32 %v324_v33, 0.0  ;;  %v2895_v33 = vpack.i.bf16 %v624_v35, %v3622_v49 }
  0x56   : > { %2751 = vrot.lane.b32.xlu0 %v3580_v11, %s3215_s14 }
  0x57   : > { %445 = vst.msk [vmem:[#allocation2 + $0x109] sm:$0xff] %vm368_vm0, %v356_v57  ;;  %v661_v57 = vld [vmem:[#allocation2 + $0xb0] sm:$0xff] }
  0x59   : > { %2746 = vrot.lane.b32.xlu1 %v2745_v28, %s3214_s13  ;;  %v2900_v28 = vpack.i.bf16 %v691_v26, %v690_v25 }
  0x5a   : > { %2761 = vrot.lane.b32.xlu0 %v3601_v2, %s3216_s23 }
  0x5d   : > { %2756 = vrot.lane.b32.xlu1 %v2755_v43, %s3215_s14 }
  0x5e   : > { %2771 = vrot.lane.b32.xlu0 %v2770_v5, %s3214_s13  ;;  %v3677_v5 = vpack.i.bf16 %v693_v42, %v692_v39 }
  0x61   : > { %2766 = vrot.lane.b32.xlu1 %v3498_v20, %s3216_s23  ;;  %v2795_v20 = vpack.i.bf16 %v3500_v22, %v646_v51  ;;  %v694_v51 = vld [vmem:[#allocation2 + $0xc1] sm:$0xff] }
  0x62   : > { %2781 = vrot.lane.b32.xlu0 %v2780_v46, %s3215_s14 }
  0x65   : > { %2776 = vrot.lane.b32.xlu1 %v2775_v41, %s3215_s14 }
  0x66   : > { %2791 = vrot.lane.b32.xlu0 %v3521_v34, %s3216_s23  ;;  %v711_v34 = vld [vmem:[#allocation2 + $0x189] sm:$0xff] }
  0x67   : > { %v2815_v60 = vpack.i.bf16 %v711_v34, %v710_v58  ;;  %v632_v58 = vld [vmem:[#allocation2 + $0xca] sm:$0xff] }
  0x69   : > { %2786 = vrot.lane.b32.xlu1 %v3625_v50, %s3216_s23 }
  0x6a   : > { %2801 = vrot.lane.b32.xlu0 %v2800_v3, %s3214_s13  ;;  %v695_v3 = vld [vmem:[#allocation2 + $0xc9] sm:$0xff] }
  0x6b   : > { %v3698_v55 = vpack.i.bf16 %v695_v3, %v694_v51  ;;  %v3739_v51 = vld [vmem:[#allocation2 + $0xe2] sm:$0xff] }
  0x6d   : > { %2796 = vrot.lane.b32.xlu1 %v2795_v20, %s3214_s13 }
  0x6e   : > { %2811 = vrot.lane.b32.xlu0 %v2810_v56, %s3215_s14 }
  0x71   : > { %2806 = vrot.lane.b32.xlu1 %v2805_v40, %s3215_s14 }
  0x72   : > { %2821 = vrot.lane.b32.xlu0 %v3580_v11, %s3216_s23  ;;  %v713_v11 = vld [vmem:[#allocation2 + $0x1a1] sm:$0xff] }
  0x73   : > { %v2870_v13 = vpack.i.bf16 %v713_v11, %v712_v30  ;;  %v585_v11 = vld [vmem:[#allocation2 + $0x19] sm:$0xff] }
  0x75   : > { %2816 = vrot.lane.b32.xlu1 %v2815_v60, %s3216_s23  ;;  %v458_v60 = vld [vmem:[#allocation2 + $0x8] sm:$0xff] }
  0x76   : > { %2831 = vrot.lane.b32.xlu0 %v2830_v36, %s3215_s14 }
  0x79   : > { %2826 = vrot.lane.b32.xlu1 %v2825_v29, %s3214_s13  ;;  %v586_v29 = vld [vmem:[#allocation2 + $0x21] sm:$0xff] }
  0x7a   : > { %2841 = vrot.lane.b32.xlu0 %v2840_v54, %s3216_s23 }
  0x7d   : > { %2836 = vrot.lane.b32.xlu1 %v2835_v1, %s3215_s14  ;;  %v664_v1 = vld [vmem:[#allocation2 + $0xd8] sm:$0xff] }
  0x7e   : > { %2851 = vrot.lane.b32.xlu0 %v2850_v6, %s3214_s13  ;;  %v665_v6 = vld [vmem:[#allocation2 + $0xe0] sm:$0xff] }
  0x7f   : > { %v3716_v18 = vpack.i.bf16 %v665_v6, %v664_v1 }
  0x81   : > { %2846 = vrot.lane.b32.xlu1 %v2775_v41, %s3216_s23  ;;  %v3682_v41 = vpack.i.bf16 %v630_v45, %v629_v44 }
  0x82   : > { %2861 = vrot.lane.b32.xlu0 %v2860_v10, %s3215_s14 }
  0x85   : > { %2856 = vrot.lane.b32.xlu1 %v3601_v2, %s3214_s13  ;;  %v660_v2 = vld [vmem:[#allocation2 + $0xa8] sm:$0xff] }
  0x86   : > { %2871 = vrot.lane.b32.xlu0 %v2870_v13, %s3216_s23  ;;  %v3672_v38 = vpack.i.bf16 %v661_v57, %v660_v2 }
  0x89   : > { %2866 = vrot.lane.b32.xlu1 %v2865_v12, %s3215_s14  ;;  %v2642_v43 = vpop.permute.xlu0 %2641 }
  0x8a   : > { %2881 = vrot.lane.b32.xlu0 %v2880_v17, %s3214_s13  ;;  %v2643_v56 = vunpack.i.l.bf16 %v2642_v43  ;;  %v2644_v34 = vunpack.i.h.bf16 %v2642_v43 }
  0x8c   : > { %v1515_v7 = vsel %vm368_vm0, %v458_v60, %v2644_v34 }
  0x8d   : > { %2876 = vrot.lane.b32.xlu1 %v2805_v40, %s3216_s23  ;;  %v2647_v46 = vpop.permute.xlu0 %2646  ;;  %v631_v40 = vld [vmem:[#allocation2 + $0xc2] sm:$0xff] }
  0x8e   : > { %2891 = vrot.lane.b32.xlu0 %v2890_v24, %s3215_s14  ;;  %v3706_v62 = vpack.i.bf16 %v632_v58, %v631_v40  ;;  %v2649_v63 = vunpack.i.h.bf16 %v2647_v46  ;;  %v3743_v40 = vld [vmem:[#allocation2 + $0x120] sm:$0xff] }
  0x90   : > { %v1548_v19 = vsel %vm1546_vm2, %v1515_v7, %v2649_v63 }
  0x91   : > { %2886 = vrot.lane.b32.xlu1 %v3625_v50, %s3214_s13  ;;  %v3689_v50 = vpack.i.bf16 %v663_v48, %v662_v9  ;;  %v3737_v48 = vld [vmem:[#allocation2 + $0xda] sm:$0xff] }
  0x92   : > { %2901 = vrot.lane.b32.xlu0 %v2900_v28, %s3216_s23 }
  0x95   : > { %2896 = vrot.lane.b32.xlu1 %v2895_v33, %s3215_s14 }
  0x96   : > { %2911 = vrot.lane.b32.xlu0 %v2910_v37, %s3214_s13 }
  0x99   : > { %2906 = vrot.lane.b32.xlu1 %v2830_v36, %s3216_s23  ;;  %v2648_v36 = vunpack.i.l.bf16 %v2647_v46  ;;  %v3735_v46 = vld [vmem:[#allocation2 + $0x128] sm:$0xff] }
  0x9a   : > { %2921 = vrot.lane.b32.xlu0 %v3672_v38, %s3215_s14 }
  0x9d   : > { %2916 = vrot.lane.b32.xlu1 %v2840_v54, %s3214_s13  ;;  %v1514_v54 = vsel %vm368_vm0, %v457_v23, %v2643_v56 }
  0x9e   : > { %2931 = vrot.lane.b32.xlu0 %v3677_v5, %s3216_s23  ;;  %v1547_v12 = vsel %vm1546_vm2, %v1514_v54, %v2648_v36 }
  0xa1   : > { %2926 = vrot.lane.b32.xlu1 %v2880_v17, %s3215_s14 }
  0xa2   : > { %2941 = vrot.lane.b32.xlu0 %v3682_v41, %s3214_s13 }
  0xa3   : > { %v3687_v49 = vpop.permute.xlu1 %2656 }
  0xa4   : > { %v3691_v20 = vpop.permute.xlu0 %2651 }
  0xa5   : > { %2936 = vrot.lane.b32.xlu1 %v2890_v24, %s3216_s23 }
  0xa6   : > { %2951 = vrot.lane.b32.xlu0 %v3689_v50, %s3215_s14 }
  0xa7   : > { %v3696_v27 = vpop.permute.xlu1 %2661 }
  0xa8   : > { %v3700_v59 = vpop.permute.xlu0 %2666  ;;  %v2664_v0 = vunpack.i.h.bf16 %v3696_v27 }
  0xa9   : > { %2946 = vrot.lane.b32.xlu1 %v2900_v28, %s3214_s13  ;;  %v2668_v35 = vunpack.i.l.bf16 %v3700_v59  ;;  %v696_v28 = vld [vmem:[#allocation2 + $0xd9] sm:$0xff]  ;;  %v2669_v34 = vunpack.i.h.bf16 %v3700_v59 }
  0xaa   : > { %2961 = vrot.lane.b32.xlu0 %v3698_v55, %s3216_s23  ;;  %v1612_v26 = vsel %vm368_vm0, %v585_v11, %v2664_v0 }
  0xab   : > { %v2672_v61 = vpop.permute.xlu1 %2671  ;;  %v1613_v15 = vsel %vm368_vm0, %v586_v29, %v2668_v35  ;;  %v3752_v35 = vpack.i.bf16 %v3739_v51, %v3737_v48  ;;  %v667_v29 = vld [vmem:[#allocation2 + $0xf8] sm:$0xff] }
  0xac   : > { %v2674_v8 = vunpack.i.h.bf16 %v2672_v61  ;;  %v2673_v10 = vunpack.i.l.bf16 %v2672_v61  ;;  %v2682_v30 = vpop.permute.xlu0 %2681  ;;  %v666_v61 = vld [vmem:[#allocation2 + $0xf0] sm:$0xff] }
  0xad   : > { %2956 = vrot.lane.b32.xlu1 %v2910_v37, %s3215_s14  ;;  %v2684_v13 = vunpack.i.h.bf16 %v2682_v30  ;;  %v2683_v14 = vunpack.i.l.bf16 %v2682_v30  ;;  %v1636_v30 = vsel %vm368_vm0, %v3539_v47, %v2669_v34 }
  0xae   : > { %2971 = vrot.lane.b32.xlu0 %v3706_v62, %s3214_s13  ;;  %v1644_v33 = vsel %vm1546_vm2, %v1612_v26, %v2673_v10  ;;  %v1645_v37 = vsel %vm1546_vm2, %v1613_v15, %v2674_v8  ;;  %v3761_v10 = vpack.i.bf16 %v667_v29, %v666_v61  ;;  %v698_v15 = vld [vmem:[#allocation2 + $0xf1] sm:$0xff]  ;;  %v668_v29 = vld [vmem:[#allocation2 + $0x108] sm:$0xff] }
  0xaf   : > { %v2677_v17 = vpop.permute.xlu1 %2676  ;;  %v1580_v2 = vsel %vm1579_vm3, %v1547_v12, %v2683_v14  ;;  %v1581_v57 = vsel %vm1579_vm3, %v1548_v19, %v2684_v13  ;;  %v699_v12 = vld [vmem:[#allocation2 + $0xf9] sm:$0xff] }
  0xb0   : > { %v2679_v24 = vunpack.i.h.bf16 %v2677_v17  ;;  %v2678_v25 = vunpack.i.l.bf16 %v2677_v17  ;;  %v3720_v32 = vpop.permute.xlu0 %2691  ;;  %v1708_v9 = vpack.c.bf16 %v1581_v57, %v1580_v2  ;;  %v3781_v57 = vpack.i.bf16 %v699_v12, %v698_v15 }
  0xb1   : > { %2966 = vrot.lane.b32.xlu1 %v3672_v38, %s3216_s23  ;;  %v2693_v43 = vunpack.i.l.bf16 %v3720_v32  ;;  %v3733_v38 = vpack.i.bf16 %v697_v31, %v696_v28  ;;  %v2694_v26 = vunpack.i.h.bf16 %v3720_v32  ;;  %v3786_v32 = vld [vmem:[#allocation2 + $0xfa] sm:$0xff] }
  0xb2   : > { %v1676_v39 = vsel %vm1579_vm3, %v1644_v33, %v2678_v25  ;;  %v1677_v42 = vsel %vm1579_vm3, %v1645_v37, %v2679_v24  ;;  %2981 = vrot.lane.b32.xlu0 %v3716_v18, %s3215_s14 }
  0xb3   : > { %v2687_v44 = vpop.permute.xlu1 %2686  ;;  %v1709_v45 = vpack.c.bf16 %v1677_v42, %v1676_v39  ;;  %v1539_v23 = vsel %vm368_vm0, %v3735_v46, %v2693_v43  ;;  %v3784_v43 = vld [vmem:[#allocation2 + $0xf2] sm:$0xff] }
  0xb4   : > { %v2689_v3 = vunpack.i.h.bf16 %v2687_v44  ;;  %v2702_v56 = vpop.permute.xlu0 %2701  ;;  %v2688_v36 = vunpack.i.l.bf16 %v2687_v44  ;;  %v3137_v44 = vld [vmem:[%s4232_s3 + $0x80] sm:$0xff]  }
  0xb5   : > { %2976 = vrot.lane.b32.xlu1 %v3677_v5, %s3214_s13  ;;  %1987 = vmatprep.mubr.bf16.mxu0 %v1709_v45  ;;  %v2704_v58 = vunpack.i.h.bf16 %v2702_v56  ;;  %v2703_v5 = vunpack.i.l.bf16 %v2702_v56 }
  0xb6   : > { %1988 = vmatmul.mubr.bf16.vlgmr.msra.gmra.mxu0 %v1708_v9  ;;  %2991 = vrot.lane.b32.xlu0 %v3733_v38, %s3216_s23  ;;  %v1538_v54 = vsel %vm368_vm0, %v3743_v40, %v2689_v3  ;;  %v1614_v9 = vsel %vm368_vm0, %v3423_v21, %v2694_v26  ;;  %v2654_v21 = vunpack.i.h.bf16 %v3691_v20 }
  0xb7   : > { %v2697_v60 = vpop.permute.xlu1 %2696  ;;  %v1572_v1 = vsel %vm1546_vm2, %v1539_v23, %v2704_v58  ;;  %v1571_v11 = vsel %vm1546_vm2, %v1538_v54, %v2703_v5  ;;  %v669_v54 = vld [vmem:[#allocation2 + $0x110] sm:$0xff] }
  0xb8   : > { %v2699_v63 = vunpack.i.h.bf16 %v2697_v60  ;;  %v2698_v59 = vunpack.i.l.bf16 %v2697_v60  ;;  %v2712_v0 = vpop.permute.xlu0 %2711  ;;  %v3801_v60 = vpack.i.bf16 %v3786_v32, %v3784_v43 }
  0xb9   : > { %2986 = vrot.lane.b32.xlu1 %v3682_v41, %s3215_s14  ;;  %v2714_v6 = vunpack.i.h.bf16 %v2712_v0  ;;  %v2713_v7 = vunpack.i.l.bf16 %v2712_v0  ;;  %v1637_v41 = vsel %vm368_vm0, %v3572_v4, %v2688_v36  ;;  %v2653_v36 = vunpack.i.l.bf16 %v3691_v20 }
  0xba   : > { %3001 = vrot.lane.b32.xlu0 %v3752_v35, %s3214_s13  ;;  %v1668_v19 = vsel %vm1546_vm2, %v1636_v30, %v2698_v59  ;;  %v1669_v24 = vsel %vm1546_vm2, %v1637_v41, %v2699_v63  ;;  %v1517_v30 = vsel %vm368_vm0, %v3463_v53, %v2654_v21 }
  0xbb   : > { %v2707_v8 = vpop.permute.xlu1 %2706  ;;  %v1604_v25 = vsel %vm1579_vm3, %v1571_v11, %v2713_v7  ;;  %v1605_v47 = vsel %vm1579_vm3, %v1572_v1, %v2714_v6  ;;  %v3813_v7 = vpack.i.bf16 %v669_v54, %v668_v29 }
  0xbc   : > { %v2709_v13 = vunpack.i.h.bf16 %v2707_v8  ;;  %v2708_v14 = vunpack.i.l.bf16 %v2707_v8  ;;  %v2722_v17 = vpop.permute.xlu0 %2721  ;;  %v1744_v42 = vpack.c.bf16 %v1605_v47, %v1604_v25  ;;  %v1516_v8 = vsel %vm368_vm0, %v3461_v52, %v2653_v36 }
  0xbd   : > { %2996 = vrot.lane.b32.xlu1 %v3689_v50, %s3216_s23  ;;  %v2724_v31 = vunpack.i.h.bf16 %v2722_v17  ;;  %v2723_v33 = vunpack.i.l.bf16 %v2722_v17  ;;  %v588_v50 = vld [vmem:[#allocation2 + $0x39] sm:$0xff]  ;;  %v3870_v36 = vpack.i.bf16 %v3735_v46, %v3743_v40 }
  0xbe   : > { %v1700_v28 = vsel %vm1579_vm3, %v1668_v19, %v2708_v14  ;;  %v1701_v4 = vsel %vm1579_vm3, %v1669_v24, %v2709_v13  ;;  %3011 = vrot.lane.b32.xlu0 %v3761_v10, %s3215_s14  ;;  %v3819_v14 = vld [vmem:[#allocation2 + $0x109] sm:$0xff] }
  0xbf   : > { %v3779_v37 = vpop.permute.xlu1 %2716  ;;  %v1745_v2 = vpack.c.bf16 %v1701_v4, %v1700_v28  ;;  %v1646_v34 = vsel %vm1546_vm2, %v1614_v9, %v2723_v33  ;;  %v3839_v4 = vld [vmem:[#allocation2 + $0x10a] sm:$0xff] }
  0xc0   : > { %v2718_v39 = vunpack.i.l.bf16 %v3779_v37  ;;  %v2732_v45 = vpop.permute.xlu0 %2731  ;;  %v2719_v41 = vunpack.i.h.bf16 %v3779_v37 }
  0xc1   : > { %3006 = vrot.lane.b32.xlu1 %v3698_v55, %s3214_s13  ;;  %2083 = vmatprep.mubr.bf16.mxu1 %v1745_v2  ;;  %v2734_v56 = vunpack.i.h.bf16 %v2732_v45  ;;  %v2733_v58 = vunpack.i.l.bf16 %v2732_v45 }
  0xc2   : > { %v1615_v3 = vsel %vm368_vm0, %v588_v50, %v2718_v39  ;;  %2084 = vmatmul.mubr.bf16.vlgmr.msra.gmra.mxu1 %v1744_v42  ;;  %3021 = vrot.lane.b32.xlu0 %v3781_v57, %s3216_s23  ;;  %v1638_v50 = vsel %vm368_vm0, %v3500_v22, %v2719_v41  ;;  %v3858_v22 = vld [vmem:[#allocation2 + $0x138] sm:$0xff]  ;;  %v589_v41 = vld [vmem:[#allocation2 + $0x49] sm:$0xff] }
  0xc3   : > { %v2727_v23 = vpop.permute.xlu1 %2726  ;;  %v1647_v55 = vsel %vm1546_vm2, %v1615_v3, %v2724_v31  ;;  %2577 = vmatpush3.bf16.msra.mxu1 %v3658_v16  ;;  %v1678_v5 = vsel %vm1579_vm3, %v1646_v34, %v2733_v58  ;;  %v612_v16 = vld [vmem:[#allocation2 + $0x159] sm:$0xff] }
  0xc4   : > { %v1679_v61 = vsel %vm1579_vm3, %v1647_v55, %v2734_v56  ;;  %2578 = vmatprep.subr.bf16.mxu1 %v3137_v44  ;;  %v2729_v63 = vunpack.i.h.bf16 %v2727_v23  ;;  %v2728_v59 = vunpack.i.l.bf16 %v2727_v23  ;;  %v2742_v0 = vpop.permute.xlu0 %2741  ;;  %v3860_v56 = vld [vmem:[#allocation2 + $0x140] sm:$0xff] }
  0xc5   : > { %3016 = vrot.lane.b32.xlu1 %v3706_v62, %s3215_s14  ;;  %v1712_v1 = vpack.c.bf16 %v1679_v61, %v1678_v5  ;;  %v2743_v6 = vunpack.i.l.bf16 %v2742_v0  ;;  %v3821_v62 = vld [vmem:[#allocation2 + $0x111] sm:$0xff]  ;;  %v2744_v45 = vunpack.i.h.bf16 %v2742_v0  ;;  %v3872_v5 = vld [vmem:[#allocation2 + $0x121] sm:$0xff]  ;;  %v3874_v61 = vld [vmem:[#allocation2 + $0x129] sm:$0xff] }
  0xc6   : > { %3031 = vrot.lane.b32.xlu0 %v3801_v60, %s3214_s13  ;;  %v1549_v15 = vsel %vm1546_vm2, %v1516_v8, %v2728_v59  ;;  %v1550_v12 = vsel %vm1546_vm2, %v1517_v30, %v2729_v63  ;;  %v3837_v28 = vpack.i.bf16 %v3821_v62, %v3819_v14  ;;  %v2658_v8 = vunpack.i.l.bf16 %v3687_v49 }
  0xc7   : > { %v2737_v20 = vpop.permute.xlu1 %2736  ;;  %1995 = vmatprep.mubr.bf16.mxu0 %v1712_v1  ;;  %2579 = vmatpush3.bf16.msra.mxu1 %v3137_v44  ;;  %v1639_v52 = vsel %vm368_vm0, %v612_v16, %v2743_v6  ;;  %v1540_v29 = vsel %vm368_vm0, %v3858_v22, %v2744_v45  ;;  %v3080_v16 = vpack.i.bf16 %v3874_v61, %v3872_v5 }
  0xc8   : > { %v2739_v11 = vunpack.i.h.bf16 %v2737_v20  ;;  %v2738_v13 = vunpack.i.l.bf16 %v2737_v20  ;;  %v2752_v17 = vpop.permute.xlu0 %2751  ;;  %v2659_v20 = vunpack.i.h.bf16 %v3687_v49 }
  0xc9   : > { %3026 = vrot.lane.b32.xlu1 %v3716_v18, %s3216_s23  ;;  %v2754_v53 = vunpack.i.h.bf16 %v2752_v17  ;;  %v2753_v25 = vunpack.i.l.bf16 %v2752_v17  ;;  %v3841_v18 = vld [vmem:[#allocation2 + $0x112] sm:$0xff]  ;;  %v3894_v17 = vld [vmem:[#allocation2 + $0x122] sm:$0xff] }
  0xca   : > { %v1582_v19 = vsel %vm1579_vm3, %v1549_v15, %v2738_v13  ;;  %v1583_v24 = vsel %vm1579_vm3, %v1550_v12, %v2739_v11  ;;  %3041 = vrot.lane.b32.xlu0 %v3813_v7, %s3215_s14  ;;  %v3853_v44 = vpack.i.bf16 %v3841_v18, %v3839_v4  ;;  %v590_v11 = vld [vmem:[#allocation2 + $0x51] sm:$0xff] }
  0xcb   : > { %v3833_v47 = vpop.permute.xlu1 %2746  ;;  %v1711_v26 = vpack.c.bf16 %v1583_v24, %v1582_v19  ;;  %v1671_v31 = vsel %vm1546_vm2, %v1639_v52, %v2754_v53  ;;  %v1670_v39 = vsel %vm1546_vm2, %v1638_v50, %v2753_v25  ;;  %v3896_v52 = vld [vmem:[#allocation2 + $0x12a] sm:$0xff] }
  0xcc   : > { %v2762_v33 = vpop.permute.xlu0 %2761  ;;  %v2748_v9 = vunpack.i.l.bf16 %v3833_v47  ;;  %v2749_v30 = vunpack.i.h.bf16 %v3833_v47 }
  0xcd   : > { %3036 = vrot.lane.b32.xlu1 %v3733_v38, %s3214_s13  ;;  %1996 = vmatmul.mubr.bf16.gmra.mxu0 %v1711_v26  ;;  %v2764_v37 = vunpack.i.h.bf16 %v2762_v33  ;;  %v2763_v2 = vunpack.i.l.bf16 %v2762_v33  ;;  %v3202_v26 = vld [vmem:[#allocation2 + $0x30] sm:$0xff]  ;;  %v3203_v33 = vld [vmem:[#allocation2 + $0x38] sm:$0xff] }
  0xce   : > { %3051 = vrot.lane.b32.xlu0 %v3837_v28, %s3216_s23  ;;  %v1519_v50 = vsel %vm368_vm0, %v3203_v33, %v2659_v20 }
  0xcf   : > { %v2757_v42 = vpop.permute.xlu1 %2756  ;;  %v1702_v38 = vsel %vm1579_vm3, %v1670_v39, %v2763_v2  ;;  %v1703_v3 = vsel %vm1579_vm3, %v1671_v31, %v2764_v37  ;;  %v1518_v31 = vsel %vm368_vm0, %v3202_v26, %v2658_v8  ;;  %v1616_v37 = vsel %vm368_vm0, %v589_v41, %v2749_v30  ;;  %v614_v41 = vld [vmem:[#allocation2 + $0x171] sm:$0xff] }
  0xd0   : > { %v2759_v58 = vunpack.i.h.bf16 %v2757_v42  ;;  %v2758_v34 = vunpack.i.l.bf16 %v2757_v42  ;;  %v3862_v23 = vpop.permute.xlu0 %2771  ;;  %v1748_v55 = vpack.c.bf16 %v1703_v3, %v1702_v38  ;;  %v3090_v39 = vpack.i.bf16 %v3896_v52, %v3894_v17 }
  0xd1   : > { %3046 = vrot.lane.b32.xlu1 %v3752_v35, %s3215_s14  ;;  %v1541_v35 = vsel %vm368_vm0, %v3860_v56, %v2748_v9  ;;  %v2773_v46 = vunpack.i.l.bf16 %v3862_v23  ;;  %v2774_v8 = vunpack.i.h.bf16 %v3862_v23 }
  0xd2   : > { %2091 = vmatprep.mubr.bf16.mxu1 %v1748_v55  ;;  %3061 = vrot.lane.b32.xlu0 %v3853_v44, %s3214_s13  ;;  %v1573_v59 = vsel %vm1546_vm2, %v1540_v29, %v2758_v34  ;;  %v1574_v0 = vsel %vm1546_vm2, %v1541_v35, %v2759_v58 }
  0xd3   : > { %v2767_v21 = vpop.permute.xlu1 %2766  ;;  %v1617_v49 = vsel %vm368_vm0, %v590_v11, %v2773_v46  ;;  %v705_v46 = vld [vmem:[#allocation2 + $0x141] sm:$0xff]  ;;  %v613_v11 = vld [vmem:[#allocation2 + $0x169] sm:$0xff] }
  0xd4   : > { %v2769_v54 = vunpack.i.h.bf16 %v2767_v21  ;;  %v2768_v63 = vunpack.i.l.bf16 %v2767_v21  ;;  %v2782_v1 = vpop.permute.xlu0 %2781 }
  0xd5   : > { %3056 = vrot.lane.b32.xlu1 %v3761_v10, %s3216_s23  ;;  %v2784_v15 = vunpack.i.h.bf16 %v2782_v1  ;;  %v2783_v12 = vunpack.i.l.bf16 %v2782_v1 }
  0xd6   : > { %v1606_v40 = vsel %vm1579_vm3, %v1573_v59, %v2768_v63  ;;  %v1607_v6 = vsel %vm1579_vm3, %v1574_v0, %v2769_v54  ;;  %3071 = vrot.lane.b32.xlu0 %v3870_v36, %s3215_s14  ;;  %v3100_v59 = vpack.i.bf16 %v3860_v56, %v3858_v22  ;;  %v486_v0 = vld [vmem:[#allocation2 + $0x158] sm:$0xff] }
  0xd7   : > { %v2777_v10 = vpop.permute.xlu1 %2776  ;;  %v1747_v13 = vpack.c.bf16 %v1607_v6, %v1606_v40  ;;  %v1551_v42 = vsel %vm1546_vm2, %v1518_v31, %v2783_v12 }
  0xd8   : > { %v2779_v53 = vunpack.i.h.bf16 %v2777_v10  ;;  %v2778_v19 = vunpack.i.l.bf16 %v2777_v10  ;;  %v2792_v24 = vpop.permute.xlu0 %2791 }
  0xd9   : > { %3066 = vrot.lane.b32.xlu1 %v3781_v57, %s3214_s13  ;;  %2092 = vmatmul.mubr.bf16.gmra.mxu1 %v1747_v13  ;;  %v2794_v25 = vunpack.i.h.bf16 %v2792_v24  ;;  %v2793_v47 = vunpack.i.l.bf16 %v2792_v24  ;;  %v1552_v57 = vsel %vm1546_vm2, %v1519_v50, %v2784_v15 }
  0xda   : > { %3081 = vrot.lane.b32.xlu0 %v3080_v16, %s3216_s23  ;;  %v1648_v38 = vsel %vm1546_vm2, %v1616_v37, %v2778_v19  ;;  %v1649_v3 = vsel %vm1546_vm2, %v1617_v49, %v2779_v53  ;;  %v485_v16 = vld [vmem:[#allocation2 + $0x150] sm:$0xff]  ;;  %v1640_v49 = vsel %vm368_vm0, %v613_v11, %v2774_v8 }
  0xdb   : > { %v2787_v2 = vpop.permute.xlu1 %2786  ;;  %v1584_v34 = vsel %vm1579_vm3, %v1551_v42, %v2793_v47  ;;  %v1585_v55 = vsel %vm1579_vm3, %v1552_v57, %v2794_v25  ;;  %v616_v11 = vld [vmem:[#allocation2 + $0x189] sm:$0xff] }
  0xdc   : > { %v2789_v45 = vunpack.i.h.bf16 %v2787_v2  ;;  %v2788_v9 = vunpack.i.l.bf16 %v2787_v2  ;;  %v3911_v58 = vpop.permute.xlu0 %2801  ;;  %v1714_v1 = vpack.c.bf16 %v1585_v55, %v1584_v34  ;;  %v592_v34 = vld [vmem:[#allocation2 + $0x69] sm:$0xff] }
  0xdd   : > { %3076 = vrot.lane.b32.xlu1 %v3801_v60, %s3215_s14  ;;  %v2803_v35 = vunpack.i.l.bf16 %v3911_v58  ;;  %v704_v60 = vld [vmem:[#allocation2 + $0x139] sm:$0xff]  ;;  %v2804_v57 = vunpack.i.h.bf16 %v3911_v58 }
  0xde   : > { %v1680_v21 = vsel %vm1579_vm3, %v1648_v38, %v2788_v9  ;;  %v1681_v29 = vsel %vm1579_vm3, %v1649_v3, %v2789_v45  ;;  %3091 = vrot.lane.b32.xlu0 %v3090_v39, %s3214_s13  ;;  %v3110_v56 = vpack.i.bf16 %v705_v46, %v704_v60  ;;  %v591_v9 = vld [vmem:[#allocation2 + $0x61] sm:$0xff]  ;;  %v2663_v46 = vunpack.i.l.bf16 %v3696_v27 }
  0xdf   : > { %v2797_v54 = vpop.permute.xlu1 %2796  ;;  %v1715_v63 = vpack.c.bf16 %v1681_v29, %v1680_v21  ;;  %v1543_v30 = vsel %vm368_vm0, %v486_v0, %v2803_v35 }
  0xe0   : > { %v2799_v40 = vunpack.i.h.bf16 %v2797_v54  ;;  %v2812_v6 = vpop.permute.xlu0 %2811  ;;  %v2798_v10 = vunpack.i.l.bf16 %v2797_v54 }
  0xe1   : > { %3086 = vrot.lane.b32.xlu1 %v3813_v7, %s3216_s23  ;;  %2003 = vmatprep.mubr.bf16.mxu0 %v1715_v63  ;;  %v2814_v20 = vunpack.i.h.bf16 %v2812_v6  ;;  %v2813_v13 = vunpack.i.l.bf16 %v2812_v6 }
  0xe2   : > { %2004 = vmatmul.mubr.bf16.gmra.mxu0 %v1714_v1  ;;  %3101 = vrot.lane.b32.xlu0 %v3100_v59, %s3215_s14  ;;  %v1542_v15 = vsel %vm368_vm0, %v485_v16, %v2799_v40  ;;  %v1641_v47 = vsel %vm368_vm0, %v614_v41, %v2798_v10  ;;  %v464_v16 = vld [vmem:[#allocation2 + $0x50] sm:$0xff] }
  0xe3   : > { %v2807_v22 = vpop.permute.xlu1 %2806  ;;  %v1576_v23 = vsel %vm1546_vm2, %v1543_v30, %v2814_v20  ;;  %v1575_v26 = vsel %vm1546_vm2, %v1542_v15, %v2813_v13  ;;  %v3204_v15 = vld [vmem:[#allocation2 + $0x48] sm:$0xff] }
  0xe4   : > { %v2809_v12 = vunpack.i.h.bf16 %v2807_v22  ;;  %v2808_v7 = vunpack.i.l.bf16 %v2807_v22  ;;  %v2822_v53 = vpop.permute.xlu0 %2821 }
  0xe5   : > { %3096 = vrot.lane.b32.xlu1 %v3837_v28, %s3214_s13  ;;  %v2824_v19 = vunpack.i.h.bf16 %v2822_v53  ;;  %v2823_v24 = vunpack.i.l.bf16 %v2822_v53 }
  0xe6   : > { %3111 = vrot.lane.b32.xlu0 %v3110_v56, %s3216_s23  ;;  %v1672_v50 = vsel %vm1546_vm2, %v1640_v49, %v2808_v7  ;;  %v1673_v37 = vsel %vm1546_vm2, %v1641_v47, %v2809_v12  ;;  %v615_v56 = vld [vmem:[#allocation2 + $0x181] sm:$0xff]  ;;  %v1520_v12 = vsel %vm368_vm0, %v3204_v15, %v2663_v46 }
  0xe7   : > { %v2817_v25 = vpop.permute.xlu1 %2816  ;;  %v1608_v2 = vsel %vm1579_vm3, %v1575_v26, %v2823_v24  ;;  %v1609_v39 = vsel %vm1579_vm3, %v1576_v23, %v2824_v19 }
  0xe8   : > { %v2819_v31 = vunpack.i.h.bf16 %v2817_v25  ;;  %v2818_v33 = vunpack.i.l.bf16 %v2817_v25  ;;  %v2832_v28 = vpop.permute.xlu0 %2831  ;;  %v1750_v35 = vpack.c.bf16 %v1609_v39, %v1608_v2 }
  0xe9   : > { %3106 = vrot.lane.b32.xlu1 %v3853_v44, %s3215_s14  ;;  %v2834_v38 = vunpack.i.h.bf16 %v2832_v28  ;;  %v2833_v3 = vunpack.i.l.bf16 %v2832_v28  ;;  %v1618_v44 = vsel %vm368_vm0, %v591_v9, %v2804_v57 }
  0xea   : > { %v1704_v42 = vsel %vm1579_vm3, %v1672_v50, %v2818_v33  ;;  %v1705_v45 = vsel %vm1579_vm3, %v1673_v37, %v2819_v31 }
  0xeb   : > { %v2827_v55 = vpop.permute.xlu1 %2826  ;;  %v1751_v21 = vpack.c.bf16 %v1705_v45, %v1704_v42  ;;  %v1650_v0 = vsel %vm1546_vm2, %v1618_v44, %v2833_v3 }
  0xec   : > { %v2828_v29 = vunpack.i.l.bf16 %v2827_v55  ;;  %v2842_v54 = vpop.permute.xlu0 %2841  ;;  %v2829_v40 = vunpack.i.h.bf16 %v2827_v55  ;;  %v714_v55 = vld [vmem:[#allocation2 + $0x32] sm:$0xff] }
  0xed   : > { %3116 = vrot.lane.b32.xlu1 %v3870_v36, %s3216_s23  ;;  %2099 = vmatprep.mubr.bf16.mxu1 %v1751_v21  ;;  %v2844_v63 = vunpack.i.h.bf16 %v2842_v54  ;;  %v2843_v59 = vunpack.i.l.bf16 %v2842_v54  ;;  %v715_v21 = vld [vmem:[#allocation2 + $0x3a] sm:$0xff] }
  0xee   : > { %v1619_v58 = vsel %vm368_vm0, %v592_v34, %v2828_v29  ;;  %2100 = vmatmul.mubr.bf16.gmra.mxu1 %v1750_v35  ;;  %v1521_v27 = vsel %vm368_vm0, %v464_v16, %v2829_v40  ;;  %v487_v29 = vld [vmem:[#allocation2 + $0x168] sm:$0xff]  ;;  %v488_v35 = vld [vmem:[#allocation2 + $0x170] sm:$0xff]  ;;  %v1710_v40 = vpack.c.bf16 %v715_v21, %v714_v55 }
  0xef   : > { %v2837_v1 = vpop.permute.xlu1 %2836  ;;  %v1651_v60 = vsel %vm1546_vm2, %v1619_v58, %v2834_v38  ;;  %v1682_v6 = vsel %vm1579_vm3, %v1650_v0, %v2843_v59  ;;  %v593_v59 = vld [vmem:[#allocation2 + $0x79] sm:$0xff]  ;;  %v594_v0 = vld [vmem:[#allocation2 + $0x81] sm:$0xff] }
  0xf0   : > { %v1683_v36 = vsel %vm1579_vm3, %v1651_v60, %v2844_v63  ;;  %v2839_v20 = vunpack.i.h.bf16 %v2837_v1  ;;  %v2838_v8 = vunpack.i.l.bf16 %v2837_v1  ;;  %v2852_v30 = vpop.permute.xlu0 %2851 }
  0xf1   : > { %v1718_v22 = vpack.c.bf16 %v1683_v36, %v1682_v6  ;;  %v2854_v10 = vunpack.i.h.bf16 %v2852_v30  ;;  %v2853_v13 = vunpack.i.l.bf16 %v2852_v30 }
  0xf2   : > { %v1553_v23 = vsel %vm1546_vm2, %v1520_v12, %v2838_v8  ;;  %v1554_v19 = vsel %vm1546_vm2, %v1521_v27, %v2839_v20 }
  0xf3   : > { %v2847_v41 = vpop.permute.xlu1 %2846  ;;  %2011 = vmatprep.mubr.bf16.mxu0 %v1718_v22  ;;  %v1643_v24 = vsel %vm368_vm0, %v616_v11, %v2854_v10  ;;  %v1642_v49 = vsel %vm368_vm0, %v615_v56, %v2853_v13 }
  0xf4   : > { %v2849_v7 = vunpack.i.h.bf16 %v2847_v41  ;;  %v2848_v53 = vunpack.i.l.bf16 %v2847_v41  ;;  %v2862_v25 = vpop.permute.xlu0 %2861 }
  0xf5   : > { %v2864_v47 = vunpack.i.h.bf16 %v2862_v25  ;;  %v2863_v26 = vunpack.i.l.bf16 %v2862_v25  ;;  %v717_v25 = vld [vmem:[#allocation2 + $0x52] sm:$0xff] }
  0xf6   : > { %v1586_v31 = vsel %vm1579_vm3, %v1553_v23, %v2848_v53  ;;  %v1587_v33 = vsel %vm1579_vm3, %v1554_v19, %v2849_v7 }
  0xf7   : > { %v2857_v50 = vpop.permute.xlu1 %2856  ;;  %v1717_v37 = vpack.c.bf16 %v1587_v33, %v1586_v31  ;;  %v1674_v28 = vsel %vm1546_vm2, %v1642_v49, %v2863_v26  ;;  %v1675_v2 = vsel %vm1546_vm2, %v1643_v24, %v2864_v47  ;;  %v716_v49 = vld [vmem:[#allocation2 + $0x4a] sm:$0xff]  ;;  %v718_v26 = vld [vmem:[#allocation2 + $0x62] sm:$0xff] }
  0xf8   : > { %v2872_v39 = vpop.permute.xlu0 %2871  ;;  %v2859_v9 = vunpack.i.h.bf16 %v2857_v50  ;;  %v2858_v38 = vunpack.i.l.bf16 %v2857_v50  ;;  %v719_v31 = vld [vmem:[#allocation2 + $0x6a] sm:$0xff] }
  0xf9   : > { %2012 = vmatmul.mubr.bf16.gmra.mxu0 %v1717_v37  ;;  %v2874_v57 = vunpack.i.h.bf16 %v2872_v39  ;;  %v2873_v42 = vunpack.i.l.bf16 %v2872_v39  ;;  %v466_v39 = vld [vmem:[#allocation2 + $0x68] sm:$0xff] }
  0xfa   : > { %v1545_v6 = vsel %vm368_vm0, %v488_v35, %v2859_v9  ;;  %v1544_v36 = vsel %vm368_vm0, %v487_v29, %v2858_v38  ;;  %v1713_v38 = vpack.c.bf16 %v717_v25, %v716_v49  ;;  %v1716_v29 = vpack.c.bf16 %v719_v31, %v718_v26  ;;  %v726_v26 = vld [vmem:[#allocation2 + $0xc2] sm:$0xff]  ;;  %v727_v31 = vld [vmem:[#allocation2 + $0xca] sm:$0xff] }
  0xfb   : > { %v2867_v45 = vpop.permute.xlu1 %2866  ;;  %v1706_v3 = vsel %vm1579_vm3, %v1674_v28, %v2873_v42  ;;  %v1707_v34 = vsel %vm1579_vm3, %v1675_v2, %v2874_v57  ;;  %v465_v2 = vld [vmem:[#allocation2 + $0x60] sm:$0xff] }
  0xfc   : > { %v2869_v54 = vunpack.i.h.bf16 %v2867_v45  ;;  %v2868_v44 = vunpack.i.l.bf16 %v2867_v45  ;;  %v2882_v58 = vpop.permute.xlu0 %2881  ;;  %v1754_v63 = vpack.c.bf16 %v1707_v34, %v1706_v3  ;;  %v595_v3 = vld [vmem:[#allocation2 + $0x91] sm:$0xff]  ;;  %v596_v34 = vld [vmem:[#allocation2 + $0x99] sm:$0xff] }
  0xfd   : > { %v2884_v1 = vunpack.i.h.bf16 %v2882_v58  ;;  %v2883_v60 = vunpack.i.l.bf16 %v2882_v58 }
  0xfe   : > { %2107 = vmatprep.mubr.bf16.mxu1 %v1754_v63  ;;  %v1577_v8 = vsel %vm1546_vm2, %v1544_v36, %v2868_v44  ;;  %v1578_v30 = vsel %vm1546_vm2, %v1545_v6, %v2869_v54 }
  0xff   : > { %v2877_v46 = vpop.permute.xlu1 %2876  ;;  %v1621_v22 = vsel %vm368_vm0, %v594_v0, %v2884_v1  ;;  %v1620_v56 = vsel %vm368_vm0, %v593_v59, %v2883_v60 }
 0x100   : > { %v2879_v16 = vunpack.i.h.bf16 %v2877_v46  ;;  %v2878_v20 = vunpack.i.l.bf16 %v2877_v46  ;;  %v2892_v11 = vpop.permute.xlu0 %2891 }
 0x101   : > { %v2894_v10 = vunpack.i.h.bf16 %v2892_v11  ;;  %v2893_v13 = vunpack.i.l.bf16 %v2892_v11  ;;  %v723_v11 = vld [vmem:[#allocation2 + $0x9a] sm:$0xff] }
 0x102   : > { %v1610_v41 = vsel %vm1579_vm3, %v1577_v8, %v2878_v20  ;;  %v1611_v15 = vsel %vm1579_vm3, %v1578_v30, %v2879_v16  ;;  %v720_v20 = vld [vmem:[#allocation2 + $0x7a] sm:$0xff]  ;;  %v721_v8 = vld [vmem:[#allocation2 + $0x82] sm:$0xff] }
 0x103   : > { %v2887_v12 = vpop.permute.xlu1 %2886  ;;  %v1753_v27 = vpack.c.bf16 %v1611_v15, %v1610_v41  ;;  %v1652_v7 = vsel %vm1546_vm2, %v1620_v56, %v2893_v13  ;;  %v1653_v53 = vsel %vm1546_vm2, %v1621_v22, %v2894_v10  ;;  %v722_v56 = vld [vmem:[#allocation2 + $0x92] sm:$0xff]  ;;  %v1719_v15 = vpack.c.bf16 %v721_v8, %v720_v20 }
 0x104   : > { %v2902_v23 = vpop.permute.xlu0 %2901  ;;  %v2889_v33 = vunpack.i.h.bf16 %v2887_v12  ;;  %v2888_v50 = vunpack.i.l.bf16 %v2887_v12 }
 0x105   : > { %2108 = vmatmul.mubr.bf16.gmra.mxu1 %v1753_v27  ;;  %v2904_v19 = vunpack.i.h.bf16 %v2902_v23  ;;  %v2903_v24 = vunpack.i.l.bf16 %v2902_v23  ;;  %v724_v23 = vld [vmem:[#allocation2 + $0xaa] sm:$0xff] }
 0x106   : > { %2580 = vmatprep.mubr.msk.bf16.mxu1 %vm368_vm0, %v1710_v40  ;;  %v1523_v54 = vsel %vm368_vm0, %v466_v39, %v2889_v33  ;;  %v1522_v44 = vsel %vm368_vm0, %v465_v2, %v2888_v50  ;;  %v467_v33 = vld [vmem:[#allocation2 + $0x78] sm:$0xff]  ;;  %v468_v50 = vld [vmem:[#allocation2 + $0x80] sm:$0xff] }
 0x107   : > { %v2897_v47 = vpop.permute.xlu1 %2896  ;;  %v1684_v37 = vsel %vm1579_vm3, %v1652_v7, %v2903_v24  ;;  %v1685_v28 = vsel %vm1579_vm3, %v1653_v53, %v2904_v19  ;;  %v1722_v7 = vpack.c.bf16 %v723_v11, %v722_v56 }
 0x108   : > { %v2899_v57 = vunpack.i.h.bf16 %v2897_v47  ;;  %v2898_v42 = vunpack.i.l.bf16 %v2897_v47  ;;  %v2912_v45 = vpop.permute.xlu0 %2911  ;;  %v1721_v9 = vpack.c.bf16 %v1685_v28, %v1684_v37  ;;  %v725_v47 = vld [vmem:[#allocation2 + $0xb2] sm:$0xff] }
 0x109   : > { %v2914_v55 = vunpack.i.h.bf16 %v2912_v45  ;;  %v2913_v21 = vunpack.i.l.bf16 %v2912_v45 }
 0x10a   : > { %2019 = vmatprep.mubr.bf16.mxu0 %v1721_v9  ;;  %v1555_v59 = vsel %vm1546_vm2, %v1522_v44, %v2898_v42  ;;  %v1556_v0 = vsel %vm1546_vm2, %v1523_v54, %v2899_v57  ;;  %v597_v57 = vld [vmem:[#allocation2 + $0xa9] sm:$0xff]  ;;  %v598_v42 = vld [vmem:[#allocation2 + $0xb1] sm:$0xff] }
 0x10b   : > { %v2907_v35 = vpop.permute.xlu1 %2906  ;;  %v1623_v1 = vsel %vm368_vm0, %v596_v34, %v2914_v55  ;;  %v1622_v60 = vsel %vm368_vm0, %v595_v3, %v2913_v21  ;;  %v1725_v3 = vpack.c.bf16 %v725_v47, %v724_v23  ;;  %v1728_v34 = vpack.c.bf16 %v727_v31, %v726_v26 }
 0x10c   : > { %v2909_v58 = vunpack.i.h.bf16 %v2907_v35  ;;  %v2908_v63 = vunpack.i.l.bf16 %v2907_v35  ;;  %v2922_v46 = vpop.permute.xlu0 %2921  ;;  %v1731_v23 = vpack.c.bf16 %v3739_v51, %v3737_v48  ;;  %v1734_v47 = vpack.c.bf16 %v3786_v32, %v3784_v43 }
 0x10d   : > { %2581 = vmatmul.mubr.msk.bf16.vlgmr.msra.gmra.mxu1 %vm368_vm0, %v1713_v38  ;;  %v2924_v40 = vunpack.i.h.bf16 %v2922_v46  ;;  %v2923_v6 = vunpack.i.l.bf16 %v2922_v46 }
 0x10e   : > { %v1588_v36 = vsel %vm1579_vm3, %v1555_v59, %v2908_v63  ;;  %v1589_v16 = vsel %vm1579_vm3, %v1556_v0, %v2909_v58  ;;  %2584 = vmatprep.mubr.msk.bf16.mxu1 %vm368_vm0, %v1716_v29 }
 0x10f   : > { %v2917_v30 = vpop.permute.xlu1 %2916  ;;  %v1720_v22 = vpack.c.bf16 %v1589_v16, %v1588_v36  ;;  %v1654_v10 = vsel %vm1546_vm2, %v1622_v60, %v2923_v6  ;;  %v1655_v13 = vsel %vm1546_vm2, %v1623_v1, %v2924_v40 }
 0x110   : > { %v2932_v41 = vpop.permute.xlu0 %2931  ;;  %v2919_v19 = vunpack.i.h.bf16 %v2917_v30  ;;  %v2918_v24 = vunpack.i.l.bf16 %v2917_v30 }
 0x111   : > { %2020 = vmatmul.mubr.bf16.gmra.mxu0 %v1720_v22  ;;  %v2934_v12 = vunpack.i.h.bf16 %v2932_v41  ;;  %v2933_v27 = vunpack.i.l.bf16 %v2932_v41  ;;  %v469_v41 = vld [vmem:[#allocation2 + $0x90] sm:$0xff] }
 0x112   : > { %v1525_v55 = vsel %vm368_vm0, %v468_v50, %v2919_v19  ;;  %v1524_v21 = vsel %vm368_vm0, %v467_v33, %v2918_v24  ;;  %v599_v19 = vld [vmem:[#allocation2 + $0xc1] sm:$0xff]  ;;  %v600_v24 = vld [vmem:[#allocation2 + $0xc9] sm:$0xff] }
 0x113   : > { %v2927_v53 = vpop.permute.xlu1 %2926  ;;  %v1686_v49 = vsel %vm1579_vm3, %v1654_v10, %v2933_v27  ;;  %v1687_v25 = vsel %vm1579_vm3, %v1655_v13, %v2934_v12 }
 0x114   : > { %v2929_v37 = vunpack.i.h.bf16 %v2927_v53  ;;  %v2928_v28 = vunpack.i.l.bf16 %v2927_v53  ;;  %v2942_v2 = vpop.permute.xlu0 %2941  ;;  %v1724_v39 = vpack.c.bf16 %v1687_v25, %v1686_v49 }
 0x115   : > { %2585 = vmatmul.mubr.msk.bf16.gmra.mxu1 %vm368_vm0, %v1719_v15  ;;  %v2944_v45 = vunpack.i.h.bf16 %v2942_v2  ;;  %v2943_v9 = vunpack.i.l.bf16 %v2942_v2  ;;  %v470_v15 = vld [vmem:[#allocation2 + $0x98] sm:$0xff] }
 0x116   : > { %2588 = vmatprep.mubr.msk.bf16.mxu1 %vm368_vm0, %v1722_v7  ;;  %2027 = vmatprep.mubr.bf16.mxu0 %v1724_v39  ;;  %v1557_v54 = vsel %vm1546_vm2, %v1524_v21, %v2928_v28  ;;  %v1558_v44 = vsel %vm1546_vm2, %v1525_v55, %v2929_v37  ;;  %v1737_v55 = vpack.c.bf16 %v3841_v18, %v3839_v4 }
 0x117   : > { %v2937_v38 = vpop.permute.xlu1 %2936  ;;  %v1625_v58 = vsel %vm368_vm0, %v598_v42, %v2944_v45  ;;  %v1624_v63 = vsel %vm368_vm0, %v597_v57, %v2943_v9 }
 0x118   : > { %v2939_v29 = vunpack.i.h.bf16 %v2937_v38  ;;  %v2938_v35 = vunpack.i.l.bf16 %v2937_v38  ;;  %v2952_v59 = vpop.permute.xlu0 %2951 }
 0x119   : > { %v2954_v0 = vunpack.i.h.bf16 %v2952_v59  ;;  %v2953_v1 = vunpack.i.l.bf16 %v2952_v59 }
 0x11a   : > { %v1590_v60 = vsel %vm1579_vm3, %v1557_v54, %v2938_v35  ;;  %v1591_v46 = vsel %vm1579_vm3, %v1558_v44, %v2939_v29  ;;  %v1740_v35 = vpack.c.bf16 %v3896_v52, %v3894_v17  ;;  %v736_v44 = vld [vmem:[#allocation2 + $0x13a] sm:$0xff] }
 0x11b   : > { %v2947_v40 = vpop.permute.xlu1 %2946  ;;  %v1723_v6 = vpack.c.bf16 %v1591_v46, %v1590_v60  ;;  %v1656_v36 = vsel %vm1546_vm2, %v1624_v63, %v2953_v1  ;;  %v1657_v16 = vsel %vm1546_vm2, %v1625_v58, %v2954_v0  ;;  %v737_v1 = vld [vmem:[#allocation2 + $0x142] sm:$0xff]  ;;  %v738_v60 = vld [vmem:[#allocation2 + $0x152] sm:$0xff]  ;;  %v739_v46 = vld [vmem:[#allocation2 + $0x15a] sm:$0xff] }
 0x11c   : > { %v2962_v20 = vpop.permute.xlu0 %2961  ;;  %v2949_v56 = vunpack.i.h.bf16 %v2947_v40  ;;  %v2948_v11 = vunpack.i.l.bf16 %v2947_v40  ;;  %v471_v40 = vld [vmem:[#allocation2 + $0xa8] sm:$0xff]  ;;  %v601_v17 = vld [vmem:[#allocation2 + $0xd9] sm:$0xff] }
 0x11d   : > { %2028 = vmatmul.mubr.bf16.gmra.mxu0 %v1723_v6  ;;  %2589 = vmatmul.mubr.msk.bf16.gmra.mxu1 %vm368_vm0, %v1725_v3  ;;  %v2964_v8 = vunpack.i.h.bf16 %v2962_v20  ;;  %v2963_v30 = vunpack.i.l.bf16 %v2962_v20  ;;  %v472_v6 = vld [vmem:[#allocation2 + $0xb0] sm:$0xff]  ;;  %v602_v52 = vld [vmem:[#allocation2 + $0xe1] sm:$0xff] }
 0x11e   : > { %2592 = vmatprep.mubr.msk.bf16.mxu1 %vm368_vm0, %v1728_v34  ;;  %v1527_v31 = vsel %vm368_vm0, %v470_v15, %v2949_v56  ;;  %v1526_v33 = vsel %vm368_vm0, %v469_v41, %v2948_v11  ;;  %v1746_v56 = vpack.c.bf16 %v739_v46, %v738_v60 }
 0x11f   : > { %v2957_v22 = vpop.permute.xlu1 %2956  ;;  %v1688_v10 = vsel %vm1579_vm3, %v1656_v36, %v2963_v30  ;;  %v1689_v13 = vsel %vm1579_vm3, %v1657_v16, %v2964_v8 }
 0x120   : > { %v2959_v12 = vunpack.i.h.bf16 %v2957_v22  ;;  %v2958_v27 = vunpack.i.l.bf16 %v2957_v22  ;;  %v2972_v7 = vpop.permute.xlu0 %2971  ;;  %v1727_v53 = vpack.c.bf16 %v1689_v13, %v1688_v10  ;;  %v1743_v22 = vpack.c.bf16 %v737_v1, %v736_v44 }
 0x121   : > { %v2974_v49 = vunpack.i.h.bf16 %v2972_v7  ;;  %v2973_v25 = vunpack.i.l.bf16 %v2972_v7 }
 0x122   : > { %2035 = vmatprep.mubr.bf16.mxu0 %v1727_v53  ;;  %v1559_v28 = vsel %vm1546_vm2, %v1526_v33, %v2958_v27  ;;  %v1560_v2 = vsel %vm1546_vm2, %v1527_v31, %v2959_v12 }
 0x123   : > { %v2967_v26 = vpop.permute.xlu1 %2966  ;;  %v1627_v48 = vsel %vm368_vm0, %v600_v24, %v2974_v49  ;;  %v1626_v51 = vsel %vm368_vm0, %v599_v19, %v2973_v25 }
 0x124   : > { %v2969_v50 = vunpack.i.h.bf16 %v2967_v26  ;;  %v2968_v37 = vunpack.i.l.bf16 %v2967_v26  ;;  %v2982_v39 = vpop.permute.xlu0 %2981 }
 0x125   : > { %2593 = vmatmul.mubr.msk.bf16.gmra.mxu1 %vm368_vm0, %v1731_v23  ;;  %v2984_v43 = vunpack.i.h.bf16 %v2982_v39  ;;  %v2983_v32 = vunpack.i.l.bf16 %v2982_v39  ;;  %v743_v39 = vld [vmem:[#allocation2 + $0x18a] sm:$0xff] }
 0x126   : > { %v1592_v57 = vsel %vm1579_vm3, %v1559_v28, %v2968_v37  ;;  %v1593_v42 = vsel %vm1579_vm3, %v1560_v2, %v2969_v50  ;;  %2596 = vmatprep.mubr.msk.bf16.mxu1 %vm368_vm0, %v1734_v47  ;;  %v740_v28 = vld [vmem:[#allocation2 + $0x16a] sm:$0xff]  ;;  %v741_v2 = vld [vmem:[#allocation2 + $0x172] sm:$0xff] }
 0x127   : > { %v2977_v45 = vpop.permute.xlu1 %2976  ;;  %v1726_v9 = vpack.c.bf16 %v1593_v42, %v1592_v57  ;;  %v1658_v38 = vsel %vm1546_vm2, %v1626_v51, %v2983_v32  ;;  %v1659_v3 = vsel %vm1546_vm2, %v1627_v48, %v2984_v43  ;;  %v742_v51 = vld [vmem:[#allocation2 + $0x182] sm:$0xff] }
 0x128   : > { %v2992_v34 = vpop.permute.xlu0 %2991  ;;  %v2979_v58 = vunpack.i.h.bf16 %v2977_v45  ;;  %v2978_v63 = vunpack.i.l.bf16 %v2977_v45  ;;  %v473_v45 = vld [vmem:[#allocation2 + $0xc0] sm:$0xff] }
 0x129   : > { %2036 = vmatmul.mubr.bf16.gmra.mxu0 %v1726_v9  ;;  %v2994_v21 = vunpack.i.h.bf16 %v2992_v34  ;;  %v2993_v29 = vunpack.i.l.bf16 %v2992_v34  ;;  %v474_v9 = vld [vmem:[#allocation2 + $0xc8] sm:$0xff] }
 0x12a   : > { %v1529_v11 = vsel %vm368_vm0, %v472_v6, %v2979_v58  ;;  %v1528_v10 = vsel %vm368_vm0, %v471_v40, %v2978_v63  ;;  %v1752_v58 = vpack.c.bf16 %v743_v39, %v742_v51 }
 0x12b   : > { %v2987_v54 = vpop.permute.xlu1 %2986  ;;  %v1690_v59 = vsel %vm1579_vm3, %v1658_v38, %v2993_v29  ;;  %v1691_v0 = vsel %vm1579_vm3, %v1659_v3, %v2994_v21  ;;  %v1749_v21 = vpack.c.bf16 %v741_v2, %v740_v28  ;;  %v603_v29 = vld [vmem:[#allocation2 + $0xf1] sm:$0xff] }
 0x12c   : > { %v2989_v36 = vunpack.i.h.bf16 %v2987_v54  ;;  %v2988_v4 = vunpack.i.l.bf16 %v2987_v54  ;;  %v3002_v18 = vpop.permute.xlu0 %3001  ;;  %v1730_v16 = vpack.c.bf16 %v1691_v0, %v1690_v59 }
 0x12d   : > { %2597 = vmatmul.mubr.msk.bf16.gmra.mxu1 %vm368_vm0, %v1737_v55  ;;  %v3004_v20 = vunpack.i.h.bf16 %v3002_v18  ;;  %v3003_v8 = vunpack.i.l.bf16 %v3002_v18 }
 0x12e   : > { %2600 = vmatprep.mubr.msk.bf16.mxu1 %vm368_vm0, %v1740_v35  ;;  %2043 = vmatprep.mubr.bf16.mxu0 %v1730_v16  ;;  %v1561_v15 = vsel %vm1546_vm2, %v1528_v10, %v2988_v4  ;;  %v1562_v12 = vsel %vm1546_vm2, %v1529_v11, %v2989_v36  ;;  %v604_v35 = vld [vmem:[#allocation2 + $0xf9] sm:$0xff] }
 0x12f   : > { %v2997_v30 = vpop.permute.xlu1 %2996  ;;  %v1629_v27 = vsel %vm368_vm0, %v602_v52, %v3004_v20  ;;  %v1628_v7 = vsel %vm368_vm0, %v601_v17, %v3003_v8  ;;  %v744_v20 = vld [vmem:[#allocation2 + $0x19a] sm:$0xff]  ;;  %v745_v8 = vld [vmem:[#allocation2 + $0x1a2] sm:$0xff] }
 0x130   : > { %v2999_v13 = vunpack.i.h.bf16 %v2997_v30  ;;  %v2998_v41 = vunpack.i.l.bf16 %v2997_v30  ;;  %v3012_v53 = vpop.permute.xlu0 %3011 }
 0x131   : > { %v3014_v23 = vunpack.i.h.bf16 %v3012_v53  ;;  %v3013_v19 = vunpack.i.l.bf16 %v3012_v53 }
 0x132   : > { %v1594_v24 = vsel %vm1579_vm3, %v1561_v15, %v2998_v41  ;;  %v1595_v49 = vsel %vm1579_vm3, %v1562_v12, %v2999_v13  ;;  %v1755_v13 = vpack.c.bf16 %v745_v8, %v744_v20 }
 0x133   : > { %v3007_v25 = vpop.permute.xlu1 %3006  ;;  %v1729_v47 = vpack.c.bf16 %v1595_v49, %v1594_v24  ;;  %v1660_v26 = vsel %vm1546_vm2, %v1628_v7, %v3013_v19  ;;  %v1661_v31 = vsel %vm1546_vm2, %v1629_v27, %v3014_v23  ;;  %v475_v19 = vld [vmem:[#allocation2 + $0xd8] sm:$0xff]  ;;  %v476_v24 = vld [vmem:[#allocation2 + $0xe0] sm:$0xff] }
 0x134   : > { %v3022_v33 = vpop.permute.xlu0 %3021  ;;  %v3009_v43 = vunpack.i.h.bf16 %v3007_v25  ;;  %v3008_v32 = vunpack.i.l.bf16 %v3007_v25 }
 0x135   : > { %2044 = vmatmul.mubr.bf16.gmra.mxu0 %v1729_v47  ;;  %2601 = vmatmul.mubr.msk.bf16.gmra.mxu1 %vm368_vm0, %v1743_v22  ;;  %v3024_v50 = vunpack.i.h.bf16 %v3022_v33  ;;  %v3023_v37 = vunpack.i.l.bf16 %v3022_v33 }
 0x136   : > { %2604 = vmatprep.mubr.msk.bf16.mxu1 %vm368_vm0, %v1746_v56  ;;  %v1531_v59 = vsel %vm368_vm0, %v474_v9, %v3009_v43  ;;  %v1530_v0 = vsel %vm368_vm0, %v473_v45, %v3008_v32 }
 0x137   : > { %v3017_v48 = vpop.permute.xlu1 %3016  ;;  %v1692_v57 = vsel %vm1579_vm3, %v1660_v26, %v3023_v37  ;;  %v1693_v42 = vsel %vm1579_vm3, %v1661_v31, %v3024_v50 }
 0x138   : > { %v3019_v38 = vunpack.i.h.bf16 %v3017_v48  ;;  %v3018_v3 = vunpack.i.l.bf16 %v3017_v48  ;;  %v3032_v34 = vpop.permute.xlu0 %3031  ;;  %v1733_v55 = vpack.c.bf16 %v1693_v42, %v1692_v57 }
 0x139   : > { %v3034_v54 = vunpack.i.h.bf16 %v3032_v34  ;;  %v3033_v44 = vunpack.i.l.bf16 %v3032_v34 }
 0x13a   : > { %2051 = vmatprep.mubr.bf16.mxu0 %v1733_v55  ;;  %v1563_v46 = vsel %vm1546_vm2, %v1530_v0, %v3018_v3  ;;  %v1564_v40 = vsel %vm1546_vm2, %v1531_v59, %v3019_v38  ;;  %v477_v59 = vld [vmem:[#allocation2 + $0xf0] sm:$0xff]  ;;  %v478_v0 = vld [vmem:[#allocation2 + $0xf8] sm:$0xff] }
 0x13b   : > { %v3027_v63 = vpop.permute.xlu1 %3026  ;;  %v1631_v6 = vsel %vm368_vm0, %v604_v35, %v3034_v54  ;;  %v1630_v36 = vsel %vm368_vm0, %v603_v29, %v3033_v44 }
 0x13c   : > { %v3029_v1 = vunpack.i.h.bf16 %v3027_v63  ;;  %v3028_v60 = vunpack.i.l.bf16 %v3027_v63  ;;  %v3042_v4 = vpop.permute.xlu0 %3041 }
 0x13d   : > { %2605 = vmatmul.mubr.msk.bf16.gmra.mxu1 %vm368_vm0, %v1749_v21  ;;  %v3044_v18 = vunpack.i.h.bf16 %v3042_v4  ;;  %v3043_v16 = vunpack.i.l.bf16 %v3042_v4 }
 0x13e   : > { %v1596_v17 = vsel %vm1579_vm3, %v1563_v46, %v3028_v60  ;;  %v1597_v52 = vsel %vm1579_vm3, %v1564_v40, %v3029_v1  ;;  %2608 = vmatprep.mubr.msk.bf16.mxu1 %vm368_vm0, %v1752_v58 }
 0x13f   : > { %v3037_v30 = vpop.permute.xlu1 %3036  ;;  %v1732_v22 = vpack.c.bf16 %v1597_v52, %v1596_v17  ;;  %v1662_v56 = vsel %vm1546_vm2, %v1630_v36, %v3043_v16  ;;  %v1663_v11 = vsel %vm1546_vm2, %v1631_v6, %v3044_v18 }
 0x140   : > { %v3052_v10 = vpop.permute.xlu0 %3051  ;;  %v3039_v27 = vunpack.i.h.bf16 %v3037_v30  ;;  %v3038_v7 = vunpack.i.l.bf16 %v3037_v30 }
 0x141   : > { %2052 = vmatmul.mubr.bf16.gmra.mxu0 %v1732_v22  ;;  %v3054_v41 = vunpack.i.h.bf16 %v3052_v10  ;;  %v3053_v15 = vunpack.i.l.bf16 %v3052_v10 }
 0x142   : > { %v1533_v37 = vsel %vm368_vm0, %v476_v24, %v3039_v27  ;;  %v1532_v28 = vsel %vm368_vm0, %v475_v19, %v3038_v7 }
 0x143   : > { %v3047_v12 = vpop.permute.xlu1 %3046  ;;  %v1694_v53 = vsel %vm1579_vm3, %v1662_v56, %v3053_v15  ;;  %v1695_v23 = vsel %vm1579_vm3, %v1663_v11, %v3054_v41 }
 0x144   : > { %v3049_v49 = vunpack.i.h.bf16 %v3047_v12  ;;  %v3048_v25 = vunpack.i.l.bf16 %v3047_v12  ;;  %v3062_v47 = vpop.permute.xlu0 %3061  ;;  %v1736_v26 = vpack.c.bf16 %v1695_v23, %v1694_v53 }
 0x145   : > { %2609 = vmatmul.mubr.msk.bf16.gmra.mxu1 %vm368_vm0, %v1755_v13  ;;  %v3064_v31 = vunpack.i.h.bf16 %v3062_v47  ;;  %v3063_v33 = vunpack.i.l.bf16 %v3062_v47  ;;  %v479_v47 = vld [vmem:[#allocation2 + $0x108] sm:$0xff] }
 0x146   : > { %2059 = vmatprep.mubr.bf16.mxu0 %v1736_v26  ;;  %v1565_v51 = vsel %vm1546_vm2, %v1532_v28, %v3048_v25  ;;  %v1566_v39 = vsel %vm1546_vm2, %v1533_v37, %v3049_v49  ;;  %v480_v26 = vld [vmem:[#allocation2 + $0x110] sm:$0xff] }
 0x147   : > { %v3057_v50 = vpop.permute.xlu1 %3056  ;;  %v1633_v43 = vsel %vm368_vm0, %v3821_v62, %v3064_v31  ;;  %v1632_v32 = vsel %vm368_vm0, %v3819_v14, %v3063_v33 }
 0x148   : > { %v3059_v2 = vunpack.i.h.bf16 %v3057_v50  ;;  %v3058_v48 = vunpack.i.l.bf16 %v3057_v50  ;;  %v3072_v57 = vpop.permute.xlu0 %3071 }
 0x149   : > { %v3074_v42 = vunpack.i.h.bf16 %v3072_v57  ;;  %v3073_v45 = vunpack.i.l.bf16 %v3072_v57 }
 0x14a   : > { %v1598_v9 = vsel %vm1579_vm3, %v1565_v51, %v3058_v48  ;;  %v1599_v38 = vsel %vm1579_vm3, %v1566_v39, %v3059_v2 }
 0x14b   : > { %v3067_v3 = vpop.permute.xlu1 %3066  ;;  %v1735_v34 = vpack.c.bf16 %v1599_v38, %v1598_v9  ;;  %v1664_v55 = vsel %vm1546_vm2, %v1632_v32, %v3073_v45  ;;  %v1665_v21 = vsel %vm1546_vm2, %v1633_v43, %v3074_v42 }
 0x14c   : > { %v3082_v29 = vpop.permute.xlu0 %3081  ;;  %v3069_v44 = vunpack.i.h.bf16 %v3067_v3  ;;  %v3068_v14 = vunpack.i.l.bf16 %v3067_v3 }
 0x14d   : > { %2060 = vmatmul.mubr.bf16.gmra.mxu0 %v1735_v34  ;;  %v3084_v35 = vunpack.i.h.bf16 %v3082_v29  ;;  %v3083_v62 = vunpack.i.l.bf16 %v3082_v29 }
 0x14e   : > { %v1535_v18 = vsel %vm368_vm0, %v478_v0, %v3069_v44  ;;  %v1534_v16 = vsel %vm368_vm0, %v477_v59, %v3068_v14 }
 0x14f   : > { %v3077_v54 = vpop.permute.xlu1 %3076  ;;  %v1696_v58 = vsel %vm1579_vm3, %v1664_v55, %v3083_v62  ;;  %v1697_v63 = vsel %vm1579_vm3, %v1665_v21, %v3084_v35 }
 0x150   : > { %v3079_v1 = vunpack.i.h.bf16 %v3077_v54  ;;  %v3078_v60 = vunpack.i.l.bf16 %v3077_v54  ;;  %v3092_v46 = vpop.permute.xlu0 %3091  ;;  %v1739_v40 = vpack.c.bf16 %v1697_v63, %v1696_v58 }
 0x151   : > { %v3094_v6 = vunpack.i.h.bf16 %v3092_v46  ;;  %v3093_v36 = vunpack.i.l.bf16 %v3092_v46 }
 0x152   : > { %2067 = vmatprep.mubr.bf16.mxu0 %v1739_v40  ;;  %v1567_v20 = vsel %vm1546_vm2, %v1534_v16, %v3078_v60  ;;  %v1568_v8 = vsel %vm1546_vm2, %v1535_v18, %v3079_v1 }
 0x153   : > { %v3087_v4 = vpop.permute.xlu1 %3086  ;;  %v1635_v30 = vsel %vm368_vm0, %v3874_v61, %v3094_v6  ;;  %v1634_v22 = vsel %vm368_vm0, %v3872_v5, %v3093_v36 }
 0x154   : > { %v3089_v17 = vunpack.i.h.bf16 %v3087_v4  ;;  %v3088_v52 = vunpack.i.l.bf16 %v3087_v4  ;;  %v3102_v56 = vpop.permute.xlu0 %3101 }
 0x155   : > { %v3104_v11 = vunpack.i.h.bf16 %v3102_v56  ;;  %v3103_v10 = vunpack.i.l.bf16 %v3102_v56 }
 0x156   : > { %v1600_v13 = vsel %vm1579_vm3, %v1567_v20, %v3088_v52  ;;  %v1601_v41 = vsel %vm1579_vm3, %v1568_v8, %v3089_v17 }
 0x157   : > { %v3097_v15 = vpop.permute.xlu1 %3096  ;;  %v1738_v12 = vpack.c.bf16 %v1601_v41, %v1600_v13  ;;  %v1666_v27 = vsel %vm1546_vm2, %v1634_v22, %v3103_v10  ;;  %v1667_v7 = vsel %vm1546_vm2, %v1635_v30, %v3104_v11 }
 0x158   : > { %v3112_v53 = vpop.permute.xlu0 %3111  ;;  %v3099_v24 = vunpack.i.h.bf16 %v3097_v15  ;;  %v3098_v5 = vunpack.i.l.bf16 %v3097_v15 }
 0x159   : > { %2068 = vmatmul.mubr.bf16.gmra.mxu0 %v1738_v12  ;;  %v3114_v23 = vunpack.i.h.bf16 %v3112_v53  ;;  %v3113_v61 = vunpack.i.l.bf16 %v3112_v53 }
 0x15a   : > { %v1537_v28 = vsel %vm368_vm0, %v480_v26, %v3099_v24  ;;  %v1536_v2 = vsel %vm368_vm0, %v479_v47, %v3098_v5 }
 0x15b   : > { %v3107_v19 = vpop.permute.xlu1 %3106  ;;  %v1698_v49 = vsel %vm1579_vm3, %v1666_v27, %v3113_v61  ;;  %v1699_v25 = vsel %vm1579_vm3, %v1667_v7, %v3114_v23  ;;  %v4119_v27 = vld [vmem:[%s4233_s4] ss:$0 sm:$0xff] }
 0x15c   : > { %v3109_v31 = vunpack.i.h.bf16 %v3107_v19  ;;  %v3108_v33 = vunpack.i.l.bf16 %v3107_v19  ;;  %v1742_v50 = vpack.c.bf16 %v1699_v25, %v1698_v49 }
 0x15e   : > { %2075 = vmatprep.mubr.bf16.mxu0 %v1742_v50  ;;  %v1569_v39 = vsel %vm1546_vm2, %v1536_v2, %v3108_v33  ;;  %v1570_v43 = vsel %vm1546_vm2, %v1537_v28, %v3109_v31 }
 0x15f   : > { %v3117_v37 = vpop.permute.xlu1 %3116 }
 0x160   : > { %v3119_v48 = vunpack.i.h.bf16 %v3117_v37  ;;  %v3118_v51 = vunpack.i.l.bf16 %v3117_v37 }
 0x162   : > { %v1602_v32 = vsel %vm1579_vm3, %v1569_v39, %v3118_v51  ;;  %v1603_v57 = vsel %vm1579_vm3, %v1570_v43, %v3119_v48 }
 0x163   : > { %v1741_v42 = vpack.c.bf16 %v1603_v57, %v1602_v32 }
 0x165   : > { %2076 = vmatmul.mubr.bf16.gmra.mxu0 %v1741_v42 }
 0x176   : > { %v2462_v21 = vpop.f32.mrf.mxu0 }
 0x178   : > { %v2463_v54 = vpop.f32.mrf.mxu0 }
 0x179   : > { %v2464_v41 = vadd.f32 %v2463_v54, %v2462_v21 }
 0x17a   : > { %v2465_v63 = vpop.f32.mrf.mxu0 }
 0x17b   : > { %v1990_v24 = vadd.f32 %v2464_v41, %v4119_v27 }
 0x17c   : > { %v2466_v59 = vpop.f32.mrf.mxu0 }
 0x17d   : > { %v2467_v61 = vadd.f32 %v2466_v59, %v2465_v63 }
 0x17f   : > { %v1993_v28 = vadd.f32 %v2467_v61, %v4119_v27 }
 0x182   : > { %v2534_v45 = vpop.f32.mrf.mxu1 }
 0x184   : > { %v2535_v9 = vpop.f32.mrf.mxu1 }
 0x185   : > { %v4096_v38 = vadd.f32 %v2535_v9, %v2534_v45 }
 0x186   : > { %v2537_v3 = vpop.f32.mrf.mxu1 }
 0x188   : > { %v2538_v34 = vpop.f32.mrf.mxu1 }
 0x189   : > { %v4098_v55 = vadd.f32 %v2538_v34, %v2537_v3 }
 0x18d   : > { %v2468_v0 = vpop.f32.mrf.mxu0 }
 0x18f   : > { %v2469_v1 = vpop.f32.mrf.mxu0 }
 0x190   : > { %v2470_v10 = vadd.f32 %v2469_v1, %v2468_v0 }
 0x191   : > { %v2471_v46 = vpop.f32.mrf.mxu0 }
 0x192   : > { %v1998_v53 = vadd.f32 %v2470_v10, %v4119_v27 }
 0x193   : > { %v2472_v4 = vpop.f32.mrf.mxu0 }
 0x194   : > { %v2473_v7 = vadd.f32 %v2472_v4, %v2471_v46 }
 0x196   : > { %v2001_v26 = vadd.f32 %v2473_v7, %v4119_v27 }
 0x199   : > { %v2540_v29 = vpop.f32.mrf.mxu1 }
 0x19b   : > { %v2541_v35 = vpop.f32.mrf.mxu1 }
 0x19c   : > { %v4100_v62 = vadd.f32 %v2541_v35, %v2540_v29 }
 0x19d   : > { %v2543_v44 = vpop.f32.mrf.mxu1 }
 0x19f   : > { %v2544_v14 = vpop.f32.mrf.mxu1 }
 0x1a0   : > { %v4102_v58 = vadd.f32 %v2544_v14, %v2543_v44 }
 0x1a2   : > { %v2474_v16 = vpop.f32.mrf.mxu0 }
 0x1a4   : > { %v2475_v52 = vpop.f32.mrf.mxu0 }
 0x1a5   : > { %v2476_v50 = vadd.f32 %v2475_v52, %v2474_v16 }
 0x1a6   : > { %v2477_v20 = vpop.f32.mrf.mxu0 }
 0x1a7   : > { %v2006_v45 = vadd.f32 %v2476_v50, %v4119_v27 }
 0x1a8   : > { %v2478_v8 = vpop.f32.mrf.mxu0 }
 0x1a9   : > { %v2479_v57 = vadd.f32 %v2478_v8, %v2477_v20 }
 0x1ab   : > { %v2009_v44 = vadd.f32 %v2479_v57, %v4119_v27 }
 0x1ae   : > { %v2546_v60 = vpop.f32.mrf.mxu1 }
 0x1b0   : > { %v2547_v40 = vpop.f32.mrf.mxu1 }
 0x1b1   : > { %v4104_v6 = vadd.f32 %v2547_v40, %v2546_v60 }
 0x1b2   : > { %v2549_v36 = vpop.f32.mrf.mxu1 }
 0x1b4   : > { %v2550_v18 = vpop.f32.mrf.mxu1 }
 0x1b5   : > { %v4106_v17 = vadd.f32 %v2550_v18, %v2549_v36 }
 0x1b9   : > { %v2480_v30 = vpop.f32.mrf.mxu0 }
 0x1bb   : > { %v2481_v56 = vpop.f32.mrf.mxu0 }
 0x1bc   : > { %v2482_v25 = vadd.f32 %v2481_v56, %v2480_v30 }
 0x1bd   : > { %v2483_v15 = vpop.f32.mrf.mxu0 }
 0x1be   : > { %v2014_v43 = vadd.f32 %v2482_v25, %v4119_v27 }
 0x1bf   : > { %v2484_v5 = vpop.f32.mrf.mxu0 }
 0x1c0   : > { %v2485_v51 = vadd.f32 %v2484_v5, %v2483_v15 }
 0x1c2   : > { %v2017_v21 = vadd.f32 %v2485_v51, %v4119_v27 }
 0x1c5   : > { %v4108_v22 = vpop.f32.mrf.mxu1 }
 0x1c7   : > { %v4110_v11 = vpop.f32.mrf.mxu1 }
 0x1c9   : > { %v4112_v13 = vpop.f32.mrf.mxu1 }
 0x1cb   : > { %v4114_v12 = vpop.f32.mrf.mxu1 }
 0x1cd   : > { %v2582_v23 = vpop.f32.mrf.mxu1 }
 0x1ce   : > { %v2159_v19 = vadd.f32 %v2582_v23, %v1998_v53 }
 0x1cf   : > { %v2150_v49 = vpop.f32.mrf.mxu1 }
 0x1d0   : > { %3138 = vtanh.f32 %v2159_v19  ;;  %v2151_v47 = vadd.f32 %v2150_v49, %v1990_v24 }
 0x1d1   : > { %v2486_v31 = vpop.f32.mrf.mxu0  ;;  %v2583_v33 = vpop.f32.mrf.mxu1 }
 0x1d2   : > { %3140 = vtanh.f32 %v2151_v47  ;;  %v2162_v37 = vadd.f32 %v2583_v33, %v2001_v26 }
 0x1d3   : > { %v2487_v2 = vpop.f32.mrf.mxu0  ;;  %v2153_v48 = vpop.f32.mrf.mxu1 }
 0x1d4   : > { %3142 = vtanh.f32 %v2162_v37  ;;  %v2154_v39 = vadd.f32 %v2153_v48, %v1993_v28  ;;  %v2488_v35 = vadd.f32 %v2487_v2, %v2486_v31 }
 0x1d5   : > { %v2586_v32 = vpop.f32.mrf.mxu1  ;;  %v2489_v9 = vpop.f32.mrf.mxu0 }
 0x1d6   : > { %3144 = vtanh.f32 %v2154_v39  ;;  %v2175_v42 = vadd.f32 %v2586_v32, %v2014_v43  ;;  %v2022_v40 = vadd.f32 %v2488_v35, %v4119_v27 }
 0x1d7   : > { %v2166_v3 = vpop.f32.mrf.mxu1  ;;  %v2490_v14 = vpop.f32.mrf.mxu0 }
 0x1d8   : > { %3146 = vtanh.f32 %v2175_v42  ;;  %v2167_v34 = vadd.f32 %v2166_v3, %v2006_v45  ;;  %v2491_v46 = vadd.f32 %v2490_v14, %v2489_v9 }
 0x1d9   : > { %v2587_v29 = vpop.f32.mrf.mxu1 }
 0x1da   : > { %3148 = vtanh.f32 %v2167_v34  ;;  %v2178_v54 = vadd.f32 %v2587_v29, %v2017_v21  ;;  %v2025_v10 = vadd.f32 %v2491_v46, %v4119_v27 }
 0x1db   : > { %v2169_v63 = vpop.f32.mrf.mxu1 }
 0x1dc   : > { %3150 = vtanh.f32 %v2178_v54  ;;  %v2170_v59 = vadd.f32 %v2169_v63, %v2009_v44 }
 0x1dd   : > { %v3139_v0 = vpop.eup %3138  ;;  %v2492_v1 = vpop.f32.mrf.mxu0 }
 0x1de   : > { %v2590_v60 = vpop.f32.mrf.mxu1  ;;  %2311 = vst [vmem:[%s4134_s26 + $0x10] sm:$0xff] %v3139_v0  ;;  %3152 = vtanh.f32 %v2170_v59 }
 0x1df   : > { %v3141_v36 = vpop.eup %3140  ;;  %v2493_v4 = vpop.f32.mrf.mxu0 }
 0x1e0   : > { %v2182_v18 = vpop.f32.mrf.mxu1  ;;  %2309 = vst [vmem:[%s4134_s26] sm:$0xff] %v3141_v36  ;;  %v2494_v16 = vadd.f32 %v2493_v4, %v2492_v1 }
 0x1e1   : > { %v2183_v52 = vadd.f32 %v2182_v18, %v2022_v40  ;;  %v3143_v20 = vpop.eup %3142  ;;  %v2495_v8 = vpop.f32.mrf.mxu0 }
 0x1e2   : > { %v2591_v30 = vpop.f32.mrf.mxu1  ;;  %2312 = vst [vmem:[%s4134_s26 + $0x18] sm:$0xff] %v3143_v20  ;;  %v2030_v56 = vadd.f32 %v2494_v16, %v4119_v27  ;;  %v2094_v16 = vadd.f32 %v4100_v62, %v4119_v27 }
 0x1e3   : > { %3154 = vtanh.f32 %v2183_v52  ;;  %v3145_v41 = vpop.eup %3144  ;;  %v2496_v15 = vpop.f32.mrf.mxu0 }
 0x1e4   : > { %v2185_v7 = vpop.f32.mrf.mxu1  ;;  %2310 = vst [vmem:[%s4134_s26 + $0x8] sm:$0xff] %v3145_v41  ;;  %v2191_v53 = vadd.f32 %v2590_v60, %v2030_v56  ;;  %v2497_v23 = vadd.f32 %v2496_v15, %v2495_v8  ;;  %v2097_v41 = vadd.f32 %v4102_v58, %v4119_v27  ;;  %v2554_v15 = vadd.f32 %v4110_v11, %v4108_v22 }
 0x1e5   : > { %v2186_v61 = vadd.f32 %v2185_v7, %v2025_v10  ;;  %v3147_v19 = vpop.eup %3146 }
 0x1e6   : > { %v2594_v24 = vpop.f32.mrf.mxu1  ;;  %2315 = vst [vmem:[%s4134_s26 + $0x30] sm:$0xff] %v3147_v19  ;;  %3156 = vtanh.f32 %v2191_v53  ;;  %v2033_v5 = vadd.f32 %v2497_v23, %v4119_v27 }
 0x1e7   : > { %v3149_v49 = vpop.eup %3148  ;;  %3158 = vtanh.f32 %v2186_v61 }
 0x1e8   : > { %v2198_v25 = vpop.f32.mrf.mxu1  ;;  %2313 = vst [vmem:[%s4134_s26 + $0x20] sm:$0xff] %v3149_v49  ;;  %v2194_v47 = vadd.f32 %v2591_v30, %v2033_v5  ;;  %v2086_v30 = vadd.f32 %v4096_v38, %v4119_v27  ;;  %v2089_v38 = vadd.f32 %v4098_v55, %v4119_v27  ;;  %v2110_v49 = vadd.f32 %v2554_v15, %v4119_v27 }
 0x1e9   : > { %v3151_v26 = vpop.eup %3150  ;;  %v2498_v31 = vpop.f32.mrf.mxu0  ;;  %v2102_v55 = vadd.f32 %v4104_v6, %v4119_v27 }
 0x1ea   : > { %v2595_v33 = vpop.f32.mrf.mxu1  ;;  %2316 = vst [vmem:[%s4134_s26 + $0x38] sm:$0xff] %v3151_v26  ;;  %3160 = vtanh.f32 %v2194_v47 }
 0x1eb   : > { %v3153_v50 = vpop.eup %3152  ;;  %v2499_v37 = vpop.f32.mrf.mxu0 }
 0x1ec   : > { %v2201_v28 = vpop.f32.mrf.mxu1  ;;  %2314 = vst [vmem:[%s4134_s26 + $0x28] sm:$0xff] %v3153_v50  ;;  %v2500_v2 = vadd.f32 %v2499_v37, %v2498_v31 }
 0x1ed   : > { %v2501_v48 = vpop.f32.mrf.mxu0 }
 0x1ee   : > { %v4148_v51 = vpop.f32.mrf.mxu1  ;;  %v2038_v39 = vadd.f32 %v2500_v2, %v4119_v27 }
 0x1ef   : > { %v2502_v32 = vpop.f32.mrf.mxu0 }
 0x1f0   : > { %v3155_v43 = vpop.eup %3154  ;;  %v4151_v57 = vpop.f32.mrf.mxu1  ;;  %v2199_v42 = vadd.f32 %v2198_v25, %v2038_v39  ;;  %v2503_v45 = vadd.f32 %v2502_v32, %v2501_v48 }
 0x1f1   : > { %2317 = vst [vmem:[%s4134_s26 + $0x40] sm:$0xff] %v3155_v43  ;;  %v2105_v43 = vadd.f32 %v4106_v17, %v4119_v27 }
 0x1f2   : > { %v4154_v9 = vpop.f32.mrf.mxu1  ;;  %3162 = vtanh.f32 %v2199_v42  ;;  %v2041_v3 = vadd.f32 %v2503_v45, %v4119_v27 }
 0x1f3   : > { %v3157_v34 = vpop.eup %3156 }
 0x1f4   : > { %v4157_v21 = vpop.f32.mrf.mxu1  ;;  %v3159_v29 = vpop.eup %3158  ;;  %2319 = vst [vmem:[%s4134_s26 + $0x50] sm:$0xff] %v3157_v34  ;;  %v2202_v35 = vadd.f32 %v2201_v28, %v2041_v3 }
 0x1f5   : > { %2318 = vst [vmem:[%s4134_s26 + $0x48] sm:$0xff] %v3159_v29  ;;  %v2504_v54 = vpop.f32.mrf.mxu0 }
 0x1f6   : > { %v4161_v44 = vpop.f32.mrf.mxu1  ;;  %3164 = vtanh.f32 %v2202_v35 }
 0x1f7   : > { %v3161_v14 = vpop.eup %3160  ;;  %v2505_v63 = vpop.f32.mrf.mxu0 }
 0x1f8   : > { %v4163_v59 = vpop.f32.mrf.mxu1  ;;  %2320 = vst [vmem:[%s4134_s26 + $0x58] sm:$0xff] %v3161_v14  ;;  %v2506_v0 = vadd.f32 %v2505_v63, %v2504_v54 }
 0x1f9   : > { %v2507_v1 = vpop.f32.mrf.mxu0 }
 0x1fa   : > { %v4166_v60 = vpop.f32.mrf.mxu1  ;;  %v2046_v46 = vadd.f32 %v2506_v0, %v4119_v27 }
 0x1fb   : > { %v2508_v40 = vpop.f32.mrf.mxu0 }
 0x1fc   : > { %v4169_v36 = vpop.f32.mrf.mxu1  ;;  %v2207_v4 = vadd.f32 %v2594_v24, %v2046_v46  ;;  %v2509_v18 = vadd.f32 %v2508_v40, %v2507_v1  ;;  %v2557_v24 = vadd.f32 %v4114_v12, %v4112_v13 }
 0x1fe   : > { %v2606_v52 = vpop.f32.mrf.mxu1  ;;  %3166 = vtanh.f32 %v2207_v4  ;;  %v2049_v20 = vadd.f32 %v2509_v18, %v4119_v27 }
 0x1ff   : > { %v2255_v8 = vadd.f32 %v2606_v52, %v2094_v16  ;;  %v3163_v56 = vpop.eup %3162 }
 0x200   : > { %v2246_v10 = vpop.f32.mrf.mxu1  ;;  %2321 = vst [vmem:[%s4134_s26 + $0x60] sm:$0xff] %v3163_v56  ;;  %v2210_v7 = vadd.f32 %v2595_v33, %v2049_v20  ;;  %v2113_v33 = vadd.f32 %v2557_v24, %v4119_v27 }
 0x201   : > { %3168 = vtanh.f32 %v2255_v8  ;;  %v2247_v62 = vadd.f32 %v2246_v10, %v2086_v30  ;;  %v2510_v53 = vpop.f32.mrf.mxu0 }
 0x202   : > { %v2607_v23 = vpop.f32.mrf.mxu1  ;;  %3170 = vtanh.f32 %v2210_v7 }
 0x203   : > { %v2258_v61 = vadd.f32 %v2607_v23, %v2097_v41  ;;  %v3165_v19 = vpop.eup %3164  ;;  %3172 = vtanh.f32 %v2247_v62  ;;  %v2511_v58 = vpop.f32.mrf.mxu0 }
 0x204   : > { %v2249_v5 = vpop.f32.mrf.mxu1  ;;  %2322 = vst [vmem:[%s4134_s26 + $0x68] sm:$0xff] %v3165_v19  ;;  %v2512_v22 = vadd.f32 %v2511_v58, %v2510_v53 }
 0x205   : > { %3174 = vtanh.f32 %v2258_v61  ;;  %v2250_v11 = vadd.f32 %v2249_v5, %v2089_v38  ;;  %v2513_v25 = vpop.f32.mrf.mxu0 }
 0x206   : > { %v2610_v47 = vpop.f32.mrf.mxu1  ;;  %v2054_v26 = vadd.f32 %v2512_v22, %v4119_v27 }
 0x207   : > { %3176 = vtanh.f32 %v2250_v11  ;;  %v2271_v31 = vadd.f32 %v2610_v47, %v2110_v49  ;;  %v2514_v13 = vpop.f32.mrf.mxu0 }
 0x208   : > { %v2262_v12 = vpop.f32.mrf.mxu1  ;;  %v2215_v50 = vadd.f32 %v4151_v57, %v2054_v26  ;;  %v2515_v37 = vadd.f32 %v2514_v13, %v2513_v25 }
 0x209   : > { %3178 = vtanh.f32 %v2271_v31  ;;  %v2263_v28 = vadd.f32 %v2262_v12, %v2102_v55 }
 0x20a   : > { %v2611_v2 = vpop.f32.mrf.mxu1  ;;  %3180 = vtanh.f32 %v2215_v50  ;;  %v2057_v48 = vadd.f32 %v2515_v37, %v4119_v27 }
 0x20b   : > { %v2274_v39 = vadd.f32 %v2611_v2, %v2113_v33  ;;  %v3167_v6 = vpop.eup %3166  ;;  %3182 = vtanh.f32 %v2263_v28 }
 0x20c   : > { %v2265_v32 = vpop.f32.mrf.mxu1  ;;  %2323 = vst [vmem:[%s4134_s26 + $0x70] sm:$0xff] %v3167_v6  ;;  %v2218_v57 = vadd.f32 %v4157_v21, %v2057_v48 }
 0x20d   : > { %3184 = vtanh.f32 %v2274_v39  ;;  %v2266_v42 = vadd.f32 %v2265_v32, %v2105_v43  ;;  %v2516_v3 = vpop.f32.mrf.mxu0 }
 0x20e   : > { %v3169_v45 = vpop.eup %3168  ;;  %3186 = vtanh.f32 %v2218_v57 }
 0x20f   : > { %2335 = vst [vmem:[%s4134_s26 + $0xd0] sm:$0xff] %v3169_v45  ;;  %v3171_v34 = vpop.eup %3170  ;;  %3188 = vtanh.f32 %v2266_v42  ;;  %v2517_v17 = vpop.f32.mrf.mxu0 }
 0x210   : > { %v3173_v29 = vpop.eup %3172  ;;  %2324 = vst [vmem:[%s4134_s26 + $0x78] sm:$0xff] %v3171_v34  ;;  %v2518_v35 = vadd.f32 %v2517_v17, %v2516_v3 }
 0x211   : > { %2333 = vst [vmem:[%s4134_s26 + $0xc0] sm:$0xff] %v3173_v29  ;;  %v2519_v14 = vpop.f32.mrf.mxu0 }
 0x212   : > { %v3175_v54 = vpop.eup %3174  ;;  %v2062_v21 = vadd.f32 %v2518_v35, %v4119_v27 }
 0x213   : > { %2336 = vst [vmem:[%s4134_s26 + $0xd8] sm:$0xff] %v3175_v54  ;;  %v2520_v0 = vpop.f32.mrf.mxu0 }
 0x214   : > { %v3177_v63 = vpop.eup %3176  ;;  %v2223_v1 = vadd.f32 %v4148_v51, %v2062_v21  ;;  %v2521_v46 = vadd.f32 %v2520_v0, %v2519_v14 }
 0x215   : > { %2334 = vst [vmem:[%s4134_s26 + $0xc8] sm:$0xff] %v3177_v63 }
 0x216   : > { %v3179_v40 = vpop.eup %3178  ;;  %3190 = vtanh.f32 %v2223_v1  ;;  %v2065_v4 = vadd.f32 %v2521_v46, %v4119_v27 }
 0x217   : > { %2339 = vst [vmem:[%s4134_s26 + $0xf0] sm:$0xff] %v3179_v40  ;;  %v3181_v18 = vpop.eup %3180 }
 0x218   : > { %v3183_v16 = vpop.eup %3182  ;;  %2325 = vst [vmem:[%s4134_s26 + $0x80] sm:$0xff] %v3181_v18  ;;  %v2226_v52 = vadd.f32 %v4154_v9, %v2065_v4 }
 0x219   : > { %2337 = vst [vmem:[%s4134_s26 + $0xe0] sm:$0xff] %v3183_v16  ;;  %v2522_v8 = vpop.f32.mrf.mxu0 }
 0x21a   : > { %v3185_v20 = vpop.eup %3184  ;;  %3192 = vtanh.f32 %v2226_v52 }
 0x21b   : > { %2340 = vst [vmem:[%s4134_s26 + $0xf8] sm:$0xff] %v3185_v20  ;;  %v3187_v51 = vpop.eup %3186  ;;  %v2523_v30 = vpop.f32.mrf.mxu0 }
 0x21c   : > { %v3189_v56 = vpop.eup %3188  ;;  %2326 = vst [vmem:[%s4134_s26 + $0x88] sm:$0xff] %v3187_v51  ;;  %v2524_v10 = vadd.f32 %v2523_v30, %v2522_v8 }
 0x21d   : > { %2338 = vst [vmem:[%s4134_s26 + $0xe8] sm:$0xff] %v3189_v56  ;;  %v2525_v41 = vpop.f32.mrf.mxu0 }
 0x21e   : > { %v2070_v15 = vadd.f32 %v2524_v10, %v4119_v27 }
 0x21f   : > { %v2526_v7 = vpop.f32.mrf.mxu0 }
 0x220   : > { %v2231_v62 = vadd.f32 %v4163_v59, %v2070_v15  ;;  %v2527_v9 = vadd.f32 %v2526_v7, %v2525_v41 }
 0x222   : > { %3194 = vtanh.f32 %v2231_v62  ;;  %v2073_v53 = vadd.f32 %v2527_v9, %v4119_v27 }
 0x223   : > { %v3191_v23 = vpop.eup %3190 }
 0x224   : > { %2327 = vst [vmem:[%s4134_s26 + $0x90] sm:$0xff] %v3191_v23  ;;  %v2234_v61 = vadd.f32 %v4169_v36, %v2073_v53 }
 0x225   : > { %v2528_v38 = vpop.f32.mrf.mxu0 }
 0x226   : > { %3196 = vtanh.f32 %v2234_v61 }
 0x227   : > { %v3193_v19 = vpop.eup %3192  ;;  %v2529_v24 = vpop.f32.mrf.mxu0 }
 0x228   : > { %2328 = vst [vmem:[%s4134_s26 + $0x98] sm:$0xff] %v3193_v19  ;;  %v2530_v58 = vadd.f32 %v2529_v24, %v2528_v38 }
 0x229   : > { %v2531_v5 = vpop.f32.mrf.mxu0 }
 0x22a   : > { %v2078_v59 = vadd.f32 %v2530_v58, %v4119_v27 }
 0x22b   : > { %v2532_v22 = vpop.f32.mrf.mxu0 }
 0x22c   : > { %v2239_v11 = vadd.f32 %v4161_v44, %v2078_v59  ;;  %v2533_v49 = vadd.f32 %v2532_v22, %v2531_v5 }
 0x22e   : > { %3198 = vtanh.f32 %v2239_v11  ;;  %v2081_v25 = vadd.f32 %v2533_v49, %v4119_v27 }
 0x22f   : > { %v3195_v36 = vpop.eup %3194 }
 0x230   : > { %2329 = vst [vmem:[%s4134_s26 + $0xa0] sm:$0xff] %v3195_v36  ;;  %v2242_v47 = vadd.f32 %v4166_v60, %v2081_v25 }
 0x232   : > { %3200 = vtanh.f32 %v2242_v47 }
 0x233   : > { %v3197_v26 = vpop.eup %3196 }
 0x234   : > { %2330 = vst [vmem:[%s4134_s26 + $0xa8] sm:$0xff] %v3197_v26 }
 0x23b   : > { %v3199_v31 = vpop.eup %3198 }
 0x23c   : > { %2331 = vst [vmem:[%s4134_s26 + $0xb0] sm:$0xff] %v3199_v31 }
 0x23f   : > { %v3201_v55 = vpop.eup %3200 }
 0x240   : > { %2332 = vst [vmem:[%s4134_s26 + $0xb8] sm:$0xff] %v3201_v55 }
 0x241 PF: > { %s15_s18 = sadd.s32 1, %s3211_s18  }
 0x242   : > { %p12_p4 = scmp.ge.s32.totalorder %s15_s18, 4  }
 0x244   :  { %14 = sbr.rel (!%p12_p4) target bundleno = 1 (0x1), region = 72 }

// kernel: dense_generator_forward.7
= control target key start
LH: loop header
LB: loop body
LE: loop exit
PB: predicated region body
PF: predicated region fallthrough
CT: control target
= control target key end

     0   :  { %s9477_s0 = inlined_call_operand.vmem [shape: s32[2,2], index: 0, kind: input, shape index: {}]   ;;  %s9478_s1 = inlined_call_operand.vmem [shape: f32[2,16,16,32], index: 1, kind: input, shape index: {}]   ;;  %s9479_s2 = inlined_call_operand.vmem [shape: bf16[2,288,32], index: 2, kind: input, shape index: {}]   ;;  %s9480_s3 = inlined_call_operand.vmem [shape: f32[2,1,32], index: 3, kind: input, shape index: {}]   ;;  %s9481_s4 = inlined_call_operand.vmem [shape: bf16[2,32,32], index: 4, kind: input, shape index: {}]   ;;  %s9482_s5 = inlined_call_operand.vmem [shape: f32[2,1,32], index: 5, kind: input, shape index: {}]   ;;  %s9483_s6 = inlined_call_operand.vmem [shape: f32[2,16,16,32], index: 6, kind: output, shape index: {}]  }
   0x1   :  { %s11_s23 = sshll.u32 %s9477_s0, 4  ;;  %s12_s23 = int_to_ptr.vmem [resolvable:$true] %s11_s23 }
   0x2   :  { %s6938_s24 = scalar_lea.vmem %s12_s23, 32  ;;  %p6943_p1 = scmp.lt.s32.totalorder %s12_s23, %s12_s23 }
   0x3   :  { %p6939_p0 = scmp.ne.s32.totalorder %s12_s23, %s6938_s24  ;;  %p6944_p2 = scmp.lt.s32.totalorder %s6938_s24, %s6938_s24 }
   0x5   :  { %p6945_p3 = por %p6944_p2, %p6943_p1 }
   0x7   :  { %p6946_p4 = pnand %p6945_p3, %p6939_p0 }
   0x9   :  { %6949 = shalt.err (!%p6946_p4)  }
   0xa   :  { %s6960_s25 = smov [#allocation5]  }
   0xb   :  { %14 = dma.vmem_to_smem %s12_s23, 32, %s6960_s25, [#allocation4] }
   0xc   :  { %6954 = dma.done.wait [#allocation4], 32 }
   0xd   :  { %6955 = vsyncadd [#allocation4], 4294967264 }
   0xe   :  { %16 = sfence }
   0xf   :  { %s7007_s26 = smov 0  }
  0x10 LB: > { %s7013_s0 = sadd.s32 4294967295, %s6958_s26   ;;  %p5269_p5 = scmp.ge.s32.totalorder %s6958_s26, 1  ;;  %s6958_s26 = sphi %s7007_s26, %s22_s26  }
  0x11   : > { %p194_p6 = scmp.lt.s32.totalorder %s6958_s26, 3 }
  0x13   : > { %p195_p7 = pnand %p5269_p5, %p194_p6 }
  0x14   : > { %p222_p8 = scmp.lt.s32.totalorder (!%p195_p7), %s7013_s0, 1  ;;  %s5274_s27 = sshll.u32 (!%p195_p7), %s7013_s0, 7 }
  0x15   : > { %198 = sbr.rel (%p195_p7) target bundleno = 1684 (0x694), region = 40  ;;  %s7021_s28 = sld [smem:[#allocation5 + %s5274_s27]] (!%p195_p7) }
  0x1a   : > { %s223_s29 = scalar_select %p222_p8, %s7013_s0, 1  ;;  %vm265_vm0 = vcmask 261120  }
  0x1b   : > { %p5275_p9 = scmp.ne.s32.totalorder %s7021_s28, 0 }
  0x1c   : > { %s5431_s30 = sshll.u32 %s223_s29, 8 }
  0x1d   : > { %s7027_s9 = scalar_lea.vmem %s9478_s1, %s5431_s30  ;;  %s7032_s12 = scalar_lea.vmem %s9483_s6, %s5431_s30 }
  0x1e   : > { %v233_v0 = vld [vmem:[%s7027_s9] sm:$0xff]  ;;  %v234_v1 = vld [vmem:[%s7027_s9 + $0x8] sm:$0xff]  ;;  %v235_v2 = vld [vmem:[%s7027_s9 + $0x10] sm:$0xff] }
  0x1f   : > { %266 = vst.msk [vmem:[#allocation2] sm:$0xff] %vm265_vm0, %v233_v0  ;;  %267 = vst.msk [vmem:[#allocation2 + $0x8] sm:$0xff] %vm265_vm0, %v234_v1  ;;  %v236_v3 = vld [vmem:[%s7027_s9 + $0x18] sm:$0xff]  ;;  %v237_v4 = vld [vmem:[%s7027_s9 + $0x20] sm:$0xff] }
  0x20   : > { %268 = vst.msk [vmem:[#allocation2 + $0x10] sm:$0xff] %vm265_vm0, %v235_v2  ;;  %v238_v5 = vld [vmem:[%s7027_s9 + $0x28] sm:$0xff]  ;;  %269 = vst.msk [vmem:[#allocation2 + $0x18] sm:$0xff] %vm265_vm0, %v236_v3  ;;  %v239_v6 = vld [vmem:[%s7027_s9 + $0x30] sm:$0xff] }
  0x21   : > { %270 = vst.msk [vmem:[#allocation2 + $0x20] sm:$0xff] %vm265_vm0, %v237_v4  ;;  %271 = vst.msk [vmem:[#allocation2 + $0x28] sm:$0xff] %vm265_vm0, %v238_v5  ;;  %v240_v7 = vld [vmem:[%s7027_s9 + $0x38] sm:$0xff]  ;;  %v241_v8 = vld [vmem:[%s7027_s9 + $0x40] sm:$0xff] }
  0x22   : > { %272 = vst.msk [vmem:[#allocation2 + $0x30] sm:$0xff] %vm265_vm0, %v239_v6  ;;  %273 = vst.msk [vmem:[#allocation2 + $0x38] sm:$0xff] %vm265_vm0, %v240_v7  ;;  %v242_v9 = vld [vmem:[%s7027_s9 + $0x48] sm:$0xff]  ;;  %v243_v10 = vld [vmem:[%s7027_s9 + $0x50] sm:$0xff] }
  0x23   : > { %274 = vst.msk [vmem:[#allocation2 + $0x40] sm:$0xff] %vm265_vm0, %v241_v8  ;;  %v244_v11 = vld [vmem:[%s7027_s9 + $0x58] sm:$0xff]  ;;  %275 = vst.msk [vmem:[#allocation2 + $0x48] sm:$0xff] %vm265_vm0, %v242_v9  ;;  %v245_v12 = vld [vmem:[%s7027_s9 + $0x60] sm:$0xff] }
  0x24   : > { %276 = vst.msk [vmem:[#allocation2 + $0x50] sm:$0xff] %vm265_vm0, %v243_v10  ;;  %277 = vst.msk [vmem:[#allocation2 + $0x58] sm:$0xff] %vm265_vm0, %v244_v11  ;;  %v246_v13 = vld [vmem:[%s7027_s9 + $0x68] sm:$0xff]  ;;  %v247_v14 = vld [vmem:[%s7027_s9 + $0x70] sm:$0xff] }
  0x25   : > { %278 = vst.msk [vmem:[#allocation2 + $0x60] sm:$0xff] %vm265_vm0, %v245_v12  ;;  %279 = vst.msk [vmem:[#allocation2 + $0x68] sm:$0xff] %vm265_vm0, %v246_v13  ;;  %v248_v15 = vld [vmem:[%s7027_s9 + $0x78] sm:$0xff]  ;;  %v249_v16 = vld [vmem:[%s7027_s9 + $0x80] sm:$0xff] }
  0x26   : > { %280 = vst.msk [vmem:[#allocation2 + $0x70] sm:$0xff] %vm265_vm0, %v247_v14  ;;  %v250_v17 = vld [vmem:[%s7027_s9 + $0x88] sm:$0xff]  ;;  %281 = vst.msk [vmem:[#allocation2 + $0x78] sm:$0xff] %vm265_vm0, %v248_v15  ;;  %v251_v18 = vld [vmem:[%s7027_s9 + $0x90] sm:$0xff] }
  0x27   : > { %282 = vst.msk [vmem:[#allocation2 + $0x80] sm:$0xff] %vm265_vm0, %v249_v16  ;;  %283 = vst.msk [vmem:[#allocation2 + $0x88] sm:$0xff] %vm265_vm0, %v250_v17  ;;  %v252_v19 = vld [vmem:[%s7027_s9 + $0x98] sm:$0xff]  ;;  %v253_v20 = vld [vmem:[%s7027_s9 + $0xa0] sm:$0xff] }
  0x28   : > { %284 = vst.msk [vmem:[#allocation2 + $0x90] sm:$0xff] %vm265_vm0, %v251_v18  ;;  %285 = vst.msk [vmem:[#allocation2 + $0x98] sm:$0xff] %vm265_vm0, %v252_v19  ;;  %v254_v21 = vld [vmem:[%s7027_s9 + $0xa8] sm:$0xff]  ;;  %v255_v22 = vld [vmem:[%s7027_s9 + $0xb0] sm:$0xff] }
  0x29   : > { %286 = vst.msk [vmem:[#allocation2 + $0xa0] sm:$0xff] %vm265_vm0, %v253_v20  ;;  %v256_v23 = vld [vmem:[%s7027_s9 + $0xb8] sm:$0xff]  ;;  %287 = vst.msk [vmem:[#allocation2 + $0xa8] sm:$0xff] %vm265_vm0, %v254_v21  ;;  %v257_v24 = vld [vmem:[%s7027_s9 + $0xc0] sm:$0xff] }
  0x2a   : > { %288 = vst.msk [vmem:[#allocation2 + $0xb0] sm:$0xff] %vm265_vm0, %v255_v22  ;;  %289 = vst.msk [vmem:[#allocation2 + $0xb8] sm:$0xff] %vm265_vm0, %v256_v23  ;;  %v258_v25 = vld [vmem:[%s7027_s9 + $0xc8] sm:$0xff]  ;;  %v259_v26 = vld [vmem:[%s7027_s9 + $0xd0] sm:$0xff]  ;;  %303 = sbr.rel (%p5275_p9) target bundleno = 603 (0x25b), region = 44 }
  0x2b   : > { %290 = vst.msk [vmem:[#allocation2 + $0xc0] sm:$0xff] %vm265_vm0, %v257_v24  ;;  %291 = vst.msk [vmem:[#allocation2 + $0xc8] sm:$0xff] %vm265_vm0, %v258_v25  ;;  %v260_v27 = vld [vmem:[%s7027_s9 + $0xd8] sm:$0xff]  ;;  %v261_v28 = vld [vmem:[%s7027_s9 + $0xe0] sm:$0xff] }
  0x2c   : > { %292 = vst.msk [vmem:[#allocation2 + $0xd0] sm:$0xff] %vm265_vm0, %v259_v26  ;;  %v262_v29 = vld [vmem:[%s7027_s9 + $0xe8] sm:$0xff]  ;;  %293 = vst.msk [vmem:[#allocation2 + $0xd8] sm:$0xff] %vm265_vm0, %v260_v27  ;;  %v263_v30 = vld [vmem:[%s7027_s9 + $0xf0] sm:$0xff] }
  0x2d   : > { %294 = vst.msk [vmem:[#allocation2 + $0xe0] sm:$0xff] %vm265_vm0, %v261_v28  ;;  %295 = vst.msk [vmem:[#allocation2 + $0xe8] sm:$0xff] %vm265_vm0, %v262_v29  ;;  %v264_v31 = vld [vmem:[%s7027_s9 + $0xf8] sm:$0xff] }
  0x2e   : > { %296 = vst.msk [vmem:[#allocation2 + $0xf0] sm:$0xff] %vm265_vm0, %v263_v30  ;;  %297 = vst.msk [vmem:[#allocation2 + $0xf8] sm:$0xff] %vm265_vm0, %v264_v31 }
  0x2f   : > { %vm338_vm1 = vcmask 254976   ;;  %v7099_v32 = vld [vmem:[#allocation2 + $0x10] sm:$0xff]  ;;  %v7101_v33 = vld [vmem:[#allocation2 + $0x18] sm:$0xff]  ;;  %v7103_v34 = vld [vmem:[#allocation2] sm:$0xff]  ;;  %v6961_v35 = vmov 0.0   ;;  %s6962_s13 = smov 32  }
  0x30   : > { %336 = vst.msk [vmem:[#allocation3] sm:$0xff] %vm265_vm0, %v6961_v35  ;;  %337 = vst.msk [vmem:[#allocation3 + $0x8] sm:$0xff] %vm265_vm0, %v6961_v35  ;;  %v7159_v36 = vld [vmem:[#allocation2 + $0x8] sm:$0xff]  ;;  %v7161_v37 = vld [vmem:[#allocation2 + $0x20] sm:$0xff]  ;;  %s6963_s14 = smov 64   ;;  %s6964_s15 = smov 96  }
  0x31   : > { %339 = vst.msk [vmem:[#allocation3 + $0x10] sm:$0x3] %vm338_vm1, %v6961_v35  ;;  %342 = vst.msk [vmem:[#allocation3 + $0x28] sm:$0x3] %vm338_vm1, %v6961_v35  ;;  %v7163_v38 = vld [vmem:[#allocation2 + $0x28] sm:$0xff]  ;;  %v7177_v39 = vld [vmem:[#allocation2 + $0x30] sm:$0xff] }
  0x32   : > { %340 = vst.msk [vmem:[#allocation3 + $0x18] sm:$0xff] %vm265_vm0, %v6961_v35  ;;  %341 = vst.msk [vmem:[#allocation3 + $0x20] sm:$0xff] %vm265_vm0, %v6961_v35  ;;  %v7179_v40 = vld [vmem:[#allocation2 + $0x38] sm:$0xff]  ;;  %v7181_v41 = vld [vmem:[#allocation2 + $0x40] sm:$0xff]  ;;  %vm1513_vm2 = vcmask 523264   ;;  %vm1546_vm3 = vcmask 785408  }
  0x33   : > { %343 = vst.msk [vmem:[#allocation3 + $0x30] sm:$0xff] %vm265_vm0, %v6961_v35  ;;  %344 = vst.msk [vmem:[#allocation3 + $0x38] sm:$0xff] %vm265_vm0, %v6961_v35  ;;  %v7187_v42 = vld [vmem:[#allocation2 + $0x48] sm:$0xff]  ;;  %v7191_v43 = vld [vmem:[#allocation2 + $0xc0] sm:$0xff] }
  0x34   : > { %345 = vst.msk [vmem:[#allocation3 + $0x40] sm:$0x3] %vm338_vm1, %v6961_v35  ;;  %348 = vst.msk [vmem:[#allocation3 + $0x58] sm:$0x3] %vm338_vm1, %v6961_v35  ;;  %v7193_v44 = vld [vmem:[#allocation2 + $0xc8] sm:$0xff]  ;;  %v7201_v45 = vld [vmem:[#allocation2 + $0xb0] sm:$0xff] }
  0x35   : > { %346 = vst.msk [vmem:[#allocation3 + $0x48] sm:$0xff] %vm265_vm0, %v6961_v35  ;;  %347 = vst.msk [vmem:[#allocation3 + $0x50] sm:$0xff] %vm265_vm0, %v6961_v35  ;;  %v7203_v46 = vld [vmem:[#allocation2 + $0xb8] sm:$0xff]  ;;  %v7205_v47 = vld [vmem:[#allocation2 + $0xd0] sm:$0xff] }
  0x36   : > { %349 = vst.msk [vmem:[#allocation3 + $0x60] sm:$0xff] %vm265_vm0, %v6961_v35  ;;  %350 = vst.msk [vmem:[#allocation3 + $0x68] sm:$0xff] %vm265_vm0, %v6961_v35  ;;  %v7211_v48 = vld [vmem:[#allocation2 + $0xd8] sm:$0xff]  ;;  %v7215_v49 = vld [vmem:[#allocation2 + $0xe0] sm:$0xff] }
  0x37   : > { %351 = vst.msk [vmem:[#allocation3 + $0x70] sm:$0x3] %vm338_vm1, %v6961_v35  ;;  %354 = vst.msk [vmem:[#allocation3 + $0x88] sm:$0x3] %vm338_vm1, %v6961_v35  ;;  %v7217_v50 = vld [vmem:[#allocation2 + $0xe8] sm:$0xff]  ;;  %v7225_v51 = vld [vmem:[#allocation2 + $0xf0] sm:$0xff] }
  0x38   : > { %352 = vst.msk [vmem:[#allocation3 + $0x78] sm:$0xff] %vm265_vm0, %v6961_v35  ;;  %353 = vst.msk [vmem:[#allocation3 + $0x80] sm:$0xff] %vm265_vm0, %v6961_v35  ;;  %v7227_v52 = vld [vmem:[#allocation2 + $0xf8] sm:$0xff]  ;;  %v7229_v53 = vld [vmem:[#allocation2 + $0x50] sm:$0xff] }
  0x39   : > { %355 = vst.msk [vmem:[#allocation3 + $0x90] sm:$0xff] %vm265_vm0, %v6961_v35  ;;  %356 = vst.msk [vmem:[#allocation3 + $0x98] sm:$0xff] %vm265_vm0, %v6961_v35  ;;  %v7235_v54 = vld [vmem:[#allocation2 + $0x58] sm:$0xff]  ;;  %v456_v55 = vld [vmem:[#allocation3 + $0x1] sm:$0xff] }
  0x3a   : > { %357 = vst.msk [vmem:[#allocation3 + $0xa0] sm:$0x3] %vm338_vm1, %v6961_v35  ;;  %360 = vst.msk [vmem:[#allocation3 + $0xb8] sm:$0x3] %vm338_vm1, %v6961_v35  ;;  %v457_v56 = vld [vmem:[#allocation3 + $0x9] sm:$0xff]  ;;  %v6410_v31 = vld [vmem:[%s9479_s2 + $0x78] sm:$0xff]  }
  0x3b   : > { %358 = vst.msk [vmem:[#allocation3 + $0xa8] sm:$0xff] %vm265_vm0, %v6961_v35  ;;  %359 = vst.msk [vmem:[#allocation3 + $0xb0] sm:$0xff] %vm265_vm0, %v6961_v35  ;;  %v5930_v57 = vpack.i.bf16 %v457_v56, %v456_v55  ;;  %v488_v15 = vld [vmem:[#allocation3 + $0x2] sm:$0xff]  ;;  %v489_v16 = vld [vmem:[#allocation3 + $0xa] sm:$0xff]  ;;  %5433 = vmatprep.subr.bf16.mxu0 %v6410_v31  ;;  %5873 = vmatprep.subr.bf16.mxu1 %v6410_v31 }
  0x3c   : > { %361 = vst.msk [vmem:[#allocation3 + $0xc0] sm:$0xff] %vm265_vm0, %v6961_v35  ;;  %362 = vst.msk [vmem:[#allocation3 + $0xc8] sm:$0xff] %vm265_vm0, %v6961_v35  ;;  %v5970_v17 = vpack.i.bf16 %v489_v16, %v488_v15  ;;  %v6411_v56 = vld [vmem:[%s9479_s2 + $0x38] sm:$0xff]   ;;  %v6415_v15 = vld [vmem:[%s9479_s2 + $0x28] sm:$0xff]  }
  0x3d   : > { %363 = vst.msk [vmem:[#allocation3 + $0xd0] sm:$0x3] %vm338_vm1, %v6961_v35  ;;  %366 = vst.msk [vmem:[#allocation3 + $0xe8] sm:$0x3] %vm338_vm1, %v6961_v35  ;;  %5931 = vrot.lane.b32.xlu0 %v5930_v57, %s6962_s13  ;;  %5434 = vmatpush3.bf16.msra.mxu0 %v6411_v56 }
  0x3e   : > { %364 = vst.msk [vmem:[#allocation3 + $0xd8] sm:$0xff] %vm265_vm0, %v6961_v35  ;;  %365 = vst.msk [vmem:[#allocation3 + $0xe0] sm:$0xff] %vm265_vm0, %v6961_v35  ;;  %5881 = vmatpush3.bf16.msra.mxu1 %v6411_v56 }
  0x3f   : > { %367 = vst.msk [vmem:[#allocation3 + $0xf0] sm:$0xff] %vm265_vm0, %v6961_v35  ;;  %368 = vst.msk [vmem:[#allocation3 + $0xf8] sm:$0xff] %vm265_vm0, %v6961_v35 }
  0x40   : > { %369 = vst.msk [vmem:[#allocation3 + $0x100] sm:$0x3] %vm338_vm1, %v6961_v35  ;;  %372 = vst.msk [vmem:[#allocation3 + $0x118] sm:$0x3] %vm338_vm1, %v6961_v35 }
  0x41   : > { %370 = vst.msk [vmem:[#allocation3 + $0x108] sm:$0xff] %vm265_vm0, %v6961_v35  ;;  %371 = vst.msk [vmem:[#allocation3 + $0x110] sm:$0xff] %vm265_vm0, %v6961_v35 }
  0x42   : > { %373 = vst.msk [vmem:[#allocation3 + $0x120] sm:$0xff] %vm265_vm0, %v6961_v35  ;;  %374 = vst.msk [vmem:[#allocation3 + $0x128] sm:$0xff] %vm265_vm0, %v6961_v35 }
  0x43   : > { %375 = vst.msk [vmem:[#allocation3 + $0x130] sm:$0x3] %vm338_vm1, %v6961_v35  ;;  %378 = vst.msk [vmem:[#allocation3 + $0x148] sm:$0x3] %vm338_vm1, %v6961_v35 }
  0x44   : > { %376 = vst.msk [vmem:[#allocation3 + $0x138] sm:$0xff] %vm265_vm0, %v6961_v35  ;;  %377 = vst.msk [vmem:[#allocation3 + $0x140] sm:$0xff] %vm265_vm0, %v6961_v35 }
  0x45   : > { %379 = vst.msk [vmem:[#allocation3 + $0x150] sm:$0xff] %vm265_vm0, %v6961_v35  ;;  %380 = vst.msk [vmem:[#allocation3 + $0x158] sm:$0xff] %vm265_vm0, %v6961_v35 }
  0x46   : > { %381 = vst.msk [vmem:[#allocation3 + $0x160] sm:$0x3] %vm338_vm1, %v6961_v35  ;;  %384 = vst.msk [vmem:[#allocation3 + $0x178] sm:$0x3] %vm338_vm1, %v6961_v35 }
  0x47   : > { %382 = vst.msk [vmem:[#allocation3 + $0x168] sm:$0xff] %vm265_vm0, %v6961_v35  ;;  %383 = vst.msk [vmem:[#allocation3 + $0x170] sm:$0xff] %vm265_vm0, %v6961_v35 }
  0x48   : > { %385 = vst.msk [vmem:[#allocation3 + $0x180] sm:$0xff] %vm265_vm0, %v6961_v35  ;;  %386 = vst.msk [vmem:[#allocation3 + $0x188] sm:$0xff] %vm265_vm0, %v6961_v35 }
  0x49   : > { %387 = vst.msk [vmem:[#allocation3 + $0x190] sm:$0x3] %vm338_vm1, %v6961_v35  ;;  %390 = vst.msk [vmem:[#allocation3 + $0x1a8] sm:$0x3] %vm338_vm1, %v6961_v35 }
  0x4a   : > { %388 = vst.msk [vmem:[#allocation3 + $0x198] sm:$0xff] %vm265_vm0, %v6961_v35  ;;  %389 = vst.msk [vmem:[#allocation3 + $0x1a0] sm:$0xff] %vm265_vm0, %v6961_v35 }
  0x4b   : > { %394 = vst.msk [vmem:[#allocation3 + $0x31] sm:$0xff] %vm265_vm0, %v7099_v32  ;;  %395 = vst.msk [vmem:[#allocation3 + $0x39] sm:$0xff] %vm265_vm0, %v7101_v33 }
  0x4c   : > { %392 = vst.msk [vmem:[#allocation3 + $0x19] sm:$0xff] %vm265_vm0, %v7103_v34  ;;  %393 = vst.msk [vmem:[#allocation3 + $0x21] sm:$0xff] %vm265_vm0, %v7159_v36 }
  0x4d   : > { %396 = vst.msk [vmem:[#allocation3 + $0x49] sm:$0xff] %vm265_vm0, %v7161_v37  ;;  %397 = vst.msk [vmem:[#allocation3 + $0x51] sm:$0xff] %vm265_vm0, %v7163_v38 }
  0x4e   : > { %398 = vst.msk [vmem:[#allocation3 + $0x61] sm:$0xff] %vm265_vm0, %v7177_v39  ;;  %399 = vst.msk [vmem:[#allocation3 + $0x69] sm:$0xff] %vm265_vm0, %v7179_v40 }
  0x4f   : > { %9526 = vst [vmem:[#allocation7_spill] sm:$0xff] %v7187_v42  ;;  %400 = vst.msk [vmem:[#allocation3 + $0x79] sm:$0xff] %vm265_vm0, %v7181_v41 }
  0x50   : > { %9527 = vst [vmem:[#allocation8_spill] sm:$0xff] %v7191_v43  ;;  %9528 = vst [vmem:[#allocation9_spill] sm:$0xff] %v7193_v44 }
  0x51   : > { %401 = vst.msk [vmem:[#allocation3 + $0x81] sm:$0xff] %vm265_vm0, %v7187_v42  ;;  %416 = vst.msk [vmem:[#allocation3 + $0x139] sm:$0xff] %vm265_vm0, %v7191_v43 }
  0x52   : > { %417 = vst.msk [vmem:[#allocation3 + $0x141] sm:$0xff] %vm265_vm0, %v7193_v44  ;;  %9529 = vst [vmem:[#allocation10_spill] sm:$0xff] %v7201_v45  ;;  %v460_v58 = vld [vmem:[#allocation3 + $0x31] sm:$0xff]  ;;  %v461_v59 = vld [vmem:[#allocation3 + $0x39] sm:$0xff] }
  0x53   : > { %9530 = vst [vmem:[#allocation11_spill] sm:$0xff] %v7203_v46  ;;  %9531 = vst [vmem:[#allocation12_spill] sm:$0xff] %v7205_v47  ;;  %v7241_v60 = vld [vmem:[#allocation3 + $0x19] sm:$0xff]  ;;  %v5940_v61 = vpack.i.bf16 %v461_v59, %v460_v58  ;;  %v7243_v62 = vld [vmem:[#allocation3 + $0x21] sm:$0xff] }
  0x54   : > { %414 = vst.msk [vmem:[#allocation3 + $0x121] sm:$0xff] %vm265_vm0, %v7201_v45  ;;  %415 = vst.msk [vmem:[#allocation3 + $0x129] sm:$0xff] %vm265_vm0, %v7203_v46  ;;  %v462_v63 = vld [vmem:[#allocation3 + $0x49] sm:$0xff]  ;;  %v463_v0 = vld [vmem:[#allocation3 + $0x51] sm:$0xff]  ;;  %v5935_v1 = vpack.i.bf16 %v7243_v62, %v7241_v60 }
  0x55   : > { %9532 = vst [vmem:[#allocation13_spill] sm:$0xff] %v7211_v48  ;;  %418 = vst.msk [vmem:[#allocation3 + $0x151] sm:$0xff] %vm265_vm0, %v7205_v47  ;;  %5941 = vrot.lane.b32.xlu1 %v5940_v61, %s6962_s13  ;;  %v7249_v2 = vpack.i.bf16 %v463_v0, %v462_v63  ;;  %v464_v3 = vld [vmem:[#allocation3 + $0x61] sm:$0xff]  ;;  %v465_v4 = vld [vmem:[#allocation3 + $0x69] sm:$0xff] }
  0x56   : > { %9533 = vst [vmem:[#allocation14_spill] sm:$0xff] %v7215_v49  ;;  %9534 = vst [vmem:[#allocation15_spill] sm:$0xff] %v7217_v50  ;;  %v466_v5 = vld [vmem:[#allocation3 + $0x79] sm:$0xff]  ;;  %5936 = vrot.lane.b32.xlu0 %v5935_v1, %s6962_s13  ;;  %v7252_v7 = vpack.i.bf16 %v465_v4, %v464_v3  ;;  %v585_v10 = vld [vmem:[#allocation3 + $0x22] sm:$0xff] }
  0x57   : > { %419 = vst.msk [vmem:[#allocation3 + $0x159] sm:$0xff] %vm265_vm0, %v7211_v48  ;;  %420 = vst.msk [vmem:[#allocation3 + $0x169] sm:$0xff] %vm265_vm0, %v7215_v49  ;;  %v584_v9 = vld [vmem:[#allocation3 + $0x1a] sm:$0xff]  ;;  %v7258_v11 = vld [vmem:[#allocation3 + $0x30] sm:$0xff] }
  0x58   : > { %421 = vst.msk [vmem:[#allocation3 + $0x171] sm:$0xff] %vm265_vm0, %v7217_v50  ;;  %9535 = vst [vmem:[#allocation16_spill] sm:$0xff] %v7225_v51  ;;  %v467_v6 = vld [vmem:[#allocation3 + $0x81] sm:$0xff]  ;;  %v7260_v12 = vld [vmem:[#allocation3 + $0x38] sm:$0xff]  ;;  %v7264_v13 = vpack.i.bf16 %v585_v10, %v584_v9 }
  0x59   : > { %9536 = vst [vmem:[#allocation17_spill] sm:$0xff] %v7227_v52  ;;  %422 = vst.msk [vmem:[#allocation3 + $0x181] sm:$0xff] %vm265_vm0, %v7225_v51  ;;  %5946 = vrot.lane.b32.xlu1 %v7249_v2, %s6962_s13  ;;  %v7256_v8 = vpack.i.bf16 %v467_v6, %v466_v5  ;;  %v7270_v14 = vpack.i.bf16 %v7260_v12, %v7258_v11  ;;  %v7276_v18 = vld [vmem:[#allocation3 + $0x18] sm:$0xff]  ;;  %v7278_v19 = vld [vmem:[#allocation3 + $0x20] sm:$0xff] }
  0x5a   : > { %423 = vst.msk [vmem:[#allocation3 + $0x189] sm:$0xff] %vm265_vm0, %v7227_v52  ;;  %402 = vst.msk [vmem:[#allocation3 + $0x91] sm:$0xff] %vm265_vm0, %v7229_v53  ;;  %5951 = vrot.lane.b32.xlu0 %v7252_v7, %s6962_s13  ;;  %v608_v20 = vld [vmem:[#allocation3 + $0x13a] sm:$0xff]  ;;  %v609_v21 = vld [vmem:[#allocation3 + $0x142] sm:$0xff]  ;;  %v5980_v22 = vpack.i.bf16 %v7278_v19, %v7276_v18 }
  0x5b   : > { %403 = vst.msk [vmem:[#allocation3 + $0x99] sm:$0xff] %vm265_vm0, %v7235_v54  ;;  %v7284_v23 = vpack.i.bf16 %v609_v21, %v608_v20  ;;  %v480_v24 = vld [vmem:[#allocation3 + $0x121] sm:$0xff]  ;;  %v481_v25 = vld [vmem:[#allocation3 + $0x129] sm:$0xff]  ;;  %v7301_v58 = vld [vmem:[#allocation3 + $0x138] sm:$0xff] }
  0x5c   : > { %v641_v26 = vld [vmem:[#allocation3 + $0x150] sm:$0xff]  ;;  %v512_v28 = vld [vmem:[#allocation3 + $0x122] sm:$0xff]  ;;  %v5990_v29 = vpack.i.bf16 %v481_v25, %v480_v24  ;;  %v587_v6 = vld [vmem:[#allocation3 + $0x3a] sm:$0xff] }
  0x5d   : > { %5956 = vrot.lane.b32.xlu1 %v7256_v8, %s6962_s13  ;;  %v513_v30 = vld [vmem:[#allocation3 + $0x12a] sm:$0xff]  ;;  %v7303_v59 = vld [vmem:[#allocation3 + $0x140] sm:$0xff]  ;;  %v586_v5 = vld [vmem:[#allocation3 + $0x32] sm:$0xff] }
  0x5e   : > { %5961 = vrot.lane.b32.xlu0 %v7264_v13, %s6962_s13  ;;  %v642_v27 = vld [vmem:[#allocation3 + $0x158] sm:$0xff]  ;;  %v7308_v63 = vld [vmem:[#allocation2 + $0x60] sm:$0xff]  ;;  %v7310_v0 = vld [vmem:[#allocation2 + $0x68] sm:$0xff]  ;;  %v6000_v1 = vpack.i.bf16 %v513_v30, %v512_v28  ;;  %v6010_v16 = vpack.i.bf16 %v7303_v59, %v7301_v58  ;;  %v7340_v20 = vpack.i.bf16 %v587_v6, %v586_v5 }
  0x5f   : > { %v7292_v35 = vpack.i.bf16 %v642_v27, %v641_v26  ;;  %v7294_v55 = vld [vmem:[#allocation3 + $0x151] sm:$0xff]  ;;  %v7299_v57 = vld [vmem:[#allocation3 + $0x159] sm:$0xff]  ;;  %9537 = vst [vmem:[#allocation18_spill] sm:$0xff] %v7308_v63  ;;  %9538 = vst [vmem:[#allocation19_spill] sm:$0xff] %v7310_v0 }
  0x60   : > { %404 = vst.msk [vmem:[#allocation3 + $0xa9] sm:$0xff] %vm265_vm0, %v7308_v63  ;;  %405 = vst.msk [vmem:[#allocation3 + $0xb1] sm:$0xff] %vm265_vm0, %v7310_v0  ;;  %v6413_v3 = vld [vmem:[%s9479_s2 + $0x30] sm:$0xff]   ;;  %v7324_v4 = vpack.i.bf16 %v7299_v57, %v7294_v55  ;;  %v6414_v9 = vld [vmem:[%s9479_s2 + $0x68] sm:$0xff]  }
  0x61   : > { %5966 = vrot.lane.b32.xlu1 %v7270_v14, %s6963_s14  ;;  %v619_v10 = vld [vmem:[#allocation3 + $0x48] sm:$0xff]  ;;  %v7342_v21 = vld [vmem:[#allocation3 + $0x50] sm:$0xff]  ;;  %v6417_v24 = vld [vmem:[%s9479_s2 + $0x20] sm:$0xff]  }
  0x62   : > { %5971 = vrot.lane.b32.xlu0 %v5970_v17, %s6963_s14  ;;  %v6416_v17 = vld [vmem:[%s9479_s2 + $0x60] sm:$0xff]   ;;  %v7353_v25 = vpack.i.bf16 %v7342_v21, %v619_v10  ;;  %v6418_v26 = vld [vmem:[%s9479_s2 + $0x58] sm:$0xff]   ;;  %v6420_v30 = vld [vmem:[%s9479_s2 + $0x50] sm:$0xff]  }
  0x63   : > { %v7360_v27 = vld [vmem:[#allocation2 + $0x78] sm:$0xff]  ;;  %v7388_v5 = vld [vmem:[#allocation2 + $0x80] sm:$0xff]  ;;  %v7390_v6 = vld [vmem:[#allocation2 + $0x88] sm:$0xff] }
  0x64   : > { %9540 = vst [vmem:[#allocation21_spill] sm:$0xff] %v7360_v27  ;;  %407 = vst.msk [vmem:[#allocation3 + $0xc9] sm:$0xff] %vm265_vm0, %v7360_v27  ;;  %v610_v28 = vld [vmem:[#allocation3 + $0x152] sm:$0xff]  ;;  %v611_v31 = vld [vmem:[#allocation3 + $0x15a] sm:$0xff] }
  0x65   : > { %5976 = vrot.lane.b32.xlu1 %v5940_v61, %s6964_s15  ;;  %v6412_v61 = vld [vmem:[%s9479_s2 + $0x70] sm:$0xff]   ;;  %v7374_v56 = vld [vmem:[#allocation3 + $0x139] sm:$0xff]  ;;  %9541 = vst [vmem:[#allocation22_spill] sm:$0xff] %v7388_v5  ;;  %9542 = vst [vmem:[#allocation23_spill] sm:$0xff] %v7390_v6 }
  0x66   : > { %5981 = vrot.lane.b32.xlu0 %v5980_v22, %s6964_s15  ;;  %5435 = vmatprep.subr.bf16.mxu0 %v6412_v61  ;;  %v7344_v22 = vld [vmem:[#allocation2 + $0x70] sm:$0xff]  ;;  %v643_v10 = vld [vmem:[#allocation3 + $0x168] sm:$0xff]  ;;  %408 = vst.msk [vmem:[#allocation3 + $0xd9] sm:$0xff] %vm265_vm0, %v7388_v5  ;;  %409 = vst.msk [vmem:[#allocation3 + $0xe1] sm:$0xff] %vm265_vm0, %v7390_v6 }
  0x67   : > { %5874 = vmatprep.subr.bf16.mxu1 %v6412_v61  ;;  %5436 = vmatpush3.bf16.msra.mxu0 %v6413_v3  ;;  %9539 = vst [vmem:[#allocation20_spill] sm:$0xff] %v7344_v22  ;;  %406 = vst.msk [vmem:[#allocation3 + $0xc1] sm:$0xff] %vm265_vm0, %v7344_v22  ;;  %v7376_v61 = vld [vmem:[#allocation3 + $0x141] sm:$0xff] }
  0x68   : > { %5882 = vmatpush3.bf16.msra.mxu1 %v6413_v3  ;;  %5437 = vmatprep.subr.bf16.mxu0 %v6414_v9  ;;  %v6422_v3 = vld [vmem:[%s9479_s2 + $0x48] sm:$0xff]  }
  0x69   : > { %5986 = vrot.lane.b32.xlu1 %v7284_v23, %s6962_s13  ;;  %5875 = vmatprep.subr.bf16.mxu1 %v6414_v9  ;;  %v6045_v9 = vpack.i.bf16 %v7376_v61, %v7374_v56  ;;  %v590_v45 = vld [vmem:[#allocation3 + $0x62] sm:$0xff] }
  0x6a   : > { %5991 = vrot.lane.b32.xlu0 %v5990_v29, %s6962_s13  ;;  %v6419_v29 = vld [vmem:[%s9479_s2 + $0x18] sm:$0xff]   ;;  %v425_v44 = vld [vmem:[#allocation3 + $0x8] sm:$0xff] }
  0x6b   : > { %5438 = vmatpush3.bf16.msra.mxu0 %v6415_v15 }
  0x6c   : > { %5883 = vmatpush3.bf16.msra.mxu1 %v6415_v15  ;;  %5439 = vmatprep.subr.bf16.mxu0 %v6416_v17  ;;  %v644_v15 = vld [vmem:[#allocation3 + $0x170] sm:$0xff] }
  0x6d   : > { %5996 = vrot.lane.b32.xlu1 %v7292_v35, %s6963_s14  ;;  %5876 = vmatprep.subr.bf16.mxu1 %v6416_v17  ;;  %v6424_v17 = vld [vmem:[%s9479_s2 + $0x40] sm:$0xff]   ;;  %v631_v52 = vld [vmem:[#allocation3 + $0xd8] sm:$0xff] }
  0x6e   : > { %6001 = vrot.lane.b32.xlu0 %v6000_v1, %s6963_s14  ;;  %v6421_v1 = vld [vmem:[%s9479_s2 + $0x10] sm:$0xff]   ;;  %v632_v49 = vld [vmem:[#allocation3 + $0xe0] sm:$0xff] }
  0x6f   : > { %5440 = vmatpush3.bf16.msra.mxu0 %v6417_v24 }
  0x70   : > { %5884 = vmatpush3.bf16.msra.mxu1 %v6417_v24  ;;  %5441 = vmatprep.subr.bf16.mxu0 %v6418_v26  ;;  %v7408_v24 = vld [vmem:[#allocation2 + $0x90] sm:$0xff] }
  0x71   : > { %6006 = vrot.lane.b32.xlu1 %v7324_v4, %s6964_s15  ;;  %5877 = vmatprep.subr.bf16.mxu1 %v6418_v26  ;;  %9543 = vst [vmem:[#allocation24_spill] sm:$0xff] %v7408_v24  ;;  %v7410_v26 = vld [vmem:[#allocation2 + $0x98] sm:$0xff]  ;;  %410 = vst.msk [vmem:[#allocation3 + $0xf1] sm:$0xff] %vm265_vm0, %v7408_v24 }
  0x72   : > { %6011 = vrot.lane.b32.xlu0 %v6010_v16, %s6964_s15  ;;  %v6423_v16 = vld [vmem:[%s9479_s2 + $0x8] sm:$0xff]   ;;  %9544 = vst [vmem:[#allocation25_spill] sm:$0xff] %v7410_v26  ;;  %411 = vst.msk [vmem:[#allocation3 + $0xf9] sm:$0xff] %vm265_vm0, %v7410_v26 }
  0x73   : > { %5442 = vmatpush3.bf16.msra.mxu0 %v6419_v29  ;;  %v599_v26 = vld [vmem:[#allocation3 + $0xca] sm:$0xff] }
  0x74   : > { %5885 = vmatpush3.bf16.msra.mxu1 %v6419_v29  ;;  %5443 = vmatprep.subr.bf16.mxu0 %v6420_v30  ;;  %v7417_v29 = vld [vmem:[#allocation2 + $0xa0] sm:$0xff] }
  0x75   : > { %6016 = vrot.lane.b32.xlu1 %v7340_v20, %s6962_s13  ;;  %5878 = vmatprep.subr.bf16.mxu1 %v6420_v30  ;;  %9545 = vst [vmem:[#allocation26_spill] sm:$0xff] %v7417_v29  ;;  %v7419_v30 = vld [vmem:[#allocation2 + $0xa8] sm:$0xff]  ;;  %412 = vst.msk [vmem:[#allocation3 + $0x109] sm:$0xff] %vm265_vm0, %v7417_v29 }
  0x76   : > { %6021 = vrot.lane.b32.xlu0 %v7353_v25, %s6963_s14  ;;  %9546 = vst [vmem:[#allocation27_spill] sm:$0xff] %v7419_v30  ;;  %413 = vst.msk [vmem:[#allocation3 + $0x111] sm:$0xff] %vm265_vm0, %v7419_v30  ;;  %v591_v30 = vld [vmem:[#allocation3 + $0x6a] sm:$0xff] }
  0x77   : > { %5444 = vmatpush3.bf16.msra.mxu0 %v6421_v1 }
  0x78   : > { %5886 = vmatpush3.bf16.msra.mxu1 %v6421_v1  ;;  %5445 = vmatprep.subr.bf16.mxu0 %v6422_v3 }
  0x79   : > { %6026 = vrot.lane.b32.xlu1 %v7264_v13, %s6963_s14  ;;  %v7386_v13 = vpack.i.bf16 %v611_v31, %v610_v28  ;;  %v676_v28 = vld [vmem:[#allocation3 + $0x171] sm:$0xff]  ;;  %5879 = vmatprep.subr.bf16.mxu1 %v6422_v3  ;;  %v6425_v31 = vld [vmem:[%s9479_s2] sm:$0xff]  }
  0x7a   : > { %6031 = vrot.lane.b32.xlu0 %v7249_v2, %s6964_s15  ;;  %v675_v2 = vld [vmem:[#allocation3 + $0x169] sm:$0xff] }
  0x7b   : > { %5446 = vmatpush3.bf16.msra.mxu0 %v6423_v16  ;;  %v6060_v1 = vpack.i.bf16 %v676_v28, %v675_v2  ;;  %v588_v3 = vld [vmem:[#allocation3 + $0x4a] sm:$0xff]  ;;  %v645_v28 = vld [vmem:[#allocation3 + $0x180] sm:$0xff] }
  0x7c   : > { %5887 = vmatpush3.bf16.msra.mxu1 %v6423_v16  ;;  %5447 = vmatprep.subr.bf16.mxu0 %v6424_v17  ;;  %v613_v16 = vld [vmem:[#allocation3 + $0x172] sm:$0xff] }
  0x7d   : > { %6036 = vrot.lane.b32.xlu1 %v7270_v14, %s6964_s15  ;;  %v6050_v14 = vpack.i.bf16 %v644_v15, %v643_v10  ;;  %5880 = vmatprep.subr.bf16.mxu1 %v6424_v17  ;;  %v7431_v10 = vld [vmem:[#allocation3 + $0x60] sm:$0xff]  ;;  %v7433_v15 = vld [vmem:[#allocation3 + $0x68] sm:$0xff] }
  0x7e   : > { %6041 = vrot.lane.b32.xlu0 %v7386_v13, %s6962_s13  ;;  %v6075_v2 = vpack.i.bf16 %v7433_v15, %v7431_v10 }
  0x7f   : > { %5448 = vmatpush3.bf16.msra.mxu0 %v6425_v31 }
  0x80   : > { %5888 = vmatpush3.bf16.msra.mxu1 %v6425_v31  ;;  %v646_v31 = vld [vmem:[#allocation3 + $0x188] sm:$0xff] }
  0x81   : > { %6046 = vrot.lane.b32.xlu1 %v6045_v9, %s6962_s13  ;;  %v589_v9 = vld [vmem:[#allocation3 + $0x52] sm:$0xff] }
  0x82   : > { %6051 = vrot.lane.b32.xlu0 %v6050_v14, %s6963_s14  ;;  %v6070_v46 = vpack.i.bf16 %v589_v9, %v588_v3  ;;  %v677_v3 = vld [vmem:[#allocation3 + $0x181] sm:$0xff]  ;;  %v678_v9 = vld [vmem:[#allocation3 + $0x189] sm:$0xff] }
  0x85   : > { %6056 = vrot.lane.b32.xlu1 %v7284_v23, %s6963_s14  ;;  %v612_v23 = vld [vmem:[#allocation3 + $0x16a] sm:$0xff] }
  0x86   : > { %6061 = vrot.lane.b32.xlu0 %v6060_v1, %s6964_s15  ;;  %v6095_v17 = vpack.i.bf16 %v613_v16, %v612_v23  ;;  %v7457_v23 = vld [vmem:[#allocation3 + $0x80] sm:$0xff] }
  0x87   : > { %v614_v16 = vld [vmem:[#allocation3 + $0x182] sm:$0xff] }
  0x89   : > { %6066 = vrot.lane.b32.xlu1 %v7292_v35, %s6964_s15  ;;  %v6105_v35 = vpack.i.bf16 %v646_v31, %v645_v28  ;;  %v648_v28 = vld [vmem:[#allocation3 + $0x1a0] sm:$0xff] }
  0x8a   : > { %6071 = vrot.lane.b32.xlu0 %v6070_v46, %s6962_s13 }
  0x8d   : > { %6076 = vrot.lane.b32.xlu1 %v6075_v2, %s6963_s14 }
  0x8e   : > { %6081 = vrot.lane.b32.xlu0 %v7340_v20, %s6963_s14  ;;  %v6115_v20 = vpack.i.bf16 %v678_v9, %v677_v3  ;;  %v680_v3 = vld [vmem:[#allocation3 + $0x1a1] sm:$0xff] }
  0x8f   : > { %v593_v9 = vld [vmem:[#allocation3 + $0x82] sm:$0xff] }
  0x91   : > { %6086 = vrot.lane.b32.xlu1 %v7252_v7, %s6964_s15  ;;  %v6125_v7 = vpack.i.bf16 %v591_v30, %v590_v45  ;;  %v647_v30 = vld [vmem:[#allocation3 + $0x198] sm:$0xff] }
  0x92   : > { %6091 = vrot.lane.b32.xlu0 %v7353_v25, %s6964_s15  ;;  %v7455_v25 = vld [vmem:[#allocation3 + $0x78] sm:$0xff]  ;;  %v6160_v31 = vpack.i.bf16 %v648_v28, %v647_v30 }
  0x93   : > { %v658_v30 = vld [vmem:[#allocation3 + $0x99] sm:$0xff] }
  0x95   : > { %6096 = vrot.lane.b32.xlu1 %v6095_v17, %s6962_s13 }
  0x96   : > { %6101 = vrot.lane.b32.xlu0 %v7324_v4, %s6962_s13  ;;  %v6130_v4 = vpack.i.bf16 %v7457_v23, %v7455_v25 }
  0x99   : > { %6106 = vrot.lane.b32.xlu1 %v6105_v35, %s6963_s14 }
  0x9a   : > { %6111 = vrot.lane.b32.xlu0 %v7386_v13, %s6963_s14  ;;  %v615_v13 = vld [vmem:[#allocation3 + $0x18a] sm:$0xff] }
  0x9b   : > { %v6150_v45 = vpack.i.bf16 %v615_v13, %v614_v16  ;;  %v626_v16 = vld [vmem:[#allocation3 + $0x98] sm:$0xff] }
  0x9d   : > { %6116 = vrot.lane.b32.xlu1 %v6115_v20, %s6964_s15  ;;  %v625_v20 = vld [vmem:[#allocation3 + $0x90] sm:$0xff] }
  0x9e   : > { %6121 = vrot.lane.b32.xlu0 %v6050_v14, %s6964_s15  ;;  %v7471_v14 = vld [vmem:[%s9479_s2 + $0x88] sm:$0xff]  }
  0x9f   : > { %5729 = vmatprep.subr.bf16.mxu1 %v7471_v14 }
  0xa1   : > { %6126 = vrot.lane.b32.xlu1 %v6125_v7, %s6962_s13 }
  0xa2   : > { %6131 = vrot.lane.b32.xlu0 %v6130_v4, %s6963_s14 }
  0xa5   : > { %6136 = vrot.lane.b32.xlu1 %v6070_v46, %s6963_s14  ;;  %v679_v46 = vld [vmem:[#allocation3 + $0x199] sm:$0xff] }
  0xa6   : > { %6141 = vrot.lane.b32.xlu0 %v7256_v8, %s6964_s15  ;;  %v6170_v8 = vpack.i.bf16 %v680_v3, %v679_v46  ;;  %v595_v46 = vld [vmem:[#allocation3 + $0x9a] sm:$0xff]  ;;  %v627_v3 = vld [vmem:[#allocation3 + $0xa8] sm:$0xff] }
  0xa9   : > { %6146 = vrot.lane.b32.xlu1 %v6075_v2, %s6964_s15  ;;  %v592_v2 = vld [vmem:[#allocation3 + $0x7a] sm:$0xff] }
  0xaa   : > { %6151 = vrot.lane.b32.xlu0 %v6150_v45, %s6962_s13  ;;  %v6180_v13 = vpack.i.bf16 %v593_v9, %v592_v2  ;;  %v6185_v45 = vpack.i.bf16 %v626_v16, %v625_v20  ;;  %v659_v2 = vld [vmem:[#allocation3 + $0xa9] sm:$0xff]  ;;  %v660_v9 = vld [vmem:[#allocation3 + $0xb1] sm:$0xff] }
  0xab   : > { %v6220_v20 = vpack.i.bf16 %v660_v9, %v659_v2  ;;  %v596_v16 = vld [vmem:[#allocation3 + $0xaa] sm:$0xff]  ;;  %v661_v2 = vld [vmem:[#allocation3 + $0xc1] sm:$0xff] }
  0xac   : > { %v662_v9 = vld [vmem:[#allocation3 + $0xc9] sm:$0xff] }
  0xad   : > { %6156 = vrot.lane.b32.xlu1 %v6060_v1, %s6962_s13  ;;  %v657_v1 = vld [vmem:[#allocation3 + $0x91] sm:$0xff] }
  0xae   : > { %6161 = vrot.lane.b32.xlu0 %v6160_v31, %s6963_s14  ;;  %v6195_v28 = vpack.i.bf16 %v658_v30, %v657_v1  ;;  %v594_v31 = vld [vmem:[#allocation3 + $0x92] sm:$0xff] }
  0xaf   : > { %v597_v1 = vld [vmem:[#allocation3 + $0xb2] sm:$0xff] }
  0xb1   : > { %6166 = vrot.lane.b32.xlu1 %v6095_v17, %s6963_s14  ;;  %v6205_v17 = vpack.i.bf16 %v595_v46, %v594_v31  ;;  %v7491_v31 = vpack.i.bf16 %v597_v1, %v596_v16  ;;  %v630_v46 = vld [vmem:[#allocation3 + $0xc8] sm:$0xff] }
  0xb2   : > { %6171 = vrot.lane.b32.xlu0 %v6170_v8, %s6964_s15  ;;  %v628_v8 = vld [vmem:[#allocation3 + $0xb0] sm:$0xff]  ;;  %v598_v1 = vld [vmem:[#allocation3 + $0xc2] sm:$0xff] }
  0xb5   : > { %6176 = vrot.lane.b32.xlu1 %v6105_v35, %s6964_s15  ;;  %v6210_v35 = vpack.i.bf16 %v628_v8, %v627_v3 }
  0xb6   : > { %6181 = vrot.lane.b32.xlu0 %v6180_v13, %s6962_s13 }
  0xb9   : > { %6186 = vrot.lane.b32.xlu1 %v6185_v45, %s6963_s14 }
  0xba   : > { %6191 = vrot.lane.b32.xlu0 %v6125_v7, %s6963_s14  ;;  %v5932_v7 = vpop.permute.xlu0 %5931 }
  0xbb   : > { %v5933_v5 = vunpack.i.l.bf16 %v5932_v7 }
  0xbd   : > { %6196 = vrot.lane.b32.xlu1 %v6195_v28, %s6964_s15 }
  0xbe   : > { %6201 = vrot.lane.b32.xlu0 %v6130_v4, %s6964_s15  ;;  %v629_v4 = vld [vmem:[#allocation3 + $0xc0] sm:$0xff] }
  0xc1   : > { %6206 = vrot.lane.b32.xlu1 %v6205_v17, %s6962_s13 }
  0xc2   : > { %6211 = vrot.lane.b32.xlu0 %v6210_v35, %s6963_s14 }
  0xc5   : > { %6216 = vrot.lane.b32.xlu1 %v6180_v13, %s6963_s14  ;;  %v7500_v13 = vpack.i.bf16 %v630_v46, %v629_v4 }
  0xc6   : > { %6221 = vrot.lane.b32.xlu0 %v6220_v20, %s6964_s15 }
  0xc7   : > { %v7488_v30 = vpop.permute.xlu1 %5941 }
  0xc8   : > { %v7494_v3 = vpop.permute.xlu0 %5936 }
  0xc9   : > { %6226 = vrot.lane.b32.xlu1 %v6185_v45, %s6964_s15  ;;  %v7509_v45 = vpack.i.bf16 %v662_v9, %v661_v2  ;;  %v5934_v2 = vunpack.i.h.bf16 %v5932_v7  ;;  %v664_v7 = vld [vmem:[#allocation3 + $0xe1] sm:$0xff] }
  0xca   : > { %6231 = vrot.lane.b32.xlu0 %v7491_v31, %s6962_s13 }
  0xcb   : > { %v7496_v8 = vpop.permute.xlu1 %5946 }
  0xcc   : > { %v7503_v29 = vpop.permute.xlu0 %5951 }
  0xcd   : > { %6236 = vrot.lane.b32.xlu1 %v6195_v28, %s6962_s13  ;;  %v7514_v28 = vpack.i.bf16 %v599_v26, %v598_v1  ;;  %v7521_v26 = vpack.i.bf16 %v632_v49, %v631_v52  ;;  %v424_v1 = vld [vmem:[#allocation3] sm:$0xff]  ;;  %v1482_v49 = vsel %vm265_vm0, %v425_v44, %v5934_v2 }
  0xce   : > { %6241 = vrot.lane.b32.xlu0 %v7500_v13, %s6963_s14  ;;  %v7544_v2 = vld [vmem:[#allocation3 + $0xe2] sm:$0xff] }
  0xcf   : > { %v7505_v16 = vpop.permute.xlu1 %5956 }
  0xd0   : > { %v5962_v24 = vpop.permute.xlu0 %5961 }
  0xd1   : > { %6246 = vrot.lane.b32.xlu1 %v6205_v17, %s6963_s14  ;;  %v5964_v4 = vunpack.i.h.bf16 %v5962_v24  ;;  %v5963_v46 = vunpack.i.l.bf16 %v5962_v24 }
  0xd2   : > { %6251 = vrot.lane.b32.xlu0 %v7509_v45, %s6964_s15 }
  0xd3   : > { %v5967_v50 = vpop.permute.xlu1 %5966  ;;  %v1580_v17 = vsel %vm265_vm0, %v7243_v62, %v5964_v4  ;;  %v1579_v9 = vsel %vm265_vm0, %v7241_v60, %v5963_v46  ;;  %v663_v4 = vld [vmem:[#allocation3 + $0xd9] sm:$0xff] }
  0xd4   : > { %v5969_v6 = vunpack.i.h.bf16 %v5967_v50  ;;  %v5968_v51 = vunpack.i.l.bf16 %v5967_v50  ;;  %v5972_v24 = vpop.permute.xlu0 %5971 }
  0xd5   : > { %6256 = vrot.lane.b32.xlu1 %v6210_v35, %s6964_s15  ;;  %v5974_v43 = vunpack.i.h.bf16 %v5972_v24  ;;  %v5973_v50 = vunpack.i.l.bf16 %v5972_v24 }
  0xd6   : > { %6261 = vrot.lane.b32.xlu0 %v7514_v28, %s6962_s13  ;;  %v1611_v60 = vsel %vm1513_vm2, %v1579_v9, %v5968_v51  ;;  %v1612_v62 = vsel %vm1513_vm2, %v1580_v17, %v5969_v6  ;;  %v7536_v6 = vpack.i.bf16 %v664_v7, %v663_v4  ;;  %v7558_v7 = vld [vmem:[#allocation3 + $0x128] sm:$0xff] }
  0xd7   : > { %v5977_v48 = vpop.permute.xlu1 %5976 }
  0xd8   : > { %v5979_v47 = vunpack.i.h.bf16 %v5977_v48  ;;  %v5978_v35 = vunpack.i.l.bf16 %v5977_v48  ;;  %v5982_v52 = vpop.permute.xlu0 %5981  ;;  %v1481_v48 = vsel %vm265_vm0, %v424_v1, %v5933_v5  ;;  %v7542_v5 = vld [vmem:[#allocation3 + $0xda] sm:$0xff] }
  0xd9   : > { %6266 = vrot.lane.b32.xlu1 %v6220_v20, %s6962_s13  ;;  %v5984_v27 = vunpack.i.h.bf16 %v5982_v52  ;;  %v5983_v22 = vunpack.i.l.bf16 %v5982_v52  ;;  %v1515_v20 = vsel %vm1513_vm2, %v1482_v49, %v5974_v43  ;;  %v1514_v51 = vsel %vm1513_vm2, %v1481_v48, %v5973_v50 }
  0xda   : > { %v1643_v46 = vsel %vm1546_vm3, %v1611_v60, %v5978_v35  ;;  %v1644_v24 = vsel %vm1546_vm3, %v1612_v62, %v5979_v47  ;;  %6271 = vrot.lane.b32.xlu0 %v7521_v26, %s6963_s14 }
  0xdb   : > { %v5987_v0 = vpop.permute.xlu1 %5986  ;;  %v1676_v63 = vpack.c.bf16 %v1644_v24, %v1643_v46  ;;  %v1547_v44 = vsel %vm1546_vm3, %v1514_v51, %v5983_v22  ;;  %v1548_v47 = vsel %vm1546_vm3, %v1515_v20, %v5984_v27  ;;  %v633_v22 = vld [vmem:[#allocation3 + $0xf0] sm:$0xff]  ;;  %v7562_v24 = vld [vmem:[#allocation3 + $0x120] sm:$0xff] }
  0xdc   : > { %v5992_v43 = vpop.permute.xlu0 %5991  ;;  %v1675_v17 = vpack.c.bf16 %v1548_v47, %v1547_v44  ;;  %v5989_v9 = vunpack.i.h.bf16 %v5987_v0  ;;  %v5988_v1 = vunpack.i.l.bf16 %v5987_v0  ;;  %v665_v44 = vld [vmem:[#allocation3 + $0xf1] sm:$0xff]  ;;  %v666_v47 = vld [vmem:[#allocation3 + $0xf9] sm:$0xff] }
  0xdd   : > { %6276 = vrot.lane.b32.xlu1 %v7491_v31, %s6963_s14  ;;  %1954 = vmatprep.mubr.bf16.mxu0 %v1676_v63  ;;  %v7550_v63 = vpack.i.bf16 %v7544_v2, %v7542_v5  ;;  %v634_v31 = vld [vmem:[#allocation3 + $0xf8] sm:$0xff]  ;;  %v5994_v60 = vunpack.i.h.bf16 %v5992_v43  ;;  %v5993_v49 = vunpack.i.l.bf16 %v5992_v43 }
  0xde   : > { %6281 = vrot.lane.b32.xlu0 %v7536_v6, %s6964_s15  ;;  %1955 = vmatmul.mubr.bf16.vlgmr.msra.gmra.mxu0 %v1675_v17  ;;  %v1604_v0 = vsel %vm265_vm0, %v7376_v61, %v5989_v9  ;;  %v1603_v4 = vsel %vm265_vm0, %v7374_v56, %v5988_v1  ;;  %v7560_v46 = vpack.i.bf16 %v634_v31, %v633_v22 }
  0xdf   : > { %v5997_v50 = vpop.permute.xlu1 %5996  ;;  %v1506_v43 = vsel %vm265_vm0, %v7558_v7, %v5994_v60  ;;  %v7580_v60 = vpack.i.bf16 %v666_v47, %v665_v44 }
  0xe0   : > { %v5999_v27 = vunpack.i.h.bf16 %v5997_v50  ;;  %v5998_v35 = vunpack.i.l.bf16 %v5997_v50  ;;  %v6002_v62 = vpop.permute.xlu0 %6001  ;;  %v1505_v50 = vsel %vm265_vm0, %v7562_v24, %v5993_v49  ;;  %v7586_v49 = vld [vmem:[#allocation3 + $0xf2] sm:$0xff] }
  0xe1   : > { %6286 = vrot.lane.b32.xlu1 %v7500_v13, %s6964_s15  ;;  %v6004_v48 = vunpack.i.h.bf16 %v6002_v62  ;;  %v6003_v20 = vunpack.i.l.bf16 %v6002_v62 }
  0xe2   : > { %6291 = vrot.lane.b32.xlu0 %v7550_v63, %s6962_s13  ;;  %v1635_v56 = vsel %vm1513_vm2, %v1603_v4, %v5998_v35  ;;  %v1636_v61 = vsel %vm1513_vm2, %v1604_v0, %v5999_v27 }
  0xe3   : > { %v6007_v52 = vpop.permute.xlu1 %6006  ;;  %v1538_v35 = vsel %vm1513_vm2, %v1505_v50, %v6003_v20  ;;  %v1539_v27 = vsel %vm1513_vm2, %v1506_v43, %v6004_v48  ;;  %v5939_v20 = vunpack.i.h.bf16 %v7494_v3  ;;  %v5938_v48 = vunpack.i.l.bf16 %v7494_v3 }
  0xe4   : > { %v6009_v51 = vunpack.i.h.bf16 %v6007_v52  ;;  %v6008_v13 = vunpack.i.l.bf16 %v6007_v52  ;;  %v6012_v17 = vpop.permute.xlu0 %6011  ;;  %v7588_v52 = vld [vmem:[#allocation3 + $0xfa] sm:$0xff] }
  0xe5   : > { %6296 = vrot.lane.b32.xlu1 %v7509_v45, %s6962_s13  ;;  %v6014_v22 = vunpack.i.h.bf16 %v6012_v17  ;;  %v6013_v31 = vunpack.i.l.bf16 %v6012_v17  ;;  %v635_v17 = vld [vmem:[#allocation3 + $0x108] sm:$0xff]  ;;  %v7599_v3 = vpack.i.bf16 %v7588_v52, %v7586_v49 }
  0xe6   : > { %v1667_v9 = vsel %vm1546_vm3, %v1635_v56, %v6008_v13  ;;  %v1668_v1 = vsel %vm1546_vm3, %v1636_v61, %v6009_v51  ;;  %6301 = vrot.lane.b32.xlu0 %v7560_v46, %s6963_s14  ;;  %v6427_v61 = vld [vmem:[%s9479_s2 + $0x80] sm:$0xff]  }
  0xe7   : > { %v6017_v45 = vpop.permute.xlu1 %6016  ;;  %v1712_v62 = vpack.c.bf16 %v1668_v1, %v1667_v9  ;;  %v1571_v0 = vsel %vm1546_vm3, %v1538_v35, %v6013_v31  ;;  %v1572_v4 = vsel %vm1546_vm3, %v1539_v27, %v6014_v22  ;;  %v636_v9 = vld [vmem:[#allocation3 + $0x110] sm:$0xff] }
  0xe8   : > { %v6019_v51 = vunpack.i.h.bf16 %v6017_v45  ;;  %v6022_v13 = vpop.permute.xlu0 %6021  ;;  %v1711_v56 = vpack.c.bf16 %v1572_v4, %v1571_v0  ;;  %v6018_v44 = vunpack.i.l.bf16 %v6017_v45  ;;  %v554_v1 = vld [vmem:[#allocation3 + $0x31] sm:$0xff]  ;;  %v1483_v45 = vsel %vm265_vm0, %v7276_v18, %v5938_v48 }
  0xe9   : > { %2050 = vmatprep.mubr.bf16.mxu1 %v1712_v62  ;;  %6306 = vrot.lane.b32.xlu1 %v7514_v28, %s6963_s14  ;;  %v555_v28 = vld [vmem:[#allocation3 + $0x39] sm:$0xff]  ;;  %v6024_v47 = vunpack.i.h.bf16 %v6022_v13  ;;  %v6023_v50 = vunpack.i.l.bf16 %v6022_v13  ;;  %v1484_v62 = vsel %vm265_vm0, %v7278_v19, %v5939_v20  ;;  %v7609_v0 = vpack.i.bf16 %v636_v9, %v635_v17 }
  0xea   : > { %6311 = vrot.lane.b32.xlu0 %v7580_v60, %s6964_s15  ;;  %2051 = vmatmul.mubr.bf16.vlgmr.msra.gmra.mxu1 %v1711_v56  ;;  %v1582_v35 = vsel %vm265_vm0, %v555_v28, %v6019_v51  ;;  %v1581_v4 = vsel %vm265_vm0, %v554_v1, %v6018_v44  ;;  %v667_v28 = vld [vmem:[#allocation3 + $0x109] sm:$0xff]  ;;  %v7622_v44 = vld [vmem:[#allocation3 + $0x111] sm:$0xff] }
  0xeb   : > { %v6027_v43 = vpop.permute.xlu1 %6026  ;;  %5730 = vmatpush3.bf16.msra.mxu1 %v7471_v14  ;;  %v1614_v13 = vsel %vm1513_vm2, %v1582_v35, %v6024_v47  ;;  %v1613_v14 = vsel %vm1513_vm2, %v1581_v4, %v6023_v50 }
  0xec   : > { %v6028_v22 = vunpack.i.l.bf16 %v6027_v43  ;;  %v6029_v31 = vunpack.i.h.bf16 %v6027_v43  ;;  %v6032_v27 = vpop.permute.xlu0 %6031  ;;  %5731 = vmatprep.subr.bf16.mxu1 %v6427_v61 }
  0xed   : > { %6316 = vrot.lane.b32.xlu1 %v7521_v26, %s6964_s15  ;;  %v6034_v56 = vunpack.i.h.bf16 %v6032_v27  ;;  %v6033_v26 = vunpack.i.l.bf16 %v6032_v27 }
  0xee   : > { %v1516_v18 = vsel %vm1513_vm2, %v1483_v45, %v6028_v22  ;;  %6321 = vrot.lane.b32.xlu0 %v7599_v3, %s6962_s13  ;;  %v1517_v19 = vsel %vm1513_vm2, %v1484_v62, %v6029_v31  ;;  %v7635_v31 = vld [vmem:[#allocation3 + $0x112] sm:$0xff] }
  0xef   : > { %v6037_v43 = vpop.permute.xlu1 %6036  ;;  %v1645_v20 = vsel %vm1546_vm3, %v1613_v14, %v6033_v26  ;;  %v1646_v51 = vsel %vm1546_vm3, %v1614_v13, %v6034_v56  ;;  %5732 = vmatpush3.bf16.msra.mxu1 %v6427_v61  ;;  %v7633_v61 = vld [vmem:[#allocation3 + $0x10a] sm:$0xff] }
  0xf0   : > { %v6039_v48 = vunpack.i.h.bf16 %v6037_v43  ;;  %v6038_v42 = vunpack.i.l.bf16 %v6037_v43  ;;  %v6042_v47 = vpop.permute.xlu0 %6041  ;;  %v1679_v17 = vpack.c.bf16 %v1646_v51, %v1645_v20  ;;  %v7641_v26 = vpack.i.bf16 %v7635_v31, %v7633_v61 }
  0xf1   : > { %6326 = vrot.lane.b32.xlu1 %v7536_v6, %s6962_s13  ;;  %v7629_v6 = vpack.i.bf16 %v7622_v44, %v667_v28  ;;  %v6043_v45 = vunpack.i.l.bf16 %v6042_v47 }
  0xf2   : > { %v1549_v9 = vsel %vm1546_vm3, %v1516_v18, %v6038_v42  ;;  %v1550_v1 = vsel %vm1546_vm3, %v1517_v19, %v6039_v48  ;;  %6331 = vrot.lane.b32.xlu0 %v7609_v0, %s6963_s14  ;;  %1962 = vmatprep.mubr.bf16.mxu0 %v1679_v17  ;;  %v6044_v42 = vunpack.i.h.bf16 %v6042_v47  ;;  %v7651_v19 = vpack.i.bf16 %v7558_v7, %v7562_v24 }
  0xf3   : > { %v6047_v50 = vpop.permute.xlu1 %6046  ;;  %v1678_v22 = vpack.c.bf16 %v1550_v1, %v1549_v9  ;;  %v1605_v18 = vsel %vm265_vm0, %v7294_v55, %v6043_v45  ;;  %v7667_v1 = vld [vmem:[#allocation3 + $0x121] sm:$0xff] }
  0xf4   : > { %v6052_v62 = vpop.permute.xlu0 %6051  ;;  %v6049_v35 = vunpack.i.h.bf16 %v6047_v50  ;;  %v6048_v27 = vunpack.i.l.bf16 %v6047_v50  ;;  %v1606_v14 = vsel %vm265_vm0, %v7299_v57, %v6044_v42  ;;  %v7669_v50 = vld [vmem:[#allocation3 + $0x129] sm:$0xff] }
  0xf5   : > { %6336 = vrot.lane.b32.xlu1 %v7550_v63, %s6963_s14  ;;  %1963 = vmatmul.mubr.bf16.gmra.mxu0 %v1678_v22  ;;  %v6054_v13 = vunpack.i.h.bf16 %v6052_v62  ;;  %v6053_v56 = vunpack.i.l.bf16 %v6052_v62 }
  0xf6   : > { %6341 = vrot.lane.b32.xlu0 %v7629_v6, %s6964_s15  ;;  %v1508_v20 = vsel %vm265_vm0, %v7303_v59, %v6049_v35  ;;  %v1507_v51 = vsel %vm265_vm0, %v7301_v58, %v6048_v27  ;;  %v556_v35 = vld [vmem:[#allocation3 + $0x49] sm:$0xff]  ;;  %v557_v27 = vld [vmem:[#allocation3 + $0x51] sm:$0xff] }
  0xf7   : > { %v6057_v4 = vpop.permute.xlu1 %6056  ;;  %v1637_v17 = vsel %vm1513_vm2, %v1605_v18, %v6053_v56  ;;  %v1638_v57 = vsel %vm1513_vm2, %v1606_v14, %v6054_v13  ;;  %v7679_v14 = vld [vmem:[#allocation3 + $0x12a] sm:$0xff] }
  0xf8   : > { %v6059_v63 = vunpack.i.h.bf16 %v6057_v4  ;;  %v6058_v43 = vunpack.i.l.bf16 %v6057_v4  ;;  %v6062_v48 = vpop.permute.xlu0 %6061 }
  0xf9   : > { %6346 = vrot.lane.b32.xlu1 %v7560_v46, %s6964_s15  ;;  %v6064_v28 = vunpack.i.h.bf16 %v6062_v48  ;;  %v6063_v47 = vunpack.i.l.bf16 %v6062_v48 }
  0xfa   : > { %6351 = vrot.lane.b32.xlu0 %v7641_v26, %s6962_s13  ;;  %v1540_v7 = vsel %vm1513_vm2, %v1507_v51, %v6058_v43  ;;  %v1541_v24 = vsel %vm1513_vm2, %v1508_v20, %v6059_v63  ;;  %v6370_v63 = vpack.i.bf16 %v7669_v50, %v7667_v1  ;;  %v7677_v43 = vld [vmem:[#allocation3 + $0x122] sm:$0xff]  ;;  %v5943_v20 = vunpack.i.l.bf16 %v7488_v30 }
  0xfb   : > { %v6067_v46 = vpop.permute.xlu1 %6066  ;;  %v1669_v58 = vsel %vm1546_vm3, %v1637_v17, %v6063_v47  ;;  %v1670_v59 = vsel %vm1546_vm3, %v1638_v57, %v6064_v28  ;;  %v6380_v57 = vpack.i.bf16 %v7679_v14, %v7677_v43 }
  0xfc   : > { %v6069_v9 = vunpack.i.h.bf16 %v6067_v46  ;;  %v6068_v55 = vunpack.i.l.bf16 %v6067_v46  ;;  %v6072_v22 = vpop.permute.xlu0 %6071  ;;  %v1715_v42 = vpack.c.bf16 %v1670_v59, %v1669_v58  ;;  %v5944_v46 = vunpack.i.h.bf16 %v7488_v30  ;;  %v639_v59 = vld [vmem:[#allocation3 + $0x138] sm:$0xff] }
  0xfd   : > { %6356 = vrot.lane.b32.xlu1 %v7580_v60, %s6962_s13  ;;  %v6074_v4 = vunpack.i.h.bf16 %v6072_v22  ;;  %v6073_v13 = vunpack.i.l.bf16 %v6072_v22  ;;  %v640_v22 = vld [vmem:[#allocation3 + $0x140] sm:$0xff]  ;;  %v1485_v30 = vsel %vm265_vm0, %v7258_v11, %v5943_v20 }
  0xfe   : > { %v1573_v45 = vsel %vm1546_vm3, %v1540_v7, %v6068_v55  ;;  %v1574_v62 = vsel %vm1546_vm3, %v1541_v24, %v6069_v9  ;;  %6361 = vrot.lane.b32.xlu0 %v7651_v19, %s6963_s14  ;;  %2058 = vmatprep.mubr.bf16.mxu1 %v1715_v42 }
  0xff   : > { %v6077_v56 = vpop.permute.xlu1 %6076  ;;  %v1714_v60 = vpack.c.bf16 %v1574_v62, %v1573_v45  ;;  %v1584_v51 = vsel %vm265_vm0, %v557_v27, %v6074_v4  ;;  %v1583_v28 = vsel %vm265_vm0, %v556_v35, %v6073_v13  ;;  %v1486_v35 = vsel %vm265_vm0, %v7260_v12, %v5944_v46  ;;  %v671_v12 = vld [vmem:[#allocation3 + $0x139] sm:$0xff] }
 0x100   : > { %v6079_v18 = vunpack.i.h.bf16 %v6077_v56  ;;  %v6078_v48 = vunpack.i.l.bf16 %v6077_v56  ;;  %v6082_v47 = vpop.permute.xlu0 %6081 }
 0x101   : > { %6366 = vrot.lane.b32.xlu1 %v7599_v3, %s6963_s14  ;;  %2059 = vmatmul.mubr.bf16.gmra.mxu1 %v1714_v60  ;;  %v6084_v9 = vunpack.i.h.bf16 %v6082_v47  ;;  %v6083_v55 = vunpack.i.l.bf16 %v6082_v47 }
 0x102   : > { %6371 = vrot.lane.b32.xlu0 %v6370_v63, %s6964_s15  ;;  %v1615_v3 = vsel %vm1513_vm2, %v1583_v28, %v6078_v48  ;;  %v1616_v58 = vsel %vm1513_vm2, %v1584_v51, %v6079_v18  ;;  %v6390_v63 = vpack.i.bf16 %v640_v22, %v639_v59  ;;  %v672_v48 = vld [vmem:[#allocation3 + $0x141] sm:$0xff]  ;;  %v453_v59 = vld [vmem:[#allocation3 + $0x158] sm:$0xff] }
 0x103   : > { %v6087_v17 = vpop.permute.xlu1 %6086  ;;  %v1519_v60 = vsel %vm1513_vm2, %v1486_v35, %v6084_v9  ;;  %v581_v9 = vld [vmem:[#allocation3 + $0x171] sm:$0xff] }
 0x104   : > { %v6089_v7 = vunpack.i.h.bf16 %v6087_v17  ;;  %v6088_v24 = vunpack.i.l.bf16 %v6087_v17  ;;  %v6092_v42 = vpop.permute.xlu0 %6091  ;;  %v580_v17 = vld [vmem:[#allocation3 + $0x169] sm:$0xff] }
 0x105   : > { %6376 = vrot.lane.b32.xlu1 %v7609_v0, %s6964_s15  ;;  %v6094_v27 = vunpack.i.h.bf16 %v6092_v42  ;;  %v6093_v4 = vunpack.i.l.bf16 %v6092_v42  ;;  %v1518_v0 = vsel %vm1513_vm2, %v1485_v30, %v6083_v55  ;;  %v452_v42 = vld [vmem:[#allocation3 + $0x150] sm:$0xff] }
 0x106   : > { %v1647_v45 = vsel %vm1546_vm3, %v1615_v3, %v6088_v24  ;;  %v1648_v62 = vsel %vm1546_vm3, %v1616_v58, %v6089_v7  ;;  %6381 = vrot.lane.b32.xlu0 %v6380_v57, %s6962_s13  ;;  %v6400_v57 = vpack.i.bf16 %v672_v48, %v671_v12 }
 0x107   : > { %v6097_v13 = vpop.permute.xlu1 %6096  ;;  %v1682_v56 = vpack.c.bf16 %v1648_v62, %v1647_v45  ;;  %v1551_v11 = vsel %vm1546_vm3, %v1518_v0, %v6093_v4  ;;  %v1552_v18 = vsel %vm1546_vm3, %v1519_v60, %v6094_v27 }
 0x108   : > { %v6102_v20 = vpop.permute.xlu0 %6101  ;;  %v1681_v51 = vpack.c.bf16 %v1552_v18, %v1551_v11  ;;  %v6099_v28 = vunpack.i.h.bf16 %v6097_v13  ;;  %v6098_v47 = vunpack.i.l.bf16 %v6097_v13 }
 0x109   : > { %6386 = vrot.lane.b32.xlu1 %v7629_v6, %s6962_s13  ;;  %1970 = vmatprep.mubr.bf16.mxu0 %v1682_v56  ;;  %v6104_v7 = vunpack.i.h.bf16 %v6102_v20  ;;  %v6103_v22 = vunpack.i.l.bf16 %v6102_v20 }
 0x10a   : > { %6391 = vrot.lane.b32.xlu0 %v6390_v63, %s6963_s14  ;;  %1971 = vmatmul.mubr.bf16.gmra.mxu0 %v1681_v51  ;;  %v1608_v3 = vsel %vm265_vm0, %v581_v9, %v6099_v28  ;;  %v1607_v58 = vsel %vm265_vm0, %v580_v17, %v6098_v47  ;;  %v5949_v47 = vunpack.i.h.bf16 %v7496_v8 }
 0x10b   : > { %v6107_v46 = vpop.permute.xlu1 %6106  ;;  %v1510_v13 = vsel %vm265_vm0, %v453_v59, %v6104_v7  ;;  %v1509_v63 = vsel %vm265_vm0, %v452_v42, %v6103_v22  ;;  %v558_v7 = vld [vmem:[#allocation3 + $0x61] sm:$0xff] }
 0x10c   : > { %v6109_v55 = vunpack.i.h.bf16 %v6107_v46  ;;  %v6108_v6 = vunpack.i.l.bf16 %v6107_v46  ;;  %v6112_v24 = vpop.permute.xlu0 %6111  ;;  %v5948_v46 = vunpack.i.l.bf16 %v7496_v8  ;;  %v6428_v42 = vld [vmem:[#allocation3 + $0x48] sm:$0xff] }
 0x10d   : > { %6396 = vrot.lane.b32.xlu1 %v7641_v26, %s6963_s14  ;;  %v6114_v45 = vunpack.i.h.bf16 %v6112_v24  ;;  %v6113_v62 = vunpack.i.l.bf16 %v6112_v24  ;;  %v559_v24 = vld [vmem:[#allocation3 + $0x69] sm:$0xff] }
 0x10e   : > { %6401 = vrot.lane.b32.xlu0 %v6400_v57, %s6964_s15  ;;  %v1639_v4 = vsel %vm1513_vm2, %v1607_v58, %v6108_v6  ;;  %v1640_v26 = vsel %vm1513_vm2, %v1608_v3, %v6109_v55 }
 0x10f   : > { %v6117_v30 = vpop.permute.xlu1 %6116  ;;  %v1542_v20 = vsel %vm1513_vm2, %v1509_v63, %v6113_v62  ;;  %v1543_v51 = vsel %vm1513_vm2, %v1510_v13, %v6114_v45  ;;  %v1487_v45 = vsel %vm265_vm0, %v6428_v42, %v5948_v46 }
 0x110   : > { %v6119_v35 = vunpack.i.h.bf16 %v6117_v30  ;;  %v6118_v27 = vunpack.i.l.bf16 %v6117_v30  ;;  %v6122_v56 = vpop.permute.xlu0 %6121  ;;  %v1488_v30 = vsel %vm265_vm0, %v7342_v21, %v5949_v47 }
 0x111   : > { %6406 = vrot.lane.b32.xlu1 %v7651_v19, %s6964_s15  ;;  %v6124_v11 = vunpack.i.h.bf16 %v6122_v56  ;;  %v6123_v18 = vunpack.i.l.bf16 %v6122_v56 }
 0x112   : > { %v1671_v60 = vsel %vm1546_vm3, %v1639_v4, %v6118_v27  ;;  %v1672_v0 = vsel %vm1546_vm3, %v1640_v26, %v6119_v35 }
 0x113   : > { %v6127_v12 = vpop.permute.xlu1 %6126  ;;  %v1718_v48 = vpack.c.bf16 %v1672_v0, %v1671_v60  ;;  %v1575_v19 = vsel %vm1546_vm3, %v1542_v20, %v6123_v18  ;;  %v1576_v28 = vsel %vm1546_vm3, %v1543_v51, %v6124_v11 }
 0x114   : > { %v6132_v17 = vpop.permute.xlu0 %6131  ;;  %v1717_v9 = vpack.c.bf16 %v1576_v28, %v1575_v19  ;;  %v6129_v57 = vunpack.i.h.bf16 %v6127_v12  ;;  %v6128_v55 = vunpack.i.l.bf16 %v6127_v12 }
 0x115   : > { %2066 = vmatprep.mubr.bf16.mxu1 %v1718_v48  ;;  %v6134_v3 = vunpack.i.h.bf16 %v6132_v17  ;;  %v6133_v58 = vunpack.i.l.bf16 %v6132_v17 }
 0x116   : > { %2067 = vmatmul.mubr.bf16.gmra.mxu1 %v1717_v9  ;;  %v1586_v8 = vsel %vm265_vm0, %v559_v24, %v6129_v57  ;;  %v1585_v35 = vsel %vm265_vm0, %v558_v7, %v6128_v55  ;;  %v582_v9 = vld [vmem:[#allocation3 + $0x181] sm:$0xff]  ;;  %v583_v57 = vld [vmem:[#allocation3 + $0x189] sm:$0xff] }
 0x117   : > { %v6137_v6 = vpop.permute.xlu1 %6136  ;;  %v1618_v13 = vsel %vm1513_vm2, %v1586_v8, %v6134_v3  ;;  %v1617_v56 = vsel %vm1513_vm2, %v1585_v35, %v6133_v58  ;;  %v454_v24 = vld [vmem:[#allocation3 + $0x168] sm:$0xff]  ;;  %v455_v3 = vld [vmem:[#allocation3 + $0x170] sm:$0xff] }
 0x118   : > { %v6139_v59 = vunpack.i.h.bf16 %v6137_v6  ;;  %v6138_v22 = vunpack.i.l.bf16 %v6137_v6  ;;  %v6142_v62 = vpop.permute.xlu0 %6141 }
 0x119   : > { %v6144_v27 = vunpack.i.h.bf16 %v6142_v62  ;;  %v6143_v4 = vunpack.i.l.bf16 %v6142_v62 }
 0x11a   : > { %v1521_v63 = vsel %vm1513_vm2, %v1488_v30, %v6139_v59  ;;  %v1520_v21 = vsel %vm1513_vm2, %v1487_v45, %v6138_v22 }
 0x11b   : > { %v6147_v26 = vpop.permute.xlu1 %6146  ;;  %v1649_v11 = vsel %vm1546_vm3, %v1617_v56, %v6143_v4  ;;  %v1650_v18 = vsel %vm1546_vm3, %v1618_v13, %v6144_v27  ;;  %v681_v13 = vld [vmem:[#allocation3 + $0x32] sm:$0xff]  ;;  %v682_v56 = vld [vmem:[#allocation3 + $0x3a] sm:$0xff] }
 0x11c   : > { %v6149_v60 = vunpack.i.h.bf16 %v6147_v26  ;;  %v6148_v0 = vunpack.i.l.bf16 %v6147_v26  ;;  %v6152_v12 = vpop.permute.xlu0 %6151  ;;  %v1685_v48 = vpack.c.bf16 %v1650_v18, %v1649_v11 }
 0x11d   : > { %v6154_v47 = vunpack.i.h.bf16 %v6152_v12  ;;  %v6153_v46 = vunpack.i.l.bf16 %v6152_v12 }
 0x11e   : > { %v1553_v20 = vsel %vm1546_vm3, %v1520_v21, %v6148_v0  ;;  %v1554_v51 = vsel %vm1546_vm3, %v1521_v63, %v6149_v60  ;;  %1978 = vmatprep.mubr.bf16.mxu0 %v1685_v48 }
 0x11f   : > { %v6157_v19 = vpop.permute.xlu1 %6156  ;;  %v1684_v28 = vpack.c.bf16 %v1554_v51, %v1553_v20  ;;  %v1610_v42 = vsel %vm265_vm0, %v583_v57, %v6154_v47  ;;  %v1609_v45 = vsel %vm265_vm0, %v582_v9, %v6153_v46  ;;  %v1677_v47 = vpack.c.bf16 %v682_v56, %v681_v13  ;;  %v560_v46 = vld [vmem:[#allocation3 + $0x79] sm:$0xff] }
 0x120   : > { %v6162_v17 = vpop.permute.xlu0 %6161  ;;  %v6159_v55 = vunpack.i.h.bf16 %v6157_v19  ;;  %v6158_v6 = vunpack.i.l.bf16 %v6157_v19 }
 0x121   : > { %1979 = vmatmul.mubr.bf16.gmra.mxu0 %v1684_v28  ;;  %v6164_v58 = vunpack.i.h.bf16 %v6162_v17  ;;  %v6163_v59 = vunpack.i.l.bf16 %v6162_v17  ;;  %v561_v17 = vld [vmem:[#allocation3 + $0x81] sm:$0xff] }
 0x122   : > { %v1512_v8 = vsel %vm265_vm0, %v455_v3, %v6159_v55  ;;  %v1511_v35 = vsel %vm265_vm0, %v454_v24, %v6158_v6  ;;  %v5954_v3 = vunpack.i.h.bf16 %v7503_v29 }
 0x123   : > { %v6167_v7 = vpop.permute.xlu1 %6166  ;;  %v1641_v60 = vsel %vm1513_vm2, %v1609_v45, %v6163_v59  ;;  %v1642_v0 = vsel %vm1513_vm2, %v1610_v42, %v6164_v58  ;;  %v684_v42 = vld [vmem:[#allocation3 + $0x52] sm:$0xff]  ;;  %v5953_v45 = vunpack.i.l.bf16 %v7503_v29 }
 0x124   : > { %v6169_v22 = vunpack.i.h.bf16 %v6167_v7  ;;  %v6168_v30 = vunpack.i.l.bf16 %v6167_v7  ;;  %v6172_v62 = vpop.permute.xlu0 %6171 }
 0x125   : > { %v6174_v27 = vunpack.i.h.bf16 %v6172_v62  ;;  %v6173_v4 = vunpack.i.l.bf16 %v6172_v62 }
 0x126   : > { %v1544_v11 = vsel %vm1513_vm2, %v1511_v35, %v6168_v30  ;;  %v1545_v18 = vsel %vm1513_vm2, %v1512_v8, %v6169_v22  ;;  %v683_v30 = vld [vmem:[#allocation3 + $0x4a] sm:$0xff]  ;;  %v685_v8 = vld [vmem:[#allocation3 + $0x62] sm:$0xff] }
 0x127   : > { %v6177_v26 = vpop.permute.xlu1 %6176  ;;  %v1673_v12 = vsel %vm1546_vm3, %v1641_v60, %v6173_v4  ;;  %v1674_v48 = vsel %vm1546_vm3, %v1642_v0, %v6174_v27  ;;  %v686_v35 = vld [vmem:[#allocation3 + $0x6a] sm:$0xff]  ;;  %v1680_v0 = vpack.c.bf16 %v684_v42, %v683_v30  ;;  %v563_v30 = vld [vmem:[#allocation3 + $0x99] sm:$0xff] }
 0x128   : > { %v6179_v63 = vunpack.i.h.bf16 %v6177_v26  ;;  %v6178_v21 = vunpack.i.l.bf16 %v6177_v26  ;;  %v6182_v20 = vpop.permute.xlu0 %6181  ;;  %v1721_v51 = vpack.c.bf16 %v1674_v48, %v1673_v12  ;;  %v1489_v12 = vsel %vm265_vm0, %v7431_v10, %v5953_v45 }
 0x129   : > { %v6184_v9 = vunpack.i.h.bf16 %v6182_v20  ;;  %v6183_v57 = vunpack.i.l.bf16 %v6182_v20 }
 0x12a   : > { %v1577_v19 = vsel %vm1546_vm3, %v1544_v11, %v6178_v21  ;;  %v1578_v28 = vsel %vm1546_vm3, %v1545_v18, %v6179_v63  ;;  %2074 = vmatprep.mubr.bf16.mxu1 %v1721_v51  ;;  %v1490_v63 = vsel %vm265_vm0, %v7433_v15, %v5954_v3  ;;  %v1683_v18 = vpack.c.bf16 %v686_v35, %v685_v8 }
 0x12b   : > { %v6187_v55 = vpop.permute.xlu1 %6186  ;;  %v1720_v6 = vpack.c.bf16 %v1578_v28, %v1577_v19  ;;  %v1588_v58 = vsel %vm265_vm0, %v561_v17, %v6184_v9  ;;  %v1587_v59 = vsel %vm265_vm0, %v560_v46, %v6183_v57  ;;  %v5959_v17 = vunpack.i.h.bf16 %v7505_v16 }
 0x12c   : > { %v6189_v7 = vunpack.i.h.bf16 %v6187_v55  ;;  %v6188_v24 = vunpack.i.l.bf16 %v6187_v55  ;;  %v6192_v22 = vpop.permute.xlu0 %6191  ;;  %v5958_v9 = vunpack.i.l.bf16 %v7505_v16  ;;  %v687_v55 = vld [vmem:[#allocation3 + $0x7a] sm:$0xff] }
 0x12d   : > { %2075 = vmatmul.mubr.bf16.gmra.mxu1 %v1720_v6  ;;  %v6194_v27 = vunpack.i.h.bf16 %v6192_v22  ;;  %v6193_v4 = vunpack.i.l.bf16 %v6192_v22  ;;  %v688_v6 = vld [vmem:[#allocation3 + $0x82] sm:$0xff]  ;;  %v562_v22 = vld [vmem:[#allocation3 + $0x91] sm:$0xff]  ;;  %v1492_v16 = vsel %vm265_vm0, %v7457_v23, %v5959_v17 }
 0x12e   : > { %5733 = vmatprep.mubr.msk.bf16.mxu1 %vm265_vm0, %v1677_v47  ;;  %v1619_v56 = vsel %vm1513_vm2, %v1587_v59, %v6188_v24  ;;  %v1620_v60 = vsel %vm1513_vm2, %v1588_v58, %v6189_v7  ;;  %v689_v58 = vld [vmem:[#allocation3 + $0x92] sm:$0xff]  ;;  %v690_v59 = vld [vmem:[#allocation3 + $0x9a] sm:$0xff]  ;;  %v1686_v35 = vpack.c.bf16 %v688_v6, %v687_v55 }
 0x12f   : > { %v6197_v62 = vpop.permute.xlu1 %6196  ;;  %v1522_v28 = vsel %vm1513_vm2, %v1489_v12, %v6193_v4  ;;  %v1523_v47 = vsel %vm1513_vm2, %v1490_v63, %v6194_v27  ;;  %v1491_v27 = vsel %vm265_vm0, %v7455_v25, %v5958_v9  ;;  %v693_v9 = vld [vmem:[#allocation3 + $0xc2] sm:$0xff] }
 0x130   : > { %v6199_v26 = vunpack.i.h.bf16 %v6197_v62  ;;  %v6198_v13 = vunpack.i.l.bf16 %v6197_v62  ;;  %v6202_v21 = vpop.permute.xlu0 %6201 }
 0x131   : > { %v6204_v48 = vunpack.i.h.bf16 %v6202_v21  ;;  %v6203_v20 = vunpack.i.l.bf16 %v6202_v21 }
 0x132   : > { %v1651_v11 = vsel %vm1546_vm3, %v1619_v56, %v6198_v13  ;;  %v1652_v29 = vsel %vm1546_vm3, %v1620_v60, %v6199_v26  ;;  %v1689_v26 = vpack.c.bf16 %v690_v59, %v689_v58  ;;  %v565_v58 = vld [vmem:[#allocation3 + $0xb1] sm:$0xff] }
 0x133   : > { %v6207_v51 = vpop.permute.xlu1 %6206  ;;  %v1688_v19 = vpack.c.bf16 %v1652_v29, %v1651_v11  ;;  %v1555_v15 = vsel %vm1546_vm3, %v1522_v28, %v6203_v20  ;;  %v1556_v46 = vsel %vm1546_vm3, %v1523_v47, %v6204_v48  ;;  %v691_v47 = vld [vmem:[#allocation3 + $0xaa] sm:$0xff] }
 0x134   : > { %v6212_v10 = vpop.permute.xlu0 %6211  ;;  %v1687_v57 = vpack.c.bf16 %v1556_v46, %v1555_v15  ;;  %v6209_v7 = vunpack.i.h.bf16 %v6207_v51  ;;  %v6208_v24 = vunpack.i.l.bf16 %v6207_v51  ;;  %v692_v15 = vld [vmem:[#allocation3 + $0xb2] sm:$0xff] }
 0x135   : > { %1986 = vmatprep.mubr.bf16.mxu0 %v1688_v19  ;;  %5734 = vmatmul.mubr.msk.bf16.vlgmr.msra.gmra.mxu1 %vm265_vm0, %v1680_v0  ;;  %v6214_v42 = vunpack.i.h.bf16 %v6212_v10  ;;  %v6213_v45 = vunpack.i.l.bf16 %v6212_v10  ;;  %v694_v10 = vld [vmem:[#allocation3 + $0xca] sm:$0xff] }
 0x136   : > { %5737 = vmatprep.mubr.msk.bf16.mxu1 %vm265_vm0, %v1683_v18  ;;  %1987 = vmatmul.mubr.bf16.gmra.mxu0 %v1687_v57  ;;  %v1590_v13 = vsel %vm265_vm0, %v563_v30, %v6209_v7  ;;  %v1589_v56 = vsel %vm265_vm0, %v562_v22, %v6208_v24  ;;  %v1692_v57 = vpack.c.bf16 %v692_v15, %v691_v47 }
 0x137   : > { %v6217_v3 = vpop.permute.xlu1 %6216  ;;  %v1622_v21 = vsel %vm1513_vm2, %v1590_v13, %v6214_v42  ;;  %v1621_v11 = vsel %vm1513_vm2, %v1589_v56, %v6213_v45  ;;  %v1695_v24 = vpack.c.bf16 %v694_v10, %v693_v9  ;;  %v436_v42 = vld [vmem:[#allocation3 + $0x90] sm:$0xff]  ;;  %v437_v45 = vld [vmem:[#allocation3 + $0x98] sm:$0xff]  ;;  %v1698_v13 = vpack.c.bf16 %v7544_v2, %v7542_v5  ;;  %v566_v10 = vld [vmem:[#allocation3 + $0xc1] sm:$0xff] }
 0x138   : > { %v6219_v62 = vunpack.i.h.bf16 %v6217_v3  ;;  %v6218_v8 = vunpack.i.l.bf16 %v6217_v3  ;;  %v6222_v4 = vpop.permute.xlu0 %6221  ;;  %v564_v3 = vld [vmem:[#allocation3 + $0xa9] sm:$0xff] }
 0x139   : > { %v6224_v60 = vunpack.i.h.bf16 %v6222_v4  ;;  %v6223_v0 = vunpack.i.l.bf16 %v6222_v4 }
 0x13a   : > { %v1525_v23 = vsel %vm1513_vm2, %v1492_v16, %v6219_v62  ;;  %v1524_v12 = vsel %vm1513_vm2, %v1491_v27, %v6218_v8 }
 0x13b   : > { %v6227_v63 = vpop.permute.xlu1 %6226  ;;  %v1653_v25 = vsel %vm1546_vm3, %v1621_v11, %v6223_v0  ;;  %v1654_v48 = vsel %vm1546_vm3, %v1622_v21, %v6224_v60 }
 0x13c   : > { %v6229_v29 = vunpack.i.h.bf16 %v6227_v63  ;;  %v6228_v18 = vunpack.i.l.bf16 %v6227_v63  ;;  %v6232_v20 = vpop.permute.xlu0 %6231  ;;  %v1691_v51 = vpack.c.bf16 %v1654_v48, %v1653_v25 }
 0x13d   : > { %5738 = vmatmul.mubr.msk.bf16.gmra.mxu1 %vm265_vm0, %v1686_v35  ;;  %v6234_v55 = vunpack.i.h.bf16 %v6232_v20  ;;  %v6233_v6 = vunpack.i.l.bf16 %v6232_v20 }
 0x13e   : > { %v1557_v19 = vsel %vm1546_vm3, %v1524_v12, %v6228_v18  ;;  %v1558_v28 = vsel %vm1546_vm3, %v1525_v23, %v6229_v29  ;;  %5741 = vmatprep.mubr.msk.bf16.mxu1 %vm265_vm0, %v1689_v26  ;;  %1994 = vmatprep.mubr.bf16.mxu0 %v1691_v51 }
 0x13f   : > { %v6237_v46 = vpop.permute.xlu1 %6236  ;;  %v1690_v17 = vpack.c.bf16 %v1558_v28, %v1557_v19  ;;  %v1592_v27 = vsel %vm265_vm0, %v565_v58, %v6234_v55  ;;  %v1591_v4 = vsel %vm265_vm0, %v564_v3, %v6233_v6  ;;  %v1701_v28 = vpack.c.bf16 %v7588_v52, %v7586_v49  ;;  %v439_v3 = vld [vmem:[#allocation3 + $0xb0] sm:$0xff] }
 0x140   : > { %v6242_v7 = vpop.permute.xlu0 %6241  ;;  %v6239_v59 = vunpack.i.h.bf16 %v6237_v46  ;;  %v6238_v22 = vunpack.i.l.bf16 %v6237_v46 }
 0x141   : > { %1995 = vmatmul.mubr.bf16.gmra.mxu0 %v1690_v17  ;;  %v6244_v62 = vunpack.i.h.bf16 %v6242_v7  ;;  %v6243_v8 = vunpack.i.l.bf16 %v6242_v7 }
 0x142   : > { %v1494_v56 = vsel %vm265_vm0, %v437_v45, %v6239_v59  ;;  %v1493_v60 = vsel %vm265_vm0, %v436_v42, %v6238_v22  ;;  %v1704_v22 = vpack.c.bf16 %v7635_v31, %v7633_v61 }
 0x143   : > { %v6247_v30 = vpop.permute.xlu1 %6246  ;;  %v1623_v11 = vsel %vm1513_vm2, %v1591_v4, %v6243_v8  ;;  %v1624_v29 = vsel %vm1513_vm2, %v1592_v27, %v6244_v62  ;;  %v1707_v62 = vpack.c.bf16 %v7679_v14, %v7677_v43 }
 0x144   : > { %v6249_v35 = vunpack.i.h.bf16 %v6247_v30  ;;  %v6248_v16 = vunpack.i.l.bf16 %v6247_v30  ;;  %v6252_v26 = vpop.permute.xlu0 %6251 }
 0x145   : > { %5742 = vmatmul.mubr.msk.bf16.gmra.mxu1 %vm265_vm0, %v1692_v57  ;;  %v6254_v0 = vunpack.i.h.bf16 %v6252_v26  ;;  %v6253_v63 = vunpack.i.l.bf16 %v6252_v26  ;;  %v567_v57 = vld [vmem:[#allocation3 + $0xc9] sm:$0xff] }
 0x146   : > { %5745 = vmatprep.mubr.msk.bf16.mxu1 %vm265_vm0, %v1695_v24  ;;  %v1526_v12 = vsel %vm1513_vm2, %v1493_v60, %v6248_v16  ;;  %v1527_v25 = vsel %vm1513_vm2, %v1494_v56, %v6249_v35  ;;  %v438_v24 = vld [vmem:[#allocation3 + $0xa8] sm:$0xff] }
 0x147   : > { %v6257_v21 = vpop.permute.xlu1 %6256  ;;  %v1655_v48 = vsel %vm1546_vm3, %v1623_v11, %v6253_v63  ;;  %v1656_v5 = vsel %vm1546_vm3, %v1624_v29, %v6254_v0  ;;  %v703_v29 = vld [vmem:[#allocation3 + $0x13a] sm:$0xff] }
 0x148   : > { %v6259_v18 = vunpack.i.h.bf16 %v6257_v21  ;;  %v6258_v23 = vunpack.i.l.bf16 %v6257_v21  ;;  %v6262_v2 = vpop.permute.xlu0 %6261  ;;  %v1694_v20 = vpack.c.bf16 %v1656_v5, %v1655_v48  ;;  %v706_v48 = vld [vmem:[#allocation3 + $0x15a] sm:$0xff] }
 0x149   : > { %v6264_v46 = vunpack.i.h.bf16 %v6262_v2  ;;  %v6263_v17 = vunpack.i.l.bf16 %v6262_v2  ;;  %v568_v2 = vld [vmem:[#allocation3 + $0xd9] sm:$0xff] }
 0x14a   : > { %v1559_v51 = vsel %vm1546_vm3, %v1526_v12, %v6258_v23  ;;  %v1560_v19 = vsel %vm1546_vm3, %v1527_v25, %v6259_v18  ;;  %2002 = vmatprep.mubr.bf16.mxu0 %v1694_v20  ;;  %v704_v18 = vld [vmem:[#allocation3 + $0x142] sm:$0xff]  ;;  %v705_v25 = vld [vmem:[#allocation3 + $0x152] sm:$0xff] }
 0x14b   : > { %v6267_v47 = vpop.permute.xlu1 %6266  ;;  %v1693_v15 = vpack.c.bf16 %v1560_v19, %v1559_v51  ;;  %v1594_v30 = vsel %vm265_vm0, %v567_v57, %v6264_v46  ;;  %v1593_v42 = vsel %vm265_vm0, %v566_v10, %v6263_v17  ;;  %v1710_v5 = vpack.c.bf16 %v704_v18, %v703_v29  ;;  %v708_v10 = vld [vmem:[#allocation3 + $0x172] sm:$0xff]  ;;  %v440_v57 = vld [vmem:[#allocation3 + $0xc0] sm:$0xff] }
 0x14c   : > { %v6272_v9 = vpop.permute.xlu0 %6271  ;;  %v6269_v55 = vunpack.i.h.bf16 %v6267_v47  ;;  %v6268_v6 = vunpack.i.l.bf16 %v6267_v47  ;;  %v569_v47 = vld [vmem:[#allocation3 + $0xe1] sm:$0xff] }
 0x14d   : > { %2003 = vmatmul.mubr.bf16.gmra.mxu0 %v1693_v15  ;;  %5746 = vmatmul.mubr.msk.bf16.gmra.mxu1 %vm265_vm0, %v1698_v13  ;;  %v6274_v58 = vunpack.i.h.bf16 %v6272_v9  ;;  %v6273_v49 = vunpack.i.l.bf16 %v6272_v9  ;;  %v707_v9 = vld [vmem:[#allocation3 + $0x16a] sm:$0xff] }
 0x14e   : > { %5749 = vmatprep.mubr.msk.bf16.mxu1 %vm265_vm0, %v1701_v28  ;;  %v1496_v8 = vsel %vm265_vm0, %v439_v3, %v6269_v55  ;;  %v1495_v35 = vsel %vm265_vm0, %v438_v24, %v6268_v6  ;;  %v1713_v28 = vpack.c.bf16 %v706_v48, %v705_v25  ;;  %v441_v55 = vld [vmem:[#allocation3 + $0xc8] sm:$0xff] }
 0x14f   : > { %v6277_v7 = vpop.permute.xlu1 %6276  ;;  %v1625_v26 = vsel %vm1513_vm2, %v1593_v42, %v6273_v49  ;;  %v1626_v13 = vsel %vm1513_vm2, %v1594_v30, %v6274_v58  ;;  %v712_v25 = vld [vmem:[#allocation3 + $0x1a2] sm:$0xff] }
 0x150   : > { %v6279_v52 = vunpack.i.h.bf16 %v6277_v7  ;;  %v6278_v59 = vunpack.i.l.bf16 %v6277_v7  ;;  %v6282_v45 = vpop.permute.xlu0 %6281 }
 0x151   : > { %v6284_v16 = vunpack.i.h.bf16 %v6282_v45  ;;  %v6283_v27 = vunpack.i.l.bf16 %v6282_v45 }
 0x152   : > { %v1528_v56 = vsel %vm1513_vm2, %v1495_v35, %v6278_v59  ;;  %v1529_v60 = vsel %vm1513_vm2, %v1496_v8, %v6279_v52  ;;  %v1716_v59 = vpack.c.bf16 %v708_v10, %v707_v9  ;;  %v709_v8 = vld [vmem:[#allocation3 + $0x182] sm:$0xff]  ;;  %v710_v35 = vld [vmem:[#allocation3 + $0x18a] sm:$0xff] }
 0x153   : > { %v6287_v4 = vpop.permute.xlu1 %6286  ;;  %v1657_v43 = vsel %vm1546_vm3, %v1625_v26, %v6283_v27  ;;  %v1658_v14 = vsel %vm1546_vm3, %v1626_v13, %v6284_v16  ;;  %v6430_v10 = vld [vmem:[#allocation3 + $0xf1] sm:$0xff] }
 0x154   : > { %v6289_v61 = vunpack.i.h.bf16 %v6287_v4  ;;  %v6288_v31 = vunpack.i.l.bf16 %v6287_v4  ;;  %v6292_v0 = vpop.permute.xlu0 %6291  ;;  %v1697_v63 = vpack.c.bf16 %v1658_v14, %v1657_v43 }
 0x155   : > { %5750 = vmatmul.mubr.msk.bf16.gmra.mxu1 %vm265_vm0, %v1704_v22  ;;  %v6294_v20 = vunpack.i.h.bf16 %v6292_v0  ;;  %v6293_v51 = vunpack.i.l.bf16 %v6292_v0 }
 0x156   : > { %v1561_v21 = vsel %vm1546_vm3, %v1528_v56, %v6288_v31  ;;  %v1562_v11 = vsel %vm1546_vm3, %v1529_v60, %v6289_v61  ;;  %5753 = vmatprep.mubr.msk.bf16.mxu1 %vm265_vm0, %v1707_v62  ;;  %2010 = vmatprep.mubr.bf16.mxu0 %v1697_v63  ;;  %v1719_v63 = vpack.c.bf16 %v710_v35, %v709_v8 }
 0x157   : > { %v6297_v23 = vpop.permute.xlu1 %6296  ;;  %v1696_v12 = vpack.c.bf16 %v1562_v11, %v1561_v21  ;;  %v1596_v58 = vsel %vm265_vm0, %v569_v47, %v6294_v20  ;;  %v1595_v49 = vsel %vm265_vm0, %v568_v2, %v6293_v51  ;;  %v442_v20 = vld [vmem:[#allocation3 + $0xd8] sm:$0xff]  ;;  %v443_v51 = vld [vmem:[#allocation3 + $0xe0] sm:$0xff] }
 0x158   : > { %v6302_v19 = vpop.permute.xlu0 %6301  ;;  %v6299_v15 = vunpack.i.h.bf16 %v6297_v23  ;;  %v6298_v46 = vunpack.i.l.bf16 %v6297_v23 }
 0x159   : > { %2011 = vmatmul.mubr.bf16.gmra.mxu0 %v1696_v12  ;;  %v6304_v6 = vunpack.i.h.bf16 %v6302_v19  ;;  %v6303_v7 = vunpack.i.l.bf16 %v6302_v19  ;;  %v711_v12 = vld [vmem:[#allocation3 + $0x19a] sm:$0xff] }
 0x15a   : > { %v1498_v22 = vsel %vm265_vm0, %v441_v55, %v6299_v15  ;;  %v1497_v30 = vsel %vm265_vm0, %v440_v57, %v6298_v46  ;;  %v1722_v46 = vpack.c.bf16 %v712_v25, %v711_v12 }
 0x15b   : > { %v6307_v17 = vpop.permute.xlu1 %6306  ;;  %v1627_v16 = vsel %vm1513_vm2, %v1595_v49, %v6303_v7  ;;  %v1628_v27 = vsel %vm1513_vm2, %v1596_v58, %v6304_v6 }
 0x15c   : > { %v6309_v24 = vunpack.i.h.bf16 %v6307_v17  ;;  %v6308_v3 = vunpack.i.l.bf16 %v6307_v17  ;;  %v6312_v52 = vpop.permute.xlu0 %6311  ;;  %v6429_v17 = vld [vmem:[#allocation3 + $0xf9] sm:$0xff] }
 0x15d   : > { %5754 = vmatmul.mubr.msk.bf16.gmra.mxu1 %vm265_vm0, %v1710_v5  ;;  %v6314_v42 = vunpack.i.h.bf16 %v6312_v52  ;;  %v6313_v45 = vunpack.i.l.bf16 %v6312_v52 }
 0x15e   : > { %5757 = vmatprep.mubr.msk.bf16.mxu1 %vm265_vm0, %v1713_v28  ;;  %v1530_v13 = vsel %vm1513_vm2, %v1497_v30, %v6308_v3  ;;  %v1531_v61 = vsel %vm1513_vm2, %v1498_v22, %v6309_v24 }
 0x15f   : > { %v6317_v62 = vpop.permute.xlu1 %6316  ;;  %v1659_v31 = vsel %vm1546_vm3, %v1627_v16, %v6313_v45  ;;  %v1660_v56 = vsel %vm1546_vm3, %v1628_v27, %v6314_v42 }
 0x160   : > { %v6319_v4 = vunpack.i.h.bf16 %v6317_v62  ;;  %v6318_v26 = vunpack.i.l.bf16 %v6317_v62  ;;  %v6322_v60 = vpop.permute.xlu0 %6321  ;;  %v1700_v43 = vpack.c.bf16 %v1660_v56, %v1659_v31 }
 0x161   : > { %v6324_v29 = vunpack.i.h.bf16 %v6322_v60  ;;  %v6323_v18 = vunpack.i.l.bf16 %v6322_v60 }
 0x162   : > { %v1563_v14 = vsel %vm1546_vm3, %v1530_v13, %v6318_v26  ;;  %v1564_v0 = vsel %vm1546_vm3, %v1531_v61, %v6319_v4  ;;  %2018 = vmatprep.mubr.bf16.mxu0 %v1700_v43 }
 0x163   : > { %v6327_v21 = vpop.permute.xlu1 %6326  ;;  %v1699_v11 = vpack.c.bf16 %v1564_v0, %v1563_v14  ;;  %v1598_v9 = vsel %vm265_vm0, %v6429_v17, %v6324_v29  ;;  %v1597_v57 = vsel %vm265_vm0, %v6430_v10, %v6323_v18  ;;  %v444_v14 = vld [vmem:[#allocation3 + $0xf0] sm:$0xff]  ;;  %v445_v0 = vld [vmem:[#allocation3 + $0xf8] sm:$0xff] }
 0x164   : > { %v6332_v23 = vpop.permute.xlu0 %6331  ;;  %v6329_v48 = vunpack.i.h.bf16 %v6327_v21  ;;  %v6328_v5 = vunpack.i.l.bf16 %v6327_v21 }
 0x165   : > { %2019 = vmatmul.mubr.bf16.gmra.mxu0 %v1699_v11  ;;  %5758 = vmatmul.mubr.msk.bf16.gmra.mxu1 %vm265_vm0, %v1716_v59  ;;  %v6334_v19 = vunpack.i.h.bf16 %v6332_v23  ;;  %v6333_v28 = vunpack.i.l.bf16 %v6332_v23  ;;  %v6431_v23 = vld [vmem:[#allocation3 + $0x109] sm:$0xff] }
 0x166   : > { %5761 = vmatprep.mubr.msk.bf16.mxu1 %vm265_vm0, %v1719_v63  ;;  %v1500_v6 = vsel %vm265_vm0, %v443_v51, %v6329_v48  ;;  %v1499_v7 = vsel %vm265_vm0, %v442_v20, %v6328_v5 }
 0x167   : > { %v6337_v2 = vpop.permute.xlu1 %6336  ;;  %v1629_v49 = vsel %vm1513_vm2, %v1597_v57, %v6333_v28  ;;  %v1630_v52 = vsel %vm1513_vm2, %v1598_v9, %v6334_v19 }
 0x168   : > { %v6339_v47 = vunpack.i.h.bf16 %v6337_v2  ;;  %v6338_v15 = vunpack.i.l.bf16 %v6337_v2  ;;  %v6342_v55 = vpop.permute.xlu0 %6341 }
 0x169   : > { %v6344_v24 = vunpack.i.h.bf16 %v6342_v55  ;;  %v6343_v3 = vunpack.i.l.bf16 %v6342_v55 }
 0x16a   : > { %v1532_v30 = vsel %vm1513_vm2, %v1499_v7, %v6338_v15  ;;  %v1533_v42 = vsel %vm1513_vm2, %v1500_v6, %v6339_v47 }
 0x16b   : > { %v6347_v58 = vpop.permute.xlu1 %6346  ;;  %v1661_v45 = vsel %vm1546_vm3, %v1629_v49, %v6343_v3  ;;  %v1662_v62 = vsel %vm1546_vm3, %v1630_v52, %v6344_v24 }
 0x16c   : > { %v6349_v59 = vunpack.i.h.bf16 %v6347_v58  ;;  %v6348_v22 = vunpack.i.l.bf16 %v6347_v58  ;;  %v6352_v8 = vpop.permute.xlu0 %6351  ;;  %v1703_v35 = vpack.c.bf16 %v1662_v62, %v1661_v45 }
 0x16d   : > { %5762 = vmatmul.mubr.msk.bf16.gmra.mxu1 %vm265_vm0, %v1722_v46  ;;  %v6354_v13 = vunpack.i.h.bf16 %v6352_v8  ;;  %v6353_v61 = vunpack.i.l.bf16 %v6352_v8 }
 0x16e   : > { %v1565_v16 = vsel %vm1546_vm3, %v1532_v30, %v6348_v22  ;;  %v1566_v27 = vsel %vm1546_vm3, %v1533_v42, %v6349_v59  ;;  %2026 = vmatprep.mubr.bf16.mxu0 %v1703_v35  ;;  %v446_v30 = vld [vmem:[#allocation3 + $0x108] sm:$0xff]  ;;  %v447_v42 = vld [vmem:[#allocation3 + $0x110] sm:$0xff] }
 0x16f   : > { %v6357_v4 = vpop.permute.xlu1 %6356  ;;  %v1702_v26 = vpack.c.bf16 %v1566_v27, %v1565_v16  ;;  %v1600_v18 = vsel %vm265_vm0, %v7622_v44, %v6354_v13  ;;  %v1599_v12 = vsel %vm265_vm0, %v6431_v23, %v6353_v61 }
 0x170   : > { %v6362_v31 = vpop.permute.xlu0 %6361  ;;  %v6359_v56 = vunpack.i.h.bf16 %v6357_v4  ;;  %v6358_v60 = vunpack.i.l.bf16 %v6357_v4 }
 0x171   : > { %2027 = vmatmul.mubr.bf16.gmra.mxu0 %v1702_v26  ;;  %v6364_v63 = vunpack.i.h.bf16 %v6362_v31  ;;  %v6363_v21 = vunpack.i.l.bf16 %v6362_v31 }
 0x172   : > { %v1502_v48 = vsel %vm265_vm0, %v445_v0, %v6359_v56  ;;  %v1501_v5 = vsel %vm265_vm0, %v444_v14, %v6358_v60 }
 0x173   : > { %v6367_v43 = vpop.permute.xlu1 %6366  ;;  %v1631_v19 = vsel %vm1513_vm2, %v1599_v12, %v6363_v21  ;;  %v1632_v28 = vsel %vm1513_vm2, %v1600_v18, %v6364_v63 }
 0x174   : > { %v6369_v11 = vunpack.i.h.bf16 %v6367_v43  ;;  %v6368_v29 = vunpack.i.l.bf16 %v6367_v43  ;;  %v6372_v25 = vpop.permute.xlu0 %6371 }
 0x175   : > { %v6374_v2 = vunpack.i.h.bf16 %v6372_v25  ;;  %v6373_v20 = vunpack.i.l.bf16 %v6372_v25 }
 0x176   : > { %v1534_v46 = vsel %vm1513_vm2, %v1501_v5, %v6368_v29  ;;  %v1535_v44 = vsel %vm1513_vm2, %v1502_v48, %v6369_v11 }
 0x177   : > { %v6377_v51 = vpop.permute.xlu1 %6376  ;;  %v1663_v17 = vsel %vm1546_vm3, %v1631_v19, %v6373_v20  ;;  %v1664_v9 = vsel %vm1546_vm3, %v1632_v28, %v6374_v2 }
 0x178   : > { %v6379_v47 = vunpack.i.h.bf16 %v6377_v51  ;;  %v6378_v15 = vunpack.i.l.bf16 %v6377_v51  ;;  %v6382_v10 = vpop.permute.xlu0 %6381  ;;  %v1706_v57 = vpack.c.bf16 %v1664_v9, %v1663_v17 }
 0x179   : > { %v6384_v3 = vunpack.i.h.bf16 %v6382_v10  ;;  %v6383_v58 = vunpack.i.l.bf16 %v6382_v10 }
 0x17a   : > { %v1567_v55 = vsel %vm1546_vm3, %v1534_v46, %v6378_v15  ;;  %v1568_v6 = vsel %vm1546_vm3, %v1535_v44, %v6379_v47  ;;  %2034 = vmatprep.mubr.bf16.mxu0 %v1706_v57 }
 0x17b   : > { %v6387_v7 = vpop.permute.xlu1 %6386  ;;  %v1705_v24 = vpack.c.bf16 %v1568_v6, %v1567_v55  ;;  %v1602_v16 = vsel %vm265_vm0, %v7669_v50, %v6384_v3  ;;  %v1601_v27 = vsel %vm265_vm0, %v7667_v1, %v6383_v58 }
 0x17c   : > { %v6392_v49 = vpop.permute.xlu0 %6391  ;;  %v6389_v52 = vunpack.i.h.bf16 %v6387_v7  ;;  %v6388_v59 = vunpack.i.l.bf16 %v6387_v7 }
 0x17d   : > { %2035 = vmatmul.mubr.bf16.gmra.mxu0 %v1705_v24  ;;  %v6394_v45 = vunpack.i.h.bf16 %v6392_v49  ;;  %v6393_v62 = vunpack.i.l.bf16 %v6392_v49 }
 0x17e   : > { %v1504_v26 = vsel %vm265_vm0, %v447_v42, %v6389_v52  ;;  %v1503_v13 = vsel %vm265_vm0, %v446_v30, %v6388_v59 }
 0x17f   : > { %v6397_v22 = vpop.permute.xlu1 %6396  ;;  %v1633_v60 = vsel %vm1513_vm2, %v1601_v27, %v6393_v62  ;;  %v1634_v43 = vsel %vm1513_vm2, %v1602_v16, %v6394_v45 }
 0x180   : > { %v6399_v8 = vunpack.i.h.bf16 %v6397_v22  ;;  %v6398_v35 = vunpack.i.l.bf16 %v6397_v22  ;;  %v6402_v4 = vpop.permute.xlu0 %6401 }
 0x181   : > { %v6404_v61 = vunpack.i.h.bf16 %v6402_v4  ;;  %v6403_v31 = vunpack.i.l.bf16 %v6402_v4 }
 0x182   : > { %v1536_v63 = vsel %vm1513_vm2, %v1503_v13, %v6398_v35  ;;  %v1537_v50 = vsel %vm1513_vm2, %v1504_v26, %v6399_v8 }
 0x183   : > { %v6407_v56 = vpop.permute.xlu1 %6406  ;;  %v1665_v1 = vsel %vm1546_vm3, %v1633_v60, %v6403_v31  ;;  %v1666_v21 = vsel %vm1546_vm3, %v1634_v43, %v6404_v61  ;;  %v7906_v31 = vld [vmem:[%s9480_s3] ss:$0 sm:$0xff] }
 0x184   : > { %v6409_v14 = vunpack.i.h.bf16 %v6407_v56  ;;  %v6408_v0 = vunpack.i.l.bf16 %v6407_v56  ;;  %v1709_v11 = vpack.c.bf16 %v1666_v21, %v1665_v1 }
 0x186   : > { %v1569_v29 = vsel %vm1546_vm3, %v1536_v63, %v6408_v0  ;;  %v1570_v18 = vsel %vm1546_vm3, %v1537_v50, %v6409_v14  ;;  %2042 = vmatprep.mubr.bf16.mxu0 %v1709_v11 }
 0x187   : > { %v1708_v23 = vpack.c.bf16 %v1570_v18, %v1569_v29 }
 0x189   : > { %2043 = vmatmul.mubr.bf16.gmra.mxu0 %v1708_v23 }
 0x19e   : > { %v5449_v51 = vpop.f32.mrf.mxu0 }
 0x1a0   : > { %v5450_v47 = vpop.f32.mrf.mxu0 }
 0x1a1   : > { %v5451_v26 = vadd.f32 %v5450_v47, %v5449_v51 }
 0x1a2   : > { %v5452_v17 = vpop.f32.mrf.mxu0 }
 0x1a3   : > { %v1957_v50 = vadd.f32 %v5451_v26, %v7906_v31 }
 0x1a4   : > { %v5453_v10 = vpop.f32.mrf.mxu0 }
 0x1a5   : > { %v5454_v14 = vadd.f32 %v5453_v10, %v5452_v17 }
 0x1aa   : > { %v5521_v12 = vpop.f32.mrf.mxu1 }
 0x1ac   : > { %v5522_v25 = vpop.f32.mrf.mxu1 }
 0x1ad   : > { %v7883_v48 = vadd.f32 %v5522_v25, %v5521_v12 }
 0x1ae   : > { %v5524_v5 = vpop.f32.mrf.mxu1 }
 0x1b0   : > { %v5525_v2 = vpop.f32.mrf.mxu1 }
 0x1b1   : > { %v7885_v20 = vadd.f32 %v5525_v2, %v5524_v5 }
 0x1b5   : > { %v5455_v57 = vpop.f32.mrf.mxu0 }
 0x1b7   : > { %v5456_v55 = vpop.f32.mrf.mxu0 }
 0x1b8   : > { %v5457_v27 = vadd.f32 %v5456_v55, %v5455_v57 }
 0x1b9   : > { %v5458_v6 = vpop.f32.mrf.mxu0 }
 0x1ba   : > { %v1965_v60 = vadd.f32 %v5457_v27, %v7906_v31 }
 0x1bb   : > { %v5459_v24 = vpop.f32.mrf.mxu0 }
 0x1bc   : > { %v5460_v56 = vadd.f32 %v5459_v24, %v5458_v6 }
 0x1be   : > { %v1968_v23 = vadd.f32 %v5460_v56, %v7906_v31 }
 0x1c1   : > { %v5527_v19 = vpop.f32.mrf.mxu1 }
 0x1c3   : > { %v5528_v28 = vpop.f32.mrf.mxu1 }
 0x1c4   : > { %v7887_v15 = vadd.f32 %v5528_v28, %v5527_v19  ;;  %v1960_v28 = vadd.f32 %v5454_v14, %v7906_v31 }
 0x1c5   : > { %v5530_v46 = vpop.f32.mrf.mxu1 }
 0x1c7   : > { %v5531_v44 = vpop.f32.mrf.mxu1 }
 0x1c8   : > { %v7889_v9 = vadd.f32 %v5531_v44, %v5530_v46 }
 0x1ca   : > { %v5461_v49 = vpop.f32.mrf.mxu0 }
 0x1cc   : > { %v5462_v30 = vpop.f32.mrf.mxu0 }
 0x1cd   : > { %v5463_v12 = vadd.f32 %v5462_v30, %v5461_v49 }
 0x1ce   : > { %v5464_v42 = vpop.f32.mrf.mxu0 }
 0x1d0   : > { %v5465_v45 = vpop.f32.mrf.mxu0 }
 0x1d6   : > { %v5533_v7 = vpop.f32.mrf.mxu1 }
 0x1d8   : > { %v5534_v3 = vpop.f32.mrf.mxu1 }
 0x1d9   : > { %v7891_v58 = vadd.f32 %v5534_v3, %v5533_v7  ;;  %v1973_v7 = vadd.f32 %v5463_v12, %v7906_v31 }
 0x1da   : > { %v5536_v52 = vpop.f32.mrf.mxu1 }
 0x1dc   : > { %v5537_v59 = vpop.f32.mrf.mxu1 }
 0x1dd   : > { %v7893_v22 = vadd.f32 %v5537_v59, %v5536_v52 }
 0x1e1   : > { %v5467_v62 = vpop.f32.mrf.mxu0 }
 0x1e3   : > { %v5468_v35 = vpop.f32.mrf.mxu0 }
 0x1e4   : > { %v5469_v1 = vadd.f32 %v5468_v35, %v5467_v62 }
 0x1e5   : > { %v5470_v13 = vpop.f32.mrf.mxu0 }
 0x1e6   : > { %v1981_v46 = vadd.f32 %v5469_v1, %v7906_v31 }
 0x1e7   : > { %v5471_v0 = vpop.f32.mrf.mxu0 }
 0x1e8   : > { %v5472_v44 = vadd.f32 %v5471_v0, %v5470_v13 }
 0x1ea   : > { %v1984_v35 = vadd.f32 %v5472_v44, %v7906_v31 }
 0x1ed   : > { %v7895_v8 = vpop.f32.mrf.mxu1 }
 0x1ef   : > { %v7897_v16 = vpop.f32.mrf.mxu1 }
 0x1f1   : > { %v7899_v4 = vpop.f32.mrf.mxu1 }
 0x1f3   : > { %v7901_v61 = vpop.f32.mrf.mxu1 }
 0x1f5   : > { %v5735_v43 = vpop.f32.mrf.mxu1 }
 0x1f6   : > { %v2126_v63 = vadd.f32 %v5735_v43, %v1965_v60  ;;  %v5473_v18 = vpop.f32.mrf.mxu0 }
 0x1f7   : > { %v2117_v21 = vpop.f32.mrf.mxu1 }
 0x1f8   : > { %v2246_v11 = vmax.f32 %v2126_v63, 0.0  ;;  %v2118_v29 = vadd.f32 %v2117_v21, %v1957_v50  ;;  %v5474_v19 = vpop.f32.mrf.mxu0 }
 0x1f9   : > { %v5736_v25 = vpop.f32.mrf.mxu1  ;;  %v5475_v27 = vadd.f32 %v5474_v19, %v5473_v18 }
 0x1fa   : > { %v2278_v5 = vadd.f32 %v2246_v11, %v7099_v32  ;;  %v2244_v2 = vmax.f32 %v2118_v29, 0.0  ;;  %v2129_v51 = vadd.f32 %v5736_v25, %v1968_v23  ;;  %v5476_v55 = vpop.f32.mrf.mxu0  ;;  %v5466_v32 = vadd.f32 %v5465_v45, %v5464_v42 }
 0x1fb   : > { %v2120_v47 = vpop.f32.mrf.mxu1  ;;  %v1989_v21 = vadd.f32 %v5475_v27, %v7906_v31 }
 0x1fc   : > { %2310 = vst.msk [vmem:[#allocation2 + $0x10] sm:$0xff] %vm265_vm0, %v2278_v5  ;;  %v2276_v17 = vadd.f32 %v2244_v2, %v7103_v34  ;;  %v2247_v10 = vmax.f32 %v2129_v51, 0.0  ;;  %v2121_v57 = vadd.f32 %v2120_v47, %v1960_v28  ;;  %v5477_v52 = vpop.f32.mrf.mxu0  ;;  %v1976_v56 = vadd.f32 %v5466_v32, %v7906_v31 }
 0x1fd   : > { %v5739_v6 = vpop.f32.mrf.mxu1  ;;  %v5478_v11 = vadd.f32 %v5477_v52, %v5476_v55 }
 0x1fe   : > { %2308 = vst.msk [vmem:[#allocation2] sm:$0xff] %vm265_vm0, %v2276_v17  ;;  %v2279_v24 = vadd.f32 %v2247_v10, %v7101_v33  ;;  %v2245_v3 = vmax.f32 %v2121_v57, 0.0  ;;  %v2142_v49 = vadd.f32 %v5739_v6, %v1981_v46 }
 0x1ff   : > { %v2133_v59 = vpop.f32.mrf.mxu1 }
 0x200   : > { %2311 = vst.msk [vmem:[#allocation2 + $0x18] sm:$0xff] %vm265_vm0, %v2279_v24  ;;  %v2277_v30 = vadd.f32 %v2245_v3, %v7159_v36  ;;  %v2250_v34 = vmax.f32 %v2142_v49, 0.0  ;;  %v2134_v62 = vadd.f32 %v2133_v59, %v1973_v7  ;;  %v9547_v49 = vld [vmem:[#allocation7_spill] sm:$0xff] }
 0x201   : > { %v5479_v26 = vpop.f32.mrf.mxu0  ;;  %v5740_v13 = vpop.f32.mrf.mxu1 }
 0x202   : > { %2309 = vst.msk [vmem:[#allocation2 + $0x8] sm:$0xff] %vm265_vm0, %v2277_v30  ;;  %v2282_v42 = vadd.f32 %v2250_v34, %v7177_v39  ;;  %v2248_v33 = vmax.f32 %v2134_v62, 0.0  ;;  %v2145_v45 = vadd.f32 %v5740_v13, %v1984_v35 }
 0x203   : > { %v5480_v60 = vpop.f32.mrf.mxu0  ;;  %v2136_v43 = vpop.f32.mrf.mxu1 }
 0x204   : > { %2314 = vst.msk [vmem:[#allocation2 + $0x30] sm:$0xff] %vm265_vm0, %v2282_v42  ;;  %v2280_v36 = vadd.f32 %v2248_v33, %v7161_v37  ;;  %v2251_v14 = vmax.f32 %v2145_v45, 0.0  ;;  %v5481_v0 = vadd.f32 %v5480_v60, %v5479_v26  ;;  %v2137_v63 = vadd.f32 %v2136_v43, %v1976_v56  ;;  %v9548_v33 = vld [vmem:[#allocation18_spill] sm:$0xff] }
 0x205   : > { %v5482_v50 = vpop.f32.mrf.mxu0  ;;  %v5743_v1 = vpop.f32.mrf.mxu1 }
 0x206   : > { %2312 = vst.msk [vmem:[#allocation2 + $0x20] sm:$0xff] %vm265_vm0, %v2280_v36  ;;  %v2283_v39 = vadd.f32 %v2251_v14, %v7179_v40  ;;  %v2249_v29 = vmax.f32 %v2137_v63, 0.0  ;;  %v1997_v18 = vadd.f32 %v5481_v0, %v7906_v31  ;;  %v1992_v40 = vadd.f32 %v5478_v11, %v7906_v31  ;;  %v9549_v63 = vld [vmem:[#allocation19_spill] sm:$0xff] }
 0x207   : > { %v5483_v23 = vpop.f32.mrf.mxu0  ;;  %v2149_v12 = vpop.f32.mrf.mxu1 }
 0x208   : > { %2315 = vst.msk [vmem:[#allocation2 + $0x38] sm:$0xff] %vm265_vm0, %v2283_v39  ;;  %v2281_v37 = vadd.f32 %v2249_v29, %v7163_v38  ;;  %v2158_v25 = vadd.f32 %v5743_v1, %v1997_v18  ;;  %v5484_v5 = vadd.f32 %v5483_v23, %v5482_v50  ;;  %v2150_v2 = vadd.f32 %v2149_v12, %v1989_v21 }
 0x209   : > { %v5744_v51 = vpop.f32.mrf.mxu1 }
 0x20a   : > { %2313 = vst.msk [vmem:[#allocation2 + $0x28] sm:$0xff] %vm265_vm0, %v2281_v37  ;;  %v2254_v19 = vmax.f32 %v2158_v25, 0.0  ;;  %v2252_v28 = vmax.f32 %v2150_v2, 0.0  ;;  %v2000_v47 = vadd.f32 %v5484_v5, %v7906_v31 }
 0x20b   : > { %v2152_v46 = vpop.f32.mrf.mxu1 }
 0x20c   : > { %v2286_v44 = vadd.f32 %v2254_v19, %v7229_v53  ;;  %v2284_v17 = vadd.f32 %v2252_v28, %v7181_v41  ;;  %v2161_v10 = vadd.f32 %v5744_v51, %v2000_v47  ;;  %v2153_v57 = vadd.f32 %v2152_v46, %v1992_v40  ;;  %v9550_v51 = vld [vmem:[#allocation20_spill] sm:$0xff] }
 0x20d   : > { %v5485_v38 = vpop.f32.mrf.mxu0  ;;  %v5747_v55 = vpop.f32.mrf.mxu1  ;;  %v2061_v47 = vadd.f32 %v7887_v15, %v7906_v31 }
 0x20e   : > { %2318 = vst.msk [vmem:[#allocation2 + $0x50] sm:$0xff] %vm265_vm0, %v2286_v44  ;;  %2316 = vst.msk [vmem:[#allocation2 + $0x40] sm:$0xff] %vm265_vm0, %v2284_v17  ;;  %v2255_v6 = vmax.f32 %v2161_v10, 0.0  ;;  %v2253_v7 = vmax.f32 %v2153_v57, 0.0  ;;  %v2053_v10 = vadd.f32 %v7883_v48, %v7906_v31  ;;  %v5541_v57 = vadd.f32 %v7897_v16, %v7895_v8 }
 0x20f   : > { %v5486_v32 = vpop.f32.mrf.mxu0  ;;  %v2165_v24 = vpop.f32.mrf.mxu1  ;;  %v5544_v16 = vadd.f32 %v7901_v61, %v7899_v4  ;;  %v9554_v61 = vld [vmem:[#allocation13_spill] sm:$0xff] }
 0x210   : > { %v2287_v3 = vadd.f32 %v2255_v6, %v7235_v54  ;;  %v2285_v52 = vadd.f32 %v2253_v7, %v9547_v49  ;;  %v5487_v59 = vadd.f32 %v5486_v32, %v5485_v38  ;;  %v2064_v6 = vadd.f32 %v7889_v9, %v7906_v31  ;;  %v9551_v7 = vld [vmem:[#allocation21_spill] sm:$0xff] }
 0x211   : > { %v5488_v53 = vpop.f32.mrf.mxu0  ;;  %v5748_v30 = vpop.f32.mrf.mxu1  ;;  %v2056_v9 = vadd.f32 %v7885_v20, %v7906_v31 }
 0x212   : > { %2319 = vst.msk [vmem:[#allocation2 + $0x58] sm:$0xff] %vm265_vm0, %v2287_v3  ;;  %2317 = vst.msk [vmem:[#allocation2 + $0x48] sm:$0xff] %vm265_vm0, %v2285_v52  ;;  %v2005_v41 = vadd.f32 %v5487_v59, %v7906_v31  ;;  %v9552_v59 = vld [vmem:[#allocation12_spill] sm:$0xff] }
 0x213   : > { %v5489_v34 = vpop.f32.mrf.mxu0  ;;  %v2168_v62 = vpop.f32.mrf.mxu1 }
 0x214   : > { %v2166_v35 = vadd.f32 %v2165_v24, %v2005_v41  ;;  %v5490_v27 = vadd.f32 %v5489_v34, %v5488_v53 }
 0x215   : > { %v7945_v26 = vpop.f32.mrf.mxu1 }
 0x216   : > { %v2256_v13 = vmax.f32 %v2166_v35, 0.0  ;;  %v2008_v54 = vadd.f32 %v5490_v27, %v7906_v31  ;;  %v9553_v27 = vld [vmem:[#allocation8_spill] sm:$0xff] }
 0x217   : > { %v2181_v42 = vpop.f32.mrf.mxu1 }
 0x218   : > { %v2288_v45 = vadd.f32 %v2256_v13, %v9548_v33  ;;  %v2169_v56 = vadd.f32 %v2168_v62, %v2008_v54  ;;  %v2077_v62 = vadd.f32 %v5541_v57, %v7906_v31  ;;  %v9559_v57 = vld [vmem:[#allocation14_spill] sm:$0xff] }
 0x219   : > { %v5491_v60 = vpop.f32.mrf.mxu0  ;;  %v7949_v43 = vpop.f32.mrf.mxu1 }
 0x21a   : > { %2320 = vst.msk [vmem:[#allocation2 + $0x60] sm:$0xff] %vm265_vm0, %v2288_v45  ;;  %v2257_v36 = vmax.f32 %v2169_v56, 0.0 }
 0x21b   : > { %v5492_v14 = vpop.f32.mrf.mxu0  ;;  %v2184_v0 = vpop.f32.mrf.mxu1 }
 0x21c   : > { %v2289_v50 = vadd.f32 %v2257_v36, %v9549_v63  ;;  %v5493_v1 = vadd.f32 %v5492_v14, %v5491_v60  ;;  %v2069_v60 = vadd.f32 %v7891_v58, %v7906_v31  ;;  %v9556_v58 = vld [vmem:[#allocation9_spill] sm:$0xff] }
 0x21d   : > { %v5494_v21 = vpop.f32.mrf.mxu0  ;;  %v7953_v11 = vpop.f32.mrf.mxu1 }
 0x21e   : > { %2321 = vst.msk [vmem:[#allocation2 + $0x68] sm:$0xff] %vm265_vm0, %v2289_v50  ;;  %v2013_v39 = vadd.f32 %v5493_v1, %v7906_v31  ;;  %v9555_v1 = vld [vmem:[#allocation22_spill] sm:$0xff] }
 0x21f   : > { %v5495_v29 = vpop.f32.mrf.mxu0  ;;  %v7957_v18 = vpop.f32.mrf.mxu1 }
 0x220   : > { %v2174_v23 = vadd.f32 %v5747_v55, %v2013_v39  ;;  %v5496_v12 = vadd.f32 %v5495_v29, %v5494_v21 }
 0x221   : > { %v7959_v37 = vpop.f32.mrf.mxu1 }
 0x222   : > { %v2258_v25 = vmax.f32 %v2174_v23, 0.0  ;;  %v2016_v5 = vadd.f32 %v5496_v12, %v7906_v31 }
 0x223   : > { %v7962_v2 = vpop.f32.mrf.mxu1 }
 0x224   : > { %v2290_v19 = vadd.f32 %v2258_v25, %v9550_v51  ;;  %v2177_v28 = vadd.f32 %v5748_v30, %v2016_v5 }
 0x225   : > { %v5497_v40 = vpop.f32.mrf.mxu0  ;;  %v5759_v46 = vpop.f32.mrf.mxu1 }
 0x226   : > { %2322 = vst.msk [vmem:[#allocation2 + $0x70] sm:$0xff] %vm265_vm0, %v2290_v19  ;;  %v2259_v44 = vmax.f32 %v2177_v28, 0.0  ;;  %v2222_v17 = vadd.f32 %v5759_v46, %v2061_v47  ;;  %v9557_v19 = vld [vmem:[#allocation16_spill] sm:$0xff] }
 0x227   : > { %v5498_v38 = vpop.f32.mrf.mxu0  ;;  %v2213_v55 = vpop.f32.mrf.mxu1 }
 0x228   : > { %v2291_v32 = vadd.f32 %v2259_v44, %v9551_v7  ;;  %v2270_v15 = vmax.f32 %v2222_v17, 0.0  ;;  %v5499_v24 = vadd.f32 %v5498_v38, %v5497_v40  ;;  %v2214_v3 = vadd.f32 %v2213_v55, %v2053_v10  ;;  %v9558_v17 = vld [vmem:[#allocation23_spill] sm:$0xff] }
 0x229   : > { %v5500_v49 = vpop.f32.mrf.mxu0  ;;  %v5760_v52 = vpop.f32.mrf.mxu1  ;;  %v2072_v44 = vadd.f32 %v7893_v22, %v7906_v31 }
 0x22a   : > { %2323 = vst.msk [vmem:[#allocation2 + $0x78] sm:$0xff] %vm265_vm0, %v2291_v32  ;;  %v2302_v53 = vadd.f32 %v2270_v15, %v9552_v59  ;;  %v2021_v48 = vadd.f32 %v5499_v24, %v7906_v31  ;;  %v2268_v30 = vmax.f32 %v2214_v3, 0.0  ;;  %v2225_v8 = vadd.f32 %v5760_v52, %v2064_v6  ;;  %v9560_v15 = vld [vmem:[#allocation17_spill] sm:$0xff] }
 0x22b   : > { %v5501_v41 = vpop.f32.mrf.mxu0  ;;  %v2216_v34 = vpop.f32.mrf.mxu1 }
 0x22c   : > { %2334 = vst.msk [vmem:[#allocation2 + $0xd0] sm:$0xff] %vm265_vm0, %v2302_v53  ;;  %v2182_v35 = vadd.f32 %v2181_v42, %v2021_v48  ;;  %v2300_v13 = vadd.f32 %v2268_v30, %v9553_v27  ;;  %v2271_v54 = vmax.f32 %v2225_v8, 0.0  ;;  %v5502_v33 = vadd.f32 %v5501_v41, %v5500_v49  ;;  %v9561_v53 = vld [vmem:[#allocation15_spill] sm:$0xff]  ;;  %v9563_v27 = vld [vmem:[#allocation25_spill] sm:$0xff] }
 0x22d   : > { %v2217_v45 = vadd.f32 %v2216_v34, %v2056_v9  ;;  %v5763_v56 = vpop.f32.mrf.mxu1  ;;  %v2080_v42 = vadd.f32 %v5544_v16, %v7906_v31  ;;  %v9562_v16 = vld [vmem:[#allocation24_spill] sm:$0xff] }
 0x22e   : > { %v2260_v4 = vmax.f32 %v2182_v35, 0.0  ;;  %2332 = vst.msk [vmem:[#allocation2 + $0xc0] sm:$0xff] %vm265_vm0, %v2300_v13  ;;  %v2303_v20 = vadd.f32 %v2271_v54, %v9554_v61  ;;  %v2024_v36 = vadd.f32 %v5502_v33, %v7906_v31  ;;  %v2238_v14 = vadd.f32 %v5763_v56, %v2077_v62  ;;  %v9564_v61 = vld [vmem:[#allocation26_spill] sm:$0xff] }
 0x22f   : > { %v2269_v63 = vmax.f32 %v2217_v45, 0.0  ;;  %v2229_v50 = vpop.f32.mrf.mxu1 }
 0x230   : > { %v2292_v21 = vadd.f32 %v2260_v4, %v9555_v1  ;;  %2335 = vst.msk [vmem:[#allocation2 + $0xd8] sm:$0xff] %vm265_vm0, %v2303_v20  ;;  %v2185_v39 = vadd.f32 %v2184_v0, %v2024_v36  ;;  %v2274_v29 = vmax.f32 %v2238_v14, 0.0  ;;  %v2230_v23 = vadd.f32 %v2229_v50, %v2069_v60 }
 0x231   : > { %v2301_v12 = vadd.f32 %v2269_v63, %v9556_v58  ;;  %v5503_v25 = vpop.f32.mrf.mxu0  ;;  %v5764_v5 = vpop.f32.mrf.mxu1 }
 0x232   : > { %2324 = vst.msk [vmem:[#allocation2 + $0x80] sm:$0xff] %vm265_vm0, %v2292_v21  ;;  %v2261_v51 = vmax.f32 %v2185_v39, 0.0  ;;  %v2306_v28 = vadd.f32 %v2274_v29, %v9557_v19  ;;  %v2272_v47 = vmax.f32 %v2230_v23, 0.0  ;;  %v2241_v40 = vadd.f32 %v5764_v5, %v2080_v42  ;;  %v9565_v42 = vld [vmem:[#allocation27_spill] sm:$0xff] }
 0x233   : > { %2333 = vst.msk [vmem:[#allocation2 + $0xc8] sm:$0xff] %vm265_vm0, %v2301_v12  ;;  %v5504_v46 = vpop.f32.mrf.mxu0  ;;  %v2232_v0 = vpop.f32.mrf.mxu1 }
 0x234   : > { %v2293_v10 = vadd.f32 %v2261_v51, %v9558_v17  ;;  %2338 = vst.msk [vmem:[#allocation2 + $0xf0] sm:$0xff] %vm265_vm0, %v2306_v28  ;;  %v2304_v38 = vadd.f32 %v2272_v47, %v9559_v57  ;;  %v2275_v55 = vmax.f32 %v2241_v40, 0.0  ;;  %v5505_v6 = vadd.f32 %v5504_v46, %v5503_v25  ;;  %v9566_v25 = vld [vmem:[#allocation10_spill] sm:$0xff]  ;;  %v9567_v28 = vld [vmem:[#allocation11_spill] sm:$0xff] }
 0x235   : > { %v2233_v7 = vadd.f32 %v2232_v0, %v2072_v44  ;;  %v5506_v32 = vpop.f32.mrf.mxu0 }
 0x236   : > { %2325 = vst.msk [vmem:[#allocation2 + $0x88] sm:$0xff] %vm265_vm0, %v2293_v10  ;;  %2336 = vst.msk [vmem:[#allocation2 + $0xe0] sm:$0xff] %vm265_vm0, %v2304_v38  ;;  %v2307_v24 = vadd.f32 %v2275_v55, %v9560_v15  ;;  %v2029_v3 = vadd.f32 %v5505_v6, %v7906_v31 }
 0x237   : > { %v2273_v22 = vmax.f32 %v2233_v7, 0.0  ;;  %v5507_v49 = vpop.f32.mrf.mxu0 }
 0x238   : > { %2339 = vst.msk [vmem:[#allocation2 + $0xf8] sm:$0xff] %vm265_vm0, %v2307_v24  ;;  %v2190_v52 = vadd.f32 %v7945_v26, %v2029_v3  ;;  %v5508_v59 = vadd.f32 %v5507_v49, %v5506_v32 }
 0x239   : > { %v2305_v48 = vadd.f32 %v2273_v22, %v9561_v53 }
 0x23a   : > { %v2262_v30 = vmax.f32 %v2190_v52, 0.0  ;;  %v2032_v8 = vadd.f32 %v5508_v59, %v7906_v31 }
 0x23b   : > { %2337 = vst.msk [vmem:[#allocation2 + $0xe8] sm:$0xff] %vm265_vm0, %v2305_v48 }
 0x23c   : > { %v2294_v41 = vadd.f32 %v2262_v30, %v9562_v16  ;;  %v2193_v9 = vadd.f32 %v7949_v43, %v2032_v8 }
 0x23d   : > { %v5509_v34 = vpop.f32.mrf.mxu0 }
 0x23e   : > { %2326 = vst.msk [vmem:[#allocation2 + $0x90] sm:$0xff] %vm265_vm0, %v2294_v41  ;;  %v2263_v62 = vmax.f32 %v2193_v9, 0.0 }
 0x23f   : > { %v5510_v35 = vpop.f32.mrf.mxu0 }
 0x240   : > { %v2295_v13 = vadd.f32 %v2263_v62, %v9563_v27  ;;  %v5511_v26 = vadd.f32 %v5510_v35, %v5509_v34 }
 0x241   : > { %v5512_v54 = vpop.f32.mrf.mxu0 }
 0x242   : > { %2327 = vst.msk [vmem:[#allocation2 + $0x98] sm:$0xff] %vm265_vm0, %v2295_v13  ;;  %v2037_v33 = vadd.f32 %v5511_v26, %v7906_v31 }
 0x243   : > { %v5513_v45 = vpop.f32.mrf.mxu0 }
 0x244   : > { %v2198_v56 = vadd.f32 %v7957_v18, %v2037_v33  ;;  %v5514_v60 = vadd.f32 %v5513_v45, %v5512_v54 }
 0x246   : > { %v2264_v4 = vmax.f32 %v2198_v56, 0.0  ;;  %v2040_v43 = vadd.f32 %v5514_v60, %v7906_v31 }
 0x248   : > { %v2296_v20 = vadd.f32 %v2264_v4, %v9564_v61  ;;  %v2201_v36 = vadd.f32 %v7962_v2, %v2040_v43 }
 0x249   : > { %v5515_v14 = vpop.f32.mrf.mxu0 }
 0x24a   : > { %2328 = vst.msk [vmem:[#allocation2 + $0xa0] sm:$0xff] %vm265_vm0, %v2296_v20  ;;  %v2265_v63 = vmax.f32 %v2201_v36, 0.0 }
 0x24b   : > { %v5516_v50 = vpop.f32.mrf.mxu0 }
 0x24c   : > { %v2297_v1 = vadd.f32 %v2265_v63, %v9565_v42  ;;  %v5517_v21 = vadd.f32 %v5516_v50, %v5515_v14 }
 0x24d   : > { %v5518_v39 = vpop.f32.mrf.mxu0 }
 0x24e   : > { %2329 = vst.msk [vmem:[#allocation2 + $0xa8] sm:$0xff] %vm265_vm0, %v2297_v1  ;;  %v2045_v18 = vadd.f32 %v5517_v21, %v7906_v31 }
 0x24f   : > { %v5519_v29 = vpop.f32.mrf.mxu0 }
 0x250   : > { %v2206_v23 = vadd.f32 %v7953_v11, %v2045_v18  ;;  %v5520_v58 = vadd.f32 %v5519_v29, %v5518_v39 }
 0x252   : > { %v2266_v12 = vmax.f32 %v2206_v23, 0.0  ;;  %v2048_v2 = vadd.f32 %v5520_v58, %v7906_v31 }
 0x254   : > { %v2298_v5 = vadd.f32 %v2266_v12, %v9566_v25  ;;  %v2209_v51 = vadd.f32 %v7959_v37, %v2048_v2 }
 0x256   : > { %2330 = vst.msk [vmem:[#allocation2 + $0xb0] sm:$0xff] %vm265_vm0, %v2298_v5  ;;  %v2267_v19 = vmax.f32 %v2209_v51, 0.0 }
 0x258   : > { %v2299_v47 = vadd.f32 %v2267_v19, %v9567_v28 }
 0x25a   : > { %2331 = vst.msk [vmem:[#allocation2 + $0xb8] sm:$0xff] %vm265_vm0, %v2299_v47 }
 0x25b PF: > { %p5311_p10 = scmp.eq.s32.totalorder %s7021_s28, 0 }
 0x25d   : > { %2343 = sbr.rel (%p5311_p10) target bundleno = 850 (0x352), region = 48 }
 0x262   : > { %v6432_v11 = vld [vmem:[%s9481_s4 + $0x8] sm:$0xff]   ;;  %v6433_v31 = vld [vmem:[%s9481_s4] sm:$0xff]   ;;  %v8049_v17 = vld [vmem:[#allocation2 + $0x10] sm:$0xff] }
 0x263   : > { %5765 = vmatprep.subr.bf16.mxu0 %v6432_v11  ;;  %5889 = vmatprep.subr.bf16.mxu1 %v6432_v11  ;;  %v8039_v37 = vld [vmem:[#allocation2] sm:$0xff]  ;;  %v8041_v40 = vld [vmem:[#allocation2 + $0x8] sm:$0xff]  ;;  %v8051_v10 = vld [vmem:[#allocation2 + $0x18] sm:$0xff] }
 0x264   : > { %v8043_v46 = vld [vmem:[#allocation2 + $0x80] sm:$0xff]  ;;  %5766 = vmatpush3.bf16.msra.mxu0 %v6432_v11  ;;  %5891 = vmatpush3.bf16.msra.mxu1 %v6432_v11  ;;  %v2376_v44 = vpack.c.bf16 %v8041_v40, %v8039_v37  ;;  %v8047_v0 = vld [vmem:[#allocation2 + $0x88] sm:$0xff]  ;;  %v8055_v38 = vld [vmem:[#allocation2 + $0x90] sm:$0xff]  ;;  %v2377_v24 = vpack.c.bf16 %v8051_v10, %v8049_v17 }
 0x265   : > { %5767 = vmatprep.subr.bf16.mxu0 %v6433_v31  ;;  %5890 = vmatprep.subr.bf16.mxu1 %v6433_v31  ;;  %v2384_v57 = vpack.c.bf16 %v8047_v0, %v8043_v46  ;;  %v8057_v55 = vld [vmem:[#allocation2 + $0x98] sm:$0xff]  ;;  %v8059_v6 = vld [vmem:[#allocation2 + $0x20] sm:$0xff]  ;;  %v8062_v7 = vld [vmem:[#allocation2 + $0x28] sm:$0xff] }
 0x266   : > { %5769 = vmatprep.mubr.msk.bf16.mxu0 %vm265_vm0, %v2376_v44  ;;  %v8064_v32 = vld [vmem:[#allocation2 + $0xa0] sm:$0xff]  ;;  %v8066_v15 = vld [vmem:[#allocation2 + $0xa8] sm:$0xff]  ;;  %v2385_v3 = vpack.c.bf16 %v8057_v55, %v8055_v38  ;;  %v2378_v22 = vpack.c.bf16 %v8062_v7, %v8059_v6  ;;  %v8079_v52 = vld [vmem:[#allocation2 + $0x30] sm:$0xff] }
 0x267   : > { %5785 = vmatprep.mubr.msk.bf16.mxu1 %vm265_vm0, %v2384_v57  ;;  %v2386_v49 = vpack.c.bf16 %v8066_v15, %v8064_v32  ;;  %v8081_v59 = vld [vmem:[#allocation2 + $0x38] sm:$0xff]  ;;  %v8085_v53 = vld [vmem:[#allocation2 + $0xb0] sm:$0xff]  ;;  %v8089_v30 = vld [vmem:[#allocation2 + $0x40] sm:$0xff] }
 0x268   : > { %5768 = vmatpush3.bf16.msra.mxu0 %v6433_v31  ;;  %5892 = vmatpush3.bf16.msra.mxu1 %v6433_v31  ;;  %v8087_v48 = vld [vmem:[#allocation2 + $0xb8] sm:$0xff]  ;;  %v8091_v8 = vld [vmem:[#allocation2 + $0x48] sm:$0xff]  ;;  %v8093_v16 = vld [vmem:[#allocation2 + $0xc0] sm:$0xff]  ;;  %v2379_v9 = vpack.c.bf16 %v8081_v59, %v8079_v52 }
 0x269   : > { %v8095_v41 = vld [vmem:[#allocation2 + $0xc8] sm:$0xff]  ;;  %v2387_v34 = vpack.c.bf16 %v8087_v48, %v8085_v53  ;;  %v2380_v62 = vpack.c.bf16 %v8091_v8, %v8089_v30  ;;  %v8107_v27 = vld [vmem:[#allocation2 + $0x50] sm:$0xff]  ;;  %v8109_v13 = vld [vmem:[#allocation2 + $0x58] sm:$0xff] }
 0x26a   : > { %v2388_v35 = vpack.c.bf16 %v8095_v41, %v8093_v16  ;;  %v8113_v26 = vld [vmem:[#allocation2 + $0xd0] sm:$0xff]  ;;  %v8115_v54 = vld [vmem:[#allocation2 + $0xd8] sm:$0xff]  ;;  %v8117_v33 = vld [vmem:[#allocation2 + $0x60] sm:$0xff]  ;;  %v2381_v4 = vpack.c.bf16 %v8109_v13, %v8107_v27 }
 0x26b   : > { %5770 = vmatmul.mubr.msk.bf16.vlgmr.msra.gmra.mxu0 %vm265_vm0, %v2377_v24  ;;  %5786 = vmatmul.mubr.msk.bf16.vlgmr.msra.gmra.mxu1 %vm265_vm0, %v2385_v3  ;;  %v8119_v45 = vld [vmem:[#allocation2 + $0x68] sm:$0xff]  ;;  %v8121_v56 = vld [vmem:[#allocation2 + $0xe0] sm:$0xff]  ;;  %v2389_v43 = vpack.c.bf16 %v8115_v54, %v8113_v26  ;;  %v8135_v36 = vld [vmem:[#allocation2 + $0x70] sm:$0xff] }
 0x26c   : > { %5773 = vmatprep.mubr.msk.bf16.mxu0 %vm265_vm0, %v2378_v22  ;;  %5789 = vmatprep.mubr.msk.bf16.mxu1 %vm265_vm0, %v2386_v49  ;;  %v8123_v60 = vld [vmem:[#allocation2 + $0xe8] sm:$0xff]  ;;  %v2382_v61 = vpack.c.bf16 %v8119_v45, %v8117_v33  ;;  %v8139_v14 = vld [vmem:[#allocation2 + $0x78] sm:$0xff]  ;;  %v8141_v63 = vld [vmem:[#allocation2 + $0xf0] sm:$0xff] }
 0x26d   : > { %v2390_v20 = vpack.c.bf16 %v8123_v60, %v8121_v56  ;;  %v8143_v50 = vld [vmem:[#allocation2 + $0xf8] sm:$0xff]  ;;  %v2383_v42 = vpack.c.bf16 %v8139_v14, %v8135_v36  ;;  %v8154_v21 = vld [vmem:[%s9482_s5] ss:$0 sm:$0xff] }
 0x26e   : > { %v2391_v1 = vpack.c.bf16 %v8143_v50, %v8141_v63 }
 0x273   : > { %5774 = vmatmul.mubr.msk.bf16.gmra.mxu0 %vm265_vm0, %v2379_v9  ;;  %5790 = vmatmul.mubr.msk.bf16.gmra.mxu1 %vm265_vm0, %v2387_v34 }
 0x274   : > { %5777 = vmatprep.mubr.msk.bf16.mxu0 %vm265_vm0, %v2380_v62  ;;  %5793 = vmatprep.mubr.msk.bf16.mxu1 %vm265_vm0, %v2388_v35 }
 0x27b   : > { %5778 = vmatmul.mubr.msk.bf16.gmra.mxu0 %vm265_vm0, %v2381_v4  ;;  %5794 = vmatmul.mubr.msk.bf16.gmra.mxu1 %vm265_vm0, %v2389_v43 }
 0x27c   : > { %5781 = vmatprep.mubr.msk.bf16.mxu0 %vm265_vm0, %v2382_v61  ;;  %5797 = vmatprep.mubr.msk.bf16.mxu1 %vm265_vm0, %v2390_v20 }
 0x283   : > { %5782 = vmatmul.mubr.msk.bf16.gmra.mxu0 %vm265_vm0, %v2383_v42  ;;  %5798 = vmatmul.mubr.msk.bf16.gmra.mxu1 %vm265_vm0, %v2391_v1 }
 0x32b   : > { %v5771_v39 = vpop.f32.mrf.mxu0  ;;  %v5787_v18 = vpop.f32.mrf.mxu1 }
 0x32c   : > { %v2506_v29 = vadd.f32 %v5771_v39, %v8154_v21  ;;  %v2570_v23 = vadd.f32 %v5787_v18, %v8154_v21 }
 0x32d   : > { %v2497_v58 = vpop.f32.mrf.mxu0  ;;  %v2561_v12 = vpop.f32.mrf.mxu1 }
 0x32e   : > { %v2626_v2 = vmax.f32 %v2506_v29, 0.0  ;;  %v2642_v25 = vmax.f32 %v2570_v23, 0.0  ;;  %v2498_v5 = vadd.f32 %v8154_v21, %v2497_v58  ;;  %v2562_v51 = vadd.f32 %v8154_v21, %v2561_v12 }
 0x32f   : > { %v5772_v19 = vpop.f32.mrf.mxu0  ;;  %v5788_v28 = vpop.f32.mrf.mxu1 }
 0x330   : > { %v2658_v47 = vadd.f32 %v2626_v2, %v8049_v17  ;;  %v2674_v11 = vadd.f32 %v2642_v25, %v8055_v38  ;;  %v2624_v31 = vmax.f32 %v2498_v5, 0.0  ;;  %v2640_v44 = vmax.f32 %v2562_v51, 0.0 }
 0x331   : > { %v2509_v57 = vadd.f32 %v5772_v19, %v8154_v21  ;;  %v2573_v24 = vadd.f32 %v5788_v28, %v8154_v21  ;;  %v2500_v3 = vpop.f32.mrf.mxu0  ;;  %v2564_v22 = vpop.f32.mrf.mxu1 }
 0x332   : > { %2690 = vst.msk [vmem:[#allocation2 + $0x10] sm:$0xff] %vm265_vm0, %v2658_v47  ;;  %2706 = vst.msk [vmem:[#allocation2 + $0x90] sm:$0xff] %vm265_vm0, %v2674_v11  ;;  %v2656_v49 = vadd.f32 %v2624_v31, %v8039_v37  ;;  %v2672_v9 = vadd.f32 %v2640_v44, %v8043_v46  ;;  %v2501_v17 = vadd.f32 %v8154_v21, %v2500_v3 }
 0x333   : > { %v2565_v38 = vadd.f32 %v8154_v21, %v2564_v22  ;;  %v2627_v34 = vmax.f32 %v2509_v57, 0.0  ;;  %v2643_v62 = vmax.f32 %v2573_v24, 0.0  ;;  %v5775_v35 = vpop.f32.mrf.mxu0  ;;  %v5791_v4 = vpop.f32.mrf.mxu1 }
 0x334   : > { %2688 = vst.msk [vmem:[#allocation2] sm:$0xff] %vm265_vm0, %v2656_v49  ;;  %2704 = vst.msk [vmem:[#allocation2 + $0x80] sm:$0xff] %vm265_vm0, %v2672_v9  ;;  %v2625_v43 = vmax.f32 %v2501_v17, 0.0  ;;  %v2522_v20 = vadd.f32 %v5775_v35, %v8154_v21  ;;  %v2586_v37 = vadd.f32 %v5791_v4, %v8154_v21 }
 0x335   : > { %v2641_v61 = vmax.f32 %v2565_v38, 0.0  ;;  %v2659_v46 = vadd.f32 %v2627_v34, %v8051_v10  ;;  %v2675_v42 = vadd.f32 %v2643_v62, %v8057_v55  ;;  %v2513_v1 = vpop.f32.mrf.mxu0  ;;  %v2577_v39 = vpop.f32.mrf.mxu1 }
 0x336   : > { %v2657_v18 = vadd.f32 %v2625_v43, %v8041_v40  ;;  %v2630_v23 = vmax.f32 %v2522_v20, 0.0  ;;  %v2646_v58 = vmax.f32 %v2586_v37, 0.0  ;;  %v2514_v12 = vadd.f32 %v8154_v21, %v2513_v1 }
 0x337   : > { %v2673_v29 = vadd.f32 %v2641_v61, %v8047_v0  ;;  %2691 = vst.msk [vmem:[#allocation2 + $0x18] sm:$0xff] %vm265_vm0, %v2659_v46  ;;  %2707 = vst.msk [vmem:[#allocation2 + $0x98] sm:$0xff] %vm265_vm0, %v2675_v42  ;;  %v2578_v2 = vadd.f32 %v8154_v21, %v2577_v39  ;;  %v5776_v25 = vpop.f32.mrf.mxu0  ;;  %v5792_v10 = vpop.f32.mrf.mxu1 }
 0x338   : > { %2689 = vst.msk [vmem:[#allocation2 + $0x8] sm:$0xff] %vm265_vm0, %v2657_v18  ;;  %v2662_v40 = vadd.f32 %v2630_v23, %v8079_v52  ;;  %v2678_v0 = vadd.f32 %v2646_v58, %v8085_v53  ;;  %v2525_v55 = vadd.f32 %v5776_v25, %v8154_v21  ;;  %v2589_v5 = vadd.f32 %v5792_v10, %v8154_v21 }
 0x339   : > { %2705 = vst.msk [vmem:[#allocation2 + $0x88] sm:$0xff] %vm265_vm0, %v2673_v29  ;;  %v2628_v51 = vmax.f32 %v2514_v12, 0.0  ;;  %v2644_v19 = vmax.f32 %v2578_v2, 0.0  ;;  %v2516_v28 = vpop.f32.mrf.mxu0  ;;  %v2580_v47 = vpop.f32.mrf.mxu1 }
 0x33a   : > { %2694 = vst.msk [vmem:[#allocation2 + $0x30] sm:$0xff] %vm265_vm0, %v2662_v40  ;;  %2710 = vst.msk [vmem:[#allocation2 + $0xb0] sm:$0xff] %vm265_vm0, %v2678_v0  ;;  %v2631_v11 = vmax.f32 %v2525_v55, 0.0  ;;  %v2647_v31 = vmax.f32 %v2589_v5, 0.0  ;;  %v2517_v44 = vadd.f32 %v8154_v21, %v2516_v28  ;;  %v2581_v52 = vadd.f32 %v8154_v21, %v2580_v47 }
 0x33b   : > { %v2660_v53 = vadd.f32 %v2628_v51, %v8059_v6  ;;  %v2676_v57 = vadd.f32 %v2644_v19, %v8064_v32  ;;  %v5779_v24 = vpop.f32.mrf.mxu0  ;;  %v5795_v3 = vpop.f32.mrf.mxu1 }
 0x33c   : > { %v2663_v22 = vadd.f32 %v2631_v11, %v8081_v59  ;;  %v2679_v49 = vadd.f32 %v2647_v31, %v8087_v48  ;;  %v2629_v9 = vmax.f32 %v2517_v44, 0.0  ;;  %v2645_v17 = vmax.f32 %v2581_v52, 0.0 }
 0x33d   : > { %2692 = vst.msk [vmem:[#allocation2 + $0x20] sm:$0xff] %vm265_vm0, %v2660_v53  ;;  %2708 = vst.msk [vmem:[#allocation2 + $0xa0] sm:$0xff] %vm265_vm0, %v2676_v57  ;;  %v2538_v38 = vadd.f32 %v5779_v24, %v8154_v21  ;;  %v2602_v34 = vadd.f32 %v5795_v3, %v8154_v21  ;;  %v2529_v62 = vpop.f32.mrf.mxu0  ;;  %v2593_v6 = vpop.f32.mrf.mxu1 }
 0x33e   : > { %2695 = vst.msk [vmem:[#allocation2 + $0x38] sm:$0xff] %vm265_vm0, %v2663_v22  ;;  %2711 = vst.msk [vmem:[#allocation2 + $0xb8] sm:$0xff] %vm265_vm0, %v2679_v49  ;;  %v2661_v32 = vadd.f32 %v2629_v9, %v8062_v7  ;;  %v2677_v59 = vadd.f32 %v2645_v17, %v8066_v15  ;;  %v2530_v48 = vadd.f32 %v8154_v21, %v2529_v62 }
 0x33f   : > { %v2594_v35 = vadd.f32 %v8154_v21, %v2593_v6  ;;  %v2634_v4 = vmax.f32 %v2538_v38, 0.0  ;;  %v2650_v43 = vmax.f32 %v2602_v34, 0.0  ;;  %v5780_v61 = vpop.f32.mrf.mxu0  ;;  %v5796_v20 = vpop.f32.mrf.mxu1 }
 0x340   : > { %2693 = vst.msk [vmem:[#allocation2 + $0x28] sm:$0xff] %vm265_vm0, %v2661_v32  ;;  %2709 = vst.msk [vmem:[#allocation2 + $0xa8] sm:$0xff] %vm265_vm0, %v2677_v59  ;;  %v2632_v37 = vmax.f32 %v2530_v48, 0.0  ;;  %v2541_v42 = vadd.f32 %v5780_v61, %v8154_v21  ;;  %v2605_v7 = vadd.f32 %v5796_v20, %v8154_v21 }
 0x341   : > { %v2648_v46 = vmax.f32 %v2594_v35, 0.0  ;;  %v2666_v15 = vadd.f32 %v2634_v4, %v8107_v27  ;;  %v2682_v1 = vadd.f32 %v2650_v43, %v8113_v26  ;;  %v2532_v39 = vpop.f32.mrf.mxu0  ;;  %v2596_v18 = vpop.f32.mrf.mxu1 }
 0x342   : > { %v2664_v29 = vadd.f32 %v2632_v37, %v8089_v30  ;;  %v2635_v58 = vmax.f32 %v2541_v42, 0.0  ;;  %v2651_v12 = vmax.f32 %v2605_v7, 0.0  ;;  %v2533_v2 = vadd.f32 %v8154_v21, %v2532_v39 }
 0x343   : > { %v2680_v23 = vadd.f32 %v2648_v46, %v8093_v16  ;;  %2698 = vst.msk [vmem:[#allocation2 + $0x50] sm:$0xff] %vm265_vm0, %v2666_v15  ;;  %2714 = vst.msk [vmem:[#allocation2 + $0xd0] sm:$0xff] %vm265_vm0, %v2682_v1  ;;  %v2597_v25 = vadd.f32 %v8154_v21, %v2596_v18  ;;  %v5783_v10 = vpop.f32.mrf.mxu0  ;;  %v5799_v27 = vpop.f32.mrf.mxu1 }
 0x344   : > { %2696 = vst.msk [vmem:[#allocation2 + $0x40] sm:$0xff] %vm265_vm0, %v2664_v29  ;;  %v2667_v30 = vadd.f32 %v2635_v58, %v8109_v13  ;;  %v2683_v16 = vadd.f32 %v2651_v12, %v8115_v54  ;;  %v2554_v26 = vadd.f32 %v5783_v10, %v8154_v21  ;;  %v2618_v40 = vadd.f32 %v5799_v27, %v8154_v21 }
 0x345   : > { %2712 = vst.msk [vmem:[#allocation2 + $0xc0] sm:$0xff] %vm265_vm0, %v2680_v23  ;;  %v2633_v0 = vmax.f32 %v2533_v2, 0.0  ;;  %v2649_v55 = vmax.f32 %v2597_v25, 0.0  ;;  %v2545_v5 = vpop.f32.mrf.mxu0  ;;  %v2609_v51 = vpop.f32.mrf.mxu1 }
 0x346   : > { %2699 = vst.msk [vmem:[#allocation2 + $0x58] sm:$0xff] %vm265_vm0, %v2667_v30  ;;  %2715 = vst.msk [vmem:[#allocation2 + $0xd8] sm:$0xff] %vm265_vm0, %v2683_v16  ;;  %v2638_v19 = vmax.f32 %v2554_v26, 0.0  ;;  %v2654_v28 = vmax.f32 %v2618_v40, 0.0  ;;  %v2546_v47 = vadd.f32 %v8154_v21, %v2545_v5  ;;  %v2610_v13 = vadd.f32 %v8154_v21, %v2609_v51 }
 0x347   : > { %v2665_v54 = vadd.f32 %v2633_v0, %v8091_v8  ;;  %v2681_v11 = vadd.f32 %v2649_v55, %v8095_v41  ;;  %v5784_v31 = vpop.f32.mrf.mxu0  ;;  %v5800_v44 = vpop.f32.mrf.mxu1 }
 0x348   : > { %v2670_v52 = vadd.f32 %v2638_v19, %v8135_v36  ;;  %v2686_v53 = vadd.f32 %v2654_v28, %v8141_v63  ;;  %v2636_v57 = vmax.f32 %v2546_v47, 0.0  ;;  %v2652_v24 = vmax.f32 %v2610_v13, 0.0 }
 0x349   : > { %2697 = vst.msk [vmem:[#allocation2 + $0x48] sm:$0xff] %vm265_vm0, %v2665_v54  ;;  %2713 = vst.msk [vmem:[#allocation2 + $0xc8] sm:$0xff] %vm265_vm0, %v2681_v11  ;;  %v2557_v3 = vadd.f32 %v5784_v31, %v8154_v21  ;;  %v2621_v22 = vadd.f32 %v5800_v44, %v8154_v21  ;;  %v2548_v49 = vpop.f32.mrf.mxu0  ;;  %v2612_v8 = vpop.f32.mrf.mxu1 }
 0x34a   : > { %2702 = vst.msk [vmem:[#allocation2 + $0x70] sm:$0xff] %vm265_vm0, %v2670_v52  ;;  %2718 = vst.msk [vmem:[#allocation2 + $0xf0] sm:$0xff] %vm265_vm0, %v2686_v53  ;;  %v2668_v41 = vadd.f32 %v2636_v57, %v8117_v33  ;;  %v2684_v36 = vadd.f32 %v2652_v24, %v8121_v56  ;;  %v2549_v63 = vadd.f32 %v8154_v21, %v2548_v49 }
 0x34b   : > { %v2613_v9 = vadd.f32 %v8154_v21, %v2612_v8  ;;  %v2639_v17 = vmax.f32 %v2557_v3, 0.0  ;;  %v2655_v38 = vmax.f32 %v2621_v22, 0.0 }
 0x34c   : > { %2700 = vst.msk [vmem:[#allocation2 + $0x60] sm:$0xff] %vm265_vm0, %v2668_v41  ;;  %2716 = vst.msk [vmem:[#allocation2 + $0xe0] sm:$0xff] %vm265_vm0, %v2684_v36  ;;  %v2637_v34 = vmax.f32 %v2549_v63, 0.0 }
 0x34d   : > { %v2653_v62 = vmax.f32 %v2613_v9, 0.0  ;;  %v2671_v6 = vadd.f32 %v2639_v17, %v8139_v14  ;;  %v2687_v32 = vadd.f32 %v2655_v38, %v8143_v50 }
 0x34e   : > { %v2669_v33 = vadd.f32 %v2637_v34, %v8119_v45 }
 0x34f   : > { %v2685_v56 = vadd.f32 %v2653_v62, %v8123_v60  ;;  %2703 = vst.msk [vmem:[#allocation2 + $0x78] sm:$0xff] %vm265_vm0, %v2671_v6  ;;  %2719 = vst.msk [vmem:[#allocation2 + $0xf8] sm:$0xff] %vm265_vm0, %v2687_v32 }
 0x350   : > { %2701 = vst.msk [vmem:[#allocation2 + $0x68] sm:$0xff] %vm265_vm0, %v2669_v33 }
 0x351   : > { %2717 = vst.msk [vmem:[#allocation2 + $0xe8] sm:$0xff] %vm265_vm0, %v2685_v56 }
 0x352 PF: > { %s2720_s22 = sadd.s32 1, %s5274_s27 }
 0x353   : > { %s8254_s23 = sld [smem:[#allocation5 + %s2720_s22]] }
 0x359   : > { %p5331_p11 = scmp.ne.s32.totalorder %s8254_s23, 0 }
 0x35b   : > { %2725 = sbr.rel (%p5331_p11) target bundleno = 1420 (0x58c), region = 52 }
 0x360   : > { %vm2760_vm4 = vcmask 254976   ;;  %v8257_v45 = vld [vmem:[#allocation2 + $0x10] sm:$0xff]  ;;  %v8259_v60 = vld [vmem:[#allocation2 + $0x18] sm:$0xff]  ;;  %v8261_v14 = vld [vmem:[#allocation2] sm:$0xff]  ;;  %v6965_v50 = vmov 0.0   ;;  %s6966_s0 = smov 32  }
 0x361   : > { %2758 = vst.msk [vmem:[#allocation3] sm:$0xff] %vm265_vm0, %v6965_v50  ;;  %2759 = vst.msk [vmem:[#allocation3 + $0x8] sm:$0xff] %vm265_vm0, %v6965_v50  ;;  %v8317_v21 = vld [vmem:[#allocation2 + $0x8] sm:$0xff]  ;;  %v8319_v59 = vld [vmem:[#allocation2 + $0x20] sm:$0xff]  ;;  %s6967_s27 = smov 64   ;;  %s6968_s24 = smov 96  }
 0x362   : > { %2761 = vst.msk [vmem:[#allocation3 + $0x10] sm:$0x3] %vm2760_vm4, %v6965_v50  ;;  %2764 = vst.msk [vmem:[#allocation3 + $0x28] sm:$0x3] %vm2760_vm4, %v6965_v50  ;;  %v8321_v48 = vld [vmem:[#allocation2 + $0x28] sm:$0xff]  ;;  %v8335_v35 = vld [vmem:[#allocation2 + $0x30] sm:$0xff] }
 0x363   : > { %2762 = vst.msk [vmem:[#allocation3 + $0x18] sm:$0xff] %vm265_vm0, %v6965_v50  ;;  %2763 = vst.msk [vmem:[#allocation3 + $0x20] sm:$0xff] %vm265_vm0, %v6965_v50  ;;  %v8337_v4 = vld [vmem:[#allocation2 + $0x38] sm:$0xff]  ;;  %v8339_v43 = vld [vmem:[#allocation2 + $0x40] sm:$0xff]  ;;  %vm3935_vm5 = vcmask 523264   ;;  %vm3968_vm6 = vcmask 785408  }
 0x364   : > { %2765 = vst.msk [vmem:[#allocation3 + $0x30] sm:$0xff] %vm265_vm0, %v6965_v50  ;;  %2766 = vst.msk [vmem:[#allocation3 + $0x38] sm:$0xff] %vm265_vm0, %v6965_v50  ;;  %v8345_v61 = vld [vmem:[#allocation2 + $0x48] sm:$0xff]  ;;  %v8349_v20 = vld [vmem:[#allocation2 + $0xc0] sm:$0xff] }
 0x365   : > { %2767 = vst.msk [vmem:[#allocation3 + $0x40] sm:$0x3] %vm2760_vm4, %v6965_v50  ;;  %2770 = vst.msk [vmem:[#allocation3 + $0x58] sm:$0x3] %vm2760_vm4, %v6965_v50  ;;  %v8351_v37 = vld [vmem:[#allocation2 + $0xc8] sm:$0xff]  ;;  %v8359_v46 = vld [vmem:[#allocation2 + $0xb0] sm:$0xff] }
 0x366   : > { %2768 = vst.msk [vmem:[#allocation3 + $0x48] sm:$0xff] %vm265_vm0, %v6965_v50  ;;  %2769 = vst.msk [vmem:[#allocation3 + $0x50] sm:$0xff] %vm265_vm0, %v6965_v50  ;;  %v8361_v42 = vld [vmem:[#allocation2 + $0xb8] sm:$0xff]  ;;  %v8363_v7 = vld [vmem:[#allocation2 + $0xd0] sm:$0xff] }
 0x367   : > { %2771 = vst.msk [vmem:[#allocation3 + $0x60] sm:$0xff] %vm265_vm0, %v6965_v50  ;;  %2772 = vst.msk [vmem:[#allocation3 + $0x68] sm:$0xff] %vm265_vm0, %v6965_v50  ;;  %v8369_v15 = vld [vmem:[#allocation2 + $0xd8] sm:$0xff]  ;;  %v8373_v1 = vld [vmem:[#allocation2 + $0xe0] sm:$0xff] }
 0x368   : > { %2773 = vst.msk [vmem:[#allocation3 + $0x70] sm:$0x3] %vm2760_vm4, %v6965_v50  ;;  %2776 = vst.msk [vmem:[#allocation3 + $0x88] sm:$0x3] %vm2760_vm4, %v6965_v50  ;;  %v8375_v39 = vld [vmem:[#allocation2 + $0xe8] sm:$0xff]  ;;  %v8383_v18 = vld [vmem:[#allocation2 + $0xf0] sm:$0xff] }
 0x369   : > { %2774 = vst.msk [vmem:[#allocation3 + $0x78] sm:$0xff] %vm265_vm0, %v6965_v50  ;;  %2775 = vst.msk [vmem:[#allocation3 + $0x80] sm:$0xff] %vm265_vm0, %v6965_v50  ;;  %v8385_v29 = vld [vmem:[#allocation2 + $0xf8] sm:$0xff]  ;;  %v8387_v23 = vld [vmem:[#allocation2 + $0x50] sm:$0xff] }
 0x36a   : > { %2777 = vst.msk [vmem:[#allocation3 + $0x90] sm:$0xff] %vm265_vm0, %v6965_v50  ;;  %2778 = vst.msk [vmem:[#allocation3 + $0x98] sm:$0xff] %vm265_vm0, %v6965_v50  ;;  %v8393_v58 = vld [vmem:[#allocation2 + $0x58] sm:$0xff]  ;;  %v2878_v12 = vld [vmem:[#allocation3 + $0x1] sm:$0xff] }
 0x36b   : > { %2779 = vst.msk [vmem:[#allocation3 + $0xa0] sm:$0x3] %vm2760_vm4, %v6965_v50  ;;  %2782 = vst.msk [vmem:[#allocation3 + $0xb8] sm:$0x3] %vm2760_vm4, %v6965_v50  ;;  %v2879_v2 = vld [vmem:[#allocation3 + $0x9] sm:$0xff] }
 0x36c   : > { %2780 = vst.msk [vmem:[#allocation3 + $0xa8] sm:$0xff] %vm265_vm0, %v6965_v50  ;;  %2781 = vst.msk [vmem:[#allocation3 + $0xb0] sm:$0xff] %vm265_vm0, %v6965_v50  ;;  %v6434_v25 = vpack.i.bf16 %v2879_v2, %v2878_v12  ;;  %v2910_v24 = vld [vmem:[#allocation3 + $0x2] sm:$0xff]  ;;  %v2911_v3 = vld [vmem:[#allocation3 + $0xa] sm:$0xff] }
 0x36d   : > { %2783 = vst.msk [vmem:[#allocation3 + $0xc0] sm:$0xff] %vm265_vm0, %v6965_v50  ;;  %2784 = vst.msk [vmem:[#allocation3 + $0xc8] sm:$0xff] %vm265_vm0, %v6965_v50  ;;  %v6474_v22 = vpack.i.bf16 %v2911_v3, %v2910_v24  ;;  %v6914_v56 = vld [vmem:[%s9479_s2 + $0x108] sm:$0xff]   ;;  %v6919_v24 = vld [vmem:[%s9479_s2 + $0xb8] sm:$0xff]  }
 0x36e   : > { %2785 = vst.msk [vmem:[#allocation3 + $0xd0] sm:$0x3] %vm2760_vm4, %v6965_v50  ;;  %2788 = vst.msk [vmem:[#allocation3 + $0xe8] sm:$0x3] %vm2760_vm4, %v6965_v50  ;;  %6435 = vrot.lane.b32.xlu0 %v6434_v25, %s6966_s0  ;;  %v6915_v2 = vld [vmem:[%s9479_s2 + $0xc8] sm:$0xff]   ;;  %5581 = vmatprep.subr.bf16.mxu0 %v6914_v56 }
 0x36f   : > { %2786 = vst.msk [vmem:[#allocation3 + $0xd8] sm:$0xff] %vm265_vm0, %v6965_v50  ;;  %2787 = vst.msk [vmem:[#allocation3 + $0xe0] sm:$0xff] %vm265_vm0, %v6965_v50  ;;  %5893 = vmatprep.subr.bf16.mxu1 %v6914_v56  ;;  %5582 = vmatpush3.bf16.msra.mxu0 %v6915_v2 }
 0x370   : > { %2789 = vst.msk [vmem:[#allocation3 + $0xf0] sm:$0xff] %vm265_vm0, %v6965_v50  ;;  %2790 = vst.msk [vmem:[#allocation3 + $0xf8] sm:$0xff] %vm265_vm0, %v6965_v50  ;;  %5901 = vmatpush3.bf16.msra.mxu1 %v6915_v2 }
 0x371   : > { %2791 = vst.msk [vmem:[#allocation3 + $0x100] sm:$0x3] %vm2760_vm4, %v6965_v50  ;;  %2794 = vst.msk [vmem:[#allocation3 + $0x118] sm:$0x3] %vm2760_vm4, %v6965_v50 }
 0x372   : > { %2792 = vst.msk [vmem:[#allocation3 + $0x108] sm:$0xff] %vm265_vm0, %v6965_v50  ;;  %2793 = vst.msk [vmem:[#allocation3 + $0x110] sm:$0xff] %vm265_vm0, %v6965_v50 }
 0x373   : > { %2795 = vst.msk [vmem:[#allocation3 + $0x120] sm:$0xff] %vm265_vm0, %v6965_v50  ;;  %2796 = vst.msk [vmem:[#allocation3 + $0x128] sm:$0xff] %vm265_vm0, %v6965_v50 }
 0x374   : > { %2797 = vst.msk [vmem:[#allocation3 + $0x130] sm:$0x3] %vm2760_vm4, %v6965_v50  ;;  %2800 = vst.msk [vmem:[#allocation3 + $0x148] sm:$0x3] %vm2760_vm4, %v6965_v50 }
 0x375   : > { %2798 = vst.msk [vmem:[#allocation3 + $0x138] sm:$0xff] %vm265_vm0, %v6965_v50  ;;  %2799 = vst.msk [vmem:[#allocation3 + $0x140] sm:$0xff] %vm265_vm0, %v6965_v50 }
 0x376   : > { %2801 = vst.msk [vmem:[#allocation3 + $0x150] sm:$0xff] %vm265_vm0, %v6965_v50  ;;  %2802 = vst.msk [vmem:[#allocation3 + $0x158] sm:$0xff] %vm265_vm0, %v6965_v50 }
 0x377   : > { %2803 = vst.msk [vmem:[#allocation3 + $0x160] sm:$0x3] %vm2760_vm4, %v6965_v50  ;;  %2806 = vst.msk [vmem:[#allocation3 + $0x178] sm:$0x3] %vm2760_vm4, %v6965_v50 }
 0x378   : > { %2804 = vst.msk [vmem:[#allocation3 + $0x168] sm:$0xff] %vm265_vm0, %v6965_v50  ;;  %2805 = vst.msk [vmem:[#allocation3 + $0x170] sm:$0xff] %vm265_vm0, %v6965_v50 }
 0x379   : > { %2807 = vst.msk [vmem:[#allocation3 + $0x180] sm:$0xff] %vm265_vm0, %v6965_v50  ;;  %2808 = vst.msk [vmem:[#allocation3 + $0x188] sm:$0xff] %vm265_vm0, %v6965_v50 }
 0x37a   : > { %2809 = vst.msk [vmem:[#allocation3 + $0x190] sm:$0x3] %vm2760_vm4, %v6965_v50  ;;  %2812 = vst.msk [vmem:[#allocation3 + $0x1a8] sm:$0x3] %vm2760_vm4, %v6965_v50 }
 0x37b   : > { %2810 = vst.msk [vmem:[#allocation3 + $0x198] sm:$0xff] %vm265_vm0, %v6965_v50  ;;  %2811 = vst.msk [vmem:[#allocation3 + $0x1a0] sm:$0xff] %vm265_vm0, %v6965_v50 }
 0x37c   : > { %2816 = vst.msk [vmem:[#allocation3 + $0x31] sm:$0xff] %vm265_vm0, %v8257_v45  ;;  %2817 = vst.msk [vmem:[#allocation3 + $0x39] sm:$0xff] %vm265_vm0, %v8259_v60 }
 0x37d   : > { %2814 = vst.msk [vmem:[#allocation3 + $0x19] sm:$0xff] %vm265_vm0, %v8261_v14  ;;  %2815 = vst.msk [vmem:[#allocation3 + $0x21] sm:$0xff] %vm265_vm0, %v8317_v21 }
 0x37e   : > { %2818 = vst.msk [vmem:[#allocation3 + $0x49] sm:$0xff] %vm265_vm0, %v8319_v59  ;;  %2819 = vst.msk [vmem:[#allocation3 + $0x51] sm:$0xff] %vm265_vm0, %v8321_v48 }
 0x37f   : > { %2820 = vst.msk [vmem:[#allocation3 + $0x61] sm:$0xff] %vm265_vm0, %v8335_v35  ;;  %2821 = vst.msk [vmem:[#allocation3 + $0x69] sm:$0xff] %vm265_vm0, %v8337_v4 }
 0x380   : > { %9568 = vst [vmem:[#allocation28_spill] sm:$0xff] %v8345_v61  ;;  %2822 = vst.msk [vmem:[#allocation3 + $0x79] sm:$0xff] %vm265_vm0, %v8339_v43 }
 0x381   : > { %9569 = vst [vmem:[#allocation29_spill] sm:$0xff] %v8349_v20  ;;  %9570 = vst [vmem:[#allocation30_spill] sm:$0xff] %v8351_v37 }
 0x382   : > { %2823 = vst.msk [vmem:[#allocation3 + $0x81] sm:$0xff] %vm265_vm0, %v8345_v61  ;;  %2838 = vst.msk [vmem:[#allocation3 + $0x139] sm:$0xff] %vm265_vm0, %v8349_v20 }
 0x383   : > { %2839 = vst.msk [vmem:[#allocation3 + $0x141] sm:$0xff] %vm265_vm0, %v8351_v37  ;;  %9571 = vst [vmem:[#allocation31_spill] sm:$0xff] %v8359_v46  ;;  %v2882_v10 = vld [vmem:[#allocation3 + $0x31] sm:$0xff]  ;;  %v2883_v27 = vld [vmem:[#allocation3 + $0x39] sm:$0xff] }
 0x384   : > { %9572 = vst [vmem:[#allocation32_spill] sm:$0xff] %v8361_v42  ;;  %9573 = vst [vmem:[#allocation33_spill] sm:$0xff] %v8363_v7  ;;  %v8399_v30 = vld [vmem:[#allocation3 + $0x19] sm:$0xff]  ;;  %v6444_v16 = vpack.i.bf16 %v2883_v27, %v2882_v10  ;;  %v8401_v26 = vld [vmem:[#allocation3 + $0x21] sm:$0xff] }
 0x385   : > { %2836 = vst.msk [vmem:[#allocation3 + $0x121] sm:$0xff] %vm265_vm0, %v8359_v46  ;;  %2837 = vst.msk [vmem:[#allocation3 + $0x129] sm:$0xff] %vm265_vm0, %v8361_v42  ;;  %v2884_v40 = vld [vmem:[#allocation3 + $0x49] sm:$0xff]  ;;  %v2885_v0 = vld [vmem:[#allocation3 + $0x51] sm:$0xff]  ;;  %v6439_v55 = vpack.i.bf16 %v8401_v26, %v8399_v30 }
 0x386   : > { %9574 = vst [vmem:[#allocation34_spill] sm:$0xff] %v8369_v15  ;;  %2840 = vst.msk [vmem:[#allocation3 + $0x151] sm:$0xff] %vm265_vm0, %v8363_v7  ;;  %6445 = vrot.lane.b32.xlu1 %v6444_v16, %s6966_s0  ;;  %v8407_v5 = vpack.i.bf16 %v2885_v0, %v2884_v40  ;;  %v2886_v51 = vld [vmem:[#allocation3 + $0x61] sm:$0xff]  ;;  %v2887_v19 = vld [vmem:[#allocation3 + $0x69] sm:$0xff] }
 0x387   : > { %9575 = vst [vmem:[#allocation35_spill] sm:$0xff] %v8373_v1  ;;  %9576 = vst [vmem:[#allocation36_spill] sm:$0xff] %v8375_v39  ;;  %v2888_v28 = vld [vmem:[#allocation3 + $0x79] sm:$0xff]  ;;  %6440 = vrot.lane.b32.xlu0 %v6439_v55, %s6966_s0  ;;  %v8410_v13 = vpack.i.bf16 %v2887_v19, %v2886_v51  ;;  %v3007_v31 = vld [vmem:[#allocation3 + $0x22] sm:$0xff] }
 0x388   : > { %2841 = vst.msk [vmem:[#allocation3 + $0x159] sm:$0xff] %vm265_vm0, %v8369_v15  ;;  %2842 = vst.msk [vmem:[#allocation3 + $0x169] sm:$0xff] %vm265_vm0, %v8373_v1  ;;  %v3006_v11 = vld [vmem:[#allocation3 + $0x1a] sm:$0xff]  ;;  %v8416_v44 = vld [vmem:[#allocation3 + $0x30] sm:$0xff] }
 0x389   : > { %2843 = vst.msk [vmem:[#allocation3 + $0x171] sm:$0xff] %vm265_vm0, %v8375_v39  ;;  %9577 = vst [vmem:[#allocation37_spill] sm:$0xff] %v8383_v18  ;;  %v2889_v47 = vld [vmem:[#allocation3 + $0x81] sm:$0xff]  ;;  %v8418_v52 = vld [vmem:[#allocation3 + $0x38] sm:$0xff]  ;;  %v8422_v53 = vpack.i.bf16 %v3007_v31, %v3006_v11 }
 0x38a   : > { %9578 = vst [vmem:[#allocation38_spill] sm:$0xff] %v8385_v29  ;;  %2844 = vst.msk [vmem:[#allocation3 + $0x181] sm:$0xff] %vm265_vm0, %v8383_v18  ;;  %6450 = vrot.lane.b32.xlu1 %v8407_v5, %s6966_s0  ;;  %v8414_v54 = vpack.i.bf16 %v2889_v47, %v2888_v28  ;;  %v8428_v57 = vpack.i.bf16 %v8418_v52, %v8416_v44  ;;  %v8434_v49 = vld [vmem:[#allocation3 + $0x18] sm:$0xff]  ;;  %v8436_v8 = vld [vmem:[#allocation3 + $0x20] sm:$0xff] }
 0x38b   : > { %2845 = vst.msk [vmem:[#allocation3 + $0x189] sm:$0xff] %vm265_vm0, %v8385_v29  ;;  %2824 = vst.msk [vmem:[#allocation3 + $0x91] sm:$0xff] %vm265_vm0, %v8387_v23  ;;  %6455 = vrot.lane.b32.xlu0 %v8410_v13, %s6966_s0  ;;  %v3030_v41 = vld [vmem:[#allocation3 + $0x13a] sm:$0xff]  ;;  %v3031_v36 = vld [vmem:[#allocation3 + $0x142] sm:$0xff]  ;;  %v6484_v63 = vpack.i.bf16 %v8436_v8, %v8434_v49 }
 0x38c   : > { %2825 = vst.msk [vmem:[#allocation3 + $0x99] sm:$0xff] %vm265_vm0, %v8393_v58  ;;  %v8442_v9 = vpack.i.bf16 %v3031_v36, %v3030_v41  ;;  %v2902_v17 = vld [vmem:[#allocation3 + $0x121] sm:$0xff]  ;;  %v2903_v38 = vld [vmem:[#allocation3 + $0x129] sm:$0xff]  ;;  %v8459_v10 = vld [vmem:[#allocation3 + $0x138] sm:$0xff] }
 0x38d   : > { %v3063_v34 = vld [vmem:[#allocation3 + $0x150] sm:$0xff]  ;;  %v2934_v6 = vld [vmem:[#allocation3 + $0x122] sm:$0xff]  ;;  %v6494_v32 = vpack.i.bf16 %v2903_v38, %v2902_v17  ;;  %v3009_v47 = vld [vmem:[#allocation3 + $0x3a] sm:$0xff] }
 0x38e   : > { %6460 = vrot.lane.b32.xlu1 %v8414_v54, %s6966_s0  ;;  %v2935_v33 = vld [vmem:[#allocation3 + $0x12a] sm:$0xff]  ;;  %v8461_v27 = vld [vmem:[#allocation3 + $0x140] sm:$0xff]  ;;  %v3008_v28 = vld [vmem:[#allocation3 + $0x32] sm:$0xff] }
 0x38f   : > { %6465 = vrot.lane.b32.xlu0 %v8422_v53, %s6966_s0  ;;  %v3064_v62 = vld [vmem:[#allocation3 + $0x158] sm:$0xff]  ;;  %v8466_v40 = vld [vmem:[#allocation2 + $0x60] sm:$0xff]  ;;  %v8468_v0 = vld [vmem:[#allocation2 + $0x68] sm:$0xff]  ;;  %v6504_v55 = vpack.i.bf16 %v2935_v33, %v2934_v6  ;;  %v6514_v3 = vpack.i.bf16 %v8461_v27, %v8459_v10  ;;  %v8498_v41 = vpack.i.bf16 %v3009_v47, %v3008_v28 }
 0x390   : > { %v8450_v50 = vpack.i.bf16 %v3064_v62, %v3063_v34  ;;  %v8452_v12 = vld [vmem:[#allocation3 + $0x151] sm:$0xff]  ;;  %v8457_v25 = vld [vmem:[#allocation3 + $0x159] sm:$0xff]  ;;  %9579 = vst [vmem:[#allocation39_spill] sm:$0xff] %v8466_v40  ;;  %9580 = vst [vmem:[#allocation40_spill] sm:$0xff] %v8468_v0 }
 0x391   : > { %2826 = vst.msk [vmem:[#allocation3 + $0xa9] sm:$0xff] %vm265_vm0, %v8466_v40  ;;  %2827 = vst.msk [vmem:[#allocation3 + $0xb1] sm:$0xff] %vm265_vm0, %v8468_v0  ;;  %v6917_v51 = vld [vmem:[%s9479_s2 + $0xc0] sm:$0xff]   ;;  %v8482_v19 = vpack.i.bf16 %v8457_v25, %v8452_v12  ;;  %v6918_v11 = vld [vmem:[%s9479_s2 + $0xf8] sm:$0xff]  }
 0x392   : > { %6470 = vrot.lane.b32.xlu1 %v8428_v57, %s6967_s27  ;;  %v3041_v31 = vld [vmem:[#allocation3 + $0x48] sm:$0xff]  ;;  %v8500_v36 = vld [vmem:[#allocation3 + $0x50] sm:$0xff]  ;;  %v8518_v62 = vld [vmem:[#allocation2 + $0x78] sm:$0xff] }
 0x393   : > { %6475 = vrot.lane.b32.xlu0 %v6474_v22, %s6967_s27  ;;  %v6920_v22 = vld [vmem:[%s9479_s2 + $0xf0] sm:$0xff]   ;;  %v8511_v38 = vpack.i.bf16 %v8500_v36, %v3041_v31  ;;  %v6922_v34 = vld [vmem:[%s9479_s2 + $0xe8] sm:$0xff]   ;;  %9582 = vst [vmem:[#allocation42_spill] sm:$0xff] %v8518_v62  ;;  %2829 = vst.msk [vmem:[#allocation3 + $0xc9] sm:$0xff] %vm265_vm0, %v8518_v62 }
 0x394   : > { %v6921_v17 = vld [vmem:[%s9479_s2 + $0xb0] sm:$0xff]   ;;  %v6924_v33 = vld [vmem:[%s9479_s2 + $0xe0] sm:$0xff]   ;;  %v8548_v47 = vld [vmem:[#allocation2 + $0x88] sm:$0xff] }
 0x395   : > { %v3032_v6 = vld [vmem:[#allocation3 + $0x152] sm:$0xff]  ;;  %v3033_v56 = vld [vmem:[#allocation3 + $0x15a] sm:$0xff]  ;;  %9584 = vst [vmem:[#allocation44_spill] sm:$0xff] %v8548_v47  ;;  %v3065_v31 = vld [vmem:[#allocation3 + $0x168] sm:$0xff] }
 0x396   : > { %6480 = vrot.lane.b32.xlu1 %v6444_v16, %s6968_s24  ;;  %v6916_v16 = vld [vmem:[%s9479_s2 + $0x100] sm:$0xff]   ;;  %2831 = vst.msk [vmem:[#allocation3 + $0xe1] sm:$0xff] %vm265_vm0, %v8548_v47  ;;  %v2847_v37 = vld [vmem:[#allocation3 + $0x8] sm:$0xff] }
 0x397   : > { %6485 = vrot.lane.b32.xlu0 %v6484_v63, %s6968_s24  ;;  %5583 = vmatprep.subr.bf16.mxu0 %v6916_v16  ;;  %v8502_v63 = vld [vmem:[#allocation2 + $0x70] sm:$0xff]  ;;  %v8532_v2 = vld [vmem:[#allocation3 + $0x139] sm:$0xff]  ;;  %v3012_v46 = vld [vmem:[#allocation3 + $0x62] sm:$0xff] }
 0x398   : > { %5894 = vmatprep.subr.bf16.mxu1 %v6916_v16  ;;  %5584 = vmatpush3.bf16.msra.mxu0 %v6917_v51  ;;  %9581 = vst [vmem:[#allocation41_spill] sm:$0xff] %v8502_v63  ;;  %2828 = vst.msk [vmem:[#allocation3 + $0xc1] sm:$0xff] %vm265_vm0, %v8502_v63  ;;  %v8534_v16 = vld [vmem:[#allocation3 + $0x141] sm:$0xff] }
 0x399   : > { %5902 = vmatpush3.bf16.msra.mxu1 %v6917_v51  ;;  %5585 = vmatprep.subr.bf16.mxu0 %v6918_v11  ;;  %v6926_v51 = vld [vmem:[%s9479_s2 + $0xd8] sm:$0xff]   ;;  %v8546_v28 = vld [vmem:[#allocation2 + $0x80] sm:$0xff] }
 0x39a   : > { %6490 = vrot.lane.b32.xlu1 %v8442_v9, %s6966_s0  ;;  %5895 = vmatprep.subr.bf16.mxu1 %v6918_v11  ;;  %9583 = vst [vmem:[#allocation43_spill] sm:$0xff] %v8546_v28  ;;  %v6549_v11 = vpack.i.bf16 %v8534_v16, %v8532_v2  ;;  %2830 = vst.msk [vmem:[#allocation3 + $0xd9] sm:$0xff] %vm265_vm0, %v8546_v28 }
 0x39b   : > { %6495 = vrot.lane.b32.xlu0 %v6494_v32, %s6966_s0  ;;  %v6923_v32 = vld [vmem:[%s9479_s2 + $0xa8] sm:$0xff]  }
 0x39c   : > { %5586 = vmatpush3.bf16.msra.mxu0 %v6919_v24 }
 0x39d   : > { %5903 = vmatpush3.bf16.msra.mxu1 %v6919_v24  ;;  %5587 = vmatprep.subr.bf16.mxu0 %v6920_v22  ;;  %v3066_v24 = vld [vmem:[#allocation3 + $0x170] sm:$0xff] }
 0x39e   : > { %6500 = vrot.lane.b32.xlu1 %v8450_v50, %s6967_s27  ;;  %5896 = vmatprep.subr.bf16.mxu1 %v6920_v22  ;;  %v6928_v22 = vld [vmem:[%s9479_s2 + $0xd0] sm:$0xff]  }
 0x39f   : > { %6505 = vrot.lane.b32.xlu0 %v6504_v55, %s6967_s27  ;;  %v6925_v55 = vld [vmem:[%s9479_s2 + $0xa0] sm:$0xff]  }
 0x3a0   : > { %5588 = vmatpush3.bf16.msra.mxu0 %v6921_v17 }
 0x3a1   : > { %5904 = vmatpush3.bf16.msra.mxu1 %v6921_v17  ;;  %5589 = vmatprep.subr.bf16.mxu0 %v6922_v34  ;;  %v8566_v17 = vld [vmem:[#allocation2 + $0x90] sm:$0xff]  ;;  %v3053_v29 = vld [vmem:[#allocation3 + $0xd8] sm:$0xff]  ;;  %v3054_v1 = vld [vmem:[#allocation3 + $0xe0] sm:$0xff] }
 0x3a2   : > { %6510 = vrot.lane.b32.xlu1 %v8482_v19, %s6968_s24  ;;  %5897 = vmatprep.subr.bf16.mxu1 %v6922_v34  ;;  %9585 = vst [vmem:[#allocation45_spill] sm:$0xff] %v8566_v17  ;;  %v8568_v34 = vld [vmem:[#allocation2 + $0x98] sm:$0xff]  ;;  %2832 = vst.msk [vmem:[#allocation3 + $0xf1] sm:$0xff] %vm265_vm0, %v8566_v17 }
 0x3a3   : > { %6515 = vrot.lane.b32.xlu0 %v6514_v3, %s6968_s24  ;;  %v6927_v3 = vld [vmem:[%s9479_s2 + $0x98] sm:$0xff]   ;;  %9586 = vst [vmem:[#allocation46_spill] sm:$0xff] %v8568_v34  ;;  %2833 = vst.msk [vmem:[#allocation3 + $0xf9] sm:$0xff] %vm265_vm0, %v8568_v34  ;;  %v3021_v34 = vld [vmem:[#allocation3 + $0xca] sm:$0xff] }
 0x3a4   : > { %5590 = vmatpush3.bf16.msra.mxu0 %v6923_v32 }
 0x3a5   : > { %5905 = vmatpush3.bf16.msra.mxu1 %v6923_v32  ;;  %5591 = vmatprep.subr.bf16.mxu0 %v6924_v33  ;;  %v8575_v32 = vld [vmem:[#allocation2 + $0xa0] sm:$0xff] }
 0x3a6   : > { %6520 = vrot.lane.b32.xlu1 %v8498_v41, %s6966_s0  ;;  %5898 = vmatprep.subr.bf16.mxu1 %v6924_v33  ;;  %9587 = vst [vmem:[#allocation47_spill] sm:$0xff] %v8575_v32  ;;  %v8577_v33 = vld [vmem:[#allocation2 + $0xa8] sm:$0xff]  ;;  %2834 = vst.msk [vmem:[#allocation3 + $0x109] sm:$0xff] %vm265_vm0, %v8575_v32 }
 0x3a7   : > { %6525 = vrot.lane.b32.xlu0 %v8511_v38, %s6967_s27  ;;  %9588 = vst [vmem:[#allocation48_spill] sm:$0xff] %v8577_v33  ;;  %2835 = vst.msk [vmem:[#allocation3 + $0x111] sm:$0xff] %vm265_vm0, %v8577_v33  ;;  %v3013_v33 = vld [vmem:[#allocation3 + $0x6a] sm:$0xff] }
 0x3a8   : > { %5592 = vmatpush3.bf16.msra.mxu0 %v6925_v55 }
 0x3a9   : > { %5906 = vmatpush3.bf16.msra.mxu1 %v6925_v55  ;;  %5593 = vmatprep.subr.bf16.mxu0 %v6926_v51 }
 0x3aa   : > { %6530 = vrot.lane.b32.xlu1 %v8422_v53, %s6967_s27  ;;  %v8544_v53 = vpack.i.bf16 %v3033_v56, %v3032_v6  ;;  %v3098_v6 = vld [vmem:[#allocation3 + $0x171] sm:$0xff]  ;;  %5899 = vmatprep.subr.bf16.mxu1 %v6926_v51 }
 0x3ab   : > { %6535 = vrot.lane.b32.xlu0 %v8407_v5, %s6968_s24  ;;  %v3097_v5 = vld [vmem:[#allocation3 + $0x169] sm:$0xff] }
 0x3ac   : > { %v6929_v56 = vld [vmem:[%s9479_s2 + $0x90] sm:$0xff]   ;;  %5594 = vmatpush3.bf16.msra.mxu0 %v6927_v3  ;;  %v6564_v55 = vpack.i.bf16 %v3098_v6, %v3097_v5  ;;  %v3067_v6 = vld [vmem:[#allocation3 + $0x180] sm:$0xff] }
 0x3ad   : > { %5907 = vmatpush3.bf16.msra.mxu1 %v6927_v3  ;;  %5595 = vmatprep.subr.bf16.mxu0 %v6928_v22  ;;  %v3010_v51 = vld [vmem:[#allocation3 + $0x4a] sm:$0xff]  ;;  %v3035_v3 = vld [vmem:[#allocation3 + $0x172] sm:$0xff] }
 0x3ae   : > { %6540 = vrot.lane.b32.xlu1 %v8428_v57, %s6968_s24  ;;  %v6554_v57 = vpack.i.bf16 %v3066_v24, %v3065_v31  ;;  %5900 = vmatprep.subr.bf16.mxu1 %v6928_v22  ;;  %v8589_v31 = vld [vmem:[#allocation3 + $0x60] sm:$0xff]  ;;  %v8591_v24 = vld [vmem:[#allocation3 + $0x68] sm:$0xff] }
 0x3af   : > { %6545 = vrot.lane.b32.xlu0 %v8544_v53, %s6966_s0  ;;  %v6579_v5 = vpack.i.bf16 %v8591_v24, %v8589_v31 }
 0x3b0   : > { %5596 = vmatpush3.bf16.msra.mxu0 %v6929_v56 }
 0x3b1   : > { %5908 = vmatpush3.bf16.msra.mxu1 %v6929_v56  ;;  %v3068_v56 = vld [vmem:[#allocation3 + $0x188] sm:$0xff] }
 0x3b2   : > { %6550 = vrot.lane.b32.xlu1 %v6549_v11, %s6966_s0  ;;  %v3011_v11 = vld [vmem:[#allocation3 + $0x52] sm:$0xff] }
 0x3b3   : > { %6555 = vrot.lane.b32.xlu0 %v6554_v57, %s6967_s27  ;;  %v6574_v42 = vpack.i.bf16 %v3011_v11, %v3010_v51  ;;  %v3099_v51 = vld [vmem:[#allocation3 + $0x181] sm:$0xff]  ;;  %v3100_v11 = vld [vmem:[#allocation3 + $0x189] sm:$0xff] }
 0x3b6   : > { %6560 = vrot.lane.b32.xlu1 %v8442_v9, %s6967_s27  ;;  %v3034_v9 = vld [vmem:[#allocation3 + $0x16a] sm:$0xff] }
 0x3b7   : > { %6565 = vrot.lane.b32.xlu0 %v6564_v55, %s6968_s24  ;;  %v6599_v22 = vpack.i.bf16 %v3035_v3, %v3034_v9  ;;  %v8615_v9 = vld [vmem:[#allocation3 + $0x80] sm:$0xff] }
 0x3b8   : > { %v3036_v3 = vld [vmem:[#allocation3 + $0x182] sm:$0xff] }
 0x3ba   : > { %6570 = vrot.lane.b32.xlu1 %v8450_v50, %s6968_s24  ;;  %v6609_v50 = vpack.i.bf16 %v3068_v56, %v3067_v6  ;;  %v3070_v6 = vld [vmem:[#allocation3 + $0x1a0] sm:$0xff] }
 0x3bb   : > { %6575 = vrot.lane.b32.xlu0 %v6574_v42, %s6966_s0 }
 0x3be   : > { %6580 = vrot.lane.b32.xlu1 %v6579_v5, %s6967_s27 }
 0x3bf   : > { %6585 = vrot.lane.b32.xlu0 %v8498_v41, %s6967_s27  ;;  %v6619_v41 = vpack.i.bf16 %v3100_v11, %v3099_v51  ;;  %v3102_v51 = vld [vmem:[#allocation3 + $0x1a1] sm:$0xff] }
 0x3c0   : > { %v3015_v11 = vld [vmem:[#allocation3 + $0x82] sm:$0xff] }
 0x3c2   : > { %6590 = vrot.lane.b32.xlu1 %v8410_v13, %s6968_s24  ;;  %v6629_v13 = vpack.i.bf16 %v3013_v33, %v3012_v46  ;;  %v3069_v33 = vld [vmem:[#allocation3 + $0x198] sm:$0xff] }
 0x3c3   : > { %6595 = vrot.lane.b32.xlu0 %v8511_v38, %s6968_s24  ;;  %v8613_v38 = vld [vmem:[#allocation3 + $0x78] sm:$0xff]  ;;  %v6664_v56 = vpack.i.bf16 %v3070_v6, %v3069_v33 }
 0x3c4   : > { %v3080_v33 = vld [vmem:[#allocation3 + $0x99] sm:$0xff] }
 0x3c6   : > { %6600 = vrot.lane.b32.xlu1 %v6599_v22, %s6966_s0 }
 0x3c7   : > { %6605 = vrot.lane.b32.xlu0 %v8482_v19, %s6966_s0  ;;  %v6634_v19 = vpack.i.bf16 %v8615_v9, %v8613_v38 }
 0x3ca   : > { %6610 = vrot.lane.b32.xlu1 %v6609_v50, %s6967_s27 }
 0x3cb   : > { %6615 = vrot.lane.b32.xlu0 %v8544_v53, %s6967_s27  ;;  %v3037_v53 = vld [vmem:[#allocation3 + $0x18a] sm:$0xff] }
 0x3cc   : > { %v6654_v46 = vpack.i.bf16 %v3037_v53, %v3036_v3  ;;  %v3048_v3 = vld [vmem:[#allocation3 + $0x98] sm:$0xff] }
 0x3ce   : > { %6620 = vrot.lane.b32.xlu1 %v6619_v41, %s6968_s24  ;;  %v3047_v41 = vld [vmem:[#allocation3 + $0x90] sm:$0xff] }
 0x3cf   : > { %6625 = vrot.lane.b32.xlu0 %v6554_v57, %s6968_s24  ;;  %v8629_v57 = vld [vmem:[%s9479_s2 + $0x118] sm:$0xff]  }
 0x3d0   : > { %5801 = vmatprep.subr.bf16.mxu1 %v8629_v57 }
 0x3d2   : > { %6630 = vrot.lane.b32.xlu1 %v6629_v13, %s6966_s0 }
 0x3d3   : > { %6635 = vrot.lane.b32.xlu0 %v6634_v19, %s6967_s27 }
 0x3d6   : > { %6640 = vrot.lane.b32.xlu1 %v6574_v42, %s6967_s27  ;;  %v3101_v42 = vld [vmem:[#allocation3 + $0x199] sm:$0xff] }
 0x3d7   : > { %6645 = vrot.lane.b32.xlu0 %v8414_v54, %s6968_s24  ;;  %v6674_v54 = vpack.i.bf16 %v3102_v51, %v3101_v42  ;;  %v3017_v42 = vld [vmem:[#allocation3 + $0x9a] sm:$0xff]  ;;  %v3049_v51 = vld [vmem:[#allocation3 + $0xa8] sm:$0xff] }
 0x3da   : > { %6650 = vrot.lane.b32.xlu1 %v6579_v5, %s6968_s24  ;;  %v3014_v5 = vld [vmem:[#allocation3 + $0x7a] sm:$0xff] }
 0x3db   : > { %6655 = vrot.lane.b32.xlu0 %v6654_v46, %s6966_s0  ;;  %v6684_v53 = vpack.i.bf16 %v3015_v11, %v3014_v5  ;;  %v6689_v46 = vpack.i.bf16 %v3048_v3, %v3047_v41  ;;  %v3081_v5 = vld [vmem:[#allocation3 + $0xa9] sm:$0xff]  ;;  %v3082_v11 = vld [vmem:[#allocation3 + $0xb1] sm:$0xff] }
 0x3dc   : > { %v6724_v41 = vpack.i.bf16 %v3082_v11, %v3081_v5  ;;  %v3018_v3 = vld [vmem:[#allocation3 + $0xaa] sm:$0xff]  ;;  %v3083_v5 = vld [vmem:[#allocation3 + $0xc1] sm:$0xff] }
 0x3dd   : > { %v3084_v11 = vld [vmem:[#allocation3 + $0xc9] sm:$0xff] }
 0x3de   : > { %6660 = vrot.lane.b32.xlu1 %v6564_v55, %s6966_s0  ;;  %v3079_v55 = vld [vmem:[#allocation3 + $0x91] sm:$0xff] }
 0x3df   : > { %6665 = vrot.lane.b32.xlu0 %v6664_v56, %s6967_s27  ;;  %v6699_v6 = vpack.i.bf16 %v3080_v33, %v3079_v55  ;;  %v3016_v56 = vld [vmem:[#allocation3 + $0x92] sm:$0xff] }
 0x3e0   : > { %v3019_v55 = vld [vmem:[#allocation3 + $0xb2] sm:$0xff] }
 0x3e2   : > { %6670 = vrot.lane.b32.xlu1 %v6599_v22, %s6967_s27  ;;  %v6709_v22 = vpack.i.bf16 %v3017_v42, %v3016_v56  ;;  %v8649_v56 = vpack.i.bf16 %v3019_v55, %v3018_v3  ;;  %v3052_v42 = vld [vmem:[#allocation3 + $0xc8] sm:$0xff] }
 0x3e3   : > { %6675 = vrot.lane.b32.xlu0 %v6674_v54, %s6968_s24  ;;  %v3050_v54 = vld [vmem:[#allocation3 + $0xb0] sm:$0xff]  ;;  %v3020_v55 = vld [vmem:[#allocation3 + $0xc2] sm:$0xff] }
 0x3e6   : > { %6680 = vrot.lane.b32.xlu1 %v6609_v50, %s6968_s24  ;;  %v6714_v50 = vpack.i.bf16 %v3050_v54, %v3049_v51 }
 0x3e7   : > { %6685 = vrot.lane.b32.xlu0 %v6684_v53, %s6966_s0 }
 0x3ea   : > { %6690 = vrot.lane.b32.xlu1 %v6689_v46, %s6967_s27 }
 0x3eb   : > { %6695 = vrot.lane.b32.xlu0 %v6629_v13, %s6967_s27  ;;  %v6436_v13 = vpop.permute.xlu0 %6435 }
 0x3ec   : > { %v6437_v28 = vunpack.i.l.bf16 %v6436_v13 }
 0x3ee   : > { %6700 = vrot.lane.b32.xlu1 %v6699_v6, %s6968_s24 }
 0x3ef   : > { %6705 = vrot.lane.b32.xlu0 %v6634_v19, %s6968_s24  ;;  %v3051_v19 = vld [vmem:[#allocation3 + $0xc0] sm:$0xff] }
 0x3f2   : > { %6710 = vrot.lane.b32.xlu1 %v6709_v22, %s6966_s0 }
 0x3f3   : > { %6715 = vrot.lane.b32.xlu0 %v6714_v50, %s6967_s27 }
 0x3f6   : > { %6720 = vrot.lane.b32.xlu1 %v6684_v53, %s6967_s27  ;;  %v8658_v53 = vpack.i.bf16 %v3052_v42, %v3051_v19 }
 0x3f7   : > { %6725 = vrot.lane.b32.xlu0 %v6724_v41, %s6968_s24 }
 0x3f8   : > { %v8646_v33 = vpop.permute.xlu1 %6445 }
 0x3f9   : > { %v8652_v51 = vpop.permute.xlu0 %6440 }
 0x3fa   : > { %6730 = vrot.lane.b32.xlu1 %v6689_v46, %s6968_s24  ;;  %v8667_v46 = vpack.i.bf16 %v3084_v11, %v3083_v5  ;;  %v6438_v5 = vunpack.i.h.bf16 %v6436_v13  ;;  %v3086_v13 = vld [vmem:[#allocation3 + $0xe1] sm:$0xff] }
 0x3fb   : > { %6735 = vrot.lane.b32.xlu0 %v8649_v56, %s6966_s0 }
 0x3fc   : > { %v8654_v54 = vpop.permute.xlu1 %6450 }
 0x3fd   : > { %v8661_v32 = vpop.permute.xlu0 %6455 }
 0x3fe   : > { %6740 = vrot.lane.b32.xlu1 %v6699_v6, %s6966_s0  ;;  %v8672_v6 = vpack.i.bf16 %v3021_v34, %v3020_v55  ;;  %v8679_v34 = vpack.i.bf16 %v3054_v1, %v3053_v29  ;;  %v2846_v55 = vld [vmem:[#allocation3] sm:$0xff]  ;;  %v3904_v1 = vsel %vm265_vm0, %v2847_v37, %v6438_v5 }
 0x3ff   : > { %6745 = vrot.lane.b32.xlu0 %v8658_v53, %s6967_s27  ;;  %v8702_v5 = vld [vmem:[#allocation3 + $0xe2] sm:$0xff] }
 0x400   : > { %v8663_v3 = vpop.permute.xlu1 %6460 }
 0x401   : > { %v6466_v17 = vpop.permute.xlu0 %6465 }
 0x402   : > { %6750 = vrot.lane.b32.xlu1 %v6709_v22, %s6967_s27  ;;  %v6468_v19 = vunpack.i.h.bf16 %v6466_v17  ;;  %v6467_v42 = vunpack.i.l.bf16 %v6466_v17 }
 0x403   : > { %6755 = vrot.lane.b32.xlu0 %v8667_v46, %s6968_s24 }
 0x404   : > { %v6471_v39 = vpop.permute.xlu1 %6470  ;;  %v4002_v22 = vsel %vm265_vm0, %v8401_v26, %v6468_v19  ;;  %v4001_v11 = vsel %vm265_vm0, %v8399_v30, %v6467_v42  ;;  %v3085_v19 = vld [vmem:[#allocation3 + $0xd9] sm:$0xff] }
 0x405   : > { %v6473_v47 = vunpack.i.h.bf16 %v6471_v39  ;;  %v6472_v18 = vunpack.i.l.bf16 %v6471_v39  ;;  %v6476_v17 = vpop.permute.xlu0 %6475 }
 0x406   : > { %6760 = vrot.lane.b32.xlu1 %v6714_v50, %s6968_s24  ;;  %v6478_v20 = vunpack.i.h.bf16 %v6476_v17  ;;  %v6477_v39 = vunpack.i.l.bf16 %v6476_v17 }
 0x407   : > { %6765 = vrot.lane.b32.xlu0 %v8672_v6, %s6966_s0  ;;  %v4033_v30 = vsel %vm3935_vm5, %v4001_v11, %v6472_v18  ;;  %v4034_v26 = vsel %vm3935_vm5, %v4002_v22, %v6473_v47  ;;  %v8694_v47 = vpack.i.bf16 %v3086_v13, %v3085_v19  ;;  %v8716_v13 = vld [vmem:[#allocation3 + $0x128] sm:$0xff] }
 0x408   : > { %v6481_v15 = vpop.permute.xlu1 %6480 }
 0x409   : > { %v6483_v7 = vunpack.i.h.bf16 %v6481_v15  ;;  %v6482_v50 = vunpack.i.l.bf16 %v6481_v15  ;;  %v6486_v29 = vpop.permute.xlu0 %6485  ;;  %v3903_v15 = vsel %vm265_vm0, %v2846_v55, %v6437_v28  ;;  %v8700_v28 = vld [vmem:[#allocation3 + $0xda] sm:$0xff] }
 0x40a   : > { %6770 = vrot.lane.b32.xlu1 %v6724_v41, %s6966_s0  ;;  %v6488_v62 = vunpack.i.h.bf16 %v6486_v29  ;;  %v6487_v63 = vunpack.i.l.bf16 %v6486_v29  ;;  %v3937_v41 = vsel %vm3935_vm5, %v3904_v1, %v6478_v20  ;;  %v3936_v18 = vsel %vm3935_vm5, %v3903_v15, %v6477_v39 }
 0x40b   : > { %v4065_v42 = vsel %vm3968_vm6, %v4033_v30, %v6482_v50  ;;  %v4066_v17 = vsel %vm3968_vm6, %v4034_v26, %v6483_v7  ;;  %6775 = vrot.lane.b32.xlu0 %v8679_v34, %s6967_s27 }
 0x40c   : > { %v6491_v0 = vpop.permute.xlu1 %6490  ;;  %v4098_v40 = vpack.c.bf16 %v4066_v17, %v4065_v42  ;;  %v3969_v37 = vsel %vm3968_vm6, %v3936_v18, %v6487_v63  ;;  %v3970_v7 = vsel %vm3968_vm6, %v3937_v41, %v6488_v62  ;;  %v3055_v63 = vld [vmem:[#allocation3 + $0xf0] sm:$0xff]  ;;  %v8720_v17 = vld [vmem:[#allocation3 + $0x120] sm:$0xff] }
 0x40d   : > { %v6496_v20 = vpop.permute.xlu0 %6495  ;;  %v4097_v22 = vpack.c.bf16 %v3970_v7, %v3969_v37  ;;  %v6493_v11 = vunpack.i.h.bf16 %v6491_v0  ;;  %v6492_v55 = vunpack.i.l.bf16 %v6491_v0  ;;  %v3087_v37 = vld [vmem:[#allocation3 + $0xf1] sm:$0xff]  ;;  %v3088_v7 = vld [vmem:[#allocation3 + $0xf9] sm:$0xff] }
 0x40e   : > { %6780 = vrot.lane.b32.xlu1 %v8649_v56, %s6967_s27  ;;  %4378 = vmatprep.mubr.bf16.mxu0 %v4098_v40  ;;  %v8708_v40 = vpack.i.bf16 %v8702_v5, %v8700_v28  ;;  %v3056_v56 = vld [vmem:[#allocation3 + $0xf8] sm:$0xff]  ;;  %v6498_v30 = vunpack.i.h.bf16 %v6496_v20  ;;  %v6497_v1 = vunpack.i.l.bf16 %v6496_v20 }
 0x40f   : > { %6785 = vrot.lane.b32.xlu0 %v8694_v47, %s6968_s24  ;;  %4379 = vmatmul.mubr.bf16.vlgmr.msra.gmra.mxu0 %v4097_v22  ;;  %v4026_v0 = vsel %vm265_vm0, %v8534_v16, %v6493_v11  ;;  %v4025_v19 = vsel %vm265_vm0, %v8532_v2, %v6492_v55  ;;  %v8718_v42 = vpack.i.bf16 %v3056_v56, %v3055_v63 }
 0x410   : > { %v6501_v39 = vpop.permute.xlu1 %6500  ;;  %v3928_v20 = vsel %vm265_vm0, %v8716_v13, %v6498_v30  ;;  %v8738_v30 = vpack.i.bf16 %v3088_v7, %v3087_v37 }
 0x411   : > { %v6503_v62 = vunpack.i.h.bf16 %v6501_v39  ;;  %v6502_v50 = vunpack.i.l.bf16 %v6501_v39  ;;  %v6506_v26 = vpop.permute.xlu0 %6505  ;;  %v3927_v39 = vsel %vm265_vm0, %v8720_v17, %v6497_v1  ;;  %v8744_v1 = vld [vmem:[#allocation3 + $0xf2] sm:$0xff] }
 0x412   : > { %6790 = vrot.lane.b32.xlu1 %v8658_v53, %s6968_s24  ;;  %v6508_v15 = vunpack.i.h.bf16 %v6506_v26  ;;  %v6507_v41 = vunpack.i.l.bf16 %v6506_v26 }
 0x413   : > { %6795 = vrot.lane.b32.xlu0 %v8708_v40, %s6966_s0  ;;  %v4057_v2 = vsel %vm3935_vm5, %v4025_v19, %v6502_v50  ;;  %v4058_v16 = vsel %vm3935_vm5, %v4026_v0, %v6503_v62 }
 0x414   : > { %v6511_v29 = vpop.permute.xlu1 %6510  ;;  %v3960_v50 = vsel %vm3935_vm5, %v3927_v39, %v6507_v41  ;;  %v3961_v62 = vsel %vm3935_vm5, %v3928_v20, %v6508_v15  ;;  %v6443_v41 = vunpack.i.h.bf16 %v8652_v51  ;;  %v6442_v15 = vunpack.i.l.bf16 %v8652_v51 }
 0x415   : > { %v6513_v18 = vunpack.i.h.bf16 %v6511_v29  ;;  %v6512_v53 = vunpack.i.l.bf16 %v6511_v29  ;;  %v6516_v22 = vpop.permute.xlu0 %6515  ;;  %v8746_v29 = vld [vmem:[#allocation3 + $0xfa] sm:$0xff] }
 0x416   : > { %6800 = vrot.lane.b32.xlu1 %v8667_v46, %s6966_s0  ;;  %v6518_v63 = vunpack.i.h.bf16 %v6516_v22  ;;  %v6517_v56 = vunpack.i.l.bf16 %v6516_v22  ;;  %v3057_v22 = vld [vmem:[#allocation3 + $0x108] sm:$0xff]  ;;  %v8757_v51 = vpack.i.bf16 %v8746_v29, %v8744_v1 }
 0x417   : > { %v4089_v11 = vsel %vm3968_vm6, %v4057_v2, %v6512_v53  ;;  %v4090_v55 = vsel %vm3968_vm6, %v4058_v16, %v6513_v18  ;;  %6805 = vrot.lane.b32.xlu0 %v8718_v42, %s6967_s27  ;;  %v6931_v16 = vld [vmem:[%s9479_s2 + $0x110] sm:$0xff]  }
 0x418   : > { %v6521_v46 = vpop.permute.xlu1 %6520  ;;  %v4134_v26 = vpack.c.bf16 %v4090_v55, %v4089_v11  ;;  %v3993_v0 = vsel %vm3968_vm6, %v3960_v50, %v6517_v56  ;;  %v3994_v19 = vsel %vm3968_vm6, %v3961_v62, %v6518_v63  ;;  %v3058_v11 = vld [vmem:[#allocation3 + $0x110] sm:$0xff] }
 0x419   : > { %v6523_v18 = vunpack.i.h.bf16 %v6521_v46  ;;  %v6526_v53 = vpop.permute.xlu0 %6525  ;;  %v4133_v2 = vpack.c.bf16 %v3994_v19, %v3993_v0  ;;  %v6522_v37 = vunpack.i.l.bf16 %v6521_v46  ;;  %v2976_v55 = vld [vmem:[#allocation3 + $0x31] sm:$0xff]  ;;  %v3905_v46 = vsel %vm265_vm0, %v8434_v49, %v6442_v15 }
 0x41a   : > { %4474 = vmatprep.mubr.bf16.mxu1 %v4134_v26  ;;  %6810 = vrot.lane.b32.xlu1 %v8672_v6, %s6967_s27  ;;  %v2977_v6 = vld [vmem:[#allocation3 + $0x39] sm:$0xff]  ;;  %v6528_v7 = vunpack.i.h.bf16 %v6526_v53  ;;  %v6527_v39 = vunpack.i.l.bf16 %v6526_v53  ;;  %v3906_v26 = vsel %vm265_vm0, %v8436_v8, %v6443_v41  ;;  %v8767_v0 = vpack.i.bf16 %v3058_v11, %v3057_v22 }
 0x41b   : > { %6815 = vrot.lane.b32.xlu0 %v8738_v30, %s6968_s24  ;;  %4475 = vmatmul.mubr.bf16.vlgmr.msra.gmra.mxu1 %v4133_v2  ;;  %v4004_v50 = vsel %vm265_vm0, %v2977_v6, %v6523_v18  ;;  %v4003_v19 = vsel %vm265_vm0, %v2976_v55, %v6522_v37  ;;  %v3089_v6 = vld [vmem:[#allocation3 + $0x109] sm:$0xff]  ;;  %v8780_v37 = vld [vmem:[#allocation3 + $0x111] sm:$0xff] }
 0x41c   : > { %v6531_v20 = vpop.permute.xlu1 %6530  ;;  %5802 = vmatpush3.bf16.msra.mxu1 %v8629_v57  ;;  %v4036_v53 = vsel %vm3935_vm5, %v4004_v50, %v6528_v7  ;;  %v4035_v57 = vsel %vm3935_vm5, %v4003_v19, %v6527_v39 }
 0x41d   : > { %v6532_v63 = vunpack.i.l.bf16 %v6531_v20  ;;  %v6533_v56 = vunpack.i.h.bf16 %v6531_v20  ;;  %v6536_v62 = vpop.permute.xlu0 %6535  ;;  %5803 = vmatprep.subr.bf16.mxu1 %v6931_v16 }
 0x41e   : > { %6820 = vrot.lane.b32.xlu1 %v8679_v34, %s6968_s24  ;;  %v6538_v2 = vunpack.i.h.bf16 %v6536_v62  ;;  %v6537_v34 = vunpack.i.l.bf16 %v6536_v62 }
 0x41f   : > { %v3938_v49 = vsel %vm3935_vm5, %v3905_v46, %v6532_v63  ;;  %6825 = vrot.lane.b32.xlu0 %v8757_v51, %s6966_s0  ;;  %v3939_v8 = vsel %vm3935_vm5, %v3906_v26, %v6533_v56  ;;  %v8793_v56 = vld [vmem:[#allocation3 + $0x112] sm:$0xff] }
 0x420   : > { %v6541_v20 = vpop.permute.xlu1 %6540  ;;  %v4067_v41 = vsel %vm3968_vm6, %v4035_v57, %v6537_v34  ;;  %v4068_v18 = vsel %vm3968_vm6, %v4036_v53, %v6538_v2  ;;  %5804 = vmatpush3.bf16.msra.mxu1 %v6931_v16  ;;  %v8791_v16 = vld [vmem:[#allocation3 + $0x10a] sm:$0xff] }
 0x421   : > { %v6543_v15 = vunpack.i.h.bf16 %v6541_v20  ;;  %v6542_v61 = vunpack.i.l.bf16 %v6541_v20  ;;  %v6546_v7 = vpop.permute.xlu0 %6545  ;;  %v4101_v22 = vpack.c.bf16 %v4068_v18, %v4067_v41  ;;  %v8799_v34 = vpack.i.bf16 %v8793_v56, %v8791_v16 }
 0x422   : > { %6830 = vrot.lane.b32.xlu1 %v8694_v47, %s6966_s0  ;;  %v8787_v47 = vpack.i.bf16 %v8780_v37, %v3089_v6  ;;  %v6547_v46 = vunpack.i.l.bf16 %v6546_v7 }
 0x423   : > { %v3971_v11 = vsel %vm3968_vm6, %v3938_v49, %v6542_v61  ;;  %v3972_v55 = vsel %vm3968_vm6, %v3939_v8, %v6543_v15  ;;  %6835 = vrot.lane.b32.xlu0 %v8767_v0, %s6967_s27  ;;  %4386 = vmatprep.mubr.bf16.mxu0 %v4101_v22  ;;  %v6548_v61 = vunpack.i.h.bf16 %v6546_v7  ;;  %v8809_v8 = vpack.i.bf16 %v8716_v13, %v8720_v17 }
 0x424   : > { %v6551_v39 = vpop.permute.xlu1 %6550  ;;  %v4100_v63 = vpack.c.bf16 %v3972_v55, %v3971_v11  ;;  %v4027_v49 = vsel %vm265_vm0, %v8452_v12, %v6547_v46  ;;  %v8825_v55 = vld [vmem:[#allocation3 + $0x121] sm:$0xff] }
 0x425   : > { %v6556_v26 = vpop.permute.xlu0 %6555  ;;  %v6553_v50 = vunpack.i.h.bf16 %v6551_v39  ;;  %v6552_v62 = vunpack.i.l.bf16 %v6551_v39  ;;  %v4028_v57 = vsel %vm265_vm0, %v8457_v25, %v6548_v61  ;;  %v8827_v39 = vld [vmem:[#allocation3 + $0x129] sm:$0xff] }
 0x426   : > { %6840 = vrot.lane.b32.xlu1 %v8708_v40, %s6967_s27  ;;  %4387 = vmatmul.mubr.bf16.gmra.mxu0 %v4100_v63  ;;  %v6558_v53 = vunpack.i.h.bf16 %v6556_v26  ;;  %v6557_v2 = vunpack.i.l.bf16 %v6556_v26 }
 0x427   : > { %6845 = vrot.lane.b32.xlu0 %v8787_v47, %s6968_s24  ;;  %v3930_v41 = vsel %vm265_vm0, %v8461_v27, %v6553_v50  ;;  %v3929_v18 = vsel %vm265_vm0, %v8459_v10, %v6552_v62  ;;  %v2978_v50 = vld [vmem:[#allocation3 + $0x49] sm:$0xff]  ;;  %v2979_v62 = vld [vmem:[#allocation3 + $0x51] sm:$0xff] }
 0x428   : > { %v6561_v19 = vpop.permute.xlu1 %6560  ;;  %v4059_v22 = vsel %vm3935_vm5, %v4027_v49, %v6557_v2  ;;  %v4060_v25 = vsel %vm3935_vm5, %v4028_v57, %v6558_v53  ;;  %v8837_v57 = vld [vmem:[#allocation3 + $0x12a] sm:$0xff] }
 0x429   : > { %v6563_v40 = vunpack.i.h.bf16 %v6561_v19  ;;  %v6562_v20 = vunpack.i.l.bf16 %v6561_v19  ;;  %v6566_v15 = vpop.permute.xlu0 %6565 }
 0x42a   : > { %6850 = vrot.lane.b32.xlu1 %v8718_v42, %s6968_s24  ;;  %v6568_v6 = vunpack.i.h.bf16 %v6566_v15  ;;  %v6567_v7 = vunpack.i.l.bf16 %v6566_v15 }
 0x42b   : > { %6855 = vrot.lane.b32.xlu0 %v8799_v34, %s6966_s0  ;;  %v3962_v13 = vsel %vm3935_vm5, %v3929_v18, %v6562_v20  ;;  %v3963_v17 = vsel %vm3935_vm5, %v3930_v41, %v6563_v40  ;;  %v6874_v40 = vpack.i.bf16 %v8827_v39, %v8825_v55  ;;  %v8835_v20 = vld [vmem:[#allocation3 + $0x122] sm:$0xff]  ;;  %v6447_v41 = vunpack.i.l.bf16 %v8646_v33 }
 0x42c   : > { %v6571_v42 = vpop.permute.xlu1 %6570  ;;  %v4091_v10 = vsel %vm3968_vm6, %v4059_v22, %v6567_v7  ;;  %v4092_v27 = vsel %vm3968_vm6, %v4060_v25, %v6568_v6  ;;  %v6884_v25 = vpack.i.bf16 %v8837_v57, %v8835_v20 }
 0x42d   : > { %v6573_v11 = vunpack.i.h.bf16 %v6571_v42  ;;  %v6572_v12 = vunpack.i.l.bf16 %v6571_v42  ;;  %v6576_v63 = vpop.permute.xlu0 %6575  ;;  %v4137_v61 = vpack.c.bf16 %v4092_v27, %v4091_v10  ;;  %v6448_v42 = vunpack.i.h.bf16 %v8646_v33  ;;  %v3061_v27 = vld [vmem:[#allocation3 + $0x138] sm:$0xff] }
 0x42e   : > { %6860 = vrot.lane.b32.xlu1 %v8738_v30, %s6966_s0  ;;  %v6578_v19 = vunpack.i.h.bf16 %v6576_v63  ;;  %v6577_v53 = vunpack.i.l.bf16 %v6576_v63  ;;  %v3062_v63 = vld [vmem:[#allocation3 + $0x140] sm:$0xff]  ;;  %v3907_v33 = vsel %vm265_vm0, %v8416_v44, %v6447_v41 }
 0x42f   : > { %v3995_v46 = vsel %vm3968_vm6, %v3962_v13, %v6572_v12  ;;  %v3996_v26 = vsel %vm3968_vm6, %v3963_v17, %v6573_v11  ;;  %6865 = vrot.lane.b32.xlu0 %v8809_v8, %s6967_s27  ;;  %4482 = vmatprep.mubr.bf16.mxu1 %v4137_v61 }
 0x430   : > { %v6581_v2 = vpop.permute.xlu1 %6580  ;;  %v4136_v30 = vpack.c.bf16 %v3996_v26, %v3995_v46  ;;  %v4006_v18 = vsel %vm265_vm0, %v2979_v62, %v6578_v19  ;;  %v4005_v6 = vsel %vm265_vm0, %v2978_v50, %v6577_v53  ;;  %v3908_v50 = vsel %vm265_vm0, %v8418_v52, %v6448_v42  ;;  %v3093_v52 = vld [vmem:[#allocation3 + $0x139] sm:$0xff] }
 0x431   : > { %v6583_v49 = vunpack.i.h.bf16 %v6581_v2  ;;  %v6582_v15 = vunpack.i.l.bf16 %v6581_v2  ;;  %v6586_v7 = vpop.permute.xlu0 %6585 }
 0x432   : > { %6870 = vrot.lane.b32.xlu1 %v8757_v51, %s6967_s27  ;;  %4483 = vmatmul.mubr.bf16.gmra.mxu1 %v4136_v30  ;;  %v6588_v11 = vunpack.i.h.bf16 %v6586_v7  ;;  %v6587_v12 = vunpack.i.l.bf16 %v6586_v7 }
 0x433   : > { %6875 = vrot.lane.b32.xlu0 %v6874_v40, %s6968_s24  ;;  %v4037_v51 = vsel %vm3935_vm5, %v4005_v6, %v6582_v15  ;;  %v4038_v10 = vsel %vm3935_vm5, %v4006_v18, %v6583_v49  ;;  %v6894_v40 = vpack.i.bf16 %v3062_v63, %v3061_v27  ;;  %v3094_v15 = vld [vmem:[#allocation3 + $0x141] sm:$0xff]  ;;  %v2875_v27 = vld [vmem:[#allocation3 + $0x158] sm:$0xff] }
 0x434   : > { %v6591_v22 = vpop.permute.xlu1 %6590  ;;  %v3941_v30 = vsel %vm3935_vm5, %v3908_v50, %v6588_v11  ;;  %v3003_v11 = vld [vmem:[#allocation3 + $0x171] sm:$0xff] }
 0x435   : > { %v6593_v13 = vunpack.i.h.bf16 %v6591_v22  ;;  %v6592_v17 = vunpack.i.l.bf16 %v6591_v22  ;;  %v6596_v61 = vpop.permute.xlu0 %6595  ;;  %v3002_v22 = vld [vmem:[#allocation3 + $0x169] sm:$0xff] }
 0x436   : > { %6880 = vrot.lane.b32.xlu1 %v8767_v0, %s6968_s24  ;;  %v6598_v62 = vunpack.i.h.bf16 %v6596_v61  ;;  %v6597_v19 = vunpack.i.l.bf16 %v6596_v61  ;;  %v3940_v0 = vsel %vm3935_vm5, %v3907_v33, %v6587_v12  ;;  %v2874_v61 = vld [vmem:[#allocation3 + $0x150] sm:$0xff] }
 0x437   : > { %v4069_v46 = vsel %vm3968_vm6, %v4037_v51, %v6592_v17  ;;  %v4070_v26 = vsel %vm3968_vm6, %v4038_v10, %v6593_v13  ;;  %6885 = vrot.lane.b32.xlu0 %v6884_v25, %s6966_s0  ;;  %v6904_v25 = vpack.i.bf16 %v3094_v15, %v3093_v52 }
 0x438   : > { %v6601_v53 = vpop.permute.xlu1 %6600  ;;  %v4104_v2 = vpack.c.bf16 %v4070_v26, %v4069_v46  ;;  %v3973_v44 = vsel %vm3968_vm6, %v3940_v0, %v6597_v19  ;;  %v3974_v49 = vsel %vm3968_vm6, %v3941_v30, %v6598_v62 }
 0x439   : > { %v6606_v41 = vpop.permute.xlu0 %6605  ;;  %v4103_v18 = vpack.c.bf16 %v3974_v49, %v3973_v44  ;;  %v6603_v6 = vunpack.i.h.bf16 %v6601_v53  ;;  %v6602_v7 = vunpack.i.l.bf16 %v6601_v53 }
 0x43a   : > { %6890 = vrot.lane.b32.xlu1 %v8787_v47, %s6966_s0  ;;  %4394 = vmatprep.mubr.bf16.mxu0 %v4104_v2  ;;  %v6608_v13 = vunpack.i.h.bf16 %v6606_v41  ;;  %v6607_v63 = vunpack.i.l.bf16 %v6606_v41 }
 0x43b   : > { %6895 = vrot.lane.b32.xlu0 %v6894_v40, %s6967_s27  ;;  %4395 = vmatmul.mubr.bf16.gmra.mxu0 %v4103_v18  ;;  %v4030_v51 = vsel %vm265_vm0, %v3003_v11, %v6603_v6  ;;  %v4029_v10 = vsel %vm265_vm0, %v3002_v22, %v6602_v7  ;;  %v6453_v7 = vunpack.i.h.bf16 %v8654_v54 }
 0x43c   : > { %v6611_v42 = vpop.permute.xlu1 %6610  ;;  %v3932_v53 = vsel %vm265_vm0, %v2875_v27, %v6608_v13  ;;  %v3931_v40 = vsel %vm265_vm0, %v2874_v61, %v6607_v63  ;;  %v2980_v13 = vld [vmem:[#allocation3 + $0x61] sm:$0xff] }
 0x43d   : > { %v6613_v12 = vunpack.i.h.bf16 %v6611_v42  ;;  %v6612_v47 = vunpack.i.l.bf16 %v6611_v42  ;;  %v6616_v17 = vpop.permute.xlu0 %6615  ;;  %v6452_v42 = vunpack.i.l.bf16 %v8654_v54  ;;  %v6932_v61 = vld [vmem:[#allocation3 + $0x48] sm:$0xff] }
 0x43e   : > { %6900 = vrot.lane.b32.xlu1 %v8799_v34, %s6967_s27  ;;  %v6618_v46 = vunpack.i.h.bf16 %v6616_v17  ;;  %v6617_v26 = vunpack.i.l.bf16 %v6616_v17  ;;  %v2981_v17 = vld [vmem:[#allocation3 + $0x69] sm:$0xff] }
 0x43f   : > { %6905 = vrot.lane.b32.xlu0 %v6904_v25, %s6968_s24  ;;  %v4061_v19 = vsel %vm3935_vm5, %v4029_v10, %v6612_v47  ;;  %v4062_v34 = vsel %vm3935_vm5, %v4030_v51, %v6613_v12 }
 0x440   : > { %v6621_v33 = vpop.permute.xlu1 %6620  ;;  %v3964_v41 = vsel %vm3935_vm5, %v3931_v40, %v6617_v26  ;;  %v3965_v18 = vsel %vm3935_vm5, %v3932_v53, %v6618_v46  ;;  %v3909_v46 = vsel %vm265_vm0, %v6932_v61, %v6452_v42 }
 0x441   : > { %v6623_v50 = vunpack.i.h.bf16 %v6621_v33  ;;  %v6622_v62 = vunpack.i.l.bf16 %v6621_v33  ;;  %v6626_v2 = vpop.permute.xlu0 %6625  ;;  %v3910_v33 = vsel %vm265_vm0, %v8500_v36, %v6453_v7 }
 0x442   : > { %6910 = vrot.lane.b32.xlu1 %v8809_v8, %s6968_s24  ;;  %v6628_v44 = vunpack.i.h.bf16 %v6626_v2  ;;  %v6627_v49 = vunpack.i.l.bf16 %v6626_v2 }
 0x443   : > { %v4093_v30 = vsel %vm3968_vm6, %v4061_v19, %v6622_v62  ;;  %v4094_v0 = vsel %vm3968_vm6, %v4062_v34, %v6623_v50 }
 0x444   : > { %v6631_v52 = vpop.permute.xlu1 %6630  ;;  %v4140_v15 = vpack.c.bf16 %v4094_v0, %v4093_v30  ;;  %v3997_v8 = vsel %vm3968_vm6, %v3964_v41, %v6627_v49  ;;  %v3998_v6 = vsel %vm3968_vm6, %v3965_v18, %v6628_v44 }
 0x445   : > { %v6636_v22 = vpop.permute.xlu0 %6635  ;;  %v4139_v11 = vpack.c.bf16 %v3998_v6, %v3997_v8  ;;  %v6633_v25 = vunpack.i.h.bf16 %v6631_v52  ;;  %v6632_v12 = vunpack.i.l.bf16 %v6631_v52 }
 0x446   : > { %4490 = vmatprep.mubr.bf16.mxu1 %v4140_v15  ;;  %v6638_v51 = vunpack.i.h.bf16 %v6636_v22  ;;  %v6637_v10 = vunpack.i.l.bf16 %v6636_v22 }
 0x447   : > { %4491 = vmatmul.mubr.bf16.gmra.mxu1 %v4139_v11  ;;  %v4008_v54 = vsel %vm265_vm0, %v2981_v17, %v6633_v25  ;;  %v4007_v50 = vsel %vm265_vm0, %v2980_v13, %v6632_v12  ;;  %v3004_v11 = vld [vmem:[#allocation3 + $0x181] sm:$0xff]  ;;  %v3005_v25 = vld [vmem:[#allocation3 + $0x189] sm:$0xff] }
 0x448   : > { %v6641_v47 = vpop.permute.xlu1 %6640  ;;  %v4040_v53 = vsel %vm3935_vm5, %v4008_v54, %v6638_v51  ;;  %v4039_v2 = vsel %vm3935_vm5, %v4007_v50, %v6637_v10  ;;  %v2876_v17 = vld [vmem:[#allocation3 + $0x168] sm:$0xff]  ;;  %v2877_v51 = vld [vmem:[#allocation3 + $0x170] sm:$0xff] }
 0x449   : > { %v6643_v27 = vunpack.i.h.bf16 %v6641_v47  ;;  %v6642_v63 = vunpack.i.l.bf16 %v6641_v47  ;;  %v6646_v26 = vpop.permute.xlu0 %6645 }
 0x44a   : > { %v6648_v62 = vunpack.i.h.bf16 %v6646_v26  ;;  %v6647_v19 = vunpack.i.l.bf16 %v6646_v26 }
 0x44b   : > { %v3943_v40 = vsel %vm3935_vm5, %v3910_v33, %v6643_v27  ;;  %v3942_v36 = vsel %vm3935_vm5, %v3909_v46, %v6642_v63 }
 0x44c   : > { %v6651_v34 = vpop.permute.xlu1 %6650  ;;  %v4071_v44 = vsel %vm3968_vm6, %v4039_v2, %v6647_v19  ;;  %v4072_v49 = vsel %vm3968_vm6, %v4040_v53, %v6648_v62  ;;  %v3103_v53 = vld [vmem:[#allocation3 + $0x32] sm:$0xff]  ;;  %v3104_v2 = vld [vmem:[#allocation3 + $0x3a] sm:$0xff] }
 0x44d   : > { %v6653_v30 = vunpack.i.h.bf16 %v6651_v34  ;;  %v6652_v0 = vunpack.i.l.bf16 %v6651_v34  ;;  %v6656_v52 = vpop.permute.xlu0 %6655  ;;  %v4107_v15 = vpack.c.bf16 %v4072_v49, %v4071_v44 }
 0x44e   : > { %v6658_v7 = vunpack.i.h.bf16 %v6656_v52  ;;  %v6657_v42 = vunpack.i.l.bf16 %v6656_v52 }
 0x44f   : > { %v3975_v41 = vsel %vm3968_vm6, %v3942_v36, %v6652_v0  ;;  %v3976_v18 = vsel %vm3968_vm6, %v3943_v40, %v6653_v30  ;;  %4402 = vmatprep.mubr.bf16.mxu0 %v4107_v15 }
 0x450   : > { %v6661_v8 = vpop.permute.xlu1 %6660  ;;  %v4106_v6 = vpack.c.bf16 %v3976_v18, %v3975_v41  ;;  %v4032_v61 = vsel %vm265_vm0, %v3005_v25, %v6658_v7  ;;  %v4031_v46 = vsel %vm265_vm0, %v3004_v11, %v6657_v42  ;;  %v4099_v7 = vpack.c.bf16 %v3104_v2, %v3103_v53  ;;  %v2982_v42 = vld [vmem:[#allocation3 + $0x79] sm:$0xff] }
 0x451   : > { %v6666_v22 = vpop.permute.xlu0 %6665  ;;  %v6663_v12 = vunpack.i.h.bf16 %v6661_v8  ;;  %v6662_v47 = vunpack.i.l.bf16 %v6661_v8 }
 0x452   : > { %4403 = vmatmul.mubr.bf16.gmra.mxu0 %v4106_v6  ;;  %v6668_v10 = vunpack.i.h.bf16 %v6666_v22  ;;  %v6667_v27 = vunpack.i.l.bf16 %v6666_v22  ;;  %v2983_v22 = vld [vmem:[#allocation3 + $0x81] sm:$0xff] }
 0x453   : > { %v3934_v54 = vsel %vm265_vm0, %v2877_v51, %v6663_v12  ;;  %v3933_v50 = vsel %vm265_vm0, %v2876_v17, %v6662_v47  ;;  %v6458_v51 = vunpack.i.h.bf16 %v8661_v32 }
 0x454   : > { %v6671_v13 = vpop.permute.xlu1 %6670  ;;  %v4063_v30 = vsel %vm3935_vm5, %v4031_v46, %v6667_v27  ;;  %v4064_v0 = vsel %vm3935_vm5, %v4032_v61, %v6668_v10  ;;  %v3106_v61 = vld [vmem:[#allocation3 + $0x52] sm:$0xff]  ;;  %v6457_v46 = vunpack.i.l.bf16 %v8661_v32 }
 0x455   : > { %v6673_v63 = vunpack.i.h.bf16 %v6671_v13  ;;  %v6672_v33 = vunpack.i.l.bf16 %v6671_v13  ;;  %v6676_v26 = vpop.permute.xlu0 %6675 }
 0x456   : > { %v6678_v62 = vunpack.i.h.bf16 %v6676_v26  ;;  %v6677_v19 = vunpack.i.l.bf16 %v6676_v26 }
 0x457   : > { %v3966_v44 = vsel %vm3935_vm5, %v3933_v50, %v6672_v33  ;;  %v3967_v49 = vsel %vm3935_vm5, %v3934_v54, %v6673_v63  ;;  %v3105_v33 = vld [vmem:[#allocation3 + $0x4a] sm:$0xff]  ;;  %v3107_v54 = vld [vmem:[#allocation3 + $0x62] sm:$0xff] }
 0x458   : > { %v6681_v34 = vpop.permute.xlu1 %6680  ;;  %v4095_v52 = vsel %vm3968_vm6, %v4063_v30, %v6677_v19  ;;  %v4096_v15 = vsel %vm3968_vm6, %v4064_v0, %v6678_v62  ;;  %v3108_v50 = vld [vmem:[#allocation3 + $0x6a] sm:$0xff]  ;;  %v4102_v0 = vpack.c.bf16 %v3106_v61, %v3105_v33  ;;  %v2985_v33 = vld [vmem:[#allocation3 + $0x99] sm:$0xff] }
 0x459   : > { %v6683_v40 = vunpack.i.h.bf16 %v6681_v34  ;;  %v6682_v36 = vunpack.i.l.bf16 %v6681_v34  ;;  %v6686_v41 = vpop.permute.xlu0 %6685  ;;  %v4143_v18 = vpack.c.bf16 %v4096_v15, %v4095_v52  ;;  %v3911_v52 = vsel %vm265_vm0, %v8589_v31, %v6457_v46 }
 0x45a   : > { %v6688_v11 = vunpack.i.h.bf16 %v6686_v41  ;;  %v6687_v25 = vunpack.i.l.bf16 %v6686_v41 }
 0x45b   : > { %v3999_v8 = vsel %vm3968_vm6, %v3966_v44, %v6682_v36  ;;  %v4000_v6 = vsel %vm3968_vm6, %v3967_v49, %v6683_v40  ;;  %4498 = vmatprep.mubr.bf16.mxu1 %v4143_v18  ;;  %v3912_v40 = vsel %vm265_vm0, %v8591_v24, %v6458_v51  ;;  %v4105_v49 = vpack.c.bf16 %v3108_v50, %v3107_v54 }
 0x45c   : > { %v6691_v12 = vpop.permute.xlu1 %6690  ;;  %v4142_v47 = vpack.c.bf16 %v4000_v6, %v3999_v8  ;;  %v4010_v10 = vsel %vm265_vm0, %v2983_v22, %v6688_v11  ;;  %v4009_v27 = vsel %vm265_vm0, %v2982_v42, %v6687_v25  ;;  %v6463_v22 = vunpack.i.h.bf16 %v8663_v3 }
 0x45d   : > { %v6693_v13 = vunpack.i.h.bf16 %v6691_v12  ;;  %v6692_v17 = vunpack.i.l.bf16 %v6691_v12  ;;  %v6696_v63 = vpop.permute.xlu0 %6695  ;;  %v6462_v11 = vunpack.i.l.bf16 %v8663_v3  ;;  %v3109_v12 = vld [vmem:[#allocation3 + $0x7a] sm:$0xff] }
 0x45e   : > { %4499 = vmatmul.mubr.bf16.gmra.mxu1 %v4142_v47  ;;  %v6698_v62 = vunpack.i.h.bf16 %v6696_v63  ;;  %v6697_v19 = vunpack.i.l.bf16 %v6696_v63  ;;  %v3110_v47 = vld [vmem:[#allocation3 + $0x82] sm:$0xff]  ;;  %v2984_v63 = vld [vmem:[#allocation3 + $0x91] sm:$0xff]  ;;  %v3914_v3 = vsel %vm265_vm0, %v8615_v9, %v6463_v22 }
 0x45f   : > { %5805 = vmatprep.mubr.msk.bf16.mxu1 %vm265_vm0, %v4099_v7  ;;  %v4041_v2 = vsel %vm3935_vm5, %v4009_v27, %v6692_v17  ;;  %v4042_v30 = vsel %vm3935_vm5, %v4010_v10, %v6693_v13  ;;  %v3111_v10 = vld [vmem:[#allocation3 + $0x92] sm:$0xff]  ;;  %v3112_v27 = vld [vmem:[#allocation3 + $0x9a] sm:$0xff]  ;;  %v4108_v50 = vpack.c.bf16 %v3110_v47, %v3109_v12 }
 0x460   : > { %v6701_v26 = vpop.permute.xlu1 %6700  ;;  %v3944_v6 = vsel %vm3935_vm5, %v3911_v52, %v6697_v19  ;;  %v3945_v7 = vsel %vm3935_vm5, %v3912_v40, %v6698_v62  ;;  %v3913_v62 = vsel %vm265_vm0, %v8613_v38, %v6462_v11  ;;  %v3115_v11 = vld [vmem:[#allocation3 + $0xc2] sm:$0xff] }
 0x461   : > { %v6703_v34 = vunpack.i.h.bf16 %v6701_v26  ;;  %v6702_v53 = vunpack.i.l.bf16 %v6701_v26  ;;  %v6706_v36 = vpop.permute.xlu0 %6705 }
 0x462   : > { %v6708_v15 = vunpack.i.h.bf16 %v6706_v36  ;;  %v6707_v41 = vunpack.i.l.bf16 %v6706_v36 }
 0x463   : > { %v4073_v44 = vsel %vm3968_vm6, %v4041_v2, %v6702_v53  ;;  %v4074_v32 = vsel %vm3968_vm6, %v4042_v30, %v6703_v34  ;;  %v4111_v34 = vpack.c.bf16 %v3112_v27, %v3111_v10  ;;  %v2987_v10 = vld [vmem:[#allocation3 + $0xb1] sm:$0xff] }
 0x464   : > { %v6711_v18 = vpop.permute.xlu1 %6710  ;;  %v4110_v8 = vpack.c.bf16 %v4074_v32, %v4073_v44  ;;  %v3977_v24 = vsel %vm3968_vm6, %v3944_v6, %v6707_v41  ;;  %v3978_v42 = vsel %vm3968_vm6, %v3945_v7, %v6708_v15  ;;  %v3113_v7 = vld [vmem:[#allocation3 + $0xaa] sm:$0xff] }
 0x465   : > { %v6716_v31 = vpop.permute.xlu0 %6715  ;;  %v4109_v25 = vpack.c.bf16 %v3978_v42, %v3977_v24  ;;  %v6713_v13 = vunpack.i.h.bf16 %v6711_v18  ;;  %v6712_v17 = vunpack.i.l.bf16 %v6711_v18  ;;  %v3114_v24 = vld [vmem:[#allocation3 + $0xb2] sm:$0xff] }
 0x466   : > { %4410 = vmatprep.mubr.bf16.mxu0 %v4110_v8  ;;  %5806 = vmatmul.mubr.msk.bf16.vlgmr.msra.gmra.mxu1 %vm265_vm0, %v4102_v0  ;;  %v6718_v61 = vunpack.i.h.bf16 %v6716_v31  ;;  %v6717_v46 = vunpack.i.l.bf16 %v6716_v31  ;;  %v3116_v31 = vld [vmem:[#allocation3 + $0xca] sm:$0xff] }
 0x467   : > { %5809 = vmatprep.mubr.msk.bf16.mxu1 %vm265_vm0, %v4105_v49  ;;  %4411 = vmatmul.mubr.bf16.gmra.mxu0 %v4109_v25  ;;  %v4012_v53 = vsel %vm265_vm0, %v2985_v33, %v6713_v13  ;;  %v4011_v2 = vsel %vm265_vm0, %v2984_v63, %v6712_v17  ;;  %v4114_v25 = vpack.c.bf16 %v3114_v24, %v3113_v7 }
 0x468   : > { %v6721_v51 = vpop.permute.xlu1 %6720  ;;  %v4044_v36 = vsel %vm3935_vm5, %v4012_v53, %v6718_v61  ;;  %v4043_v44 = vsel %vm3935_vm5, %v4011_v2, %v6717_v46  ;;  %v4117_v17 = vpack.c.bf16 %v3116_v31, %v3115_v11  ;;  %v2858_v61 = vld [vmem:[#allocation3 + $0x90] sm:$0xff]  ;;  %v2859_v46 = vld [vmem:[#allocation3 + $0x98] sm:$0xff]  ;;  %v4120_v53 = vpack.c.bf16 %v8702_v5, %v8700_v28  ;;  %v2988_v31 = vld [vmem:[#allocation3 + $0xc1] sm:$0xff] }
 0x469   : > { %v6723_v26 = vunpack.i.h.bf16 %v6721_v51  ;;  %v6722_v54 = vunpack.i.l.bf16 %v6721_v51  ;;  %v6726_v19 = vpop.permute.xlu0 %6725  ;;  %v2986_v51 = vld [vmem:[#allocation3 + $0xa9] sm:$0xff] }
 0x46a   : > { %v6728_v30 = vunpack.i.h.bf16 %v6726_v19  ;;  %v6727_v0 = vunpack.i.l.bf16 %v6726_v19 }
 0x46b   : > { %v3947_v9 = vsel %vm3935_vm5, %v3914_v3, %v6723_v26  ;;  %v3946_v52 = vsel %vm3935_vm5, %v3913_v62, %v6722_v54 }
 0x46c   : > { %v6731_v40 = vpop.permute.xlu1 %6730  ;;  %v4075_v38 = vsel %vm3968_vm6, %v4043_v44, %v6727_v0  ;;  %v4076_v15 = vsel %vm3968_vm6, %v4044_v36, %v6728_v30 }
 0x46d   : > { %v6733_v32 = vunpack.i.h.bf16 %v6731_v40  ;;  %v6732_v49 = vunpack.i.l.bf16 %v6731_v40  ;;  %v6736_v41 = vpop.permute.xlu0 %6735  ;;  %v4113_v18 = vpack.c.bf16 %v4076_v15, %v4075_v38 }
 0x46e   : > { %5810 = vmatmul.mubr.msk.bf16.gmra.mxu1 %vm265_vm0, %v4108_v50  ;;  %v6738_v12 = vunpack.i.h.bf16 %v6736_v41  ;;  %v6737_v47 = vunpack.i.l.bf16 %v6736_v41 }
 0x46f   : > { %v3979_v8 = vsel %vm3968_vm6, %v3946_v52, %v6732_v49  ;;  %v3980_v6 = vsel %vm3968_vm6, %v3947_v9, %v6733_v32  ;;  %5813 = vmatprep.mubr.msk.bf16.mxu1 %vm265_vm0, %v4111_v34  ;;  %4418 = vmatprep.mubr.bf16.mxu0 %v4113_v18 }
 0x470   : > { %v6741_v42 = vpop.permute.xlu1 %6740  ;;  %v4112_v22 = vpack.c.bf16 %v3980_v6, %v3979_v8  ;;  %v4014_v62 = vsel %vm265_vm0, %v2987_v10, %v6738_v12  ;;  %v4013_v19 = vsel %vm265_vm0, %v2986_v51, %v6737_v47  ;;  %v4123_v6 = vpack.c.bf16 %v8746_v29, %v8744_v1  ;;  %v2861_v51 = vld [vmem:[#allocation3 + $0xb0] sm:$0xff] }
 0x471   : > { %v6746_v13 = vpop.permute.xlu0 %6745  ;;  %v6743_v27 = vunpack.i.h.bf16 %v6741_v42  ;;  %v6742_v63 = vunpack.i.l.bf16 %v6741_v42 }
 0x472   : > { %4419 = vmatmul.mubr.bf16.gmra.mxu0 %v4112_v22  ;;  %v6748_v26 = vunpack.i.h.bf16 %v6746_v13  ;;  %v6747_v54 = vunpack.i.l.bf16 %v6746_v13 }
 0x473   : > { %v3916_v2 = vsel %vm265_vm0, %v2859_v46, %v6743_v27  ;;  %v3915_v30 = vsel %vm265_vm0, %v2858_v61, %v6742_v63  ;;  %v4126_v63 = vpack.c.bf16 %v8793_v56, %v8791_v16 }
 0x474   : > { %v6751_v33 = vpop.permute.xlu1 %6750  ;;  %v4045_v44 = vsel %vm3935_vm5, %v4013_v19, %v6747_v54  ;;  %v4046_v32 = vsel %vm3935_vm5, %v4014_v62, %v6748_v26  ;;  %v4129_v26 = vpack.c.bf16 %v8837_v57, %v8835_v20 }
 0x475   : > { %v6753_v50 = vunpack.i.h.bf16 %v6751_v33  ;;  %v6752_v3 = vunpack.i.l.bf16 %v6751_v33  ;;  %v6756_v34 = vpop.permute.xlu0 %6755 }
 0x476   : > { %5814 = vmatmul.mubr.msk.bf16.gmra.mxu1 %vm265_vm0, %v4114_v25  ;;  %v6758_v0 = vunpack.i.h.bf16 %v6756_v34  ;;  %v6757_v40 = vunpack.i.l.bf16 %v6756_v34  ;;  %v2989_v25 = vld [vmem:[#allocation3 + $0xc9] sm:$0xff] }
 0x477   : > { %5817 = vmatprep.mubr.msk.bf16.mxu1 %vm265_vm0, %v4117_v17  ;;  %v3948_v52 = vsel %vm3935_vm5, %v3915_v30, %v6752_v3  ;;  %v3949_v38 = vsel %vm3935_vm5, %v3916_v2, %v6753_v50  ;;  %v2860_v17 = vld [vmem:[#allocation3 + $0xa8] sm:$0xff] }
 0x478   : > { %v6761_v36 = vpop.permute.xlu1 %6760  ;;  %v4077_v15 = vsel %vm3968_vm6, %v4045_v44, %v6757_v40  ;;  %v4078_v28 = vsel %vm3968_vm6, %v4046_v32, %v6758_v0  ;;  %v3125_v32 = vld [vmem:[#allocation3 + $0x13a] sm:$0xff] }
 0x479   : > { %v6763_v49 = vunpack.i.h.bf16 %v6761_v36  ;;  %v6762_v9 = vunpack.i.l.bf16 %v6761_v36  ;;  %v6766_v5 = vpop.permute.xlu0 %6765  ;;  %v4116_v41 = vpack.c.bf16 %v4078_v28, %v4077_v15  ;;  %v3128_v15 = vld [vmem:[#allocation3 + $0x15a] sm:$0xff] }
 0x47a   : > { %v6768_v42 = vunpack.i.h.bf16 %v6766_v5  ;;  %v6767_v22 = vunpack.i.l.bf16 %v6766_v5  ;;  %v2990_v5 = vld [vmem:[#allocation3 + $0xd9] sm:$0xff] }
 0x47b   : > { %v3981_v18 = vsel %vm3968_vm6, %v3948_v52, %v6762_v9  ;;  %v3982_v8 = vsel %vm3968_vm6, %v3949_v38, %v6763_v49  ;;  %4426 = vmatprep.mubr.bf16.mxu0 %v4116_v41  ;;  %v3126_v49 = vld [vmem:[#allocation3 + $0x142] sm:$0xff]  ;;  %v3127_v38 = vld [vmem:[#allocation3 + $0x152] sm:$0xff] }
 0x47c   : > { %v6771_v7 = vpop.permute.xlu1 %6770  ;;  %v4115_v24 = vpack.c.bf16 %v3982_v8, %v3981_v18  ;;  %v4016_v33 = vsel %vm265_vm0, %v2989_v25, %v6768_v42  ;;  %v4015_v61 = vsel %vm265_vm0, %v2988_v31, %v6767_v22  ;;  %v4132_v28 = vpack.c.bf16 %v3126_v49, %v3125_v32  ;;  %v3130_v31 = vld [vmem:[#allocation3 + $0x172] sm:$0xff]  ;;  %v2862_v25 = vld [vmem:[#allocation3 + $0xc0] sm:$0xff] }
 0x47d   : > { %v6776_v11 = vpop.permute.xlu0 %6775  ;;  %v6773_v12 = vunpack.i.h.bf16 %v6771_v7  ;;  %v6772_v47 = vunpack.i.l.bf16 %v6771_v7  ;;  %v2991_v7 = vld [vmem:[#allocation3 + $0xe1] sm:$0xff] }
 0x47e   : > { %4427 = vmatmul.mubr.bf16.gmra.mxu0 %v4115_v24  ;;  %5818 = vmatmul.mubr.msk.bf16.gmra.mxu1 %vm265_vm0, %v4120_v53  ;;  %v6778_v10 = vunpack.i.h.bf16 %v6776_v11  ;;  %v6777_v1 = vunpack.i.l.bf16 %v6776_v11  ;;  %v3129_v11 = vld [vmem:[#allocation3 + $0x16a] sm:$0xff] }
 0x47f   : > { %5821 = vmatprep.mubr.msk.bf16.mxu1 %vm265_vm0, %v4123_v6  ;;  %v3918_v54 = vsel %vm265_vm0, %v2861_v51, %v6773_v12  ;;  %v3917_v50 = vsel %vm265_vm0, %v2860_v17, %v6772_v47  ;;  %v4135_v6 = vpack.c.bf16 %v3128_v15, %v3127_v38  ;;  %v2863_v12 = vld [vmem:[#allocation3 + $0xc8] sm:$0xff] }
 0x480   : > { %v6781_v13 = vpop.permute.xlu1 %6780  ;;  %v4047_v34 = vsel %vm3935_vm5, %v4015_v61, %v6777_v1  ;;  %v4048_v53 = vsel %vm3935_vm5, %v4016_v33, %v6778_v10  ;;  %v3134_v38 = vld [vmem:[#allocation3 + $0x1a2] sm:$0xff] }
 0x481   : > { %v6783_v29 = vunpack.i.h.bf16 %v6781_v13  ;;  %v6782_v27 = vunpack.i.l.bf16 %v6781_v13  ;;  %v6786_v46 = vpop.permute.xlu0 %6785 }
 0x482   : > { %v6788_v3 = vunpack.i.h.bf16 %v6786_v46  ;;  %v6787_v62 = vunpack.i.l.bf16 %v6786_v46 }
 0x483   : > { %v3950_v2 = vsel %vm3935_vm5, %v3917_v50, %v6782_v27  ;;  %v3951_v30 = vsel %vm3935_vm5, %v3918_v54, %v6783_v29  ;;  %v4138_v27 = vpack.c.bf16 %v3130_v31, %v3129_v11  ;;  %v3131_v54 = vld [vmem:[#allocation3 + $0x182] sm:$0xff]  ;;  %v3132_v50 = vld [vmem:[#allocation3 + $0x18a] sm:$0xff] }
 0x484   : > { %v6791_v19 = vpop.permute.xlu1 %6790  ;;  %v4079_v20 = vsel %vm3968_vm6, %v4047_v34, %v6787_v62  ;;  %v4080_v57 = vsel %vm3968_vm6, %v4048_v53, %v6788_v3  ;;  %v6934_v31 = vld [vmem:[#allocation3 + $0xf1] sm:$0xff] }
 0x485   : > { %v6793_v16 = vunpack.i.h.bf16 %v6791_v19  ;;  %v6792_v56 = vunpack.i.l.bf16 %v6791_v19  ;;  %v6796_v0 = vpop.permute.xlu0 %6795  ;;  %v4119_v40 = vpack.c.bf16 %v4080_v57, %v4079_v20 }
 0x486   : > { %5822 = vmatmul.mubr.msk.bf16.gmra.mxu1 %vm265_vm0, %v4126_v63  ;;  %v6798_v41 = vunpack.i.h.bf16 %v6796_v0  ;;  %v6797_v18 = vunpack.i.l.bf16 %v6796_v0 }
 0x487   : > { %v3983_v36 = vsel %vm3968_vm6, %v3950_v2, %v6792_v56  ;;  %v3984_v44 = vsel %vm3968_vm6, %v3951_v30, %v6793_v16  ;;  %5825 = vmatprep.mubr.msk.bf16.mxu1 %vm265_vm0, %v4129_v26  ;;  %4434 = vmatprep.mubr.bf16.mxu0 %v4119_v40  ;;  %v4141_v40 = vpack.c.bf16 %v3132_v50, %v3131_v54 }
 0x488   : > { %v6801_v9 = vpop.permute.xlu1 %6800  ;;  %v4118_v52 = vpack.c.bf16 %v3984_v44, %v3983_v36  ;;  %v4018_v10 = vsel %vm265_vm0, %v2991_v7, %v6798_v41  ;;  %v4017_v1 = vsel %vm265_vm0, %v2990_v5, %v6797_v18  ;;  %v2864_v41 = vld [vmem:[#allocation3 + $0xd8] sm:$0xff]  ;;  %v2865_v18 = vld [vmem:[#allocation3 + $0xe0] sm:$0xff] }
 0x489   : > { %v6806_v8 = vpop.permute.xlu0 %6805  ;;  %v6803_v24 = vunpack.i.h.bf16 %v6801_v9  ;;  %v6802_v42 = vunpack.i.l.bf16 %v6801_v9 }
 0x48a   : > { %4435 = vmatmul.mubr.bf16.gmra.mxu0 %v4118_v52  ;;  %v6808_v47 = vunpack.i.h.bf16 %v6806_v8  ;;  %v6807_v13 = vunpack.i.l.bf16 %v6806_v8  ;;  %v3133_v52 = vld [vmem:[#allocation3 + $0x19a] sm:$0xff] }
 0x48b   : > { %v3920_v63 = vsel %vm265_vm0, %v2863_v12, %v6803_v24  ;;  %v3919_v33 = vsel %vm265_vm0, %v2862_v25, %v6802_v42  ;;  %v4144_v42 = vpack.c.bf16 %v3134_v38, %v3133_v52 }
 0x48c   : > { %v6811_v22 = vpop.permute.xlu1 %6810  ;;  %v4049_v3 = vsel %vm3935_vm5, %v4017_v1, %v6807_v13  ;;  %v4050_v62 = vsel %vm3935_vm5, %v4018_v10, %v6808_v47 }
 0x48d   : > { %v6813_v17 = vunpack.i.h.bf16 %v6811_v22  ;;  %v6812_v51 = vunpack.i.l.bf16 %v6811_v22  ;;  %v6816_v29 = vpop.permute.xlu0 %6815  ;;  %v6933_v22 = vld [vmem:[#allocation3 + $0xf9] sm:$0xff] }
 0x48e   : > { %5826 = vmatmul.mubr.msk.bf16.gmra.mxu1 %vm265_vm0, %v4132_v28  ;;  %v6818_v61 = vunpack.i.h.bf16 %v6816_v29  ;;  %v6817_v46 = vunpack.i.l.bf16 %v6816_v29 }
 0x48f   : > { %5829 = vmatprep.mubr.msk.bf16.mxu1 %vm265_vm0, %v4135_v6  ;;  %v3952_v53 = vsel %vm3935_vm5, %v3919_v33, %v6812_v51  ;;  %v3953_v16 = vsel %vm3935_vm5, %v3920_v63, %v6813_v17 }
 0x490   : > { %v6821_v26 = vpop.permute.xlu1 %6820  ;;  %v4081_v56 = vsel %vm3968_vm6, %v4049_v3, %v6817_v46  ;;  %v4082_v2 = vsel %vm3968_vm6, %v4050_v62, %v6818_v61 }
 0x491   : > { %v6823_v19 = vunpack.i.h.bf16 %v6821_v26  ;;  %v6822_v34 = vunpack.i.l.bf16 %v6821_v26  ;;  %v6826_v30 = vpop.permute.xlu0 %6825  ;;  %v4122_v20 = vpack.c.bf16 %v4082_v2, %v4081_v56 }
 0x492   : > { %v6828_v32 = vunpack.i.h.bf16 %v6826_v30  ;;  %v6827_v49 = vunpack.i.l.bf16 %v6826_v30 }
 0x493   : > { %v3985_v57 = vsel %vm3968_vm6, %v3952_v53, %v6822_v34  ;;  %v3986_v0 = vsel %vm3968_vm6, %v3953_v16, %v6823_v19  ;;  %4442 = vmatprep.mubr.bf16.mxu0 %v4122_v20 }
 0x494   : > { %v6831_v36 = vpop.permute.xlu1 %6830  ;;  %v4121_v44 = vpack.c.bf16 %v3986_v0, %v3985_v57  ;;  %v4020_v11 = vsel %vm265_vm0, %v6933_v22, %v6828_v32  ;;  %v4019_v25 = vsel %vm265_vm0, %v6934_v31, %v6827_v49  ;;  %v2866_v57 = vld [vmem:[#allocation3 + $0xf0] sm:$0xff]  ;;  %v2867_v0 = vld [vmem:[#allocation3 + $0xf8] sm:$0xff] }
 0x495   : > { %v6836_v9 = vpop.permute.xlu0 %6835  ;;  %v6833_v15 = vunpack.i.h.bf16 %v6831_v36  ;;  %v6832_v28 = vunpack.i.l.bf16 %v6831_v36 }
 0x496   : > { %4443 = vmatmul.mubr.bf16.gmra.mxu0 %v4121_v44  ;;  %5830 = vmatmul.mubr.msk.bf16.gmra.mxu1 %vm265_vm0, %v4138_v27  ;;  %v6838_v8 = vunpack.i.h.bf16 %v6836_v9  ;;  %v6837_v6 = vunpack.i.l.bf16 %v6836_v9  ;;  %v6935_v9 = vld [vmem:[#allocation3 + $0x109] sm:$0xff] }
 0x497   : > { %5833 = vmatprep.mubr.msk.bf16.mxu1 %vm265_vm0, %v4141_v40  ;;  %v3922_v47 = vsel %vm265_vm0, %v2865_v18, %v6833_v15  ;;  %v3921_v13 = vsel %vm265_vm0, %v2864_v41, %v6832_v28 }
 0x498   : > { %v6841_v5 = vpop.permute.xlu1 %6840  ;;  %v4051_v1 = vsel %vm3935_vm5, %v4019_v25, %v6837_v6  ;;  %v4052_v29 = vsel %vm3935_vm5, %v4020_v11, %v6838_v8 }
 0x499   : > { %v6843_v7 = vunpack.i.h.bf16 %v6841_v5  ;;  %v6842_v24 = vunpack.i.l.bf16 %v6841_v5  ;;  %v6846_v12 = vpop.permute.xlu0 %6845 }
 0x49a   : > { %v6848_v17 = vunpack.i.h.bf16 %v6846_v12  ;;  %v6847_v51 = vunpack.i.l.bf16 %v6846_v12 }
 0x49b   : > { %v3954_v33 = vsel %vm3935_vm5, %v3921_v13, %v6842_v24  ;;  %v3955_v61 = vsel %vm3935_vm5, %v3922_v47, %v6843_v7 }
 0x49c   : > { %v6851_v10 = vpop.permute.xlu1 %6850  ;;  %v4083_v46 = vsel %vm3968_vm6, %v4051_v1, %v6847_v51  ;;  %v4084_v26 = vsel %vm3968_vm6, %v4052_v29, %v6848_v17 }
 0x49d   : > { %v6853_v27 = vunpack.i.h.bf16 %v6851_v10  ;;  %v6852_v63 = vunpack.i.l.bf16 %v6851_v10  ;;  %v6856_v54 = vpop.permute.xlu0 %6855  ;;  %v4125_v50 = vpack.c.bf16 %v4084_v26, %v4083_v46 }
 0x49e   : > { %5834 = vmatmul.mubr.msk.bf16.gmra.mxu1 %vm265_vm0, %v4144_v42  ;;  %v6858_v53 = vunpack.i.h.bf16 %v6856_v54  ;;  %v6857_v16 = vunpack.i.l.bf16 %v6856_v54 }
 0x49f   : > { %v3987_v3 = vsel %vm3968_vm6, %v3954_v33, %v6852_v63  ;;  %v3988_v62 = vsel %vm3968_vm6, %v3955_v61, %v6853_v27  ;;  %4450 = vmatprep.mubr.bf16.mxu0 %v4125_v50  ;;  %v2868_v33 = vld [vmem:[#allocation3 + $0x108] sm:$0xff]  ;;  %v2869_v61 = vld [vmem:[#allocation3 + $0x110] sm:$0xff] }
 0x4a0   : > { %v6861_v19 = vpop.permute.xlu1 %6860  ;;  %v4124_v34 = vpack.c.bf16 %v3988_v62, %v3987_v3  ;;  %v4022_v49 = vsel %vm265_vm0, %v8780_v37, %v6858_v53  ;;  %v4021_v52 = vsel %vm265_vm0, %v6935_v9, %v6857_v16 }
 0x4a1   : > { %v6866_v56 = vpop.permute.xlu0 %6865  ;;  %v6863_v2 = vunpack.i.h.bf16 %v6861_v19  ;;  %v6862_v30 = vunpack.i.l.bf16 %v6861_v19 }
 0x4a2   : > { %4451 = vmatmul.mubr.bf16.gmra.mxu0 %v4124_v34  ;;  %v6868_v40 = vunpack.i.h.bf16 %v6866_v56  ;;  %v6867_v36 = vunpack.i.l.bf16 %v6866_v56 }
 0x4a3   : > { %v3924_v15 = vsel %vm265_vm0, %v2867_v0, %v6863_v2  ;;  %v3923_v28 = vsel %vm265_vm0, %v2866_v57, %v6862_v30 }
 0x4a4   : > { %v6871_v20 = vpop.permute.xlu1 %6870  ;;  %v4053_v8 = vsel %vm3935_vm5, %v4021_v52, %v6867_v36  ;;  %v4054_v6 = vsel %vm3935_vm5, %v4022_v49, %v6868_v40 }
 0x4a5   : > { %v6873_v44 = vunpack.i.h.bf16 %v6871_v20  ;;  %v6872_v32 = vunpack.i.l.bf16 %v6871_v20  ;;  %v6876_v38 = vpop.permute.xlu0 %6875 }
 0x4a6   : > { %v6878_v5 = vunpack.i.h.bf16 %v6876_v38  ;;  %v6877_v41 = vunpack.i.l.bf16 %v6876_v38 }
 0x4a7   : > { %v3956_v42 = vsel %vm3935_vm5, %v3923_v28, %v6872_v32  ;;  %v3957_v37 = vsel %vm3935_vm5, %v3924_v15, %v6873_v44 }
 0x4a8   : > { %v6881_v18 = vpop.permute.xlu1 %6880  ;;  %v4085_v22 = vsel %vm3968_vm6, %v4053_v8, %v6877_v41  ;;  %v4086_v11 = vsel %vm3968_vm6, %v4054_v6, %v6878_v5 }
 0x4a9   : > { %v6883_v7 = vunpack.i.h.bf16 %v6881_v18  ;;  %v6882_v24 = vunpack.i.l.bf16 %v6881_v18  ;;  %v6886_v31 = vpop.permute.xlu0 %6885  ;;  %v4128_v25 = vpack.c.bf16 %v4086_v11, %v4085_v22 }
 0x4aa   : > { %v6888_v51 = vunpack.i.h.bf16 %v6886_v31  ;;  %v6887_v10 = vunpack.i.l.bf16 %v6886_v31 }
 0x4ab   : > { %v3989_v12 = vsel %vm3968_vm6, %v3956_v42, %v6882_v24  ;;  %v3990_v47 = vsel %vm3968_vm6, %v3957_v37, %v6883_v7  ;;  %4458 = vmatprep.mubr.bf16.mxu0 %v4128_v25 }
 0x4ac   : > { %v6891_v13 = vpop.permute.xlu1 %6890  ;;  %v4127_v17 = vpack.c.bf16 %v3990_v47, %v3989_v12  ;;  %v4024_v3 = vsel %vm265_vm0, %v8827_v39, %v6888_v51  ;;  %v4023_v62 = vsel %vm265_vm0, %v8825_v55, %v6887_v10 }
 0x4ad   : > { %v6896_v1 = vpop.permute.xlu0 %6895  ;;  %v6893_v29 = vunpack.i.h.bf16 %v6891_v13  ;;  %v6892_v27 = vunpack.i.l.bf16 %v6891_v13 }
 0x4ae   : > { %4459 = vmatmul.mubr.bf16.gmra.mxu0 %v4127_v17  ;;  %v6898_v46 = vunpack.i.h.bf16 %v6896_v1  ;;  %v6897_v26 = vunpack.i.l.bf16 %v6896_v1 }
 0x4af   : > { %v3926_v34 = vsel %vm265_vm0, %v2869_v61, %v6893_v29  ;;  %v3925_v53 = vsel %vm265_vm0, %v2868_v33, %v6892_v27 }
 0x4b0   : > { %v6901_v63 = vpop.permute.xlu1 %6900  ;;  %v4055_v30 = vsel %vm3935_vm5, %v4023_v62, %v6897_v26  ;;  %v4056_v20 = vsel %vm3935_vm5, %v4024_v3, %v6898_v46 }
 0x4b1   : > { %v6903_v54 = vunpack.i.h.bf16 %v6901_v63  ;;  %v6902_v50 = vunpack.i.l.bf16 %v6901_v63  ;;  %v6906_v19 = vpop.permute.xlu0 %6905 }
 0x4b2   : > { %v6908_v16 = vunpack.i.h.bf16 %v6906_v19  ;;  %v6907_v56 = vunpack.i.l.bf16 %v6906_v19 }
 0x4b3   : > { %v3958_v40 = vsel %vm3935_vm5, %v3925_v53, %v6902_v50  ;;  %v3959_v39 = vsel %vm3935_vm5, %v3926_v34, %v6903_v54 }
 0x4b4   : > { %v6911_v2 = vpop.permute.xlu1 %6910  ;;  %v4087_v55 = vsel %vm3968_vm6, %v4055_v30, %v6907_v56  ;;  %v4088_v36 = vsel %vm3968_vm6, %v4056_v20, %v6908_v16  ;;  %v9064_v56 = vld [vmem:[%s9480_s3 + $0x1] ss:$0 sm:$0xff] }
 0x4b5   : > { %v6913_v57 = vunpack.i.h.bf16 %v6911_v2  ;;  %v6912_v0 = vunpack.i.l.bf16 %v6911_v2  ;;  %v4131_v44 = vpack.c.bf16 %v4088_v36, %v4087_v55 }
 0x4b7   : > { %v3991_v32 = vsel %vm3968_vm6, %v3958_v40, %v6912_v0  ;;  %v3992_v49 = vsel %vm3968_vm6, %v3959_v39, %v6913_v57  ;;  %4466 = vmatprep.mubr.bf16.mxu0 %v4131_v44 }
 0x4b8   : > { %v4130_v9 = vpack.c.bf16 %v3992_v49, %v3991_v32 }
 0x4ba   : > { %4467 = vmatmul.mubr.bf16.gmra.mxu0 %v4130_v9 }
 0x4cf   : > { %v5597_v18 = vpop.f32.mrf.mxu0 }
 0x4d1   : > { %v5598_v7 = vpop.f32.mrf.mxu0 }
 0x4d2   : > { %v5599_v34 = vadd.f32 %v5598_v7, %v5597_v18 }
 0x4d3   : > { %v5600_v22 = vpop.f32.mrf.mxu0 }
 0x4d4   : > { %v4381_v39 = vadd.f32 %v5599_v34, %v9064_v56 }
 0x4d5   : > { %v5601_v31 = vpop.f32.mrf.mxu0 }
 0x4d6   : > { %v5602_v57 = vadd.f32 %v5601_v31, %v5600_v22 }
 0x4db   : > { %v5669_v52 = vpop.f32.mrf.mxu1 }
 0x4dd   : > { %v5670_v38 = vpop.f32.mrf.mxu1 }
 0x4de   : > { %v9041_v15 = vadd.f32 %v5670_v38, %v5669_v52 }
 0x4df   : > { %v5672_v28 = vpop.f32.mrf.mxu1 }
 0x4e1   : > { %v5673_v5 = vpop.f32.mrf.mxu1 }
 0x4e2   : > { %v9043_v41 = vadd.f32 %v5673_v5, %v5672_v28 }
 0x4e6   : > { %v5603_v25 = vpop.f32.mrf.mxu0 }
 0x4e8   : > { %v5604_v12 = vpop.f32.mrf.mxu0 }
 0x4e9   : > { %v5605_v62 = vadd.f32 %v5604_v12, %v5603_v25 }
 0x4ea   : > { %v5606_v47 = vpop.f32.mrf.mxu0 }
 0x4eb   : > { %v4389_v30 = vadd.f32 %v5605_v62, %v9064_v56 }
 0x4ec   : > { %v5607_v17 = vpop.f32.mrf.mxu0 }
 0x4ed   : > { %v5608_v2 = vadd.f32 %v5607_v17, %v5606_v47 }
 0x4ef   : > { %v4392_v9 = vadd.f32 %v5608_v2, %v9064_v56 }
 0x4f2   : > { %v5675_v8 = vpop.f32.mrf.mxu1 }
 0x4f4   : > { %v5676_v6 = vpop.f32.mrf.mxu1 }
 0x4f5   : > { %v9045_v24 = vadd.f32 %v5676_v6, %v5675_v8  ;;  %v4384_v6 = vadd.f32 %v5602_v57, %v9064_v56 }
 0x4f6   : > { %v5678_v42 = vpop.f32.mrf.mxu1 }
 0x4f8   : > { %v5679_v37 = vpop.f32.mrf.mxu1 }
 0x4f9   : > { %v9047_v11 = vadd.f32 %v5679_v37, %v5678_v42 }
 0x4fb   : > { %v5609_v1 = vpop.f32.mrf.mxu0 }
 0x4fd   : > { %v5610_v33 = vpop.f32.mrf.mxu0 }
 0x4fe   : > { %v5611_v52 = vadd.f32 %v5610_v33, %v5609_v1 }
 0x4ff   : > { %v5612_v61 = vpop.f32.mrf.mxu0 }
 0x501   : > { %v5613_v46 = vpop.f32.mrf.mxu0 }
 0x507   : > { %v5681_v13 = vpop.f32.mrf.mxu1 }
 0x509   : > { %v5682_v51 = vpop.f32.mrf.mxu1 }
 0x50a   : > { %v9049_v10 = vadd.f32 %v5682_v51, %v5681_v13  ;;  %v4397_v13 = vadd.f32 %v5611_v52, %v9064_v56 }
 0x50b   : > { %v5684_v29 = vpop.f32.mrf.mxu1 }
 0x50d   : > { %v5685_v27 = vpop.f32.mrf.mxu1 }
 0x50e   : > { %v9051_v63 = vadd.f32 %v5685_v27, %v5684_v29 }
 0x512   : > { %v5615_v26 = vpop.f32.mrf.mxu0 }
 0x514   : > { %v5616_v50 = vpop.f32.mrf.mxu0 }
 0x515   : > { %v5617_v55 = vadd.f32 %v5616_v50, %v5615_v26 }
 0x516   : > { %v5618_v53 = vpop.f32.mrf.mxu0 }
 0x517   : > { %v4405_v42 = vadd.f32 %v5617_v55, %v9064_v56 }
 0x518   : > { %v5619_v0 = vpop.f32.mrf.mxu0 }
 0x519   : > { %v5620_v37 = vadd.f32 %v5619_v0, %v5618_v53 }
 0x51b   : > { %v4408_v50 = vadd.f32 %v5620_v37, %v9064_v56 }
 0x51e   : > { %v9053_v54 = vpop.f32.mrf.mxu1 }
 0x520   : > { %v9055_v3 = vpop.f32.mrf.mxu1 }
 0x522   : > { %v9057_v19 = vpop.f32.mrf.mxu1 }
 0x524   : > { %v9059_v16 = vpop.f32.mrf.mxu1 }
 0x526   : > { %v5807_v20 = vpop.f32.mrf.mxu1 }
 0x527   : > { %v4550_v40 = vadd.f32 %v5807_v20, %v4389_v30  ;;  %v5621_v49 = vpop.f32.mrf.mxu0 }
 0x528   : > { %v4541_v36 = vpop.f32.mrf.mxu1 }
 0x529   : > { %v4670_v44 = vmax.f32 %v4550_v40, 0.0  ;;  %v4542_v32 = vadd.f32 %v4541_v36, %v4381_v39  ;;  %v5622_v8 = vpop.f32.mrf.mxu0 }
 0x52a   : > { %v5808_v38 = vpop.f32.mrf.mxu1  ;;  %v5623_v62 = vadd.f32 %v5622_v8, %v5621_v49 }
 0x52b   : > { %v4702_v28 = vadd.f32 %v4670_v44, %v8257_v45  ;;  %v4668_v5 = vmax.f32 %v4542_v32, 0.0  ;;  %v4553_v18 = vadd.f32 %v5808_v38, %v4392_v9  ;;  %v5624_v12 = vpop.f32.mrf.mxu0  ;;  %v5614_v45 = vadd.f32 %v5613_v46, %v5612_v61 }
 0x52c   : > { %v4544_v7 = vpop.f32.mrf.mxu1  ;;  %v4413_v36 = vadd.f32 %v5623_v62, %v9064_v56 }
 0x52d   : > { %4734 = vst.msk [vmem:[#allocation2 + $0x10] sm:$0xff] %vm265_vm0, %v4702_v28  ;;  %v4700_v22 = vadd.f32 %v4668_v5, %v8261_v14  ;;  %v4671_v31 = vmax.f32 %v4553_v18, 0.0  ;;  %v4545_v25 = vadd.f32 %v4544_v7, %v4384_v6  ;;  %v5625_v29 = vpop.f32.mrf.mxu0  ;;  %v4400_v2 = vadd.f32 %v5614_v45, %v9064_v56 }
 0x52e   : > { %v5811_v47 = vpop.f32.mrf.mxu1  ;;  %v5626_v44 = vadd.f32 %v5625_v29, %v5624_v12 }
 0x52f   : > { %4732 = vst.msk [vmem:[#allocation2] sm:$0xff] %vm265_vm0, %v4700_v22  ;;  %v4703_v17 = vadd.f32 %v4671_v31, %v8259_v60  ;;  %v4669_v51 = vmax.f32 %v4545_v25, 0.0  ;;  %v4566_v1 = vadd.f32 %v5811_v47, %v4405_v42 }
 0x530   : > { %v4557_v27 = vpop.f32.mrf.mxu1 }
 0x531   : > { %4735 = vst.msk [vmem:[#allocation2 + $0x18] sm:$0xff] %vm265_vm0, %v4703_v17  ;;  %v4701_v33 = vadd.f32 %v4669_v51, %v8317_v21  ;;  %v4674_v14 = vmax.f32 %v4566_v1, 0.0  ;;  %v4558_v26 = vadd.f32 %v4557_v27, %v4397_v13  ;;  %v9589_v1 = vld [vmem:[#allocation28_spill] sm:$0xff] }
 0x532   : > { %v5627_v34 = vpop.f32.mrf.mxu0  ;;  %v5812_v53 = vpop.f32.mrf.mxu1 }
 0x533   : > { %4733 = vst.msk [vmem:[#allocation2 + $0x8] sm:$0xff] %vm265_vm0, %v4701_v33  ;;  %v4706_v61 = vadd.f32 %v4674_v14, %v8335_v35  ;;  %v4672_v60 = vmax.f32 %v4558_v26, 0.0  ;;  %v4569_v46 = vadd.f32 %v5812_v53, %v4408_v50 }
 0x534   : > { %v5628_v30 = vpop.f32.mrf.mxu0  ;;  %v4560_v20 = vpop.f32.mrf.mxu1 }
 0x535   : > { %4738 = vst.msk [vmem:[#allocation2 + $0x30] sm:$0xff] %vm265_vm0, %v4706_v61  ;;  %v4704_v21 = vadd.f32 %v4672_v60, %v8319_v59  ;;  %v4675_v57 = vmax.f32 %v4569_v46, 0.0  ;;  %v5629_v0 = vadd.f32 %v5628_v30, %v5627_v34  ;;  %v4561_v40 = vadd.f32 %v4560_v20, %v4400_v2  ;;  %v9590_v60 = vld [vmem:[#allocation39_spill] sm:$0xff] }
 0x536   : > { %v5630_v39 = vpop.f32.mrf.mxu0  ;;  %v5815_v55 = vpop.f32.mrf.mxu1 }
 0x537   : > { %4736 = vst.msk [vmem:[#allocation2 + $0x20] sm:$0xff] %vm265_vm0, %v4704_v21  ;;  %v4707_v35 = vadd.f32 %v4675_v57, %v8337_v4  ;;  %v4673_v32 = vmax.f32 %v4561_v40, 0.0  ;;  %v4421_v49 = vadd.f32 %v5629_v0, %v9064_v56  ;;  %v4416_v4 = vadd.f32 %v5626_v44, %v9064_v56  ;;  %v9591_v40 = vld [vmem:[#allocation40_spill] sm:$0xff] }
 0x538   : > { %v5631_v9 = vpop.f32.mrf.mxu0  ;;  %v4573_v52 = vpop.f32.mrf.mxu1 }
 0x539   : > { %4739 = vst.msk [vmem:[#allocation2 + $0x38] sm:$0xff] %vm265_vm0, %v4707_v35  ;;  %v4705_v59 = vadd.f32 %v4673_v32, %v8321_v48  ;;  %v4582_v38 = vadd.f32 %v5815_v55, %v4421_v49  ;;  %v5632_v28 = vadd.f32 %v5631_v9, %v5630_v39  ;;  %v4574_v5 = vadd.f32 %v4573_v52, %v4413_v36 }
 0x53a   : > { %v5816_v18 = vpop.f32.mrf.mxu1 }
 0x53b   : > { %4737 = vst.msk [vmem:[#allocation2 + $0x28] sm:$0xff] %vm265_vm0, %v4705_v59  ;;  %v4678_v8 = vmax.f32 %v4582_v38, 0.0  ;;  %v4676_v6 = vmax.f32 %v4574_v5, 0.0  ;;  %v4424_v7 = vadd.f32 %v5632_v28, %v9064_v56 }
 0x53c   : > { %v4576_v42 = vpop.f32.mrf.mxu1 }
 0x53d   : > { %v4710_v37 = vadd.f32 %v4678_v8, %v8387_v23  ;;  %v4708_v22 = vadd.f32 %v4676_v6, %v8339_v43  ;;  %v4585_v31 = vadd.f32 %v5816_v18, %v4424_v7  ;;  %v4577_v25 = vadd.f32 %v4576_v42, %v4416_v4  ;;  %v9592_v18 = vld [vmem:[#allocation41_spill] sm:$0xff] }
 0x53e   : > { %v5633_v48 = vpop.f32.mrf.mxu0  ;;  %v5819_v12 = vpop.f32.mrf.mxu1  ;;  %v4485_v7 = vadd.f32 %v9045_v24, %v9064_v56 }
 0x53f   : > { %4742 = vst.msk [vmem:[#allocation2 + $0x50] sm:$0xff] %vm265_vm0, %v4710_v37  ;;  %4740 = vst.msk [vmem:[#allocation2 + $0x40] sm:$0xff] %vm265_vm0, %v4708_v22  ;;  %v4679_v47 = vmax.f32 %v4585_v31, 0.0  ;;  %v4677_v13 = vmax.f32 %v4577_v25, 0.0  ;;  %v4477_v31 = vadd.f32 %v9041_v15, %v9064_v56  ;;  %v5689_v25 = vadd.f32 %v9055_v3, %v9053_v54 }
 0x540   : > { %v5634_v45 = vpop.f32.mrf.mxu0  ;;  %v4589_v17 = vpop.f32.mrf.mxu1  ;;  %v5692_v3 = vadd.f32 %v9059_v16, %v9057_v19  ;;  %v9596_v16 = vld [vmem:[#allocation34_spill] sm:$0xff] }
 0x541   : > { %v4711_v51 = vadd.f32 %v4679_v47, %v8393_v58  ;;  %v4709_v29 = vadd.f32 %v4677_v13, %v9589_v1  ;;  %v5635_v27 = vadd.f32 %v5634_v45, %v5633_v48  ;;  %v4488_v47 = vadd.f32 %v9047_v11, %v9064_v56  ;;  %v9593_v13 = vld [vmem:[#allocation42_spill] sm:$0xff] }
 0x542   : > { %v5636_v23 = vpop.f32.mrf.mxu0  ;;  %v5820_v33 = vpop.f32.mrf.mxu1  ;;  %v4480_v11 = vadd.f32 %v9043_v41, %v9064_v56 }
 0x543   : > { %4743 = vst.msk [vmem:[#allocation2 + $0x58] sm:$0xff] %vm265_vm0, %v4711_v51  ;;  %4741 = vst.msk [vmem:[#allocation2 + $0x48] sm:$0xff] %vm265_vm0, %v4709_v29  ;;  %v4429_v43 = vadd.f32 %v5635_v27, %v9064_v56  ;;  %v9594_v27 = vld [vmem:[#allocation33_spill] sm:$0xff] }
 0x544   : > { %v5637_v14 = vpop.f32.mrf.mxu0  ;;  %v4592_v26 = vpop.f32.mrf.mxu1 }
 0x545   : > { %v4590_v50 = vadd.f32 %v4589_v17, %v4429_v43  ;;  %v5638_v62 = vadd.f32 %v5637_v14, %v5636_v23 }
 0x546   : > { %v9103_v34 = vpop.f32.mrf.mxu1 }
 0x547   : > { %v4680_v53 = vmax.f32 %v4590_v50, 0.0  ;;  %v4432_v58 = vadd.f32 %v5638_v62, %v9064_v56  ;;  %v9595_v62 = vld [vmem:[#allocation29_spill] sm:$0xff] }
 0x548   : > { %v4605_v61 = vpop.f32.mrf.mxu1 }
 0x549   : > { %v4712_v46 = vadd.f32 %v4680_v53, %v9590_v60  ;;  %v4593_v2 = vadd.f32 %v4592_v26, %v4432_v58  ;;  %v4501_v26 = vadd.f32 %v5689_v25, %v9064_v56  ;;  %v9601_v25 = vld [vmem:[#allocation35_spill] sm:$0xff] }
 0x54a   : > { %v5639_v30 = vpop.f32.mrf.mxu0  ;;  %v9107_v20 = vpop.f32.mrf.mxu1 }
 0x54b   : > { %4744 = vst.msk [vmem:[#allocation2 + $0x60] sm:$0xff] %vm265_vm0, %v4712_v46  ;;  %v4681_v21 = vmax.f32 %v4593_v2, 0.0 }
 0x54c   : > { %v5640_v57 = vpop.f32.mrf.mxu0  ;;  %v4608_v0 = vpop.f32.mrf.mxu1 }
 0x54d   : > { %v4713_v39 = vadd.f32 %v4681_v21, %v9591_v40  ;;  %v5641_v55 = vadd.f32 %v5640_v57, %v5639_v30  ;;  %v4493_v30 = vadd.f32 %v9049_v10, %v9064_v56  ;;  %v9598_v10 = vld [vmem:[#allocation30_spill] sm:$0xff] }
 0x54e   : > { %v5642_v36 = vpop.f32.mrf.mxu0  ;;  %v9111_v44 = vpop.f32.mrf.mxu1 }
 0x54f   : > { %4745 = vst.msk [vmem:[#allocation2 + $0x68] sm:$0xff] %vm265_vm0, %v4713_v39  ;;  %v4437_v35 = vadd.f32 %v5641_v55, %v9064_v56  ;;  %v9597_v55 = vld [vmem:[#allocation43_spill] sm:$0xff] }
 0x550   : > { %v5643_v32 = vpop.f32.mrf.mxu0  ;;  %v9115_v49 = vpop.f32.mrf.mxu1 }
 0x551   : > { %v4598_v9 = vadd.f32 %v5819_v12, %v4437_v35  ;;  %v5644_v52 = vadd.f32 %v5643_v32, %v5642_v36 }
 0x552   : > { %v9117_v59 = vpop.f32.mrf.mxu1 }
 0x553   : > { %v4682_v38 = vmax.f32 %v4598_v9, 0.0  ;;  %v4440_v28 = vadd.f32 %v5644_v52, %v9064_v56 }
 0x554   : > { %v9120_v5 = vpop.f32.mrf.mxu1 }
 0x555   : > { %v4714_v8 = vadd.f32 %v4682_v38, %v9592_v18  ;;  %v4601_v6 = vadd.f32 %v5820_v33, %v4440_v28 }
 0x556   : > { %v5645_v4 = vpop.f32.mrf.mxu0  ;;  %v5831_v42 = vpop.f32.mrf.mxu1 }
 0x557   : > { %4746 = vst.msk [vmem:[#allocation2 + $0x70] sm:$0xff] %vm265_vm0, %v4714_v8  ;;  %v4683_v37 = vmax.f32 %v4601_v6, 0.0  ;;  %v4646_v22 = vadd.f32 %v5831_v42, %v4485_v7  ;;  %v9599_v8 = vld [vmem:[#allocation37_spill] sm:$0xff] }
 0x558   : > { %v5646_v48 = vpop.f32.mrf.mxu0  ;;  %v4637_v12 = vpop.f32.mrf.mxu1 }
 0x559   : > { %v4715_v45 = vadd.f32 %v4683_v37, %v9593_v13  ;;  %v4694_v24 = vmax.f32 %v4646_v22, 0.0  ;;  %v5647_v17 = vadd.f32 %v5646_v48, %v5645_v4  ;;  %v4638_v51 = vadd.f32 %v4637_v12, %v4477_v31  ;;  %v9600_v22 = vld [vmem:[#allocation44_spill] sm:$0xff] }
 0x55a   : > { %v5648_v1 = vpop.f32.mrf.mxu0  ;;  %v5832_v29 = vpop.f32.mrf.mxu1  ;;  %v4496_v37 = vadd.f32 %v9051_v63, %v9064_v56 }
 0x55b   : > { %4747 = vst.msk [vmem:[#allocation2 + $0x78] sm:$0xff] %vm265_vm0, %v4715_v45  ;;  %v4726_v23 = vadd.f32 %v4694_v24, %v9594_v27  ;;  %v4445_v15 = vadd.f32 %v5647_v17, %v9064_v56  ;;  %v4692_v33 = vmax.f32 %v4638_v51, 0.0  ;;  %v4649_v54 = vadd.f32 %v5832_v29, %v4488_v47  ;;  %v9602_v24 = vld [vmem:[#allocation38_spill] sm:$0xff] }
 0x55c   : > { %v5649_v43 = vpop.f32.mrf.mxu0  ;;  %v4640_v14 = vpop.f32.mrf.mxu1 }
 0x55d   : > { %4758 = vst.msk [vmem:[#allocation2 + $0xd0] sm:$0xff] %vm265_vm0, %v4726_v23  ;;  %v4606_v50 = vadd.f32 %v4605_v61, %v4445_v15  ;;  %v4724_v53 = vadd.f32 %v4692_v33, %v9595_v62  ;;  %v4695_v58 = vmax.f32 %v4649_v54, 0.0  ;;  %v5650_v60 = vadd.f32 %v5649_v43, %v5648_v1  ;;  %v9603_v23 = vld [vmem:[#allocation36_spill] sm:$0xff]  ;;  %v9605_v62 = vld [vmem:[#allocation46_spill] sm:$0xff] }
 0x55e   : > { %v4641_v46 = vadd.f32 %v4640_v14, %v4480_v11  ;;  %v5835_v2 = vpop.f32.mrf.mxu1  ;;  %v4504_v61 = vadd.f32 %v5692_v3, %v9064_v56  ;;  %v9604_v3 = vld [vmem:[#allocation45_spill] sm:$0xff] }
 0x55f   : > { %v4684_v19 = vmax.f32 %v4606_v50, 0.0  ;;  %4756 = vst.msk [vmem:[#allocation2 + $0xc0] sm:$0xff] %vm265_vm0, %v4724_v53  ;;  %v4727_v41 = vadd.f32 %v4695_v58, %v9596_v16  ;;  %v4448_v21 = vadd.f32 %v5650_v60, %v9064_v56  ;;  %v4662_v57 = vadd.f32 %v5835_v2, %v4501_v26  ;;  %v9606_v16 = vld [vmem:[#allocation47_spill] sm:$0xff] }
 0x560   : > { %v4693_v40 = vmax.f32 %v4641_v46, 0.0  ;;  %v4653_v39 = vpop.f32.mrf.mxu1 }
 0x561   : > { %v4716_v36 = vadd.f32 %v4684_v19, %v9597_v55  ;;  %4759 = vst.msk [vmem:[#allocation2 + $0xd8] sm:$0xff] %vm265_vm0, %v4727_v41  ;;  %v4609_v35 = vadd.f32 %v4608_v0, %v4448_v21  ;;  %v4698_v32 = vmax.f32 %v4662_v57, 0.0  ;;  %v4654_v9 = vadd.f32 %v4653_v39, %v4493_v30 }
 0x562   : > { %v4725_v52 = vadd.f32 %v4693_v40, %v9598_v10  ;;  %v5651_v38 = vpop.f32.mrf.mxu0  ;;  %v5836_v28 = vpop.f32.mrf.mxu1 }
 0x563   : > { %4748 = vst.msk [vmem:[#allocation2 + $0x80] sm:$0xff] %vm265_vm0, %v4716_v36  ;;  %v4685_v18 = vmax.f32 %v4609_v35, 0.0  ;;  %v4730_v6 = vadd.f32 %v4698_v32, %v9599_v8  ;;  %v4696_v7 = vmax.f32 %v4654_v9, 0.0  ;;  %v4665_v4 = vadd.f32 %v5836_v28, %v4504_v61  ;;  %v9607_v61 = vld [vmem:[#allocation48_spill] sm:$0xff] }
 0x564   : > { %4757 = vst.msk [vmem:[#allocation2 + $0xc8] sm:$0xff] %vm265_vm0, %v4725_v52  ;;  %v5652_v42 = vpop.f32.mrf.mxu0  ;;  %v4656_v0 = vpop.f32.mrf.mxu1 }
 0x565   : > { %v4717_v31 = vadd.f32 %v4685_v18, %v9600_v22  ;;  %4762 = vst.msk [vmem:[#allocation2 + $0xf0] sm:$0xff] %vm265_vm0, %v4730_v6  ;;  %v4728_v48 = vadd.f32 %v4696_v7, %v9601_v25  ;;  %v4699_v12 = vmax.f32 %v4665_v4, 0.0  ;;  %v5653_v47 = vadd.f32 %v5652_v42, %v5651_v38  ;;  %v9608_v38 = vld [vmem:[#allocation31_spill] sm:$0xff]  ;;  %v9609_v6 = vld [vmem:[#allocation32_spill] sm:$0xff] }
 0x566   : > { %v4657_v13 = vadd.f32 %v4656_v0, %v4496_v37  ;;  %v5654_v45 = vpop.f32.mrf.mxu0 }
 0x567   : > { %4749 = vst.msk [vmem:[#allocation2 + $0x88] sm:$0xff] %vm265_vm0, %v4717_v31  ;;  %4760 = vst.msk [vmem:[#allocation2 + $0xe0] sm:$0xff] %vm265_vm0, %v4728_v48  ;;  %v4731_v17 = vadd.f32 %v4699_v12, %v9602_v24  ;;  %v4453_v51 = vadd.f32 %v5653_v47, %v9064_v56 }
 0x568   : > { %v4697_v63 = vmax.f32 %v4657_v13, 0.0  ;;  %v5655_v1 = vpop.f32.mrf.mxu0 }
 0x569   : > { %4763 = vst.msk [vmem:[#allocation2 + $0xf8] sm:$0xff] %vm265_vm0, %v4731_v17  ;;  %v4614_v29 = vadd.f32 %v9103_v34, %v4453_v51  ;;  %v5656_v27 = vadd.f32 %v5655_v1, %v5654_v45 }
 0x56a   : > { %v4729_v15 = vadd.f32 %v4697_v63, %v9603_v23 }
 0x56b   : > { %v4686_v33 = vmax.f32 %v4614_v29, 0.0  ;;  %v4456_v54 = vadd.f32 %v5656_v27, %v9064_v56 }
 0x56c   : > { %4761 = vst.msk [vmem:[#allocation2 + $0xe8] sm:$0xff] %vm265_vm0, %v4729_v15 }
 0x56d   : > { %v4718_v43 = vadd.f32 %v4686_v33, %v9604_v3  ;;  %v4617_v11 = vadd.f32 %v9107_v20, %v4456_v54 }
 0x56e   : > { %v5657_v14 = vpop.f32.mrf.mxu0 }
 0x56f   : > { %4750 = vst.msk [vmem:[#allocation2 + $0x90] sm:$0xff] %vm265_vm0, %v4718_v43  ;;  %v4687_v26 = vmax.f32 %v4617_v11, 0.0 }
 0x570   : > { %v5658_v50 = vpop.f32.mrf.mxu0 }
 0x571   : > { %v4719_v53 = vadd.f32 %v4687_v26, %v9605_v62  ;;  %v5659_v34 = vadd.f32 %v5658_v50, %v5657_v14 }
 0x572   : > { %v5660_v58 = vpop.f32.mrf.mxu0 }
 0x573   : > { %4751 = vst.msk [vmem:[#allocation2 + $0x98] sm:$0xff] %vm265_vm0, %v4719_v53  ;;  %v4461_v60 = vadd.f32 %v5659_v34, %v9064_v56 }
 0x574   : > { %v5661_v46 = vpop.f32.mrf.mxu0 }
 0x575   : > { %v4622_v2 = vadd.f32 %v9115_v49, %v4461_v60  ;;  %v5662_v30 = vadd.f32 %v5661_v46, %v5660_v58 }
 0x577   : > { %v4688_v19 = vmax.f32 %v4622_v2, 0.0  ;;  %v4464_v20 = vadd.f32 %v5662_v30, %v9064_v56 }
 0x579   : > { %v4720_v41 = vadd.f32 %v4688_v19, %v9606_v16  ;;  %v4625_v21 = vadd.f32 %v9120_v5, %v4464_v20 }
 0x57a   : > { %v5663_v57 = vpop.f32.mrf.mxu0 }
 0x57b   : > { %4752 = vst.msk [vmem:[#allocation2 + $0xa0] sm:$0xff] %vm265_vm0, %v4720_v41  ;;  %v4689_v40 = vmax.f32 %v4625_v21, 0.0 }
 0x57c   : > { %v5664_v39 = vpop.f32.mrf.mxu0 }
 0x57d   : > { %v4721_v55 = vadd.f32 %v4689_v40, %v9607_v61  ;;  %v5665_v36 = vadd.f32 %v5664_v39, %v5663_v57 }
 0x57e   : > { %v5666_v35 = vpop.f32.mrf.mxu0 }
 0x57f   : > { %4753 = vst.msk [vmem:[#allocation2 + $0xa8] sm:$0xff] %vm265_vm0, %v4721_v55  ;;  %v4469_v49 = vadd.f32 %v5665_v36, %v9064_v56 }
 0x580   : > { %v5667_v32 = vpop.f32.mrf.mxu0 }
 0x581   : > { %v4630_v9 = vadd.f32 %v9111_v44, %v4469_v49  ;;  %v5668_v10 = vadd.f32 %v5667_v32, %v5666_v35 }
 0x583   : > { %v4690_v52 = vmax.f32 %v4630_v9, 0.0  ;;  %v4472_v5 = vadd.f32 %v5668_v10, %v9064_v56 }
 0x585   : > { %v4722_v28 = vadd.f32 %v4690_v52, %v9608_v38  ;;  %v4633_v18 = vadd.f32 %v9117_v59, %v4472_v5 }
 0x587   : > { %4754 = vst.msk [vmem:[#allocation2 + $0xb0] sm:$0xff] %vm265_vm0, %v4722_v28  ;;  %v4691_v8 = vmax.f32 %v4633_v18, 0.0 }
 0x589   : > { %v4723_v7 = vadd.f32 %v4691_v8, %v9609_v6 }
 0x58b   : > { %4755 = vst.msk [vmem:[#allocation2 + $0xb8] sm:$0xff] %vm265_vm0, %v4723_v7 }
 0x58c PF: > { %p5404_p12 = scmp.eq.s32.totalorder %s8254_s23, 0 }
 0x58e   : > { %4767 = sbr.rel (%p5404_p12) target bundleno = 1667 (0x683), region = 56 }
 0x593   : > { %v6936_v44 = vld [vmem:[%s9481_s4 + $0x18] sm:$0xff]   ;;  %v6937_v56 = vld [vmem:[%s9481_s4 + $0x10] sm:$0xff]   ;;  %v9197_v59 = vld [vmem:[#allocation2] sm:$0xff] }
 0x594   : > { %5837 = vmatprep.subr.bf16.mxu0 %v6936_v44  ;;  %5909 = vmatprep.subr.bf16.mxu1 %v6936_v44  ;;  %v9199_v4 = vld [vmem:[#allocation2 + $0x8] sm:$0xff]  ;;  %v9201_v42 = vld [vmem:[#allocation2 + $0x80] sm:$0xff]  ;;  %v9207_v22 = vld [vmem:[#allocation2 + $0x10] sm:$0xff] }
 0x595   : > { %5838 = vmatpush3.bf16.msra.mxu0 %v6936_v44  ;;  %5911 = vmatpush3.bf16.msra.mxu1 %v6936_v44  ;;  %v4800_v37 = vpack.c.bf16 %v9199_v4, %v9197_v59  ;;  %v9205_v0 = vld [vmem:[#allocation2 + $0x88] sm:$0xff]  ;;  %v9209_v31 = vld [vmem:[#allocation2 + $0x18] sm:$0xff]  ;;  %v9213_v48 = vld [vmem:[#allocation2 + $0x90] sm:$0xff] }
 0x596   : > { %5839 = vmatprep.subr.bf16.mxu0 %v6937_v56  ;;  %5910 = vmatprep.subr.bf16.mxu1 %v6937_v56  ;;  %v4808_v25 = vpack.c.bf16 %v9205_v0, %v9201_v42  ;;  %v9215_v12 = vld [vmem:[#allocation2 + $0x98] sm:$0xff]  ;;  %v9217_v47 = vld [vmem:[#allocation2 + $0x20] sm:$0xff]  ;;  %v9220_v13 = vld [vmem:[#allocation2 + $0x28] sm:$0xff]  ;;  %v4801_v17 = vpack.c.bf16 %v9209_v31, %v9207_v22 }
 0x597   : > { %5841 = vmatprep.mubr.msk.bf16.mxu0 %vm265_vm0, %v4800_v37  ;;  %v9222_v45 = vld [vmem:[#allocation2 + $0xa0] sm:$0xff]  ;;  %v9224_v24 = vld [vmem:[#allocation2 + $0xa8] sm:$0xff]  ;;  %v4809_v51 = vpack.c.bf16 %v9215_v12, %v9213_v48  ;;  %v4802_v63 = vpack.c.bf16 %v9220_v13, %v9217_v47  ;;  %v9237_v29 = vld [vmem:[#allocation2 + $0x30] sm:$0xff] }
 0x598   : > { %5857 = vmatprep.mubr.msk.bf16.mxu1 %vm265_vm0, %v4808_v25  ;;  %v4810_v1 = vpack.c.bf16 %v9224_v24, %v9222_v45  ;;  %v9239_v27 = vld [vmem:[#allocation2 + $0x38] sm:$0xff]  ;;  %v9243_v23 = vld [vmem:[#allocation2 + $0xb0] sm:$0xff]  ;;  %v9247_v33 = vld [vmem:[#allocation2 + $0x40] sm:$0xff] }
 0x599   : > { %5840 = vmatpush3.bf16.msra.mxu0 %v6937_v56  ;;  %5912 = vmatpush3.bf16.msra.mxu1 %v6937_v56  ;;  %v9245_v15 = vld [vmem:[#allocation2 + $0xb8] sm:$0xff]  ;;  %v9249_v54 = vld [vmem:[#allocation2 + $0x48] sm:$0xff]  ;;  %v9251_v3 = vld [vmem:[#allocation2 + $0xc0] sm:$0xff]  ;;  %v4803_v11 = vpack.c.bf16 %v9239_v27, %v9237_v29 }
 0x59a   : > { %v9253_v43 = vld [vmem:[#allocation2 + $0xc8] sm:$0xff]  ;;  %v4811_v14 = vpack.c.bf16 %v9245_v15, %v9243_v23  ;;  %v4804_v26 = vpack.c.bf16 %v9249_v54, %v9247_v33  ;;  %v9265_v62 = vld [vmem:[#allocation2 + $0x50] sm:$0xff]  ;;  %v9267_v53 = vld [vmem:[#allocation2 + $0x58] sm:$0xff] }
 0x59b   : > { %v4812_v50 = vpack.c.bf16 %v9253_v43, %v9251_v3  ;;  %v9271_v34 = vld [vmem:[#allocation2 + $0xd0] sm:$0xff]  ;;  %v9273_v58 = vld [vmem:[#allocation2 + $0xd8] sm:$0xff]  ;;  %v9275_v60 = vld [vmem:[#allocation2 + $0x60] sm:$0xff]  ;;  %v4805_v19 = vpack.c.bf16 %v9267_v53, %v9265_v62 }
 0x59c   : > { %5842 = vmatmul.mubr.msk.bf16.vlgmr.msra.gmra.mxu0 %vm265_vm0, %v4801_v17  ;;  %5858 = vmatmul.mubr.msk.bf16.vlgmr.msra.gmra.mxu1 %vm265_vm0, %v4809_v51  ;;  %v9277_v46 = vld [vmem:[#allocation2 + $0x68] sm:$0xff]  ;;  %v9279_v2 = vld [vmem:[#allocation2 + $0xe0] sm:$0xff]  ;;  %v4813_v20 = vpack.c.bf16 %v9273_v58, %v9271_v34  ;;  %v9293_v21 = vld [vmem:[#allocation2 + $0x70] sm:$0xff] }
 0x59d   : > { %5845 = vmatprep.mubr.msk.bf16.mxu0 %vm265_vm0, %v4802_v63  ;;  %5861 = vmatprep.mubr.msk.bf16.mxu1 %vm265_vm0, %v4810_v1  ;;  %v9281_v30 = vld [vmem:[#allocation2 + $0xe8] sm:$0xff]  ;;  %v4806_v16 = vpack.c.bf16 %v9277_v46, %v9275_v60  ;;  %v9297_v57 = vld [vmem:[#allocation2 + $0x78] sm:$0xff]  ;;  %v9299_v40 = vld [vmem:[#allocation2 + $0xf0] sm:$0xff] }
 0x59e   : > { %v4814_v41 = vpack.c.bf16 %v9281_v30, %v9279_v2  ;;  %v9301_v39 = vld [vmem:[#allocation2 + $0xf8] sm:$0xff]  ;;  %v4807_v61 = vpack.c.bf16 %v9297_v57, %v9293_v21  ;;  %v9312_v36 = vld [vmem:[%s9482_s5 + $0x1] ss:$0 sm:$0xff] }
 0x59f   : > { %v4815_v55 = vpack.c.bf16 %v9301_v39, %v9299_v40 }
 0x5a4   : > { %5846 = vmatmul.mubr.msk.bf16.gmra.mxu0 %vm265_vm0, %v4803_v11  ;;  %5862 = vmatmul.mubr.msk.bf16.gmra.mxu1 %vm265_vm0, %v4811_v14 }
 0x5a5   : > { %5849 = vmatprep.mubr.msk.bf16.mxu0 %vm265_vm0, %v4804_v26  ;;  %5865 = vmatprep.mubr.msk.bf16.mxu1 %vm265_vm0, %v4812_v50 }
 0x5ac   : > { %5850 = vmatmul.mubr.msk.bf16.gmra.mxu0 %vm265_vm0, %v4805_v19  ;;  %5866 = vmatmul.mubr.msk.bf16.gmra.mxu1 %vm265_vm0, %v4813_v20 }
 0x5ad   : > { %5853 = vmatprep.mubr.msk.bf16.mxu0 %vm265_vm0, %v4806_v16  ;;  %5869 = vmatprep.mubr.msk.bf16.mxu1 %vm265_vm0, %v4814_v41 }
 0x5b4   : > { %5854 = vmatmul.mubr.msk.bf16.gmra.mxu0 %vm265_vm0, %v4807_v61  ;;  %5870 = vmatmul.mubr.msk.bf16.gmra.mxu1 %vm265_vm0, %v4815_v55 }
 0x65c   : > { %v5843_v35 = vpop.f32.mrf.mxu0  ;;  %v5859_v49 = vpop.f32.mrf.mxu1 }
 0x65d   : > { %v4932_v32 = vadd.f32 %v5843_v35, %v9312_v36  ;;  %v4996_v9 = vadd.f32 %v5859_v49, %v9312_v36 }
 0x65e   : > { %v4923_v10 = vpop.f32.mrf.mxu0  ;;  %v4987_v52 = vpop.f32.mrf.mxu1 }
 0x65f   : > { %v5052_v5 = vmax.f32 %v4932_v32, 0.0  ;;  %v5068_v38 = vmax.f32 %v4996_v9, 0.0  ;;  %v4924_v28 = vadd.f32 %v9312_v36, %v4923_v10  ;;  %v4988_v18 = vadd.f32 %v9312_v36, %v4987_v52 }
 0x660   : > { %v5844_v8 = vpop.f32.mrf.mxu0  ;;  %v5860_v6 = vpop.f32.mrf.mxu1 }
 0x661   : > { %v5084_v7 = vadd.f32 %v5052_v5, %v9207_v22  ;;  %v5100_v44 = vadd.f32 %v5068_v38, %v9213_v48  ;;  %v5050_v56 = vmax.f32 %v4924_v28, 0.0  ;;  %v5066_v37 = vmax.f32 %v4988_v18, 0.0 }
 0x662   : > { %v4935_v25 = vadd.f32 %v5844_v8, %v9312_v36  ;;  %v4999_v17 = vadd.f32 %v5860_v6, %v9312_v36  ;;  %v4926_v51 = vpop.f32.mrf.mxu0  ;;  %v4990_v63 = vpop.f32.mrf.mxu1 }
 0x663   : > { %5116 = vst.msk [vmem:[#allocation2 + $0x10] sm:$0xff] %vm265_vm0, %v5084_v7  ;;  %5132 = vst.msk [vmem:[#allocation2 + $0x90] sm:$0xff] %vm265_vm0, %v5100_v44  ;;  %v5082_v1 = vadd.f32 %v5050_v56, %v9197_v59  ;;  %v5098_v11 = vadd.f32 %v5066_v37, %v9201_v42  ;;  %v4927_v22 = vadd.f32 %v9312_v36, %v4926_v51 }
 0x664   : > { %v4991_v48 = vadd.f32 %v9312_v36, %v4990_v63  ;;  %v5053_v14 = vmax.f32 %v4935_v25, 0.0  ;;  %v5069_v26 = vmax.f32 %v4999_v17, 0.0  ;;  %v5847_v50 = vpop.f32.mrf.mxu0  ;;  %v5863_v19 = vpop.f32.mrf.mxu1 }
 0x665   : > { %5114 = vst.msk [vmem:[#allocation2] sm:$0xff] %vm265_vm0, %v5082_v1  ;;  %5130 = vst.msk [vmem:[#allocation2 + $0x80] sm:$0xff] %vm265_vm0, %v5098_v11  ;;  %v5051_v20 = vmax.f32 %v4927_v22, 0.0  ;;  %v4948_v41 = vadd.f32 %v5847_v50, %v9312_v36  ;;  %v5012_v59 = vadd.f32 %v5863_v19, %v9312_v36 }
 0x666   : > { %v5067_v16 = vmax.f32 %v4991_v48, 0.0  ;;  %v5085_v42 = vadd.f32 %v5053_v14, %v9209_v31  ;;  %v5101_v61 = vadd.f32 %v5069_v26, %v9215_v12  ;;  %v4939_v55 = vpop.f32.mrf.mxu0  ;;  %v5003_v35 = vpop.f32.mrf.mxu1 }
 0x667   : > { %v5083_v49 = vadd.f32 %v5051_v20, %v9199_v4  ;;  %v5056_v9 = vmax.f32 %v4948_v41, 0.0  ;;  %v5072_v10 = vmax.f32 %v5012_v59, 0.0  ;;  %v4940_v52 = vadd.f32 %v9312_v36, %v4939_v55 }
 0x668   : > { %v5099_v32 = vadd.f32 %v5067_v16, %v9205_v0  ;;  %5117 = vst.msk [vmem:[#allocation2 + $0x18] sm:$0xff] %vm265_vm0, %v5085_v42  ;;  %5133 = vst.msk [vmem:[#allocation2 + $0x98] sm:$0xff] %vm265_vm0, %v5101_v61  ;;  %v5004_v5 = vadd.f32 %v9312_v36, %v5003_v35  ;;  %v5848_v38 = vpop.f32.mrf.mxu0  ;;  %v5864_v31 = vpop.f32.mrf.mxu1 }
 0x669   : > { %5115 = vst.msk [vmem:[#allocation2 + $0x8] sm:$0xff] %vm265_vm0, %v5083_v49  ;;  %v5088_v4 = vadd.f32 %v5056_v9, %v9237_v29  ;;  %v5104_v0 = vadd.f32 %v5072_v10, %v9243_v23  ;;  %v4951_v12 = vadd.f32 %v5848_v38, %v9312_v36  ;;  %v5015_v28 = vadd.f32 %v5864_v31, %v9312_v36 }
 0x66a   : > { %5131 = vst.msk [vmem:[#allocation2 + $0x88] sm:$0xff] %vm265_vm0, %v5099_v32  ;;  %v5054_v18 = vmax.f32 %v4940_v52, 0.0  ;;  %v5070_v8 = vmax.f32 %v5004_v5, 0.0  ;;  %v4942_v6 = vpop.f32.mrf.mxu0  ;;  %v5006_v7 = vpop.f32.mrf.mxu1 }
 0x66b   : > { %5120 = vst.msk [vmem:[#allocation2 + $0x30] sm:$0xff] %vm265_vm0, %v5088_v4  ;;  %5136 = vst.msk [vmem:[#allocation2 + $0xb0] sm:$0xff] %vm265_vm0, %v5104_v0  ;;  %v5057_v44 = vmax.f32 %v4951_v12, 0.0  ;;  %v5073_v56 = vmax.f32 %v5015_v28, 0.0  ;;  %v4943_v37 = vadd.f32 %v9312_v36, %v4942_v6  ;;  %v5007_v29 = vadd.f32 %v9312_v36, %v5006_v7 }
 0x66c   : > { %v5086_v23 = vadd.f32 %v5054_v18, %v9217_v47  ;;  %v5102_v25 = vadd.f32 %v5070_v8, %v9222_v45  ;;  %v5851_v17 = vpop.f32.mrf.mxu0  ;;  %v5867_v51 = vpop.f32.mrf.mxu1 }
 0x66d   : > { %v5089_v63 = vadd.f32 %v5057_v44, %v9239_v27  ;;  %v5105_v1 = vadd.f32 %v5073_v56, %v9245_v15  ;;  %v5055_v11 = vmax.f32 %v4943_v37, 0.0  ;;  %v5071_v22 = vmax.f32 %v5007_v29, 0.0 }
 0x66e   : > { %5118 = vst.msk [vmem:[#allocation2 + $0x20] sm:$0xff] %vm265_vm0, %v5086_v23  ;;  %5134 = vst.msk [vmem:[#allocation2 + $0xa0] sm:$0xff] %vm265_vm0, %v5102_v25  ;;  %v4964_v48 = vadd.f32 %v5851_v17, %v9312_v36  ;;  %v5028_v14 = vadd.f32 %v5867_v51, %v9312_v36  ;;  %v4955_v26 = vpop.f32.mrf.mxu0  ;;  %v5019_v47 = vpop.f32.mrf.mxu1 }
 0x66f   : > { %5121 = vst.msk [vmem:[#allocation2 + $0x38] sm:$0xff] %vm265_vm0, %v5089_v63  ;;  %5137 = vst.msk [vmem:[#allocation2 + $0xb8] sm:$0xff] %vm265_vm0, %v5105_v1  ;;  %v5087_v45 = vadd.f32 %v5055_v11, %v9220_v13  ;;  %v5103_v27 = vadd.f32 %v5071_v22, %v9224_v24  ;;  %v4956_v15 = vadd.f32 %v9312_v36, %v4955_v26 }
 0x670   : > { %v5020_v50 = vadd.f32 %v9312_v36, %v5019_v47  ;;  %v5060_v19 = vmax.f32 %v4964_v48, 0.0  ;;  %v5076_v20 = vmax.f32 %v5028_v14, 0.0  ;;  %v5852_v16 = vpop.f32.mrf.mxu0  ;;  %v5868_v41 = vpop.f32.mrf.mxu1 }
 0x671   : > { %5119 = vst.msk [vmem:[#allocation2 + $0x28] sm:$0xff] %vm265_vm0, %v5087_v45  ;;  %5135 = vst.msk [vmem:[#allocation2 + $0xa8] sm:$0xff] %vm265_vm0, %v5103_v27  ;;  %v5058_v59 = vmax.f32 %v4956_v15, 0.0  ;;  %v4967_v61 = vadd.f32 %v5852_v16, %v9312_v36  ;;  %v5031_v13 = vadd.f32 %v5868_v41, %v9312_v36 }
 0x672   : > { %v5074_v42 = vmax.f32 %v5020_v50, 0.0  ;;  %v5092_v24 = vadd.f32 %v5060_v19, %v9265_v62  ;;  %v5108_v55 = vadd.f32 %v5076_v20, %v9271_v34  ;;  %v4958_v35 = vpop.f32.mrf.mxu0  ;;  %v5022_v49 = vpop.f32.mrf.mxu1 }
 0x673   : > { %v5090_v32 = vadd.f32 %v5058_v59, %v9247_v33  ;;  %v5061_v10 = vmax.f32 %v4967_v61, 0.0  ;;  %v5077_v52 = vmax.f32 %v5031_v13, 0.0  ;;  %v4959_v5 = vadd.f32 %v9312_v36, %v4958_v35 }
 0x674   : > { %v5106_v9 = vadd.f32 %v5074_v42, %v9251_v3  ;;  %5124 = vst.msk [vmem:[#allocation2 + $0x50] sm:$0xff] %vm265_vm0, %v5092_v24  ;;  %5140 = vst.msk [vmem:[#allocation2 + $0xd0] sm:$0xff] %vm265_vm0, %v5108_v55  ;;  %v5023_v38 = vadd.f32 %v9312_v36, %v5022_v49  ;;  %v5855_v31 = vpop.f32.mrf.mxu0  ;;  %v5871_v62 = vpop.f32.mrf.mxu1 }
 0x675   : > { %5122 = vst.msk [vmem:[#allocation2 + $0x40] sm:$0xff] %vm265_vm0, %v5090_v32  ;;  %v5093_v33 = vadd.f32 %v5061_v10, %v9267_v53  ;;  %v5109_v3 = vadd.f32 %v5077_v52, %v9273_v58  ;;  %v4980_v34 = vadd.f32 %v5855_v31, %v9312_v36  ;;  %v5044_v4 = vadd.f32 %v5871_v62, %v9312_v36 }
 0x676   : > { %5138 = vst.msk [vmem:[#allocation2 + $0xc0] sm:$0xff] %vm265_vm0, %v5106_v9  ;;  %v5059_v0 = vmax.f32 %v4959_v5, 0.0  ;;  %v5075_v12 = vmax.f32 %v5023_v38, 0.0  ;;  %v4971_v28 = vpop.f32.mrf.mxu0  ;;  %v5035_v18 = vpop.f32.mrf.mxu1 }
 0x677   : > { %5125 = vst.msk [vmem:[#allocation2 + $0x58] sm:$0xff] %vm265_vm0, %v5093_v33  ;;  %5141 = vst.msk [vmem:[#allocation2 + $0xd8] sm:$0xff] %vm265_vm0, %v5109_v3  ;;  %v5064_v8 = vmax.f32 %v4980_v34, 0.0  ;;  %v5080_v6 = vmax.f32 %v5044_v4, 0.0  ;;  %v4972_v7 = vadd.f32 %v9312_v36, %v4971_v28  ;;  %v5036_v53 = vadd.f32 %v9312_v36, %v5035_v18 }
 0x678   : > { %v5091_v58 = vadd.f32 %v5059_v0, %v9249_v54  ;;  %v5107_v44 = vadd.f32 %v5075_v12, %v9253_v43  ;;  %v5856_v56 = vpop.f32.mrf.mxu0  ;;  %v5872_v37 = vpop.f32.mrf.mxu1 }
 0x679   : > { %v5096_v29 = vadd.f32 %v5064_v8, %v9293_v21  ;;  %v5112_v23 = vadd.f32 %v5080_v6, %v9299_v40  ;;  %v5062_v25 = vmax.f32 %v4972_v7, 0.0  ;;  %v5078_v17 = vmax.f32 %v5036_v53, 0.0 }
 0x67a   : > { %5123 = vst.msk [vmem:[#allocation2 + $0x48] sm:$0xff] %vm265_vm0, %v5091_v58  ;;  %5139 = vst.msk [vmem:[#allocation2 + $0xc8] sm:$0xff] %vm265_vm0, %v5107_v44  ;;  %v4983_v51 = vadd.f32 %v5856_v56, %v9312_v36  ;;  %v5047_v63 = vadd.f32 %v5872_v37, %v9312_v36  ;;  %v4974_v1 = vpop.f32.mrf.mxu0  ;;  %v5038_v54 = vpop.f32.mrf.mxu1 }
 0x67b   : > { %5128 = vst.msk [vmem:[#allocation2 + $0x70] sm:$0xff] %vm265_vm0, %v5096_v29  ;;  %5144 = vst.msk [vmem:[#allocation2 + $0xf0] sm:$0xff] %vm265_vm0, %v5112_v23  ;;  %v5094_v43 = vadd.f32 %v5062_v25, %v9275_v60  ;;  %v5110_v21 = vadd.f32 %v5078_v17, %v9279_v2  ;;  %v4975_v40 = vadd.f32 %v9312_v36, %v4974_v1 }
 0x67c   : > { %v5039_v11 = vadd.f32 %v9312_v36, %v5038_v54  ;;  %v5065_v22 = vmax.f32 %v4983_v51, 0.0  ;;  %v5081_v48 = vmax.f32 %v5047_v63, 0.0 }
 0x67d   : > { %5126 = vst.msk [vmem:[#allocation2 + $0x60] sm:$0xff] %vm265_vm0, %v5094_v43  ;;  %5142 = vst.msk [vmem:[#allocation2 + $0xe0] sm:$0xff] %vm265_vm0, %v5110_v21  ;;  %v5063_v14 = vmax.f32 %v4975_v40, 0.0 }
 0x67e   : > { %v5079_v26 = vmax.f32 %v5039_v11, 0.0  ;;  %v5097_v47 = vadd.f32 %v5065_v22, %v9297_v57  ;;  %v5113_v45 = vadd.f32 %v5081_v48, %v9301_v39 }
 0x67f   : > { %v5095_v60 = vadd.f32 %v5063_v14, %v9277_v46 }
 0x680   : > { %v5111_v2 = vadd.f32 %v5079_v26, %v9281_v30  ;;  %5129 = vst.msk [vmem:[#allocation2 + $0x78] sm:$0xff] %vm265_vm0, %v5097_v47  ;;  %5145 = vst.msk [vmem:[#allocation2 + $0xf8] sm:$0xff] %vm265_vm0, %v5113_v45 }
 0x681   : > { %5127 = vst.msk [vmem:[#allocation2 + $0x68] sm:$0xff] %vm265_vm0, %v5095_v60 }
 0x682   : > { %5143 = vst.msk [vmem:[#allocation2 + $0xe8] sm:$0xff] %vm265_vm0, %v5111_v2 }
 0x683 PF: > { %v5146_v36 = vld [vmem:[#allocation2] sm:$0xff]  ;;  %v5147_v46 = vld [vmem:[#allocation2 + $0x8] sm:$0xff]  ;;  %v5148_v30 = vld [vmem:[#allocation2 + $0x10] sm:$0xff] }
 0x684   : > { %5178 = vst.msk [vmem:[%s7032_s12] sm:$0xff] %vm265_vm0, %v5146_v36  ;;  %5179 = vst.msk [vmem:[%s7032_s12 + $0x8] sm:$0xff] %vm265_vm0, %v5147_v46  ;;  %v5149_v57 = vld [vmem:[#allocation2 + $0x18] sm:$0xff]  ;;  %v5150_v39 = vld [vmem:[#allocation2 + $0x20] sm:$0xff] }
 0x685   : > { %5180 = vst.msk [vmem:[%s7032_s12 + $0x10] sm:$0xff] %vm265_vm0, %v5148_v30  ;;  %v5151_v27 = vld [vmem:[#allocation2 + $0x28] sm:$0xff]  ;;  %5181 = vst.msk [vmem:[%s7032_s12 + $0x18] sm:$0xff] %vm265_vm0, %v5149_v57  ;;  %v5152_v15 = vld [vmem:[#allocation2 + $0x30] sm:$0xff] }
 0x686   : > { %5182 = vst.msk [vmem:[%s7032_s12 + $0x20] sm:$0xff] %vm265_vm0, %v5150_v39  ;;  %5183 = vst.msk [vmem:[%s7032_s12 + $0x28] sm:$0xff] %vm265_vm0, %v5151_v27  ;;  %v5153_v50 = vld [vmem:[#allocation2 + $0x38] sm:$0xff]  ;;  %v5154_v19 = vld [vmem:[#allocation2 + $0x40] sm:$0xff] }
 0x687   : > { %5184 = vst.msk [vmem:[%s7032_s12 + $0x30] sm:$0xff] %vm265_vm0, %v5152_v15  ;;  %5185 = vst.msk [vmem:[%s7032_s12 + $0x38] sm:$0xff] %vm265_vm0, %v5153_v50  ;;  %v5155_v20 = vld [vmem:[#allocation2 + $0x48] sm:$0xff]  ;;  %v5156_v16 = vld [vmem:[#allocation2 + $0x50] sm:$0xff] }
 0x688   : > { %5186 = vst.msk [vmem:[%s7032_s12 + $0x40] sm:$0xff] %vm265_vm0, %v5154_v19  ;;  %v5157_v41 = vld [vmem:[#allocation2 + $0x58] sm:$0xff]  ;;  %5187 = vst.msk [vmem:[%s7032_s12 + $0x48] sm:$0xff] %vm265_vm0, %v5155_v20  ;;  %v5158_v59 = vld [vmem:[#allocation2 + $0x60] sm:$0xff] }
 0x689   : > { %5188 = vst.msk [vmem:[%s7032_s12 + $0x50] sm:$0xff] %vm265_vm0, %v5156_v16  ;;  %5189 = vst.msk [vmem:[%s7032_s12 + $0x58] sm:$0xff] %vm265_vm0, %v5157_v41  ;;  %v5159_v42 = vld [vmem:[#allocation2 + $0x68] sm:$0xff]  ;;  %v5160_v61 = vld [vmem:[#allocation2 + $0x70] sm:$0xff] }
 0x68a   : > { %5190 = vst.msk [vmem:[%s7032_s12 + $0x60] sm:$0xff] %vm265_vm0, %v5158_v59  ;;  %5191 = vst.msk [vmem:[%s7032_s12 + $0x68] sm:$0xff] %vm265_vm0, %v5159_v42  ;;  %v5161_v13 = vld [vmem:[#allocation2 + $0x78] sm:$0xff]  ;;  %v5162_v24 = vld [vmem:[#allocation2 + $0x80] sm:$0xff] }
 0x68b   : > { %5192 = vst.msk [vmem:[%s7032_s12 + $0x70] sm:$0xff] %vm265_vm0, %v5160_v61  ;;  %v5163_v55 = vld [vmem:[#allocation2 + $0x88] sm:$0xff]  ;;  %5193 = vst.msk [vmem:[%s7032_s12 + $0x78] sm:$0xff] %vm265_vm0, %v5161_v13  ;;  %v5164_v35 = vld [vmem:[#allocation2 + $0x90] sm:$0xff] }
 0x68c   : > { %5194 = vst.msk [vmem:[%s7032_s12 + $0x80] sm:$0xff] %vm265_vm0, %v5162_v24  ;;  %5195 = vst.msk [vmem:[%s7032_s12 + $0x88] sm:$0xff] %vm265_vm0, %v5163_v55  ;;  %v5165_v49 = vld [vmem:[#allocation2 + $0x98] sm:$0xff]  ;;  %v5166_v32 = vld [vmem:[#allocation2 + $0xa0] sm:$0xff] }
 0x68d   : > { %5196 = vst.msk [vmem:[%s7032_s12 + $0x90] sm:$0xff] %vm265_vm0, %v5164_v35  ;;  %5197 = vst.msk [vmem:[%s7032_s12 + $0x98] sm:$0xff] %vm265_vm0, %v5165_v49  ;;  %v5167_v9 = vld [vmem:[#allocation2 + $0xa8] sm:$0xff]  ;;  %v5168_v10 = vld [vmem:[#allocation2 + $0xb0] sm:$0xff] }
 0x68e   : > { %5198 = vst.msk [vmem:[%s7032_s12 + $0xa0] sm:$0xff] %vm265_vm0, %v5166_v32  ;;  %v5169_v52 = vld [vmem:[#allocation2 + $0xb8] sm:$0xff]  ;;  %5199 = vst.msk [vmem:[%s7032_s12 + $0xa8] sm:$0xff] %vm265_vm0, %v5167_v9  ;;  %v5170_v5 = vld [vmem:[#allocation2 + $0xc0] sm:$0xff] }
 0x68f   : > { %5200 = vst.msk [vmem:[%s7032_s12 + $0xb0] sm:$0xff] %vm265_vm0, %v5168_v10  ;;  %5201 = vst.msk [vmem:[%s7032_s12 + $0xb8] sm:$0xff] %vm265_vm0, %v5169_v52  ;;  %v5171_v38 = vld [vmem:[#allocation2 + $0xc8] sm:$0xff]  ;;  %v5172_v31 = vld [vmem:[#allocation2 + $0xd0] sm:$0xff] }
 0x690   : > { %5202 = vst.msk [vmem:[%s7032_s12 + $0xc0] sm:$0xff] %vm265_vm0, %v5170_v5  ;;  %5203 = vst.msk [vmem:[%s7032_s12 + $0xc8] sm:$0xff] %vm265_vm0, %v5171_v38  ;;  %v5173_v62 = vld [vmem:[#allocation2 + $0xd8] sm:$0xff]  ;;  %v5174_v33 = vld [vmem:[#allocation2 + $0xe0] sm:$0xff] }
 0x691   : > { %5204 = vst.msk [vmem:[%s7032_s12 + $0xd0] sm:$0xff] %vm265_vm0, %v5172_v31  ;;  %v5175_v3 = vld [vmem:[#allocation2 + $0xe8] sm:$0xff]  ;;  %5205 = vst.msk [vmem:[%s7032_s12 + $0xd8] sm:$0xff] %vm265_vm0, %v5173_v62  ;;  %v5176_v34 = vld [vmem:[#allocation2 + $0xf0] sm:$0xff] }
 0x692   : > { %5206 = vst.msk [vmem:[%s7032_s12 + $0xe0] sm:$0xff] %vm265_vm0, %v5174_v33  ;;  %5207 = vst.msk [vmem:[%s7032_s12 + $0xe8] sm:$0xff] %vm265_vm0, %v5175_v3  ;;  %v5177_v4 = vld [vmem:[#allocation2 + $0xf8] sm:$0xff] }
 0x693   : > { %5208 = vst.msk [vmem:[%s7032_s12 + $0xf0] sm:$0xff] %vm265_vm0, %v5176_v34  ;;  %5209 = vst.msk [vmem:[%s7032_s12 + $0xf8] sm:$0xff] %vm265_vm0, %v5177_v4 }
 0x694 PF: > { %s22_s26 = sadd.s32 1, %s6958_s26  }
 0x695   : > { %p19_p13 = scmp.ge.s32.totalorder %s22_s26, 4  }
 0x697   :  { %21 = sbr.rel (!%p19_p13) target bundleno = 16 (0x10), region = 94 }

</bundles_post_ra>
